<compile_context>
chip_gen: v6e
topology: v6e:2x2x1
jax: 0.10.0
libtpu: 0.0.40
codegen_flags: <defaults>
</compile_context>

<pallas_src>
import numpy as np
import jax
import jax.numpy as jnp
from jax import lax
from jax.experimental import pallas as pl
from jax.experimental.pallas import tpu as pltpu

EPS = 1e-5      # InstanceNorm2d default eps (affine=False, biased variance)
PADW = 8        # left/right halo width of the activation scratch (tile aligned)
K1 = 128        # conv1 im2col contraction depth (9 taps zero-padded to 128)


# ------------------------------ fused kernel ---------------------------------

def resnet2_kernel(x1_ref, w1_ref, b1_ref, w2_ref, b2_ref, w3_ref, b3_ref,
                   wfc_ref, bfc_ref, out_ref, act_ref, col_ref):
    """Fused conv1/2/3 + InstanceNorm + ReLU + FC for one batch element."""
    H = act_ref.shape[0] - 2
    W = act_ref.shape[1] - 2 * PADW
    C = act_ref.shape[2]
    HW = H * W
    NC = wfc_ref.shape[0]

    def inorm_relu(y):
        # per-channel biased mean/var over the HW rows, single pass over y
        s = jnp.sum(y, axis=0, keepdims=True)
        ss = jnp.sum(y * y, axis=0, keepdims=True)
        mean = s * (1.0 / HW)
        var = ss * (1.0 / HW) - mean * mean
        return jnp.maximum((y - mean) * lax.rsqrt(var + EPS), 0.0)

    def store_act(y):
        # write the (H, W, C) interior of the zero-bordered halo buffer;
        # column offset PADW=8 keeps this store sublane-tile aligned.
        act_ref[1:H + 1, PADW:PADW + W, :] = y.reshape(H, W, C)

    def conv3x3_deep(w_ref, b_ref):
        # build the (HW, 9*C) bf16 im2col slab, then ONE deep-K MXU matmul
        for t in range(9):
            dy, dx = divmod(t, 3)
            patch = act_ref[dy:dy + H, PADW - 1 + dx:PADW - 1 + dx + W, :]
            col_ref[:, t * C:(t + 1) * C] = patch.reshape(HW, C).astype(jnp.bfloat16)
        y = jnp.dot(col_ref[...], w_ref[...], preferred_element_type=jnp.float32)
        return inorm_relu(y + b_ref[...])

    # zero the halo buffer (border must be 0; interior is overwritten below)
    act_ref[...] = jnp.zeros_like(act_ref)

    # ---- conv1 (Cin=1): host-built 9-tap im2col, one small matmul ----------
    y = jnp.dot(x1_ref[0].astype(jnp.bfloat16), w1_ref[...],
                preferred_element_type=jnp.float32)
    y = inorm_relu(y + b1_ref[...])
    store_act(y)

    # ---- conv2 ---------------------------------------------------------------
    y = conv3x3_deep(w2_ref, b2_ref)
    store_act(y)

    # ---- conv3 (its output feeds the FC directly; no writeback needed) ------
    y = conv3x3_deep(w3_ref, b3_ref)

    # ---- FC folded into the epilogue: lane-dense f32 multiply + reduce ------
    lane = lax.broadcasted_iota(jnp.int32, (1, 128), 1)
    row = jnp.zeros((1, 128), jnp.float32)
    for j in range(NC):
        prod = y * wfc_ref[j]                                   # (HW, C) f32
        v = jnp.sum(jnp.sum(prod, axis=0, keepdims=True), axis=1, keepdims=True)
        row = jnp.where(lane == j, v, row)
    out_ref[...] = (row + bfc_ref[...]).reshape(1, 1, 128)


# --------------------------------- wrapper ------------------------------------

def resnet2_forward(x_nchw, p):
    N, Cin, H, W = x_nchw.shape
    assert Cin == 1
    C = p["w1"].shape[-1]
    NC = p["wfc"].shape[-1]
    assert NC <= 128
    HW = H * W

    # tiny host-side glue: 9-tap im2col of the single-channel input (K -> 128)
    xp = jnp.pad(x_nchw[:, 0], ((0, 0), (1, 1), (1, 1)))
    taps = [xp[:, dy:dy + H, dx:dx + W] for dy in range(3) for dx in range(3)]
    x1 = jnp.stack(taps, axis=-1).reshape(N, HW, 9)
    x1 = jnp.pad(x1, ((0, 0), (0, 0), (0, K1 - 9))).astype(jnp.float32)

    # weights reshaped once into kernel-friendly layouts (bf16 for MXU operands)
    w1m = jnp.pad(p["w1"].reshape(9, C), ((0, K1 - 9), (0, 0))).astype(jnp.bfloat16)
    w2m = p["w2"].reshape(9 * C, C).astype(jnp.bfloat16)
    w3m = p["w3"].reshape(9 * C, C).astype(jnp.bfloat16)
    b1r = p["b1"].reshape(1, C).astype(jnp.float32)
    b2r = p["b2"].reshape(1, C).astype(jnp.float32)
    b3r = p["b3"].reshape(1, C).astype(jnp.float32)
    # permute fc rows (torch NCHW flatten order: c*H*W + h*W + w) into (h*W+w, c)
    wfcp = (p["wfc"].T.reshape(NC, C, H, W).transpose(0, 2, 3, 1)
            .reshape(NC, HW, C).astype(jnp.float32))
    bfcp = jnp.zeros((1, 128), jnp.float32).at[0, :NC].set(p["bfc"].astype(jnp.float32))

    out = pl.pallas_call(
        resnet2_kernel,
        out_shape=jax.ShapeDtypeStruct((N, 1, 128), jnp.float32),
        grid_spec=pltpu.PrefetchScalarGridSpec(
            num_scalar_prefetch=0,
            grid=(N,),
            in_specs=[
                pl.BlockSpec((1, HW, K1), lambda n: (n, 0, 0)),      # conv1 im2col
                pl.BlockSpec((K1, C), lambda n: (0, 0)),             # w1
                pl.BlockSpec((1, C), lambda n: (0, 0)),              # b1
                pl.BlockSpec((9 * C, C), lambda n: (0, 0)),          # w2
                pl.BlockSpec((1, C), lambda n: (0, 0)),              # b2
                pl.BlockSpec((9 * C, C), lambda n: (0, 0)),          # w3
                pl.BlockSpec((1, C), lambda n: (0, 0)),              # b3
                pl.BlockSpec((NC, HW, C), lambda n: (0, 0, 0)),      # wfc (permuted)
                pl.BlockSpec((1, 128), lambda n: (0, 0)),            # bfc (lane-padded)
            ],
            out_specs=pl.BlockSpec((1, 1, 128), lambda n: (n, 0, 0)),
            scratch_shapes=[
                pltpu.VMEM((H + 2, W + 2 * PADW, C), jnp.float32),   # halo activation
                pltpu.VMEM((HW, 9 * C), jnp.bfloat16),               # im2col slab
            ],
        ),
        compiler_params=pltpu.CompilerParams(dimension_semantics=("parallel",)),
    )(x1, w1m, b1r, w2m, b2r, w3m, b3r, wfcp, bfcp)
    return out[:, 0, :NC]


# ------------------------------ pure-JAX ref -----------------------------------

def ref_forward(x_nchw, p):
    def conv(x, w, b):
        w_oihw = jnp.transpose(w, (3, 2, 0, 1))                  # HWIO -> OIHW
        y = lax.conv_general_dilated(x, w_oihw, (1, 1), ((1, 1), (1, 1)),
                                     dimension_numbers=("NCHW", "OIHW", "NCHW"),
                                     precision=lax.Precision.HIGHEST)
        return y + b[None, :, None, None]

    def inorm_relu(x):
        m = x.mean(axis=(2, 3), keepdims=True)
        v = ((x - m) ** 2).mean(axis=(2, 3), keepdims=True)
        return jnp.maximum((x - m) * lax.rsqrt(v + EPS), 0.0)

    h = inorm_relu(conv(x_nchw, p["w1"], p["b1"]))
    h = inorm_relu(conv(h, p["w2"], p["b2"]))
    h = inorm_relu(conv(h, p["w3"], p["b3"]))
    flat = h.reshape(h.shape[0], -1)                             # torch .view(N,-1)
    return jnp.dot(flat, p["wfc"], precision=lax.Precision.HIGHEST) + p["bfc"][None, :]


# ---------------------------------- main ---------------------------------------

if __name__ == "__main__":
    N, H, W = 2, 16, 16
    C = 128                      # channel width mandated by the module
    NUM_CLASSES = 1
    K = C * H * W                # fc in_features = C*H*W (see note at top)

    key = jax.random.PRNGKey(0)
    ks = jax.random.split(key, 9)
    params = dict(
        w1=jax.random.normal(ks[0], (3, 3, 1, C), jnp.float32) * 0.2,
        b1=jax.random.normal(ks[1], (C,), jnp.float32) * 0.1,
        w2=jax.random.normal(ks[2], (3, 3, C, C), jnp.float32) * (1.0 / np.sqrt(9 * C)),
        b2=jax.random.normal(ks[3], (C,), jnp.float32) * 0.1,
        w3=jax.random.normal(ks[4], (3, 3, C, C), jnp.float32) * (1.0 / np.sqrt(9 * C)),
        b3=jax.random.normal(ks[5], (C,), jnp.float32) * 0.1,
        wfc=jax.random.normal(ks[6], (K, NUM_CLASSES), jnp.float32) * 0.01,
        bfc=jax.random.normal(ks[7], (NUM_CLASSES,), jnp.float32) * 0.01,
    )

    x = jax.random.normal(ks[8], (N, 1, H, W), jnp.float32)      # NCHW like PyTorch

    fwd = jax.jit(resnet2_forward)
    out = jax.block_until_ready(fwd(x, params))
    ref = jax.block_until_ready(ref_forward(x, params))

    assert out.shape == (N, NUM_CLASSES)
    np.testing.assert_allclose(np.asarray(out), np.asarray(ref), rtol=5e-2, atol=5e-2)
    print("KERNEL_OK")
</pallas_src>

<mosaic_0001>
module attributes {stable_mosaic.version = 11 : i64} {
  func.func @resnet2_kernel(%arg0: i32, %arg1: memref<1x256x128xf32, #tpu.memory_space<vmem>>, %arg2: memref<128x128xbf16, #tpu.memory_space<vmem>>, %arg3: memref<1x128xf32, #tpu.memory_space<vmem>>, %arg4: memref<1152x128xbf16, #tpu.memory_space<vmem>>, %arg5: memref<1x128xf32, #tpu.memory_space<vmem>>, %arg6: memref<1152x128xbf16, #tpu.memory_space<vmem>>, %arg7: memref<1x128xf32, #tpu.memory_space<vmem>>, %arg8: memref<1x256x128xf32, #tpu.memory_space<vmem>>, %arg9: memref<1x128xf32, #tpu.memory_space<vmem>>, %arg10: memref<1x1x128xf32, #tpu.memory_space<vmem>>, %arg11: memref<18x32x128xf32, #tpu.memory_space<vmem>>, %arg12: memref<256x1152xbf16, #tpu.memory_space<vmem>>) attributes {dimension_semantics = [#tpu.dimension_semantics<parallel>], iteration_bounds = array<i64: 2>, scalar_prefetch = 0 : i64, scratch_operands = 2 : i64, tpu.core_type = #tpu.core_type<tc>, window_params = [{transform_indices = @transform_0, window_bounds = array<i64: 1, 256, 128>}, {pipeline_mode = #tpu.pipeline_mode<synchronous>, transform_indices = @transform_1, window_bounds = array<i64: 128, 128>}, {pipeline_mode = #tpu.pipeline_mode<synchronous>, transform_indices = @transform_2, window_bounds = array<i64: 1, 128>}, {pipeline_mode = #tpu.pipeline_mode<synchronous>, transform_indices = @transform_3, window_bounds = array<i64: 1152, 128>}, {pipeline_mode = #tpu.pipeline_mode<synchronous>, transform_indices = @transform_4, window_bounds = array<i64: 1, 128>}, {pipeline_mode = #tpu.pipeline_mode<synchronous>, transform_indices = @transform_5, window_bounds = array<i64: 1152, 128>}, {pipeline_mode = #tpu.pipeline_mode<synchronous>, transform_indices = @transform_6, window_bounds = array<i64: 1, 128>}, {pipeline_mode = #tpu.pipeline_mode<synchronous>, transform_indices = @transform_7, window_bounds = array<i64: 1, 256, 128>}, {pipeline_mode = #tpu.pipeline_mode<synchronous>, transform_indices = @transform_8, window_bounds = array<i64: 1, 128>}, {transform_indices = @transform_9, window_bounds = array<i64: 1, 1, 128>}]} {
    %cst = arith.constant 0.000000e+00 : f32
    %0 = vector.broadcast %cst : f32 to vector<18x32x128xf32>
    %c0 = arith.constant 0 : index
    %c0_0 = arith.constant 0 : index
    %c0_1 = arith.constant 0 : index
    %1 = vector.load %arg11[%c0, %c0_0, %c0_1] : memref<18x32x128xf32, #tpu.memory_space<vmem>>, vector<18x32x128xf32>
    tpu.vector_store %arg11[%c0, %c0_0, %c0_1], %0 {strides = array<i32>} : memref<18x32x128xf32, #tpu.memory_space<vmem>>, vector<18x32x128xf32>,
    %c0_2 = arith.constant 0 : index
    %c0_3 = arith.constant 0 : index
    %c0_4 = arith.constant 0 : index
    %2 = vector.load %arg1[%c0_2, %c0_3, %c0_4] : memref<1x256x128xf32, #tpu.memory_space<vmem>>, vector<1x256x128xf32>
    %3 = vector.shape_cast %2 : vector<1x256x128xf32> to vector<256x128xf32>
    %4 = arith.truncf %3 : vector<256x128xf32> to vector<256x128xbf16>
    %c0_5 = arith.constant 0 : index
    %c0_6 = arith.constant 0 : index
    %5 = vector.load %arg2[%c0_5, %c0_6] : memref<128x128xbf16, #tpu.memory_space<vmem>>, vector<128x128xbf16>
    %cst_7 = arith.constant dense<0.000000e+00> : vector<256x128xf32>
    %6 = tpu.matmul %4, %5, %cst_7 {dimension_numbers = #tpu.dot_dimension_numbers<[1], [0], [0], [1], [0, 0, 1, 1], [], []>} : vector<256x128xbf16>, vector<128x128xbf16>, vector<256x128xf32> -> vector<256x128xf32>
    %c0_8 = arith.constant 0 : index
    %c0_9 = arith.constant 0 : index
    %7 = vector.load %arg3[%c0_8, %c0_9] : memref<1x128xf32, #tpu.memory_space<vmem>>, vector<1x128xf32>
    %8 = vector.broadcast %7 : vector<1x128xf32> to vector<256x128xf32>
    %9 = arith.addf %6, %8 : vector<256x128xf32>
    %cst_10 = arith.constant dense<0.000000e+00> : vector<128xf32>
    %10 = vector.multi_reduction <add>, %9, %cst_10 [0] : vector<256x128xf32> to vector<128xf32>
    %11 = vector.shape_cast %10 : vector<128xf32> to vector<1x128xf32>
    %12 = arith.mulf %9, %9 : vector<256x128xf32>
    %cst_11 = arith.constant dense<0.000000e+00> : vector<128xf32>
    %13 = vector.multi_reduction <add>, %12, %cst_11 [0] : vector<256x128xf32> to vector<128xf32>
    %14 = vector.shape_cast %13 : vector<128xf32> to vector<1x128xf32>
    %cst_12 = arith.constant 3.906250e-03 : f32
    %15 = vector.broadcast %cst_12 : f32 to vector<1x128xf32>
    %16 = arith.mulf %11, %15 : vector<1x128xf32>
    %cst_13 = arith.constant 3.906250e-03 : f32
    %17 = vector.broadcast %cst_13 : f32 to vector<1x128xf32>
    %18 = arith.mulf %14, %17 : vector<1x128xf32>
    %19 = arith.mulf %16, %16 : vector<1x128xf32>
    %20 = arith.subf %18, %19 : vector<1x128xf32>
    %21 = vector.broadcast %16 : vector<1x128xf32> to vector<256x128xf32>
    %22 = arith.subf %9, %21 : vector<256x128xf32>
    %cst_14 = arith.constant 9.99999974E-6 : f32
    %23 = vector.broadcast %cst_14 : f32 to vector<1x128xf32>
    %24 = arith.addf %20, %23 : vector<1x128xf32>
    %25 = math.rsqrt %24 : vector<1x128xf32>
    %26 = vector.broadcast %25 : vector<1x128xf32> to vector<256x128xf32>
    %27 = arith.mulf %22, %26 : vector<256x128xf32>
    %cst_15 = arith.constant 0.000000e+00 : f32
    %28 = vector.broadcast %cst_15 : f32 to vector<256x128xf32>
    %29 = arith.maximumf %27, %28 : vector<256x128xf32>
    %30 = vector.shape_cast %29 : vector<256x128xf32> to vector<16x16x128xf32>
    %c1 = arith.constant 1 : index
    %c8 = arith.constant 8 : index
    %c0_16 = arith.constant 0 : index
    %31 = vector.load %arg11[%c1, %c8, %c0_16] : memref<18x32x128xf32, #tpu.memory_space<vmem>>, vector<16x16x128xf32>
    tpu.vector_store %arg11[%c1, %c8, %c0_16], %30 {strides = array<i32>} : memref<18x32x128xf32, #tpu.memory_space<vmem>>, vector<16x16x128xf32>,
    %c0_17 = arith.constant 0 : index
    %c7 = arith.constant 7 : index
    %c0_18 = arith.constant 0 : index
    %32 = vector.load %arg11[%c0_17, %c7, %c0_18] : memref<18x32x128xf32, #tpu.memory_space<vmem>>, vector<16x16x128xf32>
    %33 = vector.shape_cast %32 : vector<16x16x128xf32> to vector<256x128xf32>
    %34 = arith.truncf %33 : vector<256x128xf32> to vector<256x128xbf16>
    %c0_19 = arith.constant 0 : index
    %c0_20 = arith.constant 0 : index
    %35 = vector.load %arg12[%c0_19, %c0_20] : memref<256x1152xbf16, #tpu.memory_space<vmem>>, vector<256x128xbf16>
    tpu.vector_store %arg12[%c0_19, %c0_20], %34 {strides = array<i32>} : memref<256x1152xbf16, #tpu.memory_space<vmem>>, vector<256x128xbf16>,
    %c0_21 = arith.constant 0 : index
    %c8_22 = arith.constant 8 : index
    %c0_23 = arith.constant 0 : index
    %36 = vector.load %arg11[%c0_21, %c8_22, %c0_23] : memref<18x32x128xf32, #tpu.memory_space<vmem>>, vector<16x16x128xf32>
    %37 = vector.shape_cast %36 : vector<16x16x128xf32> to vector<256x128xf32>
    %38 = arith.truncf %37 : vector<256x128xf32> to vector<256x128xbf16>
    %c0_24 = arith.constant 0 : index
    %c128 = arith.constant 128 : index
    %39 = vector.load %arg12[%c0_24, %c128] : memref<256x1152xbf16, #tpu.memory_space<vmem>>, vector<256x128xbf16>
    tpu.vector_store %arg12[%c0_24, %c128], %38 {strides = array<i32>} : memref<256x1152xbf16, #tpu.memory_space<vmem>>, vector<256x128xbf16>,
    %c0_25 = arith.constant 0 : index
    %c9 = arith.constant 9 : index
    %c0_26 = arith.constant 0 : index
    %40 = vector.load %arg11[%c0_25, %c9, %c0_26] : memref<18x32x128xf32, #tpu.memory_space<vmem>>, vector<16x16x128xf32>
    %41 = vector.shape_cast %40 : vector<16x16x128xf32> to vector<256x128xf32>
    %42 = arith.truncf %41 : vector<256x128xf32> to vector<256x128xbf16>
    %c0_27 = arith.constant 0 : index
    %c256 = arith.constant 256 : index
    %43 = vector.load %arg12[%c0_27, %c256] : memref<256x1152xbf16, #tpu.memory_space<vmem>>, vector<256x128xbf16>
    tpu.vector_store %arg12[%c0_27, %c256], %42 {strides = array<i32>} : memref<256x1152xbf16, #tpu.memory_space<vmem>>, vector<256x128xbf16>,
    %c1_28 = arith.constant 1 : index
    %c7_29 = arith.constant 7 : index
    %c0_30 = arith.constant 0 : index
    %44 = vector.load %arg11[%c1_28, %c7_29, %c0_30] : memref<18x32x128xf32, #tpu.memory_space<vmem>>, vector<16x16x128xf32>
    %45 = vector.shape_cast %44 : vector<16x16x128xf32> to vector<256x128xf32>
    %46 = arith.truncf %45 : vector<256x128xf32> to vector<256x128xbf16>
    %c0_31 = arith.constant 0 : index
    %c384 = arith.constant 384 : index
    %47 = vector.load %arg12[%c0_31, %c384] : memref<256x1152xbf16, #tpu.memory_space<vmem>>, vector<256x128xbf16>
    tpu.vector_store %arg12[%c0_31, %c384], %46 {strides = array<i32>} : memref<256x1152xbf16, #tpu.memory_space<vmem>>, vector<256x128xbf16>,
    %c1_32 = arith.constant 1 : index
    %c8_33 = arith.constant 8 : index
    %c0_34 = arith.constant 0 : index
    %48 = vector.load %arg11[%c1_32, %c8_33, %c0_34] : memref<18x32x128xf32, #tpu.memory_space<vmem>>, vector<16x16x128xf32>
    %49 = vector.shape_cast %48 : vector<16x16x128xf32> to vector<256x128xf32>
    %50 = arith.truncf %49 : vector<256x128xf32> to vector<256x128xbf16>
    %c0_35 = arith.constant 0 : index
    %c512 = arith.constant 512 : index
    %51 = vector.load %arg12[%c0_35, %c512] : memref<256x1152xbf16, #tpu.memory_space<vmem>>, vector<256x128xbf16>
    tpu.vector_store %arg12[%c0_35, %c512], %50 {strides = array<i32>} : memref<256x1152xbf16, #tpu.memory_space<vmem>>, vector<256x128xbf16>,
    %c1_36 = arith.constant 1 : index
    %c9_37 = arith.constant 9 : index
    %c0_38 = arith.constant 0 : index
    %52 = vector.load %arg11[%c1_36, %c9_37, %c0_38] : memref<18x32x128xf32, #tpu.memory_space<vmem>>, vector<16x16x128xf32>
    %53 = vector.shape_cast %52 : vector<16x16x128xf32> to vector<256x128xf32>
    %54 = arith.truncf %53 : vector<256x128xf32> to vector<256x128xbf16>
    %c0_39 = arith.constant 0 : index
    %c640 = arith.constant 640 : index
    %55 = vector.load %arg12[%c0_39, %c640] : memref<256x1152xbf16, #tpu.memory_space<vmem>>, vector<256x128xbf16>
    tpu.vector_store %arg12[%c0_39, %c640], %54 {strides = array<i32>} : memref<256x1152xbf16, #tpu.memory_space<vmem>>, vector<256x128xbf16>,
    %c2 = arith.constant 2 : index
    %c7_40 = arith.constant 7 : index
    %c0_41 = arith.constant 0 : index
    %56 = vector.load %arg11[%c2, %c7_40, %c0_41] : memref<18x32x128xf32, #tpu.memory_space<vmem>>, vector<16x16x128xf32>
    %57 = vector.shape_cast %56 : vector<16x16x128xf32> to vector<256x128xf32>
    %58 = arith.truncf %57 : vector<256x128xf32> to vector<256x128xbf16>
    %c0_42 = arith.constant 0 : index
    %c768 = arith.constant 768 : index
    %59 = vector.load %arg12[%c0_42, %c768] : memref<256x1152xbf16, #tpu.memory_space<vmem>>, vector<256x128xbf16>
    tpu.vector_store %arg12[%c0_42, %c768], %58 {strides = array<i32>} : memref<256x1152xbf16, #tpu.memory_space<vmem>>, vector<256x128xbf16>,
    %c2_43 = arith.constant 2 : index
    %c8_44 = arith.constant 8 : index
    %c0_45 = arith.constant 0 : index
    %60 = vector.load %arg11[%c2_43, %c8_44, %c0_45] : memref<18x32x128xf32, #tpu.memory_space<vmem>>, vector<16x16x128xf32>
    %61 = vector.shape_cast %60 : vector<16x16x128xf32> to vector<256x128xf32>
    %62 = arith.truncf %61 : vector<256x128xf32> to vector<256x128xbf16>
    %c0_46 = arith.constant 0 : index
    %c896 = arith.constant 896 : index
    %63 = vector.load %arg12[%c0_46, %c896] : memref<256x1152xbf16, #tpu.memory_space<vmem>>, vector<256x128xbf16>
    tpu.vector_store %arg12[%c0_46, %c896], %62 {strides = array<i32>} : memref<256x1152xbf16, #tpu.memory_space<vmem>>, vector<256x128xbf16>,
    %c2_47 = arith.constant 2 : index
    %c9_48 = arith.constant 9 : index
    %c0_49 = arith.constant 0 : index
    %64 = vector.load %arg11[%c2_47, %c9_48, %c0_49] : memref<18x32x128xf32, #tpu.memory_space<vmem>>, vector<16x16x128xf32>
    %65 = vector.shape_cast %64 : vector<16x16x128xf32> to vector<256x128xf32>
    %66 = arith.truncf %65 : vector<256x128xf32> to vector<256x128xbf16>
    %c0_50 = arith.constant 0 : index
    %c1024 = arith.constant 1024 : index
    %67 = vector.load %arg12[%c0_50, %c1024] : memref<256x1152xbf16, #tpu.memory_space<vmem>>, vector<256x128xbf16>
    tpu.vector_store %arg12[%c0_50, %c1024], %66 {strides = array<i32>} : memref<256x1152xbf16, #tpu.memory_space<vmem>>, vector<256x128xbf16>,
    %c0_51 = arith.constant 0 : index
    %c0_52 = arith.constant 0 : index
    %68 = vector.load %arg12[%c0_51, %c0_52] : memref<256x1152xbf16, #tpu.memory_space<vmem>>, vector<256x1152xbf16>
    %c0_53 = arith.constant 0 : index
    %c0_54 = arith.constant 0 : index
    %69 = vector.load %arg4[%c0_53, %c0_54] : memref<1152x128xbf16, #tpu.memory_space<vmem>>, vector<1152x128xbf16>
    %cst_55 = arith.constant dense<0.000000e+00> : vector<256x128xf32>
    %70 = tpu.matmul %68, %69, %cst_55 {dimension_numbers = #tpu.dot_dimension_numbers<[1], [0], [0], [1], [0, 0, 1, 1], [], []>} : vector<256x1152xbf16>, vector<1152x128xbf16>, vector<256x128xf32> -> vector<256x128xf32>
    %c0_56 = arith.constant 0 : index
    %c0_57 = arith.constant 0 : index
    %71 = vector.load %arg5[%c0_56, %c0_57] : memref<1x128xf32, #tpu.memory_space<vmem>>, vector<1x128xf32>
    %72 = vector.broadcast %71 : vector<1x128xf32> to vector<256x128xf32>
    %73 = arith.addf %70, %72 : vector<256x128xf32>
    %cst_58 = arith.constant dense<0.000000e+00> : vector<128xf32>
    %74 = vector.multi_reduction <add>, %73, %cst_58 [0] : vector<256x128xf32> to vector<128xf32>
    %75 = vector.shape_cast %74 : vector<128xf32> to vector<1x128xf32>
    %76 = arith.mulf %73, %73 : vector<256x128xf32>
    %cst_59 = arith.constant dense<0.000000e+00> : vector<128xf32>
    %77 = vector.multi_reduction <add>, %76, %cst_59 [0] : vector<256x128xf32> to vector<128xf32>
    %78 = vector.shape_cast %77 : vector<128xf32> to vector<1x128xf32>
    %cst_60 = arith.constant 3.906250e-03 : f32
    %79 = vector.broadcast %cst_60 : f32 to vector<1x128xf32>
    %80 = arith.mulf %75, %79 : vector<1x128xf32>
    %cst_61 = arith.constant 3.906250e-03 : f32
    %81 = vector.broadcast %cst_61 : f32 to vector<1x128xf32>
    %82 = arith.mulf %78, %81 : vector<1x128xf32>
    %83 = arith.mulf %80, %80 : vector<1x128xf32>
    %84 = arith.subf %82, %83 : vector<1x128xf32>
    %85 = vector.broadcast %80 : vector<1x128xf32> to vector<256x128xf32>
    %86 = arith.subf %73, %85 : vector<256x128xf32>
    %cst_62 = arith.constant 9.99999974E-6 : f32
    %87 = vector.broadcast %cst_62 : f32 to vector<1x128xf32>
    %88 = arith.addf %84, %87 : vector<1x128xf32>
    %89 = math.rsqrt %88 : vector<1x128xf32>
    %90 = vector.broadcast %89 : vector<1x128xf32> to vector<256x128xf32>
    %91 = arith.mulf %86, %90 : vector<256x128xf32>
    %cst_63 = arith.constant 0.000000e+00 : f32
    %92 = vector.broadcast %cst_63 : f32 to vector<256x128xf32>
    %93 = arith.maximumf %91, %92 : vector<256x128xf32>
    %94 = vector.shape_cast %93 : vector<256x128xf32> to vector<16x16x128xf32>
    %c1_64 = arith.constant 1 : index
    %c8_65 = arith.constant 8 : index
    %c0_66 = arith.constant 0 : index
    %95 = vector.load %arg11[%c1_64, %c8_65, %c0_66] : memref<18x32x128xf32, #tpu.memory_space<vmem>>, vector<16x16x128xf32>
    tpu.vector_store %arg11[%c1_64, %c8_65, %c0_66], %94 {strides = array<i32>} : memref<18x32x128xf32, #tpu.memory_space<vmem>>, vector<16x16x128xf32>,
    %c0_67 = arith.constant 0 : index
    %c7_68 = arith.constant 7 : index
    %c0_69 = arith.constant 0 : index
    %96 = vector.load %arg11[%c0_67, %c7_68, %c0_69] : memref<18x32x128xf32, #tpu.memory_space<vmem>>, vector<16x16x128xf32>
    %97 = vector.shape_cast %96 : vector<16x16x128xf32> to vector<256x128xf32>
    %98 = arith.truncf %97 : vector<256x128xf32> to vector<256x128xbf16>
    %c0_70 = arith.constant 0 : index
    %c0_71 = arith.constant 0 : index
    %99 = vector.load %arg12[%c0_70, %c0_71] : memref<256x1152xbf16, #tpu.memory_space<vmem>>, vector<256x128xbf16>
    tpu.vector_store %arg12[%c0_70, %c0_71], %98 {strides = array<i32>} : memref<256x1152xbf16, #tpu.memory_space<vmem>>, vector<256x128xbf16>,
    %c0_72 = arith.constant 0 : index
    %c8_73 = arith.constant 8 : index
    %c0_74 = arith.constant 0 : index
    %100 = vector.load %arg11[%c0_72, %c8_73, %c0_74] : memref<18x32x128xf32, #tpu.memory_space<vmem>>, vector<16x16x128xf32>
    %101 = vector.shape_cast %100 : vector<16x16x128xf32> to vector<256x128xf32>
    %102 = arith.truncf %101 : vector<256x128xf32> to vector<256x128xbf16>
    %c0_75 = arith.constant 0 : index
    %c128_76 = arith.constant 128 : index
    %103 = vector.load %arg12[%c0_75, %c128_76] : memref<256x1152xbf16, #tpu.memory_space<vmem>>, vector<256x128xbf16>
    tpu.vector_store %arg12[%c0_75, %c128_76], %102 {strides = array<i32>} : memref<256x1152xbf16, #tpu.memory_space<vmem>>, vector<256x128xbf16>,
    %c0_77 = arith.constant 0 : index
    %c9_78 = arith.constant 9 : index
    %c0_79 = arith.constant 0 : index
    %104 = vector.load %arg11[%c0_77, %c9_78, %c0_79] : memref<18x32x128xf32, #tpu.memory_space<vmem>>, vector<16x16x128xf32>
    %105 = vector.shape_cast %104 : vector<16x16x128xf32> to vector<256x128xf32>
    %106 = arith.truncf %105 : vector<256x128xf32> to vector<256x128xbf16>
    %c0_80 = arith.constant 0 : index
    %c256_81 = arith.constant 256 : index
    %107 = vector.load %arg12[%c0_80, %c256_81] : memref<256x1152xbf16, #tpu.memory_space<vmem>>, vector<256x128xbf16>
    tpu.vector_store %arg12[%c0_80, %c256_81], %106 {strides = array<i32>} : memref<256x1152xbf16, #tpu.memory_space<vmem>>, vector<256x128xbf16>,
    %c1_82 = arith.constant 1 : index
    %c7_83 = arith.constant 7 : index
    %c0_84 = arith.constant 0 : index
    %108 = vector.load %arg11[%c1_82, %c7_83, %c0_84] : memref<18x32x128xf32, #tpu.memory_space<vmem>>, vector<16x16x128xf32>
    %109 = vector.shape_cast %108 : vector<16x16x128xf32> to vector<256x128xf32>
    %110 = arith.truncf %109 : vector<256x128xf32> to vector<256x128xbf16>
    %c0_85 = arith.constant 0 : index
    %c384_86 = arith.constant 384 : index
    %111 = vector.load %arg12[%c0_85, %c384_86] : memref<256x1152xbf16, #tpu.memory_space<vmem>>, vector<256x128xbf16>
    tpu.vector_store %arg12[%c0_85, %c384_86], %110 {strides = array<i32>} : memref<256x1152xbf16, #tpu.memory_space<vmem>>, vector<256x128xbf16>,
    %c1_87 = arith.constant 1 : index
    %c8_88 = arith.constant 8 : index
    %c0_89 = arith.constant 0 : index
    %112 = vector.load %arg11[%c1_87, %c8_88, %c0_89] : memref<18x32x128xf32, #tpu.memory_space<vmem>>, vector<16x16x128xf32>
    %113 = vector.shape_cast %112 : vector<16x16x128xf32> to vector<256x128xf32>
    %114 = arith.truncf %113 : vector<256x128xf32> to vector<256x128xbf16>
    %c0_90 = arith.constant 0 : index
    %c512_91 = arith.constant 512 : index
    %115 = vector.load %arg12[%c0_90, %c512_91] : memref<256x1152xbf16, #tpu.memory_space<vmem>>, vector<256x128xbf16>
    tpu.vector_store %arg12[%c0_90, %c512_91], %114 {strides = array<i32>} : memref<256x1152xbf16, #tpu.memory_space<vmem>>, vector<256x128xbf16>,
    %c1_92 = arith.constant 1 : index
    %c9_93 = arith.constant 9 : index
    %c0_94 = arith.constant 0 : index
    %116 = vector.load %arg11[%c1_92, %c9_93, %c0_94] : memref<18x32x128xf32, #tpu.memory_space<vmem>>, vector<16x16x128xf32>
    %117 = vector.shape_cast %116 : vector<16x16x128xf32> to vector<256x128xf32>
    %118 = arith.truncf %117 : vector<256x128xf32> to vector<256x128xbf16>
    %c0_95 = arith.constant 0 : index
    %c640_96 = arith.constant 640 : index
    %119 = vector.load %arg12[%c0_95, %c640_96] : memref<256x1152xbf16, #tpu.memory_space<vmem>>, vector<256x128xbf16>
    tpu.vector_store %arg12[%c0_95, %c640_96], %118 {strides = array<i32>} : memref<256x1152xbf16, #tpu.memory_space<vmem>>, vector<256x128xbf16>,
    %c2_97 = arith.constant 2 : index
    %c7_98 = arith.constant 7 : index
    %c0_99 = arith.constant 0 : index
    %120 = vector.load %arg11[%c2_97, %c7_98, %c0_99] : memref<18x32x128xf32, #tpu.memory_space<vmem>>, vector<16x16x128xf32>
    %121 = vector.shape_cast %120 : vector<16x16x128xf32> to vector<256x128xf32>
    %122 = arith.truncf %121 : vector<256x128xf32> to vector<256x128xbf16>
    %c0_100 = arith.constant 0 : index
    %c768_101 = arith.constant 768 : index
    %123 = vector.load %arg12[%c0_100, %c768_101] : memref<256x1152xbf16, #tpu.memory_space<vmem>>, vector<256x128xbf16>
    tpu.vector_store %arg12[%c0_100, %c768_101], %122 {strides = array<i32>} : memref<256x1152xbf16, #tpu.memory_space<vmem>>, vector<256x128xbf16>,
    %c2_102 = arith.constant 2 : index
    %c8_103 = arith.constant 8 : index
    %c0_104 = arith.constant 0 : index
    %124 = vector.load %arg11[%c2_102, %c8_103, %c0_104] : memref<18x32x128xf32, #tpu.memory_space<vmem>>, vector<16x16x128xf32>
    %125 = vector.shape_cast %124 : vector<16x16x128xf32> to vector<256x128xf32>
    %126 = arith.truncf %125 : vector<256x128xf32> to vector<256x128xbf16>
    %c0_105 = arith.constant 0 : index
    %c896_106 = arith.constant 896 : index
    %127 = vector.load %arg12[%c0_105, %c896_106] : memref<256x1152xbf16, #tpu.memory_space<vmem>>, vector<256x128xbf16>
    tpu.vector_store %arg12[%c0_105, %c896_106], %126 {strides = array<i32>} : memref<256x1152xbf16, #tpu.memory_space<vmem>>, vector<256x128xbf16>,
    %c2_107 = arith.constant 2 : index
    %c9_108 = arith.constant 9 : index
    %c0_109 = arith.constant 0 : index
    %128 = vector.load %arg11[%c2_107, %c9_108, %c0_109] : memref<18x32x128xf32, #tpu.memory_space<vmem>>, vector<16x16x128xf32>
    %129 = vector.shape_cast %128 : vector<16x16x128xf32> to vector<256x128xf32>
    %130 = arith.truncf %129 : vector<256x128xf32> to vector<256x128xbf16>
    %c0_110 = arith.constant 0 : index
    %c1024_111 = arith.constant 1024 : index
    %131 = vector.load %arg12[%c0_110, %c1024_111] : memref<256x1152xbf16, #tpu.memory_space<vmem>>, vector<256x128xbf16>
    tpu.vector_store %arg12[%c0_110, %c1024_111], %130 {strides = array<i32>} : memref<256x1152xbf16, #tpu.memory_space<vmem>>, vector<256x128xbf16>,
    %c0_112 = arith.constant 0 : index
    %c0_113 = arith.constant 0 : index
    %132 = vector.load %arg12[%c0_112, %c0_113] : memref<256x1152xbf16, #tpu.memory_space<vmem>>, vector<256x1152xbf16>
    %c0_114 = arith.constant 0 : index
    %c0_115 = arith.constant 0 : index
    %133 = vector.load %arg6[%c0_114, %c0_115] : memref<1152x128xbf16, #tpu.memory_space<vmem>>, vector<1152x128xbf16>
    %cst_116 = arith.constant dense<0.000000e+00> : vector<256x128xf32>
    %134 = tpu.matmul %132, %133, %cst_116 {dimension_numbers = #tpu.dot_dimension_numbers<[1], [0], [0], [1], [0, 0, 1, 1], [], []>} : vector<256x1152xbf16>, vector<1152x128xbf16>, vector<256x128xf32> -> vector<256x128xf32>
    %c0_117 = arith.constant 0 : index
    %c0_118 = arith.constant 0 : index
    %135 = vector.load %arg7[%c0_117, %c0_118] : memref<1x128xf32, #tpu.memory_space<vmem>>, vector<1x128xf32>
    %136 = vector.broadcast %135 : vector<1x128xf32> to vector<256x128xf32>
    %137 = arith.addf %134, %136 : vector<256x128xf32>
    %cst_119 = arith.constant dense<0.000000e+00> : vector<128xf32>
    %138 = vector.multi_reduction <add>, %137, %cst_119 [0] : vector<256x128xf32> to vector<128xf32>
    %139 = vector.shape_cast %138 : vector<128xf32> to vector<1x128xf32>
    %140 = arith.mulf %137, %137 : vector<256x128xf32>
    %cst_120 = arith.constant dense<0.000000e+00> : vector<128xf32>
    %141 = vector.multi_reduction <add>, %140, %cst_120 [0] : vector<256x128xf32> to vector<128xf32>
    %142 = vector.shape_cast %141 : vector<128xf32> to vector<1x128xf32>
    %cst_121 = arith.constant 3.906250e-03 : f32
    %143 = vector.broadcast %cst_121 : f32 to vector<1x128xf32>
    %144 = arith.mulf %139, %143 : vector<1x128xf32>
    %cst_122 = arith.constant 3.906250e-03 : f32
    %145 = vector.broadcast %cst_122 : f32 to vector<1x128xf32>
    %146 = arith.mulf %142, %145 : vector<1x128xf32>
    %147 = arith.mulf %144, %144 : vector<1x128xf32>
    %148 = arith.subf %146, %147 : vector<1x128xf32>
    %149 = vector.broadcast %144 : vector<1x128xf32> to vector<256x128xf32>
    %150 = arith.subf %137, %149 : vector<256x128xf32>
    %cst_123 = arith.constant 9.99999974E-6 : f32
    %151 = vector.broadcast %cst_123 : f32 to vector<1x128xf32>
    %152 = arith.addf %148, %151 : vector<1x128xf32>
    %153 = math.rsqrt %152 : vector<1x128xf32>
    %154 = vector.broadcast %153 : vector<1x128xf32> to vector<256x128xf32>
    %155 = arith.mulf %150, %154 : vector<256x128xf32>
    %cst_124 = arith.constant 0.000000e+00 : f32
    %156 = vector.broadcast %cst_124 : f32 to vector<256x128xf32>
    %157 = arith.maximumf %155, %156 : vector<256x128xf32>
    %158 = tpu.iota {dimensions = array<i32: 1>} : vector<1x128xi32>
    %cst_125 = arith.constant 0.000000e+00 : f32
    %159 = vector.broadcast %cst_125 : f32 to vector<1x128xf32>
    %c0_126 = arith.constant 0 : index
    %c0_127 = arith.constant 0 : index
    %c0_128 = arith.constant 0 : index
    %160 = vector.load %arg8[%c0_126, %c0_127, %c0_128] : memref<1x256x128xf32, #tpu.memory_space<vmem>>, vector<1x256x128xf32>
    %161 = vector.shape_cast %160 : vector<1x256x128xf32> to vector<256x128xf32>
    %162 = arith.mulf %157, %161 : vector<256x128xf32>
    %cst_129 = arith.constant dense<0.000000e+00> : vector<128xf32>
    %163 = vector.multi_reduction <add>, %162, %cst_129 [0] : vector<256x128xf32> to vector<128xf32>
    %164 = vector.shape_cast %163 : vector<128xf32> to vector<1x128xf32>
    %cst_130 = arith.constant dense<0.000000e+00> : vector<1xf32>
    %165 = vector.multi_reduction <add>, %164, %cst_130 [1] : vector<1x128xf32> to vector<1xf32>
    %166 = vector.shape_cast %165 : vector<1xf32> to vector<1x1xf32>
    %c0_i32 = arith.constant 0 : i32
    %167 = vector.broadcast %c0_i32 : i32 to vector<1x128xi32>
    %168 = arith.cmpi eq, %158, %167 : vector<1x128xi32>
    %169 = vector.shape_cast %166 : vector<1x1xf32> to vector<1x1xf32>
    %170 = vector.broadcast %169 : vector<1x1xf32> to vector<1x128xf32>
    %171 = arith.select %168, %170, %159 : vector<1x128xi1>, vector<1x128xf32>
    %c0_131 = arith.constant 0 : index
    %c0_132 = arith.constant 0 : index
    %172 = vector.load %arg9[%c0_131, %c0_132] : memref<1x128xf32, #tpu.memory_space<vmem>>, vector<1x128xf32>
    %173 = arith.addf %171, %172 : vector<1x128xf32>
    %174 = vector.shape_cast %173 : vector<1x128xf32> to vector<1x1x128xf32>
    %c0_133 = arith.constant 0 : index
    %c0_134 = arith.constant 0 : index
    %c0_135 = arith.constant 0 : index
    %175 = vector.load %arg10[%c0_133, %c0_134, %c0_135] : memref<1x1x128xf32, #tpu.memory_space<vmem>>, vector<1x1x128xf32>
    tpu.vector_store %arg10[%c0_133, %c0_134, %c0_135], %174 {strides = array<i32>} : memref<1x1x128xf32, #tpu.memory_space<vmem>>, vector<1x1x128xf32>,
    return
  }
  func.func @transform_0(%arg0: i32) -> (i32, i32, i32) {
    %c0_i32 = arith.constant 0 : i32
    %c0_i32_0 = arith.constant 0 : i32
    %c0_i32_1 = arith.constant 0 : i32
    return %arg0, %c0_i32, %c0_i32_0 : i32, i32, i32
  }
  func.func @transform_1(%arg0: i32) -> (i32, i32) {
    %c0_i32 = arith.constant 0 : i32
    %c0_i32_0 = arith.constant 0 : i32
    %c0_i32_1 = arith.constant 0 : i32
    return %c0_i32, %c0_i32_0 : i32, i32
  }
  func.func @transform_2(%arg0: i32) -> (i32, i32) {
    %c0_i32 = arith.constant 0 : i32
    %c0_i32_0 = arith.constant 0 : i32
    %c0_i32_1 = arith.constant 0 : i32
    return %c0_i32, %c0_i32_0 : i32, i32
  }
  func.func @transform_3(%arg0: i32) -> (i32, i32) {
    %c0_i32 = arith.constant 0 : i32
    %c0_i32_0 = arith.constant 0 : i32
    %c0_i32_1 = arith.constant 0 : i32
    return %c0_i32, %c0_i32_0 : i32, i32
  }
  func.func @transform_4(%arg0: i32) -> (i32, i32) {
    %c0_i32 = arith.constant 0 : i32
    %c0_i32_0 = arith.constant 0 : i32
    %c0_i32_1 = arith.constant 0 : i32
    return %c0_i32, %c0_i32_0 : i32, i32
  }
  func.func @transform_5(%arg0: i32) -> (i32, i32) {
    %c0_i32 = arith.constant 0 : i32
    %c0_i32_0 = arith.constant 0 : i32
    %c0_i32_1 = arith.constant 0 : i32
    return %c0_i32, %c0_i32_0 : i32, i32
  }
  func.func @transform_6(%arg0: i32) -> (i32, i32) {
    %c0_i32 = arith.constant 0 : i32
    %c0_i32_0 = arith.constant 0 : i32
    %c0_i32_1 = arith.constant 0 : i32
    return %c0_i32, %c0_i32_0 : i32, i32
  }
  func.func @transform_7(%arg0: i32) -> (i32, i32, i32) {
    %c0_i32 = arith.constant 0 : i32
    %c0_i32_0 = arith.constant 0 : i32
    %c0_i32_1 = arith.constant 0 : i32
    %c0_i32_2 = arith.constant 0 : i32
    return %c0_i32, %c0_i32_0, %c0_i32_1 : i32, i32, i32
  }
  func.func @transform_8(%arg0: i32) -> (i32, i32) {
    %c0_i32 = arith.constant 0 : i32
    %c0_i32_0 = arith.constant 0 : i32
    %c0_i32_1 = arith.constant 0 : i32
    return %c0_i32, %c0_i32_0 : i32, i32
  }
  func.func @transform_9(%arg0: i32) -> (i32, i32, i32) {
    %c0_i32 = arith.constant 0 : i32
    %c0_i32_0 = arith.constant 0 : i32
    %c0_i32_1 = arith.constant 0 : i32
    return %arg0, %c0_i32, %c0_i32_0 : i32, i32, i32
  }
}

</mosaic_0001>

<bundles_post_ra>
// kernel: resnet2_forward.1
= control target key start
LH: loop header
LB: loop body
LE: loop exit
PB: predicated region body
PF: predicated region fallthrough
CT: control target
= control target key end

     0   :  { %s12927_s30 = smov 0   ;;  %s15545_s0 = inlined_call_operand.vmem [shape: f32[2,256,128], index: 0, kind: input, shape index: {}]   ;;  %s15546_s1 = inlined_call_operand.vmem [shape: bf16[128,128], index: 1, kind: input, shape index: {}]   ;;  %s15547_s2 = inlined_call_operand.vmem [shape: f32[1,128], index: 2, kind: input, shape index: {}]   ;;  %s15548_s3 = inlined_call_operand.vmem [shape: bf16[1152,128], index: 3, kind: input, shape index: {}]   ;;  %s15549_s4 = inlined_call_operand.vmem [shape: f32[1,128], index: 4, kind: input, shape index: {}]   ;;  %s15550_s5 = inlined_call_operand.vmem [shape: bf16[1152,128], index: 5, kind: input, shape index: {}]   ;;  %s15551_s6 = inlined_call_operand.vmem [shape: f32[1,128], index: 6, kind: input, shape index: {}]   ;;  %s15552_s7 = inlined_call_operand.vmem [shape: f32[1,256,128], index: 7, kind: input, shape index: {}]   ;;  %s15553_s8 = inlined_call_operand.vmem [shape: f32[1,128], index: 8, kind: input, shape index: {}]   ;;  %s15554_s9 = inlined_call_operand.vmem [shape: f32[2,1,128], index: 9, kind: output, shape index: {}]  }
   0x1 LB: > { %s9553_s10 = sadd.s32 4294967295, %s12873_s30   ;;  %p9557_p0 = scmp.ge.s32.totalorder %s12873_s30, 1  ;;  %s12873_s30 = sphi %s12927_s30, %s19_s30  }
   0x2   : > { %p287_p1 = scmp.lt.s32.totalorder %s12873_s30, 3 }
   0x4   : > { %p288_p2 = pnand %p9557_p0, %p287_p1 }
   0x6   : > { %291 = sbr.rel (%p288_p2) target bundleno = 1761 (0x6e1), region = 56 }
   0xb   : > { %v12295_v0 = vld [vmem:[%s15546_s1 + $0x38] sm:$0xff]   ;;  %p321_p3 = scmp.lt.s32.totalorder %s9553_s10, 1  ;;  %v12296_v1 = vld [vmem:[%s15546_s1 + $0x30] sm:$0xff]   ;;  %v12875_v2 = vmov 0.0   ;;  %v12297_v3 = vld [vmem:[%s15546_s1 + $0x28] sm:$0xff]  }
   0xc   : > { %12126 = vmatprep.subr.bf16.mxu0 %v12295_v0  ;;  %12270 = vmatprep.subr.bf16.mxu1 %v12295_v0  ;;  %330 = vst [vmem:[#allocation2] sm:$0xff] %v12875_v2  ;;  %331 = vst [vmem:[#allocation2 + $0x8] sm:$0xff] %v12875_v2  ;;  %v12298_v4 = vld [vmem:[%s15546_s1 + $0x20] sm:$0xff]   ;;  %v12299_v8 = vld [vmem:[%s15546_s1 + $0x18] sm:$0xff]  }
   0xd   : > { %s15670_s10 = smov (!%p321_p3, %s9553_s10), 1  ;;  %332 = vst [vmem:[#allocation2 + $0x10] sm:$0xff] %v12875_v2  ;;  %333 = vst [vmem:[#allocation2 + $0x18] sm:$0xff] %v12875_v2  ;;  %12127 = vmatpush3.bf16.msra.mxu0 %v12295_v0  ;;  %12278 = vmatpush3.bf16.msra.mxu1 %v12295_v0  ;;  %v12300_v12 = vld [vmem:[%s15546_s1 + $0x10] sm:$0xff]   ;;  %v12301_v13 = vld [vmem:[%s15546_s1 + $0x8] sm:$0xff]  }
   0xe   : > { %334 = vst [vmem:[#allocation2 + $0x20] sm:$0xff] %v12875_v2  ;;  %337 = vst [vmem:[#allocation2 + $0x38] sm:$0xff] %v12875_v2  ;;  %12128 = vmatprep.subr.bf16.mxu0 %v12296_v1  ;;  %12271 = vmatprep.subr.bf16.mxu1 %v12296_v1  ;;  %s10581_s17 = sshll.u32 %s15670_s10, 8  ;;  %v12302_v14 = vld [vmem:[%s15546_s1] sm:$0xff]   ;;  %v12303_v57 = vld [vmem:[%s15548_s3 + $0x78] sm:$0xff]   ;;  %s328_s13 = scalar_lea.vmem %s15554_s9, %s15670_s10 }
   0xf   : > { %338 = vst [vmem:[#allocation2 + $0x40] sm:$0xff] %v12875_v2  ;;  %341 = vst [vmem:[#allocation2 + $0x58] sm:$0xff] %v12875_v2  ;;  %s12950_s20 = scalar_lea.vmem %s15545_s0, %s10581_s17  ;;  %v12304_v58 = vld [vmem:[%s15548_s3 + $0x38] sm:$0xff]   ;;  %v12305_v59 = vld [vmem:[%s15548_s3 + $0x70] sm:$0xff]  }
  0x10   : > { %342 = vst [vmem:[#allocation2 + $0x60] sm:$0xff] %v12875_v2  ;;  %345 = vst [vmem:[#allocation2 + $0x78] sm:$0xff] %v12875_v2  ;;  %v402_v5 = vld [vmem:[%s12950_s20] sm:$0xff]  ;;  %v403_v6 = vld [vmem:[%s12950_s20 + $0x8] sm:$0xff] }
  0x11   : > { %346 = vst [vmem:[#allocation2 + $0x80] sm:$0xff] %v12875_v2  ;;  %349 = vst [vmem:[#allocation2 + $0x98] sm:$0xff] %v12875_v2  ;;  %12129 = vmatpush3.bf16.msra.mxu0 %v12296_v1  ;;  %12279 = vmatpush3.bf16.msra.mxu1 %v12296_v1  ;;  %v434_v7 = vpack.c.bf16 %v403_v6, %v402_v5  ;;  %v418_v9 = vld [vmem:[%s12950_s20 + $0x80] sm:$0xff]  ;;  %v419_v10 = vld [vmem:[%s12950_s20 + $0x88] sm:$0xff] }
  0x12   : > { %350 = vst [vmem:[#allocation2 + $0xa0] sm:$0xff] %v12875_v2  ;;  %353 = vst [vmem:[#allocation2 + $0xb8] sm:$0xff] %v12875_v2  ;;  %12130 = vmatprep.subr.bf16.mxu0 %v12297_v3  ;;  %12272 = vmatprep.subr.bf16.mxu1 %v12297_v3  ;;  %v442_v11 = vpack.c.bf16 %v419_v10, %v418_v9  ;;  %v404_v15 = vld [vmem:[%s12950_s20 + $0x10] sm:$0xff]  ;;  %v405_v16 = vld [vmem:[%s12950_s20 + $0x18] sm:$0xff] }
  0x13   : > { %354 = vst [vmem:[#allocation2 + $0xc0] sm:$0xff] %v12875_v2  ;;  %357 = vst [vmem:[#allocation2 + $0xd8] sm:$0xff] %v12875_v2  ;;  %12142 = vmatprep.mubr.bf16.mxu0 %v434_v7  ;;  %v406_v17 = vld [vmem:[%s12950_s20 + $0x20] sm:$0xff]  ;;  %v407_v18 = vld [vmem:[%s12950_s20 + $0x28] sm:$0xff]  ;;  %v435_v23 = vpack.c.bf16 %v405_v16, %v404_v15  ;;  %v12876_v16 = vmov 0.0|0.0  }
  0x14   : > { %358 = vst [vmem:[#allocation2 + $0xe0] sm:$0xff] %v12875_v2  ;;  %361 = vst [vmem:[#allocation2 + $0xf8] sm:$0xff] %v12875_v2  ;;  %12158 = vmatprep.mubr.bf16.mxu1 %v442_v11  ;;  %v420_v19 = vld [vmem:[%s12950_s20 + $0x90] sm:$0xff]  ;;  %v421_v20 = vld [vmem:[%s12950_s20 + $0x98] sm:$0xff]  ;;  %v436_v24 = vpack.c.bf16 %v407_v18, %v406_v17 }
  0x15   : > { %362 = vst [vmem:[#allocation2 + $0x100] sm:$0xff] %v12875_v2  ;;  %365 = vst [vmem:[#allocation2 + $0x118] sm:$0xff] %v12875_v2  ;;  %12131 = vmatpush3.bf16.msra.mxu0 %v12297_v3  ;;  %12280 = vmatpush3.bf16.msra.mxu1 %v12297_v3  ;;  %v422_v21 = vld [vmem:[%s12950_s20 + $0xa0] sm:$0xff]  ;;  %v423_v22 = vld [vmem:[%s12950_s20 + $0xa8] sm:$0xff]  ;;  %v443_v25 = vpack.c.bf16 %v421_v20, %v420_v19 }
  0x16   : > { %366 = vst [vmem:[#allocation2 + $0x120] sm:$0xff] %v12875_v2  ;;  %369 = vst [vmem:[#allocation2 + $0x138] sm:$0xff] %v12875_v2  ;;  %12132 = vmatprep.subr.bf16.mxu0 %v12298_v4  ;;  %12273 = vmatprep.subr.bf16.mxu1 %v12298_v4  ;;  %v444_v26 = vpack.c.bf16 %v423_v22, %v422_v21  ;;  %v408_v27 = vld [vmem:[%s12950_s20 + $0x30] sm:$0xff]  ;;  %v409_v28 = vld [vmem:[%s12950_s20 + $0x38] sm:$0xff] }
  0x17   : > { %370 = vst [vmem:[#allocation2 + $0x140] sm:$0xff] %v12875_v2  ;;  %373 = vst [vmem:[#allocation2 + $0x158] sm:$0xff] %v12875_v2  ;;  %v410_v29 = vld [vmem:[%s12950_s20 + $0x40] sm:$0xff]  ;;  %v411_v30 = vld [vmem:[%s12950_s20 + $0x48] sm:$0xff]  ;;  %v437_v35 = vpack.c.bf16 %v409_v28, %v408_v27 }
  0x18   : > { %374 = vst [vmem:[#allocation2 + $0x160] sm:$0xff] %v12875_v2  ;;  %377 = vst [vmem:[#allocation2 + $0x178] sm:$0xff] %v12875_v2  ;;  %v424_v31 = vld [vmem:[%s12950_s20 + $0xb0] sm:$0xff]  ;;  %v425_v32 = vld [vmem:[%s12950_s20 + $0xb8] sm:$0xff]  ;;  %v438_v36 = vpack.c.bf16 %v411_v30, %v410_v29 }
  0x19   : > { %378 = vst [vmem:[#allocation2 + $0x180] sm:$0xff] %v12875_v2  ;;  %381 = vst [vmem:[#allocation2 + $0x198] sm:$0xff] %v12875_v2  ;;  %12133 = vmatpush3.bf16.msra.mxu0 %v12298_v4  ;;  %12281 = vmatpush3.bf16.msra.mxu1 %v12298_v4  ;;  %v426_v33 = vld [vmem:[%s12950_s20 + $0xc0] sm:$0xff]  ;;  %v427_v34 = vld [vmem:[%s12950_s20 + $0xc8] sm:$0xff]  ;;  %v445_v37 = vpack.c.bf16 %v425_v32, %v424_v31 }
  0x1a   : > { %382 = vst [vmem:[#allocation2 + $0x1a0] sm:$0xff] %v12875_v2  ;;  %385 = vst [vmem:[#allocation2 + $0x1b8] sm:$0xff] %v12875_v2  ;;  %12134 = vmatprep.subr.bf16.mxu0 %v12299_v8  ;;  %12274 = vmatprep.subr.bf16.mxu1 %v12299_v8  ;;  %v446_v38 = vpack.c.bf16 %v427_v34, %v426_v33  ;;  %v412_v39 = vld [vmem:[%s12950_s20 + $0x50] sm:$0xff]  ;;  %v413_v40 = vld [vmem:[%s12950_s20 + $0x58] sm:$0xff] }
  0x1b   : > { %386 = vst [vmem:[#allocation2 + $0x1c0] sm:$0xff] %v12875_v2  ;;  %389 = vst [vmem:[#allocation2 + $0x1d8] sm:$0xff] %v12875_v2  ;;  %v414_v41 = vld [vmem:[%s12950_s20 + $0x60] sm:$0xff]  ;;  %v415_v42 = vld [vmem:[%s12950_s20 + $0x68] sm:$0xff]  ;;  %v439_v47 = vpack.c.bf16 %v413_v40, %v412_v39 }
  0x1c   : > { %390 = vst [vmem:[#allocation2 + $0x1e0] sm:$0xff] %v12875_v2  ;;  %393 = vst [vmem:[#allocation2 + $0x1f8] sm:$0xff] %v12875_v2  ;;  %v428_v43 = vld [vmem:[%s12950_s20 + $0xd0] sm:$0xff]  ;;  %v429_v44 = vld [vmem:[%s12950_s20 + $0xd8] sm:$0xff]  ;;  %v440_v48 = vpack.c.bf16 %v415_v42, %v414_v41 }
  0x1d   : > { %394 = vst [vmem:[#allocation2 + $0x200] sm:$0xff] %v12875_v2  ;;  %397 = vst [vmem:[#allocation2 + $0x218] sm:$0xff] %v12875_v2  ;;  %12135 = vmatpush3.bf16.msra.mxu0 %v12299_v8  ;;  %12282 = vmatpush3.bf16.msra.mxu1 %v12299_v8  ;;  %v430_v45 = vld [vmem:[%s12950_s20 + $0xe0] sm:$0xff]  ;;  %v431_v46 = vld [vmem:[%s12950_s20 + $0xe8] sm:$0xff]  ;;  %v447_v49 = vpack.c.bf16 %v429_v44, %v428_v43 }
  0x1e   : > { %398 = vst [vmem:[#allocation2 + $0x220] sm:$0xff] %v12875_v2  ;;  %399 = vst [vmem:[#allocation2 + $0x228] sm:$0xff] %v12875_v2  ;;  %12136 = vmatprep.subr.bf16.mxu0 %v12300_v12  ;;  %12275 = vmatprep.subr.bf16.mxu1 %v12300_v12  ;;  %v448_v50 = vpack.c.bf16 %v431_v46, %v430_v45  ;;  %v416_v51 = vld [vmem:[%s12950_s20 + $0x70] sm:$0xff]  ;;  %v417_v52 = vld [vmem:[%s12950_s20 + $0x78] sm:$0xff] }
  0x1f   : > { %400 = vst [vmem:[#allocation2 + $0x230] sm:$0xff] %v12875_v2  ;;  %401 = vst [vmem:[#allocation2 + $0x238] sm:$0xff] %v12875_v2  ;;  %v432_v53 = vld [vmem:[%s12950_s20 + $0xf0] sm:$0xff]  ;;  %v433_v54 = vld [vmem:[%s12950_s20 + $0xf8] sm:$0xff]  ;;  %v441_v55 = vpack.c.bf16 %v417_v52, %v416_v51 }
  0x20   : > { %v449_v56 = vpack.c.bf16 %v433_v54, %v432_v53  ;;  %v12306_v60 = vld [vmem:[%s15548_s3 + $0x30] sm:$0xff]   ;;  %v12307_v61 = vld [vmem:[%s15548_s3 + $0x68] sm:$0xff]   ;;  %v12309_v63 = vld [vmem:[%s15548_s3 + $0x60] sm:$0xff]   ;;  %1275 = vst [vmem:[#allocation3 + $0x4] sm:$0xf] %v12876_v16 }
  0x21   : > { %12137 = vmatpush3.bf16.msra.mxu0 %v12300_v12  ;;  %12283 = vmatpush3.bf16.msra.mxu1 %v12300_v12  ;;  %v12308_v62 = vld [vmem:[%s15548_s3 + $0x28] sm:$0xff]   ;;  %v12310_v0 = vld [vmem:[%s15548_s3 + $0x20] sm:$0xff]   ;;  %v12311_v1 = vld [vmem:[%s15548_s3 + $0xf8] sm:$0xff]   ;;  %1276 = vst [vmem:[#allocation3 + $0x28] sm:$0xf] %v12876_v16 }
  0x22   : > { %12138 = vmatprep.subr.bf16.mxu0 %v12301_v13  ;;  %12276 = vmatprep.subr.bf16.mxu1 %v12301_v13  ;;  %v12312_v2 = vld [vmem:[%s15548_s3 + $0xb8] sm:$0xff]   ;;  %v12315_v5 = vld [vmem:[%s15548_s3 + $0xf0] sm:$0xff]   ;;  %v923_v9 = vld [vmem:[#allocation2 + $0x7] sm:$0xff] }
  0x23   : > { %v12313_v3 = vld [vmem:[%s15548_s3 + $0x58] sm:$0xff]   ;;  %v12316_v6 = vld [vmem:[%s15548_s3 + $0xb0] sm:$0xff]   ;;  %v12319_v11 = vld [vmem:[%s15548_s3 + $0xe8] sm:$0xff]   ;;  %v10582_v12 = vpack.c.bf16 %v923_v9, %v923_v9 }
  0x24   : > { %v12314_v4 = vld [vmem:[%s15548_s3 + $0x18] sm:$0xff]   ;;  %v12317_v7 = vld [vmem:[%s15548_s3 + $0x50] sm:$0xff]   ;;  %v12321_v15 = vld [vmem:[%s15548_s3 + $0x48] sm:$0xff]  }
  0x25   : > { %12139 = vmatpush3.bf16.msra.mxu0 %v12301_v13  ;;  %12284 = vmatpush3.bf16.msra.mxu1 %v12301_v13  ;;  %v12318_v8 = vld [vmem:[%s15548_s3 + $0x10] sm:$0xff]   ;;  %1083 = vst [vmem:[#allocation3] sm:$0xf] %v10582_v12  ;;  %v12322_v17 = vld [vmem:[%s15548_s3 + $0x8] sm:$0xff]   ;;  %v12323_v18 = vld [vmem:[%s15548_s3 + $0xe0] sm:$0xff]  }
  0x26   : > { %12140 = vmatprep.subr.bf16.mxu0 %v12302_v14  ;;  %12277 = vmatprep.subr.bf16.mxu1 %v12302_v14  ;;  %v924_v10 = vld [vmem:[#allocation2 + $0xf] sm:$0xff]  ;;  %v12324_v19 = vld [vmem:[%s15548_s3 + $0xa0] sm:$0xff]   ;;  %v12327_v22 = vld [vmem:[%s15548_s3 + $0xd8] sm:$0xff]  }
  0x27   : > { %v10583_v13 = vpack.c.bf16 %v924_v10, %v924_v10  ;;  %v12325_v20 = vld [vmem:[%s15548_s3 + $0x40] sm:$0xff]   ;;  %v12331_v30 = vld [vmem:[%s15548_s3 + $0xd0] sm:$0xff]   ;;  %v12333_v33 = vld [vmem:[%s15548_s3 + $0x178] sm:$0xff]  }
  0x28   : > { %v12326_v21 = vld [vmem:[%s15548_s3] sm:$0xff]   ;;  %v12332_v32 = vld [vmem:[%s15548_s3 + $0x90] sm:$0xff]   ;;  %v12334_v34 = vld [vmem:[%s15548_s3 + $0xc8] sm:$0xff]  }
  0x29   : > { %12141 = vmatpush3.bf16.msra.mxu0 %v12302_v14  ;;  %12285 = vmatpush3.bf16.msra.mxu1 %v12302_v14  ;;  %v12320_v14 = vld [vmem:[%s15548_s3 + $0xa8] sm:$0xff]   ;;  %1084 = vst [vmem:[#allocation3 + $0x24] sm:$0xf] %v10583_v13  ;;  %v1308_v40 = vld [vmem:[#allocation2 + $0x11] sm:$0xff]  ;;  %v12337_v46 = vld [vmem:[%s15548_s3 + $0xc0] sm:$0xff]  }
  0x2a   : > { %11182 = vmatprep.subr.bf16.mxu1 %v12303_v57  ;;  %11294 = vmatprep.subr.bf16.mxu0 %v12311_v1  ;;  %v1307_v39 = vld [vmem:[#allocation2 + $0x9] sm:$0xff] }
  0x2b   : > { %v12336_v42 = vld [vmem:[%s15548_s3 + $0x88] sm:$0xff]   ;;  %v13107_v43 = vpack.c.bf16 %v1307_v39, %v1307_v39  ;;  %v12348_v9 = vld [vmem:[%s15548_s3 + $0x170] sm:$0xff]  }
  0x2c   : > { %12143 = vmatmul.mubr.bf16.vlgmr.msra.gmra.mxu0 %v435_v23  ;;  %12159 = vmatmul.mubr.bf16.vlgmr.msra.gmra.mxu1 %v443_v25  ;;  %v2652_v23 = vld [vmem:[#allocation3] sm:$0xff] }
  0x2d   : > { %12146 = vmatprep.mubr.bf16.mxu0 %v436_v24  ;;  %12162 = vmatprep.mubr.bf16.mxu1 %v444_v26  ;;  %v12328_v25 = vld [vmem:[#allocation3 + $0x4] ss:$36 sps:$4 sm:$0xff]   ;;  %5336 = vst [vmem:[#allocation3] sm:$0xf] %v10582_v12  ;;  %v12330_v26 = vld [vmem:[%s15548_s3 + $0x98] sm:$0xff]  }
  0x2e   : > { %11183 = vmatpush3.bf16.msra.mxu1 %v12304_v58  ;;  %11295 = vmatpush3.bf16.msra.mxu0 %v12312_v2  ;;  %5528 = vst [vmem:[#allocation3 + $0x4] sm:$0xf] %v12876_v16  ;;  %1467 = vst [vmem:[#allocation3 + $0x8] sm:$0xf] %v13107_v43 }
  0x2f   : > { %11184 = vmatprep.subr.bf16.mxu1 %v12305_v59  ;;  %11296 = vmatprep.subr.bf16.mxu0 %v12315_v5 }
  0x30   : > { %v2657_v24 = vld [vmem:[#allocation3 + $0x24] sm:$0xff] }
  0x31   : > { %5337 = vst [vmem:[#allocation3 + $0x24] sm:$0xf] %v10583_v13  ;;  %5529 = vst [vmem:[#allocation3 + $0x28] sm:$0xf] %v12876_v16  ;;  %v9858_v27 = vcombine.low %v2652_v23, %v2657_v24 }
  0x32   : > { %11185 = vmatpush3.bf16.msra.mxu1 %v12306_v60  ;;  %11297 = vmatpush3.bf16.msra.mxu0 %v12316_v6 }
  0x33   : > { %11186 = vmatprep.subr.bf16.mxu1 %v12307_v61  ;;  %11298 = vmatprep.subr.bf16.mxu0 %v12319_v11  ;;  %v12351_v11 = vld [vmem:[%s15548_s3 + $0x130] sm:$0xff]  }
  0x34   : > { %12147 = vmatmul.mubr.bf16.gmra.mxu0 %v437_v35  ;;  %12163 = vmatmul.mubr.bf16.gmra.mxu1 %v445_v37  ;;  %v13099_v37 = vld [vmem:[%s15547_s2] ss:$0 sm:$0xff] }
  0x35   : > { %12150 = vmatprep.mubr.bf16.mxu0 %v438_v36  ;;  %12166 = vmatprep.mubr.bf16.mxu1 %v446_v38  ;;  %v12335_v36 = vld [vmem:[%s15548_s3 + $0x138] sm:$0xff]  }
  0x36   : > { %11187 = vmatpush3.bf16.msra.mxu1 %v12308_v62  ;;  %11299 = vmatpush3.bf16.msra.mxu0 %v12320_v14 }
  0x37   : > { %11188 = vmatprep.subr.bf16.mxu1 %v12309_v63  ;;  %11300 = vmatprep.subr.bf16.mxu0 %v12323_v18 }
  0x3a   : > { %11189 = vmatpush3.bf16.msra.mxu1 %v12310_v0  ;;  %11301 = vmatpush3.bf16.msra.mxu0 %v12324_v19 }
  0x3b   : > { %11190 = vmatprep.subr.bf16.mxu1 %v12313_v3  ;;  %11302 = vmatprep.subr.bf16.mxu0 %v12327_v22 }
  0x3c   : > { %12151 = vmatmul.mubr.bf16.gmra.mxu0 %v439_v47  ;;  %12167 = vmatmul.mubr.bf16.gmra.mxu1 %v447_v49  ;;  %v13114_v47 = vpack.c.bf16 %v1308_v40, %v1308_v40 }
  0x3d   : > { %12154 = vmatprep.mubr.bf16.mxu0 %v440_v48  ;;  %12170 = vmatprep.mubr.bf16.mxu1 %v448_v50 }
  0x3e   : > { %11191 = vmatpush3.bf16.msra.mxu1 %v12314_v4  ;;  %11303 = vmatpush3.bf16.msra.mxu0 %v12330_v26  ;;  %1468 = vst [vmem:[#allocation3 + $0x2c] sm:$0xf] %v13114_v47 }
  0x3f   : > { %11192 = vmatprep.subr.bf16.mxu1 %v12317_v7  ;;  %11304 = vmatprep.subr.bf16.mxu0 %v12331_v30 }
  0x42   : > { %11193 = vmatpush3.bf16.msra.mxu1 %v12318_v8  ;;  %11305 = vmatpush3.bf16.msra.mxu0 %v12332_v32 }
  0x43   : > { %11194 = vmatprep.subr.bf16.mxu1 %v12321_v15  ;;  %11306 = vmatprep.subr.bf16.mxu0 %v12334_v34 }
  0x44   : > { %12155 = vmatmul.mubr.bf16.gmra.mxu0 %v441_v55  ;;  %12171 = vmatmul.mubr.bf16.gmra.mxu1 %v449_v56  ;;  %v12338_v55 = vld [vmem:[%s15548_s3 + $0x80] sm:$0xff]  }
  0x45   : > { %4163 = vmatprep.mubr.bf16.mxu1 %v12328_v25 }
  0x46   : > { %11195 = vmatpush3.bf16.msra.mxu1 %v12322_v17  ;;  %11307 = vmatpush3.bf16.msra.mxu0 %v12336_v42  ;;  %v12362_v42 = vld [vmem:[%s15548_s3 + $0x168] sm:$0xff]  }
  0x47   : > { %11196 = vmatprep.subr.bf16.mxu1 %v12325_v20  ;;  %11308 = vmatprep.subr.bf16.mxu0 %v12337_v46 }
  0x4a   : > { %11197 = vmatpush3.bf16.msra.mxu1 %v12326_v21  ;;  %11309 = vmatpush3.bf16.msra.mxu0 %v12338_v55 }
  0x4b   : > { %11406 = vmatprep.subr.bf16.mxu1 %v12333_v33 }
  0x4d   : > { %4164 = vmatmul.mubr.bf16.vlgmr.msra.gmra.mxu1 %v9858_v27 }
  0x4e   : > { %11407 = vmatpush3.bf16.msra.mxu1 %v12335_v36 }
  0x4f   : > { %11408 = vmatprep.subr.bf16.mxu1 %v12348_v9 }
  0x52   : > { %11409 = vmatpush3.bf16.msra.mxu1 %v12351_v11 }
  0x53   : > { %11410 = vmatprep.subr.bf16.mxu1 %v12362_v42 }
  0xec   : > { %v12144_v28 = vpop.f32.mrf.mxu0  ;;  %v13077_v29 = vpop.f32.mrf.mxu1 }
  0xed   : > { %v13117_v48 = vadd.f32 %v12144_v28, %v13099_v37 }
  0xee   : > { %v555_v31 = vpop.f32.mrf.mxu0  ;;  %v13091_v35 = vpop.f32.mrf.mxu1 }
  0xef   : > { %v13102_v41 = vadd.f32 %v13099_v37, %v555_v31  ;;  %v721_v58 = vmul.f32 %v13117_v48, %v13117_v48 }
  0xf0   : > { %v12145_v38 = vpop.f32.mrf.mxu0  ;;  %v13109_v45 = vpop.f32.mrf.mxu1 }
  0xf1   : > { %v719_v51 = vmul.f32 %v13102_v41, %v13102_v41  ;;  %v13127_v52 = vadd.f32 %v12145_v38, %v13099_v37 }
  0xf2   : > { %v558_v44 = vpop.f32.mrf.mxu0  ;;  %v13136_v57 = vpop.f32.mrf.mxu1 }
  0xf3   : > { %v13120_v49 = vadd.f32 %v13099_v37, %v558_v44  ;;  %v722_v63 = vmul.f32 %v13127_v52, %v13127_v52 }
  0xf4   : > { %v12148_v50 = vpop.f32.mrf.mxu0  ;;  %v13150_v4 = vpop.f32.mrf.mxu1 }
  0xf5   : > { %v682_v53 = vadd.f32 %v13120_v49, %v13102_v41  ;;  %v720_v54 = vmul.f32 %v13120_v49, %v13120_v49  ;;  %v13148_v2 = vadd.f32 %v12148_v50, %v13099_v37 }
  0xf6   : > { %v571_v56 = vpop.f32.mrf.mxu0  ;;  %v13170_v17 = vpop.f32.mrf.mxu1 }
  0xf7   : > { %v683_v59 = vadd.f32 %v682_v53, %v13117_v48  ;;  %v751_v60 = vadd.f32 %v720_v54, %v719_v51  ;;  %v13142_v61 = vadd.f32 %v13099_v37, %v571_v56  ;;  %v725_v18 = vmul.f32 %v13148_v2, %v13148_v2 }
  0xf8   : > { %v12149_v62 = vpop.f32.mrf.mxu0  ;;  %v13184_v28 = vpop.f32.mrf.mxu1 }
  0xf9   : > { %v752_v0 = vadd.f32 %v751_v60, %v721_v58  ;;  %v684_v1 = vadd.f32 %v683_v59, %v13127_v52  ;;  %v723_v6 = vmul.f32 %v13142_v61, %v13142_v61  ;;  %v13165_v13 = vadd.f32 %v12149_v62, %v13099_v37 }
  0xfa   : > { %v574_v3 = vpop.f32.mrf.mxu0  ;;  %v638_v46 = vpop.f32.mrf.mxu1 }
  0xfb   : > { %v685_v5 = vadd.f32 %v684_v1, %v13142_v61  ;;  %v753_v7 = vadd.f32 %v752_v0, %v722_v63  ;;  %v13156_v8 = vadd.f32 %v13099_v37, %v574_v3  ;;  %v726_v23 = vmul.f32 %v13165_v13, %v13165_v13 }
  0xfc   : > { %v12152_v10 = vpop.f32.mrf.mxu0  ;;  %v12168_v63 = vpop.f32.mrf.mxu1 }
  0xfd   : > { %v754_v12 = vadd.f32 %v753_v7, %v723_v6  ;;  %v686_v14 = vadd.f32 %v685_v5, %v13156_v8  ;;  %v724_v15 = vmul.f32 %v13156_v8, %v13156_v8  ;;  %v13182_v26 = vadd.f32 %v12152_v10, %v13099_v37  ;;  %v12365_v6 = vld [vmem:[%s15548_s3 + $0x128] sm:$0xff]  }
  0xfe   : > { %v587_v16 = vpop.f32.mrf.mxu0  ;;  %11411 = vmatpush3.bf16.msra.mxu1 %v12365_v6 }
  0xff   : > { %v687_v19 = vadd.f32 %v686_v14, %v13148_v2  ;;  %v755_v20 = vadd.f32 %v754_v12, %v724_v15  ;;  %v13176_v21 = vadd.f32 %v13099_v37, %v587_v16  ;;  %v729_v50 = vmul.f32 %v13182_v26, %v13182_v26  ;;  %v651_v12 = vpop.f32.mrf.mxu1 }
 0x100   : > { %v12153_v22 = vpop.f32.mrf.mxu0  ;;  %v13232_v15 = vadd.f32 %v13099_v37, %v13091_v35 }
 0x101   : > { %v756_v24 = vadd.f32 %v755_v20, %v725_v18  ;;  %v688_v25 = vadd.f32 %v687_v19, %v13165_v13  ;;  %v727_v31 = vmul.f32 %v13176_v21, %v13176_v21  ;;  %v13193_v38 = vadd.f32 %v12153_v22, %v13099_v37 }
 0x102   : > { %v590_v27 = vpop.f32.mrf.mxu0  ;;  %v13239_v22 = vadd.f32 %v13099_v37, %v13136_v57  ;;  %v735_v35 = vmul.f32 %v13232_v15, %v13232_v15 }
 0x103   : > { %v689_v30 = vadd.f32 %v688_v25, %v13176_v21  ;;  %v757_v32 = vadd.f32 %v756_v24, %v726_v23  ;;  %v13190_v33 = vadd.f32 %v13099_v37, %v590_v27  ;;  %v730_v56 = vmul.f32 %v13193_v38, %v13193_v38  ;;  %v12169_v24 = vpop.f32.mrf.mxu1 }
 0x104   : > { %v12156_v34 = vpop.f32.mrf.mxu0  ;;  %v13244_v25 = vadd.f32 %v13077_v29, %v13099_v37  ;;  %v12376_v29 = vld [vmem:[%s15548_s3 + $0x160] sm:$0xff]  }
 0x105   : > { %v758_v36 = vadd.f32 %v757_v32, %v727_v31  ;;  %v690_v39 = vadd.f32 %v689_v30, %v13190_v33  ;;  %v728_v40 = vmul.f32 %v13190_v33, %v13190_v33  ;;  %v13211_v60 = vadd.f32 %v12156_v34, %v13099_v37  ;;  %11412 = vmatprep.subr.bf16.mxu1 %v12376_v29 }
 0x106   : > { %v603_v44 = vpop.f32.mrf.mxu0  ;;  %v13251_v31 = vadd.f32 %v13109_v45, %v13099_v37  ;;  %v736_v32 = vmul.f32 %v13239_v22, %v13239_v22  ;;  %v13264_v45 = vadd.f32 %v13099_v37, %v13170_v17 }
 0x107   : > { %v691_v51 = vadd.f32 %v690_v39, %v13182_v26  ;;  %v759_v53 = vadd.f32 %v758_v36, %v728_v40  ;;  %v13205_v54 = vadd.f32 %v13099_v37, %v603_v44  ;;  %v733_v14 = vmul.f32 %v13211_v60, %v13211_v60  ;;  %v654_v36 = vpop.f32.mrf.mxu1 }
 0x108   : > { %v12157_v55 = vpop.f32.mrf.mxu0  ;;  %v737_v39 = vmul.f32 %v13244_v25, %v13244_v25  ;;  %v738_v44 = vmul.f32 %v13251_v31, %v13251_v31  ;;  %v739_v17 = vmul.f32 %v13264_v45, %v13264_v45 }
 0x109   : > { %v760_v58 = vadd.f32 %v759_v53, %v729_v50  ;;  %v692_v59 = vadd.f32 %v691_v51, %v13193_v38  ;;  %v731_v1 = vmul.f32 %v13205_v54, %v13205_v54  ;;  %v13223_v9 = vadd.f32 %v12157_v55, %v13099_v37  ;;  %v12172_v55 = vpop.f32.mrf.mxu1 }
 0x10a   : > { %v606_v62 = vpop.f32.mrf.mxu0  ;;  %v13270_v53 = vadd.f32 %v13099_v37, %v638_v46  ;;  %v13284_v46 = vadd.f32 %v13184_v28, %v13099_v37 }
 0x10b   : > { %v693_v0 = vadd.f32 %v692_v59, %v13205_v54  ;;  %v761_v3 = vadd.f32 %v760_v58, %v730_v56  ;;  %v13217_v5 = vadd.f32 %v13099_v37, %v606_v62  ;;  %v734_v19 = vmul.f32 %v13223_v9, %v13223_v9  ;;  %v12379_v62 = vld [vmem:[%s15548_s3 + $0x120] sm:$0xff]  }
 0x10c   : > { %v13274_v56 = vadd.f32 %v13150_v4, %v13099_v37  ;;  %v740_v4 = vmul.f32 %v13270_v53, %v13270_v53  ;;  %11413 = vmatpush3.bf16.msra.mxu1 %v12379_v62  ;;  %v742_v28 = vmul.f32 %v13284_v46, %v13284_v46 }
 0x10d   : > { %v762_v7 = vadd.f32 %v761_v3, %v731_v1  ;;  %v694_v10 = vadd.f32 %v693_v0, %v13217_v5  ;;  %v732_v11 = vmul.f32 %v13217_v5, %v13217_v5  ;;  %v667_v3 = vpop.f32.mrf.mxu1 }
 0x10e   : > { %v741_v6 = vmul.f32 %v13274_v56, %v13274_v56 }
 0x10f   : > { %v695_v16 = vadd.f32 %v694_v10, %v13211_v60  ;;  %v763_v18 = vadd.f32 %v762_v7, %v732_v11  ;;  %v13293_v11 = vadd.f32 %v13099_v37, %v651_v12 }
 0x111   : > { %v764_v20 = vadd.f32 %v763_v18, %v733_v14  ;;  %v696_v23 = vadd.f32 %v695_v16, %v13223_v9  ;;  %v13299_v18 = vadd.f32 %v13099_v37, %v654_v36 }
 0x113   : > { %v697_v27 = vadd.f32 %v696_v23, %v13232_v15  ;;  %v765_v30 = vadd.f32 %v764_v20, %v734_v19  ;;  %v13302_v19 = vadd.f32 %v12168_v63, %v13099_v37  ;;  %v12173_v20 = vpop.f32.mrf.mxu1  ;;  %v12390_v63 = vld [vmem:[%s15548_s3 + $0x158] sm:$0xff]  }
 0x114   : > { %11414 = vmatprep.subr.bf16.mxu1 %v12390_v63 }
 0x115   : > { %v698_v57 = vadd.f32 %v697_v27, %v13239_v22  ;;  %v766_v34 = vadd.f32 %v765_v30, %v735_v35  ;;  %v743_v35 = vmul.f32 %v13293_v11, %v13293_v11  ;;  %v13308_v30 = vadd.f32 %v12169_v24, %v13099_v37  ;;  %v670_v36 = vpop.f32.mrf.mxu1 }
 0x116   : > { %v745_v29 = vmul.f32 %v13302_v19, %v13302_v19 }
 0x117   : > { %v699_v40 = vadd.f32 %v698_v57, %v13244_v25  ;;  %v767_v42 = vadd.f32 %v766_v34, %v736_v32  ;;  %v744_v32 = vmul.f32 %v13299_v18, %v13299_v18  ;;  %v12391_v34 = vld [vmem:[%s15548_s3 + $0x1f8] sm:$0xff]  }
 0x118   : > { %11518 = vmatprep.subr.bf16.mxu0 %v12391_v34 }
 0x119   : > { %v768_v50 = vadd.f32 %v767_v42, %v737_v39  ;;  %v700_v51 = vadd.f32 %v699_v40, %v13251_v31  ;;  %v13323_v40 = vadd.f32 %v13099_v37, %v667_v3  ;;  %v746_v42 = vmul.f32 %v13308_v30, %v13308_v30 }
 0x11b   : > { %v701_v58 = vadd.f32 %v700_v51, %v13264_v45  ;;  %v769_v59 = vadd.f32 %v768_v50, %v738_v44  ;;  %v13329_v51 = vadd.f32 %v13099_v37, %v670_v36  ;;  %v12410_v36 = vld [vmem:[%s15548_s3 + $0x110] sm:$0xff]  }
 0x11d   : > { %v770_v0 = vadd.f32 %v769_v59, %v739_v17  ;;  %v702_v1 = vadd.f32 %v701_v58, %v13270_v53  ;;  %v13332_v58 = vadd.f32 %v12172_v55, %v13099_v37  ;;  %v747_v59 = vmul.f32 %v13323_v40, %v13323_v40 }
 0x11e   : > { %v748_v55 = vmul.f32 %v13329_v51, %v13329_v51 }
 0x11f   : > { %v703_v7 = vadd.f32 %v702_v1, %v13274_v56  ;;  %v771_v10 = vadd.f32 %v770_v0, %v740_v4  ;;  %v12394_v0 = vld [vmem:[%s15548_s3 + $0x118] sm:$0xff]   ;;  %v13341_v4 = vadd.f32 %v12173_v20, %v13099_v37 }
 0x120   : > { %11415 = vmatpush3.bf16.msra.mxu1 %v12394_v0  ;;  %v12422_v0 = vld [vmem:[%s15548_s3 + $0x148] sm:$0xff]  }
 0x121   : > { %v772_v14 = vadd.f32 %v771_v10, %v741_v6  ;;  %v704_v16 = vadd.f32 %v703_v7, %v13284_v46  ;;  %v749_v6 = vmul.f32 %v13332_v58, %v13332_v58 }
 0x123   : > { %v705_v23 = vadd.f32 %v704_v16, %v13293_v11  ;;  %v773_v12 = vadd.f32 %v772_v14, %v742_v28  ;;  %v750_v28 = vmul.f32 %v13341_v4, %v13341_v4 }
 0x125   : > { %v774_v27 = vadd.f32 %v773_v12, %v743_v35  ;;  %v706_v57 = vadd.f32 %v705_v23, %v13299_v18  ;;  %v12406_v12 = vld [vmem:[%s15548_s3 + $0x150] sm:$0xff]  }
 0x126   : > { %11416 = vmatprep.subr.bf16.mxu1 %v12406_v12 }
 0x127   : > { %v707_v24 = vadd.f32 %v706_v57, %v13302_v19  ;;  %v775_v39 = vadd.f32 %v774_v27, %v744_v32  ;;  %11417 = vmatpush3.bf16.msra.mxu1 %v12410_v36 }
 0x128   : > { %11418 = vmatprep.subr.bf16.mxu1 %v12422_v0 }
 0x129   : > { %v776_v44 = vadd.f32 %v775_v39, %v745_v29  ;;  %v708_v50 = vadd.f32 %v707_v24, %v13308_v30 }
 0x12b   : > { %v709_v17 = vadd.f32 %v708_v50, %v13323_v40  ;;  %v777_v62 = vadd.f32 %v776_v44, %v746_v42 }
 0x12d   : > { %v778_v1 = vadd.f32 %v777_v62, %v747_v59  ;;  %v710_v3 = vadd.f32 %v709_v17, %v13329_v51 }
 0x12f   : > { %v711_v7 = vadd.f32 %v710_v3, %v13332_v58  ;;  %v779_v10 = vadd.f32 %v778_v1, %v748_v55  ;;  %v12426_v1 = vld [vmem:[%s15548_s3 + $0x108] sm:$0xff]  }
 0x130   : > { %11419 = vmatpush3.bf16.msra.mxu1 %v12426_v1 }
 0x131   : > { %v712_v14 = vadd.f32 %v711_v7, %v13341_v4  ;;  %v780_v16 = vadd.f32 %v779_v10, %v749_v6 }
 0x133   : > { %v713_v37 = vrot.slane %v712_v14, 4  ;;  %v781_v20 = vadd.f32 %v780_v16, %v750_v28 }
 0x135   : > { %v714_v23 = vadd.f32 %v713_v37, %v712_v14  ;;  %v782_v35 = vrot.slane %v781_v20, 4 }
 0x137   : > { %v715_v27 = vrot.slane %v714_v23, 2  ;;  %v783_v57 = vadd.f32 %v782_v35, %v781_v20 }
 0x139   : > { %v716_v32 = vadd.f32 %v715_v27, %v714_v23  ;;  %v784_v63 = vrot.slane %v783_v57, 2 }
 0x13b   : > { %v717_v34 = vrot.slane %v716_v32, 1  ;;  %v785_v29 = vadd.f32 %v784_v63, %v783_v57 }
 0x13d   : > { %v718_v24 = vadd.f32 %v717_v34, %v716_v32  ;;  %v786_v39 = vrot.slane %v785_v29, 1 }
 0x13f   : > { %v787_v42 = vadd.f32 %v786_v39, %v785_v29  ;;  %v13358_v44 = vmul.f32 0.00390625, %v718_v24 }
 0x141   : > { %v789_v50 = vmul.f32 0.00390625, %v787_v42  ;;  %v790_v17 = vmul.f32 %v13358_v44, %v13358_v44  ;;  %v820_v3 = vsub.f32 %v13323_v40, %v13358_v44  ;;  %v821_v55 = vsub.f32 %v13329_v51, %v13358_v44 }
 0x142   : > { %v792_v6 = vsub.f32 %v13102_v41, %v13358_v44  ;;  %v793_v7 = vsub.f32 %v13120_v49, %v13358_v44  ;;  %v794_v10 = vsub.f32 %v13117_v48, %v13358_v44  ;;  %v795_v28 = vsub.f32 %v13127_v52, %v13358_v44 }
 0x143   : > { %v791_v59 = vsub.f32 %v789_v50, %v790_v17  ;;  %v796_v14 = vsub.f32 %v13142_v61, %v13358_v44  ;;  %v797_v40 = vsub.f32 %v13156_v8, %v13358_v44  ;;  %v798_v51 = vsub.f32 %v13148_v2, %v13358_v44 }
 0x144   : > { %v799_v41 = vsub.f32 %v13165_v13, %v13358_v44  ;;  %v800_v49 = vsub.f32 %v13176_v21, %v13358_v44  ;;  %v801_v48 = vsub.f32 %v13190_v33, %v13358_v44  ;;  %v802_v52 = vsub.f32 %v13182_v26, %v13358_v44 }
 0x145   : > { %v824_v62 = vadd.f32 1e-05, %v791_v59  ;;  %v803_v61 = vsub.f32 %v13193_v38, %v13358_v44  ;;  %v804_v8 = vsub.f32 %v13205_v54, %v13358_v44  ;;  %v805_v2 = vsub.f32 %v13217_v5, %v13358_v44 }
 0x146   : > { %v806_v13 = vsub.f32 %v13211_v60, %v13358_v44  ;;  %v807_v21 = vsub.f32 %v13223_v9, %v13358_v44  ;;  %v808_v33 = vsub.f32 %v13232_v15, %v13358_v44  ;;  %v809_v26 = vsub.f32 %v13239_v22, %v13358_v44 }
 0x147   : > { %12860 = vrsqrt.f32 %v824_v62  ;;  %v810_v38 = vsub.f32 %v13244_v25, %v13358_v44  ;;  %v811_v54 = vsub.f32 %v13251_v31, %v13358_v44  ;;  %v812_v5 = vsub.f32 %v13264_v45, %v13358_v44 }
 0x148   : > { %v813_v60 = vsub.f32 %v13270_v53, %v13358_v44  ;;  %v814_v9 = vsub.f32 %v13274_v56, %v13358_v44  ;;  %v815_v15 = vsub.f32 %v13284_v46, %v13358_v44  ;;  %v816_v22 = vsub.f32 %v13293_v11, %v13358_v44 }
 0x149   : > { %v817_v25 = vsub.f32 %v13299_v18, %v13358_v44  ;;  %v818_v31 = vsub.f32 %v13302_v19, %v13358_v44  ;;  %v819_v45 = vsub.f32 %v13308_v30, %v13358_v44  ;;  %v822_v53 = vsub.f32 %v13332_v58, %v13358_v44  ;;  %v12438_v18 = vld [vmem:[%s15548_s3 + $0x140] sm:$0xff]  }
 0x14a   : > { %v823_v56 = vsub.f32 %v13341_v4, %v13358_v44  ;;  %11420 = vmatprep.subr.bf16.mxu1 %v12438_v18 }
 0x154   : > { %v12861_v16 = vpop.eup %12860 }
 0x155   : > { %v854_v46 = vmul.f32 %v12861_v16, %v820_v3  ;;  %v855_v37 = vmul.f32 %v12861_v16, %v821_v55  ;;  %v826_v20 = vmul.f32 %v12861_v16, %v792_v6  ;;  %v827_v11 = vmul.f32 %v12861_v16, %v793_v7 }
 0x156   : > { %v828_v23 = vmul.f32 %v12861_v16, %v794_v10  ;;  %v829_v35 = vmul.f32 %v12861_v16, %v795_v28  ;;  %v830_v19 = vmul.f32 %v12861_v16, %v796_v14  ;;  %v831_v12 = vmul.f32 %v12861_v16, %v797_v40  ;;  %v12442_v10 = vld [vmem:[%s15548_s3 + $0x100] sm:$0xff]  }
 0x157   : > { %v886_v27 = vmax.f32 %v854_v46, 0.0  ;;  %v887_v30 = vmax.f32 %v855_v37, 0.0  ;;  %v832_v57 = vmul.f32 %v12861_v16, %v798_v51  ;;  %v833_v32 = vmul.f32 %v12861_v16, %v799_v41  ;;  %11421 = vmatpush3.bf16.msra.mxu1 %v12442_v10 }
 0x158   : > { %v834_v58 = vmul.f32 %v12861_v16, %v800_v49  ;;  %v835_v63 = vmul.f32 %v12861_v16, %v801_v48  ;;  %v836_v4 = vmul.f32 %v12861_v16, %v802_v52  ;;  %v837_v34 = vmul.f32 %v12861_v16, %v803_v61 }
 0x159   : > { %919 = vst [vmem:[#allocation2 + $0x1e8] sm:$0xff] %v886_v27  ;;  %920 = vst [vmem:[#allocation2 + $0x1f0] sm:$0xff] %v887_v30  ;;  %v838_v29 = vmul.f32 %v12861_v16, %v804_v8  ;;  %v839_v36 = vmul.f32 %v12861_v16, %v805_v2  ;;  %v840_v24 = vmul.f32 %v12861_v16, %v806_v13  ;;  %v13446_v40 = vmax.f32 %v826_v20, 0.0 }
 0x15a   : > { %v841_v39 = vmul.f32 %v12861_v16, %v807_v21  ;;  %v842_v42 = vmul.f32 %v12861_v16, %v808_v33  ;;  %v843_v44 = vmul.f32 %v12861_v16, %v809_v26  ;;  %v844_v50 = vmul.f32 %v12861_v16, %v810_v38 }
 0x15b   : > { %v845_v17 = vmul.f32 %v12861_v16, %v811_v54  ;;  %v846_v59 = vmul.f32 %v12861_v16, %v812_v5  ;;  %v847_v62 = vmul.f32 %v12861_v16, %v813_v60  ;;  %v848_v0 = vmul.f32 %v12861_v16, %v814_v9  ;;  %891 = vst [vmem:[#allocation2 + $0x28] sm:$0xff] %v13446_v40 }
 0x15c   : > { %v849_v1 = vmul.f32 %v12861_v16, %v815_v15  ;;  %v850_v3 = vmul.f32 %v12861_v16, %v816_v22  ;;  %v851_v55 = vmul.f32 %v12861_v16, %v817_v25  ;;  %v13435_v6 = vmul.f32 %v12861_v16, %v818_v31 }
 0x15d   : > { %v13437_v7 = vmul.f32 %v12861_v16, %v819_v45  ;;  %v13442_v28 = vmul.f32 %v12861_v16, %v822_v53  ;;  %v13444_v14 = vmul.f32 %v12861_v16, %v823_v56  ;;  %v13448_v51 = vmax.f32 %v827_v11, 0.0 }
 0x15e   : > { %v13450_v41 = vmax.f32 %v828_v23, 0.0  ;;  %v13452_v49 = vmax.f32 %v829_v35, 0.0  ;;  %v13454_v48 = vmax.f32 %v830_v19, 0.0  ;;  %v13456_v52 = vmax.f32 %v831_v12, 0.0 }
 0x15f   : > { %v13458_v61 = vmax.f32 %v832_v57, 0.0  ;;  %v13460_v8 = vmax.f32 %v833_v32, 0.0  ;;  %v13462_v2 = vmax.f32 %v834_v58, 0.0  ;;  %v13464_v13 = vmax.f32 %v835_v63, 0.0  ;;  %892 = vst [vmem:[#allocation2 + $0x30] sm:$0xff] %v13448_v51 }
 0x160   : > { %v13468_v21 = vmax.f32 %v836_v4, 0.0  ;;  %v13470_v33 = vmax.f32 %v837_v34, 0.0  ;;  %v13472_v26 = vmax.f32 %v838_v29, 0.0  ;;  %v13474_v38 = vmax.f32 %v839_v36, 0.0  ;;  %893 = vst [vmem:[#allocation2 + $0x48] sm:$0xff] %v13450_v41  ;;  %894 = vst [vmem:[#allocation2 + $0x50] sm:$0xff] %v13452_v49 }
 0x161   : > { %895 = vst [vmem:[#allocation2 + $0x68] sm:$0xff] %v13454_v48  ;;  %896 = vst [vmem:[#allocation2 + $0x70] sm:$0xff] %v13456_v52  ;;  %v13480_v54 = vmax.f32 %v840_v24, 0.0  ;;  %v13482_v5 = vmax.f32 %v841_v39, 0.0  ;;  %v874_v60 = vmax.f32 %v842_v42, 0.0  ;;  %v875_v9 = vmax.f32 %v843_v44, 0.0 }
 0x162   : > { %897 = vst [vmem:[#allocation2 + $0x88] sm:$0xff] %v13458_v61  ;;  %898 = vst [vmem:[#allocation2 + $0x90] sm:$0xff] %v13460_v8  ;;  %v876_v15 = vmax.f32 %v844_v50, 0.0  ;;  %v877_v22 = vmax.f32 %v845_v17, 0.0  ;;  %v878_v25 = vmax.f32 %v846_v59, 0.0  ;;  %v879_v16 = vmax.f32 %v847_v62, 0.0 }
 0x163   : > { %899 = vst [vmem:[#allocation2 + $0xa8] sm:$0xff] %v13462_v2  ;;  %900 = vst [vmem:[#allocation2 + $0xb0] sm:$0xff] %v13464_v13  ;;  %v880_v31 = vmax.f32 %v848_v0, 0.0  ;;  %v881_v45 = vmax.f32 %v849_v1, 0.0  ;;  %v882_v53 = vmax.f32 %v850_v3, 0.0  ;;  %v883_v56 = vmax.f32 %v851_v55, 0.0 }
 0x164   : > { %901 = vst [vmem:[#allocation2 + $0xc8] sm:$0xff] %v13468_v21  ;;  %902 = vst [vmem:[#allocation2 + $0xd0] sm:$0xff] %v13470_v33  ;;  %v884_v46 = vmax.f32 %v13435_v6, 0.0  ;;  %v885_v37 = vmax.f32 %v13437_v7, 0.0  ;;  %v888_v20 = vmax.f32 %v13442_v28, 0.0  ;;  %v889_v11 = vmax.f32 %v13444_v14, 0.0 }
 0x165   : > { %903 = vst [vmem:[#allocation2 + $0xe8] sm:$0xff] %v13472_v26  ;;  %904 = vst [vmem:[#allocation2 + $0xf0] sm:$0xff] %v13474_v38  ;;  %v10616_v18 = vpack.c.bf16 %v13446_v40, %v13446_v40  ;;  %v10617_v23 = vpack.c.bf16 %v13448_v51, %v13448_v51  ;;  %v10618_v35 = vpack.c.bf16 %v13450_v41, %v13450_v41  ;;  %v925_v12 = vld [vmem:[#allocation2 + $0x27] sm:$0xff]  ;;  %v954_v51 = vld [vmem:[#allocation2 + $0x1ef] sm:$0xff] }
 0x166   : > { %905 = vst [vmem:[#allocation2 + $0x108] sm:$0xff] %v13480_v54  ;;  %906 = vst [vmem:[#allocation2 + $0x110] sm:$0xff] %v13482_v5  ;;  %v10619_v19 = vpack.c.bf16 %v13452_v49, %v13452_v49  ;;  %v926_v27 = vld [vmem:[#allocation2 + $0x2f] sm:$0xff]  ;;  %v10620_v57 = vpack.c.bf16 %v13454_v48, %v13454_v48  ;;  %v10621_v32 = vpack.c.bf16 %v13456_v52, %v13456_v52  ;;  %v13522_v3 = vld [vmem:[#allocation2 + $0x1e7] sm:$0xff] }
 0x167   : > { %907 = vst [vmem:[#allocation2 + $0x128] sm:$0xff] %v874_v60  ;;  %908 = vst [vmem:[#allocation2 + $0x130] sm:$0xff] %v875_v9  ;;  %v1309_v30 = vld [vmem:[#allocation2 + $0x29] sm:$0xff]  ;;  %v10622_v58 = vpack.c.bf16 %v13458_v61, %v13458_v61  ;;  %v10623_v63 = vpack.c.bf16 %v13460_v8, %v13460_v8  ;;  %v10584_v36 = vpack.c.bf16 %v925_v12, %v925_v12 }
 0x168   : > { %909 = vst [vmem:[#allocation2 + $0x148] sm:$0xff] %v876_v15  ;;  %910 = vst [vmem:[#allocation2 + $0x150] sm:$0xff] %v877_v22  ;;  %v928_v4 = vld [vmem:[#allocation2 + $0x4f] sm:$0xff]  ;;  %v10585_v24 = vpack.c.bf16 %v926_v27, %v926_v27  ;;  %v10648_v39 = vpack.c.bf16 %v1309_v30, %v1309_v30  ;;  %v10624_v42 = vpack.c.bf16 %v13462_v2, %v13462_v2 }
 0x169   : > { %911 = vst [vmem:[#allocation2 + $0x168] sm:$0xff] %v878_v25  ;;  %912 = vst [vmem:[#allocation2 + $0x170] sm:$0xff] %v879_v16  ;;  %v1311_v34 = vld [vmem:[#allocation2 + $0x49] sm:$0xff]  ;;  %v2463_v17 = vld [vmem:[#allocation2 + $0x71] sm:$0xff]  ;;  %v13516_v62 = vpack.c.bf16 %v928_v4, %v928_v4  ;;  %v10625_v1 = vpack.c.bf16 %v13464_v13, %v13464_v13  ;;  %v10626_v40 = vpack.c.bf16 %v13468_v21, %v13468_v21 }
 0x16a   : > { %913 = vst [vmem:[#allocation2 + $0x188] sm:$0xff] %v880_v31  ;;  %914 = vst [vmem:[#allocation2 + $0x190] sm:$0xff] %v881_v45  ;;  %v2462_v29 = vld [vmem:[#allocation2 + $0x69] sm:$0xff]  ;;  %v13518_v0 = vpack.c.bf16 %v1311_v34, %v1311_v34  ;;  %v10841_v10 = vpack.c.bf16 %v2463_v17, %v2463_v17  ;;  %v10627_v2 = vpack.c.bf16 %v13470_v33, %v13470_v33  ;;  %v13593_v4 = vld [vmem:[%s15548_s3 + $0x1b8] sm:$0xff]  }
 0x16b   : > { %915 = vst [vmem:[#allocation2 + $0x1a8] sm:$0xff] %v882_v53  ;;  %916 = vst [vmem:[#allocation2 + $0x1b0] sm:$0xff] %v883_v56  ;;  %v932_v44 = vld [vmem:[#allocation2 + $0x8f] sm:$0xff]  ;;  %v10840_v59 = vpack.c.bf16 %v2462_v29, %v2462_v29  ;;  %v10628_v21 = vpack.c.bf16 %v13472_v26, %v13472_v26  ;;  %v10629_v15 = vpack.c.bf16 %v13474_v38, %v13474_v38 }
 0x16c   : > { %917 = vst [vmem:[#allocation2 + $0x1c8] sm:$0xff] %v884_v46  ;;  %918 = vst [vmem:[#allocation2 + $0x1d0] sm:$0xff] %v885_v37  ;;  %v1315_v50 = vld [vmem:[#allocation2 + $0x89] sm:$0xff]  ;;  %v13524_v28 = vpack.c.bf16 %v932_v44, %v932_v44  ;;  %v10630_v26 = vpack.c.bf16 %v13480_v54, %v13480_v54  ;;  %v10631_v38 = vpack.c.bf16 %v13482_v5, %v13482_v5  ;;  %v1338_v56 = vld [vmem:[#allocation2 + $0x1f1] sm:$0xff] }
 0x16d   : > { %921 = vst [vmem:[#allocation2 + $0x208] sm:$0xff] %v888_v20  ;;  %922 = vst [vmem:[#allocation2 + $0x210] sm:$0xff] %v889_v11  ;;  %v936_v55 = vld [vmem:[#allocation2 + $0xcf] sm:$0xff]  ;;  %v13526_v14 = vpack.c.bf16 %v1315_v50, %v1315_v50  ;;  %v10613_v12 = vpack.c.bf16 %v954_v51, %v954_v51 }
 0x16e   : > { %1277 = vst [vmem:[#allocation3 + $0x4c] sm:$0xf] %v10616_v18  ;;  %1278 = vst [vmem:[#allocation3 + $0x70] sm:$0xf] %v10617_v23  ;;  %v1319_v6 = vld [vmem:[#allocation2 + $0xc9] sm:$0xff]  ;;  %v13537_v8 = vpack.c.bf16 %v936_v55, %v936_v55  ;;  %v10612_v23 = vpack.c.bf16 %v13522_v3, %v13522_v3 }
 0x16f   : > { %1279 = vst [vmem:[#allocation3 + $0x94] sm:$0xf] %v10618_v35  ;;  %1280 = vst [vmem:[#allocation3 + $0xb8] sm:$0xf] %v10619_v19  ;;  %v2466_v7 = vld [vmem:[#allocation2 + $0xa9] sm:$0xff]  ;;  %v13550_v33 = vpack.c.bf16 %v1319_v6, %v1319_v6 }
 0x170   : > { %1281 = vst [vmem:[#allocation3 + $0xdc] sm:$0xf] %v10620_v57  ;;  %1282 = vst [vmem:[#allocation3 + $0x100] sm:$0xf] %v10621_v32  ;;  %v13530_v41 = vld [vmem:[#allocation2 + $0x1e8] sm:$0xff]  ;;  %v13532_v49 = vld [vmem:[#allocation2 + $0x1f0] sm:$0xff]  ;;  %v13541_v13 = vpack.c.bf16 %v2466_v7, %v2466_v7 }
 0x171   : > { %1283 = vst [vmem:[#allocation3 + $0x124] sm:$0xf] %v10622_v58  ;;  %1284 = vst [vmem:[#allocation3 + $0x148] sm:$0xf] %v10623_v63  ;;  %v940_v48 = vld [vmem:[#allocation2 + $0x10f] sm:$0xff]  ;;  %v927_v35 = vld [vmem:[#allocation2 + $0x47] sm:$0xff]  ;;  %v10644_v27 = vpack.c.bf16 %v13530_v41, %v13530_v41  ;;  %v10645_v30 = vpack.c.bf16 %v13532_v49, %v13532_v49 }
 0x172   : > { %1085 = vst [vmem:[#allocation3 + $0x48] sm:$0xf] %v10584_v36  ;;  %1086 = vst [vmem:[#allocation3 + $0x6c] sm:$0xf] %v10585_v24  ;;  %v1323_v52 = vld [vmem:[#allocation2 + $0x109] sm:$0xff]  ;;  %v13552_v22 = vpack.c.bf16 %v940_v48, %v940_v48  ;;  %v10586_v57 = vpack.c.bf16 %v927_v35, %v927_v35  ;;  %v1310_v32 = vld [vmem:[#allocation2 + $0x31] sm:$0xff] }
 0x173   : > { %1659 = vst [vmem:[#allocation3 + $0xc] sm:$0xf] %v10584_v36  ;;  %1660 = vst [vmem:[#allocation3 + $0x30] sm:$0xf] %v10585_v24  ;;  %v2470_v61 = vld [vmem:[#allocation2 + $0xe9] sm:$0xff]  ;;  %v13565_v53 = vpack.c.bf16 %v1323_v52, %v1323_v52  ;;  %v10677_v36 = vpack.c.bf16 %v1338_v56, %v1338_v56  ;;  %v1322_v56 = vld [vmem:[#allocation2 + $0xf1] sm:$0xff] }
 0x174   : > { %1469 = vst [vmem:[#allocation3 + $0x50] sm:$0xf] %v10648_v39  ;;  %1285 = vst [vmem:[#allocation3 + $0x16c] sm:$0xf] %v10624_v42  ;;  %v944_v60 = vld [vmem:[#allocation2 + $0x14f] sm:$0xff]  ;;  %v13563_v45 = vpack.c.bf16 %v2470_v61, %v2470_v61  ;;  %v929_v58 = vld [vmem:[#allocation2 + $0x67] sm:$0xff]  ;;  %v10649_v39 = vpack.c.bf16 %v1310_v32, %v1310_v32 }
 0x175   : > { %2622 = vst [vmem:[#allocation3 + $0x68] sm:$0xf] %v10840_v59  ;;  %1088 = vst [vmem:[#allocation3 + $0xb4] sm:$0xf] %v13516_v62  ;;  %v1327_v9 = vld [vmem:[#allocation2 + $0x149] sm:$0xff]  ;;  %v13567_v54 = vpack.c.bf16 %v944_v60, %v944_v60  ;;  %v10588_v42 = vpack.c.bf16 %v929_v58, %v929_v58 }
 0x176   : > { %1662 = vst [vmem:[#allocation3 + $0x78] sm:$0xf] %v13516_v62  ;;  %1471 = vst [vmem:[#allocation3 + $0x98] sm:$0xf] %v13518_v0  ;;  %v13556_v25 = vld [vmem:[#allocation2 + $0x1e9] sm:$0xff]  ;;  %v13572_v11 = vpack.c.bf16 %v1327_v9, %v1327_v9 }
 0x177   : > { %1473 = vst [vmem:[#allocation3 + $0xe0] sm:$0xf] %v10840_v59  ;;  %1286 = vst [vmem:[#allocation3 + $0x190] sm:$0xf] %v10625_v1  ;;  %v948_v16 = vld [vmem:[#allocation2 + $0x18f] sm:$0xff]  ;;  %v10676_v29 = vpack.c.bf16 %v13556_v25, %v13556_v25  ;;  %v931_v49 = vld [vmem:[#allocation2 + $0x87] sm:$0xff] }
 0x178   : > { %2623 = vst [vmem:[#allocation3 + $0x8c] sm:$0xf] %v10841_v10  ;;  %1092 = vst [vmem:[#allocation3 + $0x144] sm:$0xf] %v13524_v28  ;;  %v1331_v31 = vld [vmem:[#allocation2 + $0x189] sm:$0xff]  ;;  %v13574_v5 = vpack.c.bf16 %v948_v16, %v948_v16  ;;  %v10590_v52 = vpack.c.bf16 %v931_v49, %v931_v49  ;;  %v1320_v16 = vld [vmem:[#allocation2 + $0xd1] sm:$0xff] }
 0x179   : > { %1474 = vst [vmem:[#allocation3 + $0x104] sm:$0xf] %v10841_v10  ;;  %1666 = vst [vmem:[#allocation3 + $0x108] sm:$0xf] %v13524_v28  ;;  %v952_v46 = vld [vmem:[#allocation2 + $0x1cf] sm:$0xff]  ;;  %v13576_v18 = vpack.c.bf16 %v1331_v31, %v1331_v31  ;;  %v933_v61 = vld [vmem:[#allocation2 + $0xa7] sm:$0xff] }
 0x17a   : > { %1475 = vst [vmem:[#allocation3 + $0x128] sm:$0xf] %v13526_v14  ;;  %1287 = vst [vmem:[#allocation3 + $0x1b4] sm:$0xf] %v10626_v40  ;;  %v1335_v37 = vld [vmem:[#allocation2 + $0x1c9] sm:$0xff]  ;;  %v13584_v19 = vpack.c.bf16 %v952_v46, %v952_v46  ;;  %v1312_v10 = vld [vmem:[#allocation2 + $0x51] sm:$0xff] }
 0x17b   : > { %1096 = vst [vmem:[#allocation3 + $0x1d4] sm:$0xf] %v13537_v8  ;;  %1288 = vst [vmem:[#allocation3 + $0x1d8] sm:$0xf] %v10627_v2  ;;  %v1530_v20 = vld [vmem:[#allocation2 + $0x20f] sm:$0xff]  ;;  %v13599_v34 = vpack.c.bf16 %v1335_v37, %v1335_v37  ;;  %v10651_v41 = vpack.c.bf16 %v1312_v10, %v1312_v10  ;;  %v935_v9 = vld [vmem:[#allocation2 + $0xc7] sm:$0xff] }
 0x17c   : > { %1477 = vst [vmem:[#allocation3 + $0x170] sm:$0xf] %v13541_v13  ;;  %1670 = vst [vmem:[#allocation3 + $0x198] sm:$0xf] %v13537_v8  ;;  %v930_v63 = vld [vmem:[#allocation2 + $0x6f] sm:$0xff]  ;;  %v13610_v17 = vpack.c.bf16 %v1530_v20, %v1530_v20  ;;  %v943_v49 = vld [vmem:[#allocation2 + $0x147] sm:$0xff] }
 0x17d   : > { %1289 = vst [vmem:[#allocation3 + $0x1fc] sm:$0xf] %v10628_v21  ;;  %1290 = vst [vmem:[#allocation3 + $0x220] sm:$0xf] %v10629_v15  ;;  %v12339_v24 = vld [vmem:[#allocation3 + $0x4c] ss:$36 sps:$4 sm:$0xff]   ;;  %v10589_v44 = vpack.c.bf16 %v930_v63, %v930_v63 }
 0x17e   : > { %1479 = vst [vmem:[#allocation3 + $0x1b8] sm:$0xf] %v13550_v33  ;;  %1100 = vst [vmem:[#allocation3 + $0x264] sm:$0xf] %v13552_v22  ;;  %v13606_v50 = vld [vmem:[%s15548_s3 + $0x1f0] sm:$0xff]   ;;  %v2653_v59 = vld [vmem:[#allocation3 + $0x8] sm:$0xff]  ;;  %4171 = vmatprep.mubr.bf16.mxu1 %v12339_v24 }
 0x17f   : > { %1291 = vst [vmem:[#allocation3 + $0x244] sm:$0xf] %v10630_v26  ;;  %1674 = vst [vmem:[#allocation3 + $0x228] sm:$0xf] %v13552_v22  ;;  %v2658_v1 = vld [vmem:[#allocation3 + $0x2c] sm:$0xff]  ;;  %v12443_v63 = vld [vmem:[%s15548_s3 + $0x1a0] sm:$0xff]  }
 0x180   : > { %1292 = vst [vmem:[#allocation3 + $0x268] sm:$0xf] %v10631_v38  ;;  %1481 = vst [vmem:[#allocation3 + $0x200] sm:$0xf] %v13563_v45  ;;  %v12341_v3 = vld [vmem:[#allocation3 + $0xc] ss:$36 sps:$4 sm:$0xff]   ;;  %v9860_v7 = vcombine.low %v2653_v59, %v2658_v1 }
 0x181   : > { %1483 = vst [vmem:[#allocation3 + $0x248] sm:$0xf] %v13565_v53  ;;  %1104 = vst [vmem:[#allocation3 + $0x2f4] sm:$0xf] %v13567_v54  ;;  %v1719_v55 = vld [vmem:[#allocation2 + $0x1e8] sm:$0xff]  ;;  %v1720_v40 = vld [vmem:[#allocation2 + $0x1f0] sm:$0xff]  ;;  %4324 = vmatprep.mubr.bf16.mxu0 %v12341_v3 }
 0x182   : > { %1678 = vst [vmem:[#allocation3 + $0x2b8] sm:$0xf] %v13567_v54  ;;  %1487 = vst [vmem:[#allocation3 + $0x2d8] sm:$0xf] %v13572_v11  ;;  %v12343_v6 = vld [vmem:[#allocation3 + $0x48] ss:$36 sps:$4 sm:$0xff]   ;;  %4325 = vmatmul.mubr.bf16.vlgmr.msra.gmra.mxu0 %v9860_v7  ;;  %v10738_v31 = vpack.c.bf16 %v1719_v55, %v1719_v55  ;;  %v10739_v37 = vpack.c.bf16 %v1720_v40, %v1720_v40 }
 0x183   : > { %1108 = vst [vmem:[#allocation3 + $0x384] sm:$0xf] %v13574_v5  ;;  %1682 = vst [vmem:[#allocation3 + $0x348] sm:$0xf] %v13574_v5  ;;  %v13616_v51 = vld [vmem:[#allocation2 + $0x209] sm:$0xff]  ;;  %4172 = vmatmul.mubr.bf16.gmra.mxu1 %v12343_v6  ;;  %v1316_v21 = vld [vmem:[#allocation2 + $0x91] sm:$0xff]  ;;  %11519 = vmatpush3.bf16.msra.mxu0 %v13593_v4 }
 0x184   : > { %1491 = vst [vmem:[#allocation3 + $0x368] sm:$0xf] %v13576_v18  ;;  %1113 = vst [vmem:[#allocation3 + $0x438] sm:$0xf] %v10612_v23  ;;  %v13629_v48 = vld [vmem:[#allocation2 + $0x169] sm:$0xff]  ;;  %v10655_v60 = vpack.c.bf16 %v1316_v21, %v1316_v21  ;;  %v1318_v15 = vld [vmem:[#allocation2 + $0xb1] sm:$0xff]  ;;  %11520 = vmatprep.subr.bf16.mxu0 %v13606_v50 }
 0x185   : > { %1687 = vst [vmem:[#allocation3 + $0x3fc] sm:$0xf] %v10612_v23  ;;  %1112 = vst [vmem:[#allocation3 + $0x414] sm:$0xf] %v13584_v19  ;;  %v934_v2 = vld [vmem:[#allocation2 + $0xaf] sm:$0xff]  ;;  %v937_v26 = vld [vmem:[#allocation2 + $0xe7] sm:$0xff]  ;;  %v10772_v23 = vpack.c.bf16 %v13616_v51, %v13616_v51 }
 0x186   : > { %1686 = vst [vmem:[#allocation3 + $0x3d8] sm:$0xf] %v13584_v19  ;;  %1114 = vst [vmem:[#allocation3 + $0x45c] sm:$0xf] %v10613_v12  ;;  %v938_v25 = vld [vmem:[#allocation2 + $0xef] sm:$0xff]  ;;  %v941_v3 = vld [vmem:[#allocation2 + $0x127] sm:$0xff] }
 0x187   : > { %1305 = vst [vmem:[#allocation3 + $0x43c] sm:$0xf] %v10644_v27  ;;  %1306 = vst [vmem:[#allocation3 + $0x460] sm:$0xf] %v10645_v30  ;;  %v10597_v38 = vpack.c.bf16 %v938_v25, %v938_v25  ;;  %v12427_v46 = vld [vmem:[%s15548_s3 + $0x1a8] sm:$0xff]   ;;  %v10600_v7 = vpack.c.bf16 %v941_v3, %v941_v3  ;;  %v1134_v40 = vld [vmem:[#allocation2 + $0x130] sm:$0xff] }
 0x188   : > { %1688 = vst [vmem:[#allocation3 + $0x420] sm:$0xf] %v10613_v12  ;;  %1087 = vst [vmem:[#allocation3 + $0x90] sm:$0xf] %v10586_v57  ;;  %v12344_v20 = vld [vmem:[#allocation3 + $0x94] ss:$36 sps:$4 sm:$0xff]  }
 0x189   : > { %1661 = vst [vmem:[#allocation3 + $0x54] sm:$0xf] %v10586_v57  ;;  %1495 = vst [vmem:[#allocation3 + $0x3f8] sm:$0xf] %v13599_v34  ;;  %4179 = vmatprep.mubr.bf16.mxu1 %v12344_v20  ;;  %v12352_v32 = vld [vmem:[#allocation3 + $0xdc] ss:$36 sps:$4 sm:$0xff]  }
 0x18a   : > { %1497 = vst [vmem:[#allocation3 + $0x440] sm:$0xf] %v10676_v29  ;;  %1498 = vst [vmem:[#allocation3 + $0x464] sm:$0xf] %v10677_v36  ;;  %v2486_v4 = vld [vmem:[#allocation2 + $0x1e9] sm:$0xff]  ;;  %v1328_v25 = vld [vmem:[#allocation2 + $0x151] sm:$0xff] }
 0x18b   : > { %5720 = vst [vmem:[#allocation3 + $0x8] sm:$0xf] %v13107_v43  ;;  %5721 = vst [vmem:[#allocation3 + $0x2c] sm:$0xf] %v13114_v47  ;;  %v13621_v43 = vld [vmem:[%s15548_s3 + $0x1b0] sm:$0xff]   ;;  %v10864_v36 = vpack.c.bf16 %v2486_v4, %v2486_v4  ;;  %v1133_v6 = vld [vmem:[#allocation2 + $0x128] sm:$0xff] }
 0x18c   : > { %1470 = vst [vmem:[#allocation3 + $0x74] sm:$0xf] %v10649_v39  ;;  %1089 = vst [vmem:[#allocation3 + $0xd8] sm:$0xf] %v10588_v42  ;;  %v13627_v47 = vld [vmem:[#allocation2 + $0x129] sm:$0xff]  ;;  %11521 = vmatpush3.bf16.msra.mxu0 %v13621_v43  ;;  %v10632_v51 = vpack.c.bf16 %v1133_v6, %v1133_v6  ;;  %v10633_v43 = vpack.c.bf16 %v1134_v40, %v1134_v40 }
 0x18d   : > { %1090 = vst [vmem:[#allocation3 + $0xfc] sm:$0xf] %v10589_v44  ;;  %1663 = vst [vmem:[#allocation3 + $0x9c] sm:$0xf] %v10588_v42  ;;  %v10852_v27 = vpack.c.bf16 %v13627_v47, %v13627_v47  ;;  %v12358_v24 = vld [vmem:[#allocation3 + $0x124] ss:$36 sps:$4 sm:$0xff]  }
 0x18e   : > { %1664 = vst [vmem:[#allocation3 + $0xc0] sm:$0xf] %v10589_v44  ;;  %1690 = vst [vmem:[#allocation3 + $0x468] sm:$0xf] %v13610_v17  ;;  %v12456_v42 = vld [vmem:[%s15548_s3 + $0x1d0] sm:$0xff]  }
 0x18f   : > { %2045 = vst [vmem:[#allocation3 + $0x5c] sm:$0xf] %v13518_v0  ;;  %2237 = vst [vmem:[#allocation3 + $0x3c] sm:$0xf] %v13516_v62  ;;  %v13634_v0 = vld [vmem:[%s15548_s3 + $0x1e8] sm:$0xff]   ;;  %v12457_v44 = vld [vmem:[%s15548_s3 + $0x190] sm:$0xff]  }
 0x190   : > { %2049 = vst [vmem:[#allocation3 + $0xec] sm:$0xf] %v13526_v14  ;;  %2241 = vst [vmem:[#allocation3 + $0xcc] sm:$0xf] %v13524_v28  ;;  %v13639_v62 = vld [vmem:[#allocation2 + $0x1a9] sm:$0xff]  ;;  %v10592_v28 = vpack.c.bf16 %v933_v61, %v933_v61  ;;  %v10593_v14 = vpack.c.bf16 %v934_v2, %v934_v2  ;;  %11522 = vmatprep.subr.bf16.mxu0 %v13634_v0 }
 0x191   : > { %2053 = vst [vmem:[#allocation3 + $0x17c] sm:$0xf] %v13550_v33  ;;  %2245 = vst [vmem:[#allocation3 + $0x15c] sm:$0xf] %v13537_v8  ;;  %v10594_v8 = vpack.c.bf16 %v935_v9, %v935_v9  ;;  %v10657_v33 = vpack.c.bf16 %v1318_v15, %v1318_v15  ;;  %v12346_v35 = vld [vmem:[#allocation3 + $0x54] ss:$36 sps:$4 sm:$0xff]   ;;  %v10860_v57 = vpack.c.bf16 %v13639_v62, %v13639_v62  ;;  %11523 = vmatpush3.bf16.msra.mxu0 %v12427_v46 }
 0x192   : > { %2057 = vst [vmem:[#allocation3 + $0x20c] sm:$0xf] %v13565_v53  ;;  %1472 = vst [vmem:[#allocation3 + $0xbc] sm:$0xf] %v10651_v41  ;;  %v10659_v53 = vpack.c.bf16 %v1320_v16, %v1320_v16  ;;  %v12349_v12 = vld [vmem:[#allocation3 + $0x90] ss:$36 sps:$4 sm:$0xff]   ;;  %4332 = vmatprep.mubr.bf16.mxu0 %v12346_v35 }
 0x193   : > { %2249 = vst [vmem:[#allocation3 + $0x1ec] sm:$0xf] %v13552_v22  ;;  %2061 = vst [vmem:[#allocation3 + $0x29c] sm:$0xf] %v13572_v11  ;;  %v10596_v22 = vpack.c.bf16 %v937_v26, %v937_v26  ;;  %v12350_v30 = vld [vmem:[#allocation3 + $0x50] ss:$36 sps:$4 sm:$0xff]   ;;  %4180 = vmatmul.mubr.bf16.gmra.mxu1 %v12349_v12 }
 0x194   : > { %2253 = vst [vmem:[#allocation3 + $0x27c] sm:$0xf] %v13567_v54  ;;  %1091 = vst [vmem:[#allocation3 + $0x120] sm:$0xf] %v10590_v52  ;;  %v939_v54 = vld [vmem:[#allocation2 + $0x107] sm:$0xff]  ;;  %4333 = vmatmul.mubr.bf16.gmra.mxu0 %v12350_v30  ;;  %4187 = vmatprep.mubr.bf16.mxu1 %v12352_v32  ;;  %v942_v55 = vld [vmem:[#allocation2 + $0x12f] sm:$0xff] }
 0x195   : > { %1665 = vst [vmem:[#allocation3 + $0xe4] sm:$0xf] %v10590_v52  ;;  %2065 = vst [vmem:[#allocation3 + $0x32c] sm:$0xf] %v13576_v18  ;;  %v10598_v11 = vpack.c.bf16 %v939_v54, %v939_v54  ;;  %v12439_v18 = vld [vmem:[%s15548_s3 + $0x1e0] sm:$0xff]   ;;  %v10601_v10 = vpack.c.bf16 %v942_v55, %v942_v55  ;;  %v1324_v41 = vld [vmem:[#allocation2 + $0x111] sm:$0xff] }
 0x196   : > { %2257 = vst [vmem:[#allocation3 + $0x30c] sm:$0xf] %v13574_v5  ;;  %1093 = vst [vmem:[#allocation3 + $0x168] sm:$0xf] %v10592_v28  ;;  %v10661_v5 = vpack.c.bf16 %v1322_v56, %v1322_v56  ;;  %v12354_v58 = vld [vmem:[#allocation3 + $0x9c] ss:$36 sps:$4 sm:$0xff]   ;;  %11524 = vmatprep.subr.bf16.mxu0 %v12439_v18  ;;  %v10663_v47 = vpack.c.bf16 %v1324_v41, %v1324_v41 }
 0x197   : > { %1094 = vst [vmem:[#allocation3 + $0x18c] sm:$0xf] %v10593_v14  ;;  %1476 = vst [vmem:[#allocation3 + $0x14c] sm:$0xf] %v10655_v60  ;;  %4340 = vmatprep.mubr.bf16.mxu0 %v12354_v58  ;;  %11525 = vmatpush3.bf16.msra.mxu0 %v12443_v63  ;;  %v12366_v59 = vld [vmem:[#allocation3 + $0x16c] ss:$36 sps:$4 sm:$0xff]  }
 0x198   : > { %1667 = vst [vmem:[#allocation3 + $0x12c] sm:$0xf] %v10592_v28  ;;  %1668 = vst [vmem:[#allocation3 + $0x150] sm:$0xf] %v10593_v14  ;;  %v1135_v52 = vld [vmem:[#allocation2 + $0x148] sm:$0xff]  ;;  %v1136_v61 = vld [vmem:[#allocation2 + $0x150] sm:$0xff] }
 0x199   : > { %2069 = vst [vmem:[#allocation3 + $0x3bc] sm:$0xf] %v13599_v34  ;;  %1095 = vst [vmem:[#allocation3 + $0x1b0] sm:$0xf] %v10594_v8  ;;  %v12455_v34 = vld [vmem:[%s15548_s3 + $0x198] sm:$0xff]   ;;  %v1325_v2 = vld [vmem:[#allocation2 + $0x129] sm:$0xff]  ;;  %v10634_v21 = vpack.c.bf16 %v1135_v52, %v1135_v52  ;;  %v10635_v0 = vpack.c.bf16 %v1136_v61, %v1136_v61 }
 0x19a   : > { %1478 = vst [vmem:[#allocation3 + $0x194] sm:$0xf] %v10657_v33  ;;  %1669 = vst [vmem:[#allocation3 + $0x174] sm:$0xf] %v10594_v8  ;;  %v12357_v29 = vld [vmem:[#allocation3 + $0x98] ss:$36 sps:$4 sm:$0xff]   ;;  %v10664_v28 = vpack.c.bf16 %v1325_v2, %v1325_v2 }
 0x19b   : > { %2261 = vst [vmem:[#allocation3 + $0x39c] sm:$0xf] %v13584_v19  ;;  %1879 = vst [vmem:[#allocation3 + $0x400] sm:$0xf] %v10738_v31  ;;  %v10856_v19 = vpack.c.bf16 %v13629_v48, %v13629_v48  ;;  %v12363_v50 = vld [vmem:[#allocation3 + $0x120] ss:$36 sps:$4 sm:$0xff]   ;;  %v10602_v48 = vpack.c.bf16 %v943_v49, %v943_v49 }
 0x19c   : > { %2454 = vst [vmem:[#allocation3 + $0x3c4] sm:$0xf] %v10738_v31  ;;  %1097 = vst [vmem:[#allocation3 + $0x1f8] sm:$0xf] %v10596_v22  ;;  %v12360_v39 = vld [vmem:[#allocation3 + $0xe4] ss:$36 sps:$4 sm:$0xff]   ;;  %4341 = vmatmul.mubr.bf16.gmra.mxu0 %v12357_v29 }
 0x19d   : > { %1098 = vst [vmem:[#allocation3 + $0x21c] sm:$0xf] %v10597_v38  ;;  %1480 = vst [vmem:[#allocation3 + $0x1dc] sm:$0xf] %v10659_v53  ;;  %4348 = vmatprep.mubr.bf16.mxu0 %v12360_v39  ;;  %v1326_v62 = vld [vmem:[#allocation2 + $0x131] sm:$0xff]  ;;  %v945_v14 = vld [vmem:[#allocation2 + $0x167] sm:$0xff] }
 0x19e   : > { %1671 = vst [vmem:[#allocation3 + $0x1bc] sm:$0xf] %v10596_v22  ;;  %1672 = vst [vmem:[#allocation3 + $0x1e0] sm:$0xf] %v10597_v38  ;;  %v946_v60 = vld [vmem:[#allocation2 + $0x16f] sm:$0xff]  ;;  %v10665_v9 = vpack.c.bf16 %v1326_v62, %v1326_v62  ;;  %v10604_v15 = vpack.c.bf16 %v945_v14, %v945_v14  ;;  %v10667_v22 = vpack.c.bf16 %v1328_v25, %v1328_v25  ;;  %v947_v38 = vld [vmem:[#allocation2 + $0x187] sm:$0xff] }
 0x19f   : > { %1880 = vst [vmem:[#allocation3 + $0x424] sm:$0xf] %v10739_v37  ;;  %2455 = vst [vmem:[#allocation3 + $0x3e8] sm:$0xf] %v10739_v37  ;;  %v12368_v1 = vld [vmem:[#allocation3 + $0x12c] ss:$36 sps:$4 sm:$0xff]   ;;  %v10605_v8 = vpack.c.bf16 %v946_v60, %v946_v60  ;;  %v10606_v56 = vpack.c.bf16 %v947_v38, %v947_v38 }
 0x1a0   : > { %1099 = vst [vmem:[#allocation3 + $0x240] sm:$0xf] %v10598_v11  ;;  %1482 = vst [vmem:[#allocation3 + $0x224] sm:$0xf] %v10661_v5  ;;  %v1137_v33 = vld [vmem:[#allocation2 + $0x168] sm:$0xff]  ;;  %v1138_v26 = vld [vmem:[#allocation2 + $0x170] sm:$0xff] }
 0x1a1   : > { %1673 = vst [vmem:[#allocation3 + $0x204] sm:$0xf] %v10598_v11  ;;  %2073 = vst [vmem:[#allocation3 + $0x44c] sm:$0xf] %v10772_v23  ;;  %v10636_v16 = vpack.c.bf16 %v1137_v33, %v1137_v33  ;;  %v10637_v31 = vpack.c.bf16 %v1138_v26, %v1138_v26  ;;  %v1139_v53 = vld [vmem:[#allocation2 + $0x188] sm:$0xff]  ;;  %v1140_v54 = vld [vmem:[#allocation2 + $0x190] sm:$0xff] }
 0x1a2   : > { %2265 = vst [vmem:[#allocation3 + $0x42c] sm:$0xf] %v13610_v17  ;;  %2626 = vst [vmem:[#allocation3 + $0xf8] sm:$0xf] %v13541_v13  ;;  %v12450_v13 = vld [vmem:[%s15548_s3 + $0x1d8] sm:$0xff]   ;;  %v10638_v46 = vpack.c.bf16 %v1139_v53, %v1139_v53  ;;  %v10639_v37 = vpack.c.bf16 %v1140_v54, %v1140_v54  ;;  %v1329_v20 = vld [vmem:[#allocation2 + $0x169] sm:$0xff] }
 0x1a3   : > { %2630 = vst [vmem:[#allocation3 + $0x188] sm:$0xf] %v13563_v45  ;;  %2634 = vst [vmem:[#allocation3 + $0x218] sm:$0xf] %v10852_v27  ;;  %v12356_v45 = vld [vmem:[#allocation3 + $0xd8] ss:$36 sps:$4 sm:$0xff]   ;;  %11526 = vmatprep.subr.bf16.mxu0 %v12450_v13  ;;  %v10668_v35 = vpack.c.bf16 %v1329_v20, %v1329_v20 }
 0x1a4   : > { %2638 = vst [vmem:[#allocation3 + $0x2a8] sm:$0xf] %v10856_v19  ;;  %2642 = vst [vmem:[#allocation3 + $0x338] sm:$0xf] %v10860_v57  ;;  %4188 = vmatmul.mubr.bf16.gmra.mxu1 %v12356_v45  ;;  %11527 = vmatpush3.bf16.msra.mxu0 %v12455_v34  ;;  %v12364_v17 = vld [vmem:[#allocation3 + $0xe0] ss:$36 sps:$4 sm:$0xff]  }
 0x1a5   : > { %2646 = vst [vmem:[#allocation3 + $0x3c8] sm:$0xf] %v10864_v36  ;;  %4195 = vmatprep.mubr.bf16.mxu1 %v12358_v24  ;;  %11528 = vmatprep.subr.bf16.mxu0 %v12456_v42  ;;  %1101 = vst [vmem:[#allocation3 + $0x288] sm:$0xf] %v10600_v7  ;;  %v1330_v11 = vld [vmem:[#allocation2 + $0x171] sm:$0xff]  ;;  %v949_v5 = vld [vmem:[#allocation2 + $0x1a7] sm:$0xff] }
 0x1a6   : > { %4349 = vmatmul.mubr.bf16.gmra.mxu0 %v12364_v17  ;;  %1102 = vst [vmem:[#allocation3 + $0x2ac] sm:$0xf] %v10601_v10  ;;  %1293 = vst [vmem:[#allocation3 + $0x28c] sm:$0xf] %v10632_v51  ;;  %v12370_v18 = vld [vmem:[#allocation3 + $0x168] ss:$36 sps:$4 sm:$0xff]   ;;  %v10669_v12 = vpack.c.bf16 %v1330_v11, %v1330_v11  ;;  %v10608_v19 = vpack.c.bf16 %v949_v5, %v949_v5 }
 0x1a7   : > { %1675 = vst [vmem:[#allocation3 + $0x24c] sm:$0xf] %v10600_v7  ;;  %1676 = vst [vmem:[#allocation3 + $0x270] sm:$0xf] %v10601_v10  ;;  %4356 = vmatprep.mubr.bf16.mxu0 %v12368_v1  ;;  %v12371_v23 = vld [vmem:[#allocation3 + $0x128] ss:$36 sps:$4 sm:$0xff]  }
 0x1a8   : > { %11529 = vmatpush3.bf16.msra.mxu0 %v12457_v44  ;;  %1294 = vst [vmem:[#allocation3 + $0x2b0] sm:$0xf] %v10633_v43  ;;  %1484 = vst [vmem:[#allocation3 + $0x26c] sm:$0xf] %v10663_v47  ;;  %v950_v27 = vld [vmem:[#allocation2 + $0x1af] sm:$0xff]  ;;  %v951_v34 = vld [vmem:[#allocation2 + $0x1c7] sm:$0xff] }
 0x1a9   : > { %1103 = vst [vmem:[#allocation3 + $0x2d0] sm:$0xf] %v10602_v48  ;;  %1677 = vst [vmem:[#allocation3 + $0x294] sm:$0xf] %v10602_v48  ;;  %v1141_v30 = vld [vmem:[#allocation2 + $0x1a8] sm:$0xff]  ;;  %v1142_v57 = vld [vmem:[#allocation2 + $0x1b0] sm:$0xff]  ;;  %v10609_v63 = vpack.c.bf16 %v950_v27, %v950_v27  ;;  %v10610_v24 = vpack.c.bf16 %v951_v34, %v951_v34 }
 0x1aa   : > { %1295 = vst [vmem:[#allocation3 + $0x2d4] sm:$0xf] %v10634_v21  ;;  %1296 = vst [vmem:[#allocation3 + $0x2f8] sm:$0xf] %v10635_v0  ;;  %v12372_v32 = vld [vmem:[#allocation3 + $0x1b4] ss:$36 sps:$4 sm:$0xff]   ;;  %v10640_v13 = vpack.c.bf16 %v1141_v30, %v1141_v30  ;;  %v10641_v4 = vpack.c.bf16 %v1142_v57, %v1142_v57 }
 0x1ab   : > { %1485 = vst [vmem:[#allocation3 + $0x290] sm:$0xf] %v10664_v28  ;;  %1486 = vst [vmem:[#allocation3 + $0x2b4] sm:$0xf] %v10665_v9  ;;  %v12374_v58 = vld [vmem:[#allocation3 + $0x174] ss:$36 sps:$4 sm:$0xff]  }
 0x1ac   : > { %4196 = vmatmul.mubr.bf16.gmra.mxu1 %v12363_v50  ;;  %1105 = vst [vmem:[#allocation3 + $0x318] sm:$0xf] %v10604_v15  ;;  %1106 = vst [vmem:[#allocation3 + $0x33c] sm:$0xf] %v10605_v8  ;;  %v1332_v45 = vld [vmem:[#allocation2 + $0x191] sm:$0xff]  ;;  %v1143_v29 = vld [vmem:[#allocation2 + $0x1c8] sm:$0xff] }
 0x1ad   : > { %4203 = vmatprep.mubr.bf16.mxu1 %v12366_v59  ;;  %1679 = vst [vmem:[#allocation3 + $0x2dc] sm:$0xf] %v10604_v15  ;;  %1680 = vst [vmem:[#allocation3 + $0x300] sm:$0xf] %v10605_v8  ;;  %v10671_v36 = vpack.c.bf16 %v1332_v45, %v1332_v45  ;;  %v1144_v39 = vld [vmem:[#allocation2 + $0x1d0] sm:$0xff]  ;;  %v10642_v42 = vpack.c.bf16 %v1143_v29, %v1143_v29  ;;  %v1529_v47 = vld [vmem:[#allocation2 + $0x207] sm:$0xff] }
 0x1ae   : > { %1297 = vst [vmem:[#allocation3 + $0x31c] sm:$0xf] %v10636_v16  ;;  %1298 = vst [vmem:[#allocation3 + $0x340] sm:$0xf] %v10637_v31  ;;  %v1333_v44 = vld [vmem:[#allocation2 + $0x1a9] sm:$0xff]  ;;  %v1334_v50 = vld [vmem:[#allocation2 + $0x1b1] sm:$0xff]  ;;  %v10643_v17 = vpack.c.bf16 %v1144_v39, %v1144_v39  ;;  %4357 = vmatmul.mubr.bf16.gmra.mxu0 %v12371_v23  ;;  %v10708_v52 = vpack.c.bf16 %v1529_v47, %v1529_v47 }
 0x1af   : > { %1488 = vst [vmem:[#allocation3 + $0x2fc] sm:$0xf] %v10667_v22  ;;  %1107 = vst [vmem:[#allocation3 + $0x360] sm:$0xf] %v10606_v56  ;;  %v10672_v59 = vpack.c.bf16 %v1333_v44, %v1333_v44  ;;  %v10673_v1 = vpack.c.bf16 %v1334_v50, %v1334_v50  ;;  %4364 = vmatprep.mubr.bf16.mxu0 %v12374_v58  ;;  %v12377_v3 = vld [vmem:[#allocation3 + $0x1b0] ss:$36 sps:$4 sm:$0xff]  }
 0x1b0   : > { %1299 = vst [vmem:[#allocation3 + $0x364] sm:$0xf] %v10638_v46  ;;  %1300 = vst [vmem:[#allocation3 + $0x388] sm:$0xf] %v10639_v37  ;;  %v12378_v55 = vld [vmem:[#allocation3 + $0x170] ss:$36 sps:$4 sm:$0xff]  }
 0x1b1   : > { %1681 = vst [vmem:[#allocation3 + $0x324] sm:$0xf] %v10606_v56  ;;  %1489 = vst [vmem:[#allocation3 + $0x320] sm:$0xf] %v10668_v35  ;;  %v12380_v6 = vld [vmem:[#allocation3 + $0x1fc] ss:$36 sps:$4 sm:$0xff]  }
 0x1b2   : > { %1490 = vst [vmem:[#allocation3 + $0x344] sm:$0xf] %v10669_v12  ;;  %1109 = vst [vmem:[#allocation3 + $0x3a8] sm:$0xf] %v10608_v19  ;;  %v12382_v7 = vld [vmem:[#allocation3 + $0x1bc] ss:$36 sps:$4 sm:$0xff]  }
 0x1b3   : > { %1683 = vst [vmem:[#allocation3 + $0x36c] sm:$0xf] %v10608_v19  ;;  %1110 = vst [vmem:[#allocation3 + $0x3cc] sm:$0xf] %v10609_v63  ;;  %v12384_v10 = vld [vmem:[#allocation3 + $0x1f8] ss:$36 sps:$4 sm:$0xff]  }
 0x1b4   : > { %1301 = vst [vmem:[#allocation3 + $0x3ac] sm:$0xf] %v10640_v13  ;;  %1302 = vst [vmem:[#allocation3 + $0x3d0] sm:$0xf] %v10641_v4  ;;  %4204 = vmatmul.mubr.bf16.gmra.mxu1 %v12370_v18  ;;  %v12385_v40 = vld [vmem:[#allocation3 + $0x1b8] ss:$36 sps:$4 sm:$0xff]  }
 0x1b5   : > { %1684 = vst [vmem:[#allocation3 + $0x390] sm:$0xf] %v10609_v63  ;;  %1492 = vst [vmem:[#allocation3 + $0x38c] sm:$0xf] %v10671_v36  ;;  %4211 = vmatprep.mubr.bf16.mxu1 %v12372_v32  ;;  %v12386_v51 = vld [vmem:[#allocation3 + $0x244] ss:$36 sps:$4 sm:$0xff]  }
 0x1b6   : > { %1111 = vst [vmem:[#allocation3 + $0x3f0] sm:$0xf] %v10610_v24  ;;  %1303 = vst [vmem:[#allocation3 + $0x3f4] sm:$0xf] %v10642_v42  ;;  %4365 = vmatmul.mubr.bf16.gmra.mxu0 %v12378_v55  ;;  %v12388_v41 = vld [vmem:[#allocation3 + $0x204] ss:$36 sps:$4 sm:$0xff]  }
 0x1b7   : > { %1685 = vst [vmem:[#allocation3 + $0x3b4] sm:$0xf] %v10610_v24  ;;  %1304 = vst [vmem:[#allocation3 + $0x418] sm:$0xf] %v10643_v17  ;;  %4372 = vmatprep.mubr.bf16.mxu0 %v12382_v7  ;;  %v1336_v49 = vld [vmem:[#allocation2 + $0x1d1] sm:$0xff]  ;;  %v1691_v48 = vld [vmem:[#allocation2 + $0x28] sm:$0xff]  ;;  %v11198_v24 = vpop.f32.mrf.mxu1 }
 0x1b8   : > { %1493 = vst [vmem:[#allocation3 + $0x3b0] sm:$0xf] %v10672_v59  ;;  %1494 = vst [vmem:[#allocation3 + $0x3d4] sm:$0xf] %v10673_v1  ;;  %v10675_v43 = vpack.c.bf16 %v1336_v49, %v1336_v49  ;;  %v1692_v61 = vld [vmem:[#allocation2 + $0x30] sm:$0xff]  ;;  %v10710_v2 = vpack.c.bf16 %v1691_v48, %v1691_v48  ;;  %v13687_v60 = vld [vmem:[%s15548_s3 + $0x238] sm:$0xff]  }
 0x1b9   : > { %v1883_v21 = vld [vmem:[#allocation2 + $0x29] sm:$0xff]  ;;  %v1884_v0 = vld [vmem:[#allocation2 + $0x31] sm:$0xff]  ;;  %v10711_v62 = vpack.c.bf16 %v1692_v61, %v1692_v61  ;;  %v12392_v8 = vld [vmem:[#allocation3 + $0x240] ss:$36 sps:$4 sm:$0xff]   ;;  %1689 = vst [vmem:[#allocation3 + $0x444] sm:$0xf] %v10708_v52  ;;  %12174 = vmatprep.subr.bf16.mxu1 %v13687_v60  ;;  %v11199_v50 = vpop.f32.mrf.mxu1 }
 0x1ba   : > { %1496 = vst [vmem:[#allocation3 + $0x41c] sm:$0xf] %v10675_v43  ;;  %v10742_v28 = vpack.c.bf16 %v1883_v21, %v1883_v21  ;;  %v10743_v14 = vpack.c.bf16 %v1884_v0, %v1884_v0  ;;  %v12461_v9 = vld [vmem:[%s15548_s3 + $0x1c8] sm:$0xff]   ;;  %v12393_v33 = vld [vmem:[#allocation3 + $0x200] ss:$36 sps:$4 sm:$0xff]   ;;  %v1694_v26 = vld [vmem:[#allocation2 + $0x50] sm:$0xff]  ;;  %v13702_v17 = vadd.f32 %v11199_v50, %v11198_v24 }
 0x1bb   : > { %v1693_v15 = vld [vmem:[#allocation2 + $0x48] sm:$0xff]  ;;  %1851 = vst [vmem:[#allocation3 + $0x10] sm:$0xf] %v10710_v2  ;;  %v1886_v16 = vld [vmem:[#allocation2 + $0x51] sm:$0xff]  ;;  %1852 = vst [vmem:[#allocation3 + $0x34] sm:$0xf] %v10711_v62  ;;  %11530 = vmatprep.subr.bf16.mxu0 %v12461_v9  ;;  %v10713_v53 = vpack.c.bf16 %v1694_v26, %v1694_v26 }
 0x1bc   : > { %4212 = vmatmul.mubr.bf16.gmra.mxu1 %v12377_v3  ;;  %v10712_v25 = vpack.c.bf16 %v1693_v15, %v1693_v15  ;;  %v12464_v31 = vld [vmem:[%s15548_s3 + $0x188] sm:$0xff]   ;;  %2043 = vst [vmem:[#allocation3 + $0x14] sm:$0xf] %v10742_v28  ;;  %2044 = vst [vmem:[#allocation3 + $0x38] sm:$0xf] %v10743_v14  ;;  %v10745_v54 = vpack.c.bf16 %v1886_v16, %v1886_v16  ;;  %v12467_v46 = vld [vmem:[%s15548_s3 + $0x1c0] sm:$0xff]  }
 0x1bd   : > { %4219 = vmatprep.mubr.bf16.mxu1 %v12380_v6  ;;  %v12396_v22 = vld [vmem:[#allocation3 + $0x28c] ss:$36 sps:$4 sm:$0xff]   ;;  %v12468_v37 = vld [vmem:[%s15548_s3 + $0x180] sm:$0xff]   ;;  %11531 = vmatpush3.bf16.msra.mxu0 %v12464_v31  ;;  %1854 = vst [vmem:[#allocation3 + $0x7c] sm:$0xf] %v10713_v53 }
 0x1be   : > { %4373 = vmatmul.mubr.bf16.gmra.mxu0 %v12385_v40  ;;  %v12398_v38 = vld [vmem:[#allocation3 + $0x24c] ss:$36 sps:$4 sm:$0xff]   ;;  %1853 = vst [vmem:[#allocation3 + $0x58] sm:$0xf] %v10712_v25  ;;  %2428 = vst [vmem:[#allocation3 + $0x1c] sm:$0xf] %v10712_v25  ;;  %11532 = vmatprep.subr.bf16.mxu0 %v12467_v46 }
 0x1bf   : > { %4380 = vmatprep.mubr.bf16.mxu0 %v12388_v41  ;;  %v2076_v56 = vld [vmem:[#allocation2 + $0x47] sm:$0xff]  ;;  %v1696_v5 = vld [vmem:[#allocation2 + $0x70] sm:$0xff]  ;;  %2046 = vst [vmem:[#allocation3 + $0x80] sm:$0xf] %v10745_v54  ;;  %2429 = vst [vmem:[#allocation3 + $0x40] sm:$0xf] %v10713_v53 }
 0x1c0   : > { %v10774_v20 = vpack.c.bf16 %v2076_v56, %v2076_v56  ;;  %v1695_v11 = vld [vmem:[#allocation2 + $0x68] sm:$0xff]  ;;  %v10715_v35 = vpack.c.bf16 %v1696_v5, %v1696_v5  ;;  %v1888_v12 = vld [vmem:[#allocation2 + $0x71] sm:$0xff]  ;;  %v12412_v49 = vld [vmem:[#allocation3 + $0x31c] ss:$36 sps:$4 sm:$0xff]  }
 0x1c1   : > { %v1887_v18 = vld [vmem:[#allocation2 + $0x69] sm:$0xff]  ;;  %v10714_v23 = vpack.c.bf16 %v1695_v11, %v1695_v11  ;;  %v10747_v57 = vpack.c.bf16 %v1888_v12, %v1888_v12  ;;  %v1890_v34 = vld [vmem:[#allocation2 + $0x91] sm:$0xff]  ;;  %11533 = vmatpush3.bf16.msra.mxu0 %v12468_v37  ;;  %v12414_v52 = vld [vmem:[#allocation3 + $0x2dc] ss:$36 sps:$4 sm:$0xff]  }
 0x1c2   : > { %v10746_v27 = vpack.c.bf16 %v1887_v18, %v1887_v18  ;;  %v2078_v19 = vld [vmem:[#allocation2 + $0x67] sm:$0xff]  ;;  %v2079_v30 = vld [vmem:[#allocation2 + $0x6f] sm:$0xff]  ;;  %2236 = vst [vmem:[#allocation3 + $0x18] sm:$0xf] %v10774_v20  ;;  %1856 = vst [vmem:[#allocation3 + $0xc4] sm:$0xf] %v10715_v35  ;;  %v10749_v39 = vpack.c.bf16 %v1890_v34, %v1890_v34 }
 0x1c3   : > { %v10776_v32 = vpack.c.bf16 %v2078_v19, %v2078_v19  ;;  %v10777_v58 = vpack.c.bf16 %v2079_v30, %v2079_v30  ;;  %v1697_v63 = vld [vmem:[#allocation2 + $0x88] sm:$0xff]  ;;  %v1698_v13 = vld [vmem:[#allocation2 + $0x90] sm:$0xff]  ;;  %1855 = vst [vmem:[#allocation3 + $0xa0] sm:$0xf] %v10714_v23  ;;  %2430 = vst [vmem:[#allocation3 + $0x64] sm:$0xf] %v10714_v23 }
 0x1c4   : > { %4220 = vmatmul.mubr.bf16.gmra.mxu1 %v12384_v10  ;;  %2047 = vst [vmem:[#allocation3 + $0xa4] sm:$0xf] %v10746_v27  ;;  %2431 = vst [vmem:[#allocation3 + $0x88] sm:$0xf] %v10715_v35  ;;  %v10716_v4 = vpack.c.bf16 %v1697_v63, %v1697_v63  ;;  %v10717_v45 = vpack.c.bf16 %v1698_v13, %v1698_v13  ;;  %v2080_v29 = vld [vmem:[#allocation2 + $0x87] sm:$0xff]  ;;  %v1700_v1 = vld [vmem:[#allocation2 + $0xb0] sm:$0xff] }
 0x1c5   : > { %4227 = vmatprep.mubr.bf16.mxu1 %v12386_v51  ;;  %v1699_v36 = vld [vmem:[#allocation2 + $0xa8] sm:$0xff]  ;;  %2048 = vst [vmem:[#allocation3 + $0xc8] sm:$0xf] %v10747_v57  ;;  %2238 = vst [vmem:[#allocation3 + $0x60] sm:$0xf] %v10776_v32  ;;  %v10778_v42 = vpack.c.bf16 %v2080_v29, %v2080_v29  ;;  %v10719_v55 = vpack.c.bf16 %v1700_v1, %v1700_v1  ;;  %v1892_v43 = vld [vmem:[#allocation2 + $0xb1] sm:$0xff] }
 0x1c6   : > { %4381 = vmatmul.mubr.bf16.gmra.mxu0 %v12393_v33  ;;  %2239 = vst [vmem:[#allocation3 + $0x84] sm:$0xf] %v10777_v58  ;;  %v10718_v44 = vpack.c.bf16 %v1699_v36, %v1699_v36  ;;  %1857 = vst [vmem:[#allocation3 + $0xe8] sm:$0xf] %v10716_v4  ;;  %v12400_v59 = vld [vmem:[#allocation3 + $0x288] ss:$36 sps:$4 sm:$0xff]   ;;  %v10751_v61 = vpack.c.bf16 %v1892_v43, %v1892_v43 }
 0x1c7   : > { %4388 = vmatprep.mubr.bf16.mxu0 %v12398_v38  ;;  %1858 = vst [vmem:[#allocation3 + $0x10c] sm:$0xf] %v10717_v45  ;;  %2432 = vst [vmem:[#allocation3 + $0xac] sm:$0xf] %v10716_v4  ;;  %v12401_v3 = vld [vmem:[#allocation3 + $0x248] ss:$36 sps:$4 sm:$0xff]  }
 0x1c8   : > { %2433 = vst [vmem:[#allocation3 + $0xd0] sm:$0xf] %v10717_v45  ;;  %2050 = vst [vmem:[#allocation3 + $0x110] sm:$0xf] %v10749_v39  ;;  %v12402_v6 = vld [vmem:[#allocation3 + $0x2d4] ss:$36 sps:$4 sm:$0xff]  }
 0x1c9   : > { %2240 = vst [vmem:[#allocation3 + $0xa8] sm:$0xf] %v10778_v42  ;;  %1859 = vst [vmem:[#allocation3 + $0x130] sm:$0xf] %v10718_v44  ;;  %v12404_v7 = vld [vmem:[#allocation3 + $0x294] ss:$36 sps:$4 sm:$0xff]  }
 0x1ca   : > { %2434 = vst [vmem:[#allocation3 + $0xf4] sm:$0xf] %v10718_v44  ;;  %1860 = vst [vmem:[#allocation3 + $0x154] sm:$0xf] %v10719_v55  ;;  %v1891_v10 = vld [vmem:[#allocation2 + $0xa9] sm:$0xff]  ;;  %v1894_v9 = vld [vmem:[#allocation2 + $0xd1] sm:$0xff] }
 0x1cb   : > { %2435 = vst [vmem:[#allocation3 + $0x118] sm:$0xf] %v10719_v55  ;;  %v10750_v40 = vpack.c.bf16 %v1891_v10, %v1891_v10  ;;  %v12408_v51 = vld [vmem:[#allocation3 + $0x2d0] ss:$36 sps:$4 sm:$0xff]   ;;  %v2082_v47 = vld [vmem:[#allocation2 + $0xa7] sm:$0xff]  ;;  %v10753_v33 = vpack.c.bf16 %v1894_v9, %v1894_v9 }
 0x1cc   : > { %4228 = vmatmul.mubr.bf16.gmra.mxu1 %v12392_v8  ;;  %v12409_v41 = vld [vmem:[#allocation3 + $0x290] ss:$36 sps:$4 sm:$0xff]   ;;  %v10780_v2 = vpack.c.bf16 %v2082_v47, %v2082_v47  ;;  %v1701_v0 = vld [vmem:[#allocation2 + $0xc8] sm:$0xff]  ;;  %2052 = vst [vmem:[#allocation3 + $0x158] sm:$0xf] %v10751_v61 }
 0x1cd   : > { %4235 = vmatprep.mubr.bf16.mxu1 %v12396_v22  ;;  %2051 = vst [vmem:[#allocation3 + $0x134] sm:$0xf] %v10750_v40  ;;  %v2083_v48 = vld [vmem:[#allocation2 + $0xaf] sm:$0xff]  ;;  %v10720_v28 = vpack.c.bf16 %v1701_v0, %v1701_v0  ;;  %v2084_v15 = vld [vmem:[#allocation2 + $0xc7] sm:$0xff]  ;;  %2054 = vst [vmem:[#allocation3 + $0x1a0] sm:$0xf] %v10753_v33 }
 0x1ce   : > { %4389 = vmatmul.mubr.bf16.gmra.mxu0 %v12401_v3  ;;  %v10781_v21 = vpack.c.bf16 %v2083_v48, %v2083_v48  ;;  %v1702_v62 = vld [vmem:[#allocation2 + $0xd0] sm:$0xff]  ;;  %v1703_v8 = vld [vmem:[#allocation2 + $0xe8] sm:$0xff]  ;;  %2242 = vst [vmem:[#allocation3 + $0xf0] sm:$0xf] %v10780_v2  ;;  %v10782_v26 = vpack.c.bf16 %v2084_v15, %v2084_v15  ;;  %v12416_v18 = vld [vmem:[#allocation3 + $0x318] ss:$36 sps:$4 sm:$0xff]  }
 0x1cf   : > { %4396 = vmatprep.mubr.bf16.mxu0 %v12404_v7  ;;  %v10721_v14 = vpack.c.bf16 %v1702_v62, %v1702_v62  ;;  %v1704_v25 = vld [vmem:[#allocation2 + $0xf0] sm:$0xff]  ;;  %v10722_v16 = vpack.c.bf16 %v1703_v8, %v1703_v8  ;;  %1861 = vst [vmem:[#allocation3 + $0x178] sm:$0xf] %v10720_v28  ;;  %2436 = vst [vmem:[#allocation3 + $0x13c] sm:$0xf] %v10720_v28  ;;  %v2086_v56 = vld [vmem:[#allocation2 + $0xe7] sm:$0xff] }
 0x1d0   : > { %2243 = vst [vmem:[#allocation3 + $0x114] sm:$0xf] %v10781_v21  ;;  %v1895_v31 = vld [vmem:[#allocation2 + $0xe9] sm:$0xff]  ;;  %v1896_v22 = vld [vmem:[#allocation2 + $0xf1] sm:$0xff]  ;;  %v10723_v38 = vpack.c.bf16 %v1704_v25, %v1704_v25  ;;  %2244 = vst [vmem:[#allocation3 + $0x138] sm:$0xf] %v10782_v26  ;;  %v10784_v37 = vpack.c.bf16 %v2086_v56, %v2086_v56 }
 0x1d1   : > { %1862 = vst [vmem:[#allocation3 + $0x19c] sm:$0xf] %v10721_v14  ;;  %2437 = vst [vmem:[#allocation3 + $0x160] sm:$0xf] %v10721_v14  ;;  %v10754_v53 = vpack.c.bf16 %v1895_v31, %v1895_v31  ;;  %v10755_v54 = vpack.c.bf16 %v1896_v22, %v1896_v22  ;;  %v2087_v46 = vld [vmem:[#allocation2 + $0xef] sm:$0xff]  ;;  %v2088_v19 = vld [vmem:[#allocation2 + $0x107] sm:$0xff] }
 0x1d2   : > { %1863 = vst [vmem:[#allocation3 + $0x1c0] sm:$0xf] %v10722_v16  ;;  %v10785_v20 = vpack.c.bf16 %v2087_v46, %v2087_v46  ;;  %2438 = vst [vmem:[#allocation3 + $0x184] sm:$0xf] %v10722_v16  ;;  %v1705_v11 = vld [vmem:[#allocation2 + $0x108] sm:$0xff]  ;;  %v1706_v5 = vld [vmem:[#allocation2 + $0x110] sm:$0xff]  ;;  %v10786_v32 = vpack.c.bf16 %v2088_v19, %v2088_v19 }
 0x1d3   : > { %v12417_v23 = vld [vmem:[#allocation3 + $0x2d8] ss:$36 sps:$4 sm:$0xff]   ;;  %1864 = vst [vmem:[#allocation3 + $0x1e4] sm:$0xf] %v10723_v38  ;;  %2055 = vst [vmem:[#allocation3 + $0x1c4] sm:$0xf] %v10754_v53  ;;  %v10724_v35 = vpack.c.bf16 %v1705_v11, %v1705_v11  ;;  %v10725_v12 = vpack.c.bf16 %v1706_v5, %v1706_v5 }
 0x1d4   : > { %4236 = vmatmul.mubr.bf16.gmra.mxu1 %v12400_v59  ;;  %2056 = vst [vmem:[#allocation3 + $0x1e8] sm:$0xf] %v10755_v54  ;;  %2439 = vst [vmem:[#allocation3 + $0x1a8] sm:$0xf] %v10723_v38  ;;  %v1898_v27 = vld [vmem:[#allocation2 + $0x111] sm:$0xff]  ;;  %v1707_v30 = vld [vmem:[#allocation2 + $0x128] sm:$0xff] }
 0x1d5   : > { %4243 = vmatprep.mubr.bf16.mxu1 %v12402_v6  ;;  %2246 = vst [vmem:[#allocation3 + $0x180] sm:$0xf] %v10784_v37  ;;  %2247 = vst [vmem:[#allocation3 + $0x1a4] sm:$0xf] %v10785_v20  ;;  %v10757_v57 = vpack.c.bf16 %v1898_v27, %v1898_v27  ;;  %v1708_v58 = vld [vmem:[#allocation2 + $0x130] sm:$0xff]  ;;  %v10726_v63 = vpack.c.bf16 %v1707_v30, %v1707_v30  ;;  %v2090_v24 = vld [vmem:[#allocation2 + $0x127] sm:$0xff] }
 0x1d6   : > { %4397 = vmatmul.mubr.bf16.gmra.mxu0 %v12409_v41  ;;  %v1899_v13 = vld [vmem:[#allocation2 + $0x129] sm:$0xff]  ;;  %v1900_v4 = vld [vmem:[#allocation2 + $0x131] sm:$0xff]  ;;  %1865 = vst [vmem:[#allocation3 + $0x208] sm:$0xf] %v10724_v35  ;;  %1866 = vst [vmem:[#allocation3 + $0x22c] sm:$0xf] %v10725_v12  ;;  %v10727_v34 = vpack.c.bf16 %v1708_v58, %v1708_v58  ;;  %v10788_v44 = vpack.c.bf16 %v2090_v24, %v2090_v24 }
 0x1d7   : > { %4404 = vmatprep.mubr.bf16.mxu0 %v12414_v52  ;;  %v12418_v45 = vld [vmem:[#allocation3 + $0x364] ss:$36 sps:$4 sm:$0xff]   ;;  %2440 = vst [vmem:[#allocation3 + $0x1cc] sm:$0xf] %v10724_v35  ;;  %2441 = vst [vmem:[#allocation3 + $0x1f0] sm:$0xf] %v10725_v12  ;;  %v10758_v29 = vpack.c.bf16 %v1899_v13, %v1899_v13  ;;  %v10759_v36 = vpack.c.bf16 %v1900_v4, %v1900_v4 }
 0x1d8   : > { %v2091_v39 = vld [vmem:[#allocation2 + $0x12f] sm:$0xff]  ;;  %v12420_v42 = vld [vmem:[#allocation3 + $0x324] ss:$36 sps:$4 sm:$0xff]   ;;  %2058 = vst [vmem:[#allocation3 + $0x230] sm:$0xf] %v10757_v57 }
 0x1d9   : > { %2248 = vst [vmem:[#allocation3 + $0x1c8] sm:$0xf] %v10786_v32  ;;  %1867 = vst [vmem:[#allocation3 + $0x250] sm:$0xf] %v10726_v63  ;;  %v10789_v50 = vpack.c.bf16 %v2091_v39, %v2091_v39  ;;  %v1709_v59 = vld [vmem:[#allocation2 + $0x148] sm:$0xff]  ;;  %v1710_v1 = vld [vmem:[#allocation2 + $0x150] sm:$0xff] }
 0x1da   : > { %2442 = vst [vmem:[#allocation3 + $0x214] sm:$0xf] %v10726_v63  ;;  %1868 = vst [vmem:[#allocation3 + $0x274] sm:$0xf] %v10727_v34  ;;  %v10728_v3 = vpack.c.bf16 %v1709_v59, %v1709_v59  ;;  %v10729_v55 = vpack.c.bf16 %v1710_v1, %v1710_v1  ;;  %v12424_v6 = vld [vmem:[#allocation3 + $0x360] ss:$36 sps:$4 sm:$0xff]  }
 0x1db   : > { %2059 = vst [vmem:[#allocation3 + $0x254] sm:$0xf] %v10758_v29  ;;  %2060 = vst [vmem:[#allocation3 + $0x278] sm:$0xf] %v10759_v36  ;;  %v12425_v7 = vld [vmem:[#allocation3 + $0x320] ss:$36 sps:$4 sm:$0xff]  }
 0x1dc   : > { %4244 = vmatmul.mubr.bf16.gmra.mxu1 %v12408_v51  ;;  %2443 = vst [vmem:[#allocation3 + $0x238] sm:$0xf] %v10727_v34  ;;  %2250 = vst [vmem:[#allocation3 + $0x210] sm:$0xf] %v10788_v44  ;;  %v12428_v10 = vld [vmem:[#allocation3 + $0x3ac] ss:$36 sps:$4 sm:$0xff]  }
 0x1dd   : > { %4251 = vmatprep.mubr.bf16.mxu1 %v12412_v49  ;;  %2251 = vst [vmem:[#allocation3 + $0x234] sm:$0xf] %v10789_v50  ;;  %1869 = vst [vmem:[#allocation3 + $0x298] sm:$0xf] %v10728_v3  ;;  %v12430_v40 = vld [vmem:[#allocation3 + $0x36c] ss:$36 sps:$4 sm:$0xff]  }
 0x1de   : > { %4405 = vmatmul.mubr.bf16.gmra.mxu0 %v12417_v23  ;;  %1870 = vst [vmem:[#allocation3 + $0x2bc] sm:$0xf] %v10729_v55  ;;  %2444 = vst [vmem:[#allocation3 + $0x25c] sm:$0xf] %v10728_v3  ;;  %v12432_v51 = vld [vmem:[#allocation3 + $0x3a8] ss:$36 sps:$4 sm:$0xff]  }
 0x1df   : > { %4412 = vmatprep.mubr.bf16.mxu0 %v12420_v42  ;;  %2445 = vst [vmem:[#allocation3 + $0x280] sm:$0xf] %v10729_v55  ;;  %v12433_v41 = vld [vmem:[#allocation3 + $0x368] ss:$36 sps:$4 sm:$0xff]   ;;  %v12434_v49 = vld [vmem:[#allocation3 + $0x3f4] ss:$36 sps:$4 sm:$0xff]  }
 0x1e0   : > { %v12436_v43 = vld [vmem:[#allocation3 + $0x3b4] ss:$36 sps:$4 sm:$0xff]   ;;  %v2092_v48 = vld [vmem:[#allocation2 + $0x147] sm:$0xff]  ;;  %v12444_v4 = vld [vmem:[#allocation3 + $0x43c] ss:$36 sps:$4 sm:$0xff]  }
 0x1e1   : > { %v1902_v47 = vld [vmem:[#allocation2 + $0x151] sm:$0xff]  ;;  %v10790_v61 = vpack.c.bf16 %v2092_v48, %v2092_v48  ;;  %v1711_v2 = vld [vmem:[#allocation2 + $0x168] sm:$0xff]  ;;  %v12446_v3 = vld [vmem:[#allocation3 + $0x3fc] ss:$36 sps:$4 sm:$0xff]  }
 0x1e2   : > { %v10761_v52 = vpack.c.bf16 %v1902_v47, %v1902_v47  ;;  %v1712_v21 = vld [vmem:[#allocation2 + $0x170] sm:$0xff]  ;;  %v10730_v0 = vpack.c.bf16 %v1711_v2, %v1711_v2  ;;  %v2094_v9 = vld [vmem:[#allocation2 + $0x167] sm:$0xff]  ;;  %v12462_v48 = vld [vmem:[#allocation3 + $0x5c] ss:$36 sps:$4 sm:$0xff]  }
 0x1e3   : > { %v10731_v62 = vpack.c.bf16 %v1712_v21, %v1712_v21  ;;  %v1903_v28 = vld [vmem:[#allocation2 + $0x169] sm:$0xff]  ;;  %v1904_v14 = vld [vmem:[#allocation2 + $0x171] sm:$0xff]  ;;  %2252 = vst [vmem:[#allocation3 + $0x258] sm:$0xf] %v10790_v61  ;;  %v10792_v26 = vpack.c.bf16 %v2094_v9, %v2094_v9 }
 0x1e4   : > { %4252 = vmatmul.mubr.bf16.gmra.mxu1 %v12416_v18  ;;  %2062 = vst [vmem:[#allocation3 + $0x2c0] sm:$0xf] %v10761_v52  ;;  %v10762_v15 = vpack.c.bf16 %v1903_v28, %v1903_v28  ;;  %v10763_v8 = vpack.c.bf16 %v1904_v14, %v1904_v14  ;;  %v2095_v33 = vld [vmem:[#allocation2 + $0x16f] sm:$0xff]  ;;  %1871 = vst [vmem:[#allocation3 + $0x2e0] sm:$0xf] %v10730_v0  ;;  %v2096_v53 = vld [vmem:[#allocation2 + $0x187] sm:$0xff] }
 0x1e5   : > { %4259 = vmatprep.mubr.bf16.mxu1 %v12418_v45  ;;  %v1713_v25 = vld [vmem:[#allocation2 + $0x188] sm:$0xff]  ;;  %1872 = vst [vmem:[#allocation3 + $0x304] sm:$0xf] %v10731_v62  ;;  %v10793_v16 = vpack.c.bf16 %v2095_v33, %v2095_v33  ;;  %2446 = vst [vmem:[#allocation3 + $0x2a4] sm:$0xf] %v10730_v0  ;;  %v1714_v31 = vld [vmem:[#allocation2 + $0x190] sm:$0xff]  ;;  %v10794_v46 = vpack.c.bf16 %v2096_v53, %v2096_v53 }
 0x1e6   : > { %4413 = vmatmul.mubr.bf16.gmra.mxu0 %v12425_v7  ;;  %2447 = vst [vmem:[#allocation3 + $0x2c8] sm:$0xf] %v10731_v62  ;;  %v10732_v22 = vpack.c.bf16 %v1713_v25, %v1713_v25  ;;  %v1906_v38 = vld [vmem:[#allocation2 + $0x191] sm:$0xff]  ;;  %2063 = vst [vmem:[#allocation3 + $0x2e4] sm:$0xf] %v10762_v15  ;;  %v10733_v54 = vpack.c.bf16 %v1714_v31, %v1714_v31  ;;  %v1715_v37 = vld [vmem:[#allocation2 + $0x1a8] sm:$0xff] }
 0x1e7   : > { %4420 = vmatprep.mubr.bf16.mxu0 %v12430_v40  ;;  %2064 = vst [vmem:[#allocation3 + $0x308] sm:$0xf] %v10763_v8  ;;  %2254 = vst [vmem:[#allocation3 + $0x2a0] sm:$0xf] %v10792_v26  ;;  %v10765_v56 = vpack.c.bf16 %v1906_v38, %v1906_v38  ;;  %v1716_v20 = vld [vmem:[#allocation2 + $0x1b0] sm:$0xff]  ;;  %v10734_v5 = vpack.c.bf16 %v1715_v37, %v1715_v37  ;;  %v2098_v12 = vld [vmem:[#allocation2 + $0x1a7] sm:$0xff] }
 0x1e8   : > { %v1907_v11 = vld [vmem:[#allocation2 + $0x1a9] sm:$0xff]  ;;  %2639 = vst [vmem:[#allocation3 + $0x2cc] sm:$0xf] %v10763_v8  ;;  %2255 = vst [vmem:[#allocation3 + $0x2c4] sm:$0xf] %v10793_v16  ;;  %v10735_v18 = vpack.c.bf16 %v1716_v20, %v1716_v20  ;;  %v1908_v23 = vld [vmem:[#allocation2 + $0x1b1] sm:$0xff]  ;;  %v10796_v32 = vpack.c.bf16 %v2098_v12, %v2098_v12 }
 0x1e9   : > { %1873 = vst [vmem:[#allocation3 + $0x328] sm:$0xf] %v10732_v22  ;;  %2448 = vst [vmem:[#allocation3 + $0x2ec] sm:$0xf] %v10732_v22  ;;  %v10766_v35 = vpack.c.bf16 %v1907_v11, %v1907_v11  ;;  %v2099_v27 = vld [vmem:[#allocation2 + $0x1af] sm:$0xff]  ;;  %v10767_v57 = vpack.c.bf16 %v1908_v23, %v1908_v23  ;;  %v2100_v36 = vld [vmem:[#allocation2 + $0x1c7] sm:$0xff] }
 0x1ea   : > { %v12440_v19 = vld [vmem:[#allocation3 + $0x3f0] ss:$36 sps:$4 sm:$0xff]   ;;  %1874 = vst [vmem:[#allocation3 + $0x34c] sm:$0xf] %v10733_v54  ;;  %2066 = vst [vmem:[#allocation3 + $0x350] sm:$0xf] %v10765_v56  ;;  %v10797_v58 = vpack.c.bf16 %v2099_v27, %v2099_v27  ;;  %v10798_v42 = vpack.c.bf16 %v2100_v36, %v2100_v36 }
 0x1eb   : > { %v12441_v30 = vld [vmem:[#allocation3 + $0x3b0] ss:$36 sps:$4 sm:$0xff]   ;;  %2256 = vst [vmem:[#allocation3 + $0x2e8] sm:$0xf] %v10794_v46  ;;  %2449 = vst [vmem:[#allocation3 + $0x310] sm:$0xf] %v10733_v54 }
 0x1ec   : > { %4260 = vmatmul.mubr.bf16.gmra.mxu1 %v12424_v6  ;;  %v1717_v63 = vld [vmem:[#allocation2 + $0x1c8] sm:$0xff]  ;;  %v1718_v13 = vld [vmem:[#allocation2 + $0x1d0] sm:$0xff]  ;;  %2641 = vst [vmem:[#allocation3 + $0x314] sm:$0xf] %v10765_v56  ;;  %1875 = vst [vmem:[#allocation3 + $0x370] sm:$0xf] %v10734_v5 }
 0x1ed   : > { %4267 = vmatprep.mubr.bf16.mxu1 %v12428_v10  ;;  %1876 = vst [vmem:[#allocation3 + $0x394] sm:$0xf] %v10735_v18  ;;  %2067 = vst [vmem:[#allocation3 + $0x374] sm:$0xf] %v10766_v35  ;;  %v10736_v45 = vpack.c.bf16 %v1717_v63, %v1717_v63  ;;  %v10737_v34 = vpack.c.bf16 %v1718_v13, %v1718_v13  ;;  %v1910_v29 = vld [vmem:[#allocation2 + $0x1d1] sm:$0xff]  ;;  %v1911_v24 = vld [vmem:[#allocation2 + $0x1e9] sm:$0xff] }
 0x1ee   : > { %4421 = vmatmul.mubr.bf16.gmra.mxu0 %v12433_v41  ;;  %2450 = vst [vmem:[#allocation3 + $0x334] sm:$0xf] %v10734_v5  ;;  %2451 = vst [vmem:[#allocation3 + $0x358] sm:$0xf] %v10735_v18  ;;  %v10769_v39 = vpack.c.bf16 %v1910_v29, %v1910_v29  ;;  %v1912_v44 = vld [vmem:[#allocation2 + $0x1f1] sm:$0xff]  ;;  %v10770_v50 = vpack.c.bf16 %v1911_v24, %v1911_v24  ;;  %v2102_v59 = vld [vmem:[#allocation2 + $0x1e7] sm:$0xff] }
 0x1ef   : > { %4428 = vmatprep.mubr.bf16.mxu0 %v12436_v43  ;;  %2068 = vst [vmem:[#allocation3 + $0x398] sm:$0xf] %v10767_v57  ;;  %2258 = vst [vmem:[#allocation3 + $0x330] sm:$0xf] %v10796_v32  ;;  %v2103_v1 = vld [vmem:[#allocation2 + $0x1ef] sm:$0xff]  ;;  %v10771_v55 = vpack.c.bf16 %v1912_v44, %v1912_v44  ;;  %v10800_v6 = vpack.c.bf16 %v2102_v59, %v2102_v59  ;;  %v2104_v62 = vld [vmem:[#allocation2 + $0x207] sm:$0xff] }
 0x1f0   : > { %2259 = vst [vmem:[#allocation3 + $0x354] sm:$0xf] %v10797_v58  ;;  %2643 = vst [vmem:[#allocation3 + $0x35c] sm:$0xf] %v10767_v57  ;;  %v10801_v7 = vpack.c.bf16 %v2103_v1, %v2103_v1  ;;  %v12448_v10 = vld [vmem:[#allocation3 + $0x438] ss:$36 sps:$4 sm:$0xff]   ;;  %v10802_v9 = vpack.c.bf16 %v2104_v62, %v2104_v62 }
 0x1f1   : > { %1877 = vst [vmem:[#allocation3 + $0x3b8] sm:$0xf] %v10736_v45  ;;  %1878 = vst [vmem:[#allocation3 + $0x3dc] sm:$0xf] %v10737_v34  ;;  %v12449_v40 = vld [vmem:[#allocation3 + $0x3f8] ss:$36 sps:$4 sm:$0xff]  }
 0x1f2   : > { %2452 = vst [vmem:[#allocation3 + $0x37c] sm:$0xf] %v10736_v45  ;;  %2453 = vst [vmem:[#allocation3 + $0x3a0] sm:$0xf] %v10737_v34  ;;  %v12453_v41 = vld [vmem:[#allocation3 + $0x14] ss:$36 sps:$4 sm:$0xff]  }
 0x1f3   : > { %2070 = vst [vmem:[#allocation3 + $0x3e0] sm:$0xf] %v10769_v39  ;;  %2260 = vst [vmem:[#allocation3 + $0x378] sm:$0xf] %v10798_v42  ;;  %v12459_v43 = vld [vmem:[#allocation3 + $0x440] ss:$36 sps:$4 sm:$0xff]  }
 0x1f4   : > { %4268 = vmatmul.mubr.bf16.gmra.mxu1 %v12432_v51  ;;  %2071 = vst [vmem:[#allocation3 + $0x404] sm:$0xf] %v10770_v50  ;;  %2645 = vst [vmem:[#allocation3 + $0x3a4] sm:$0xf] %v10769_v39  ;;  %v12451_v51 = vld [vmem:[#allocation3 + $0x444] ss:$36 sps:$4 sm:$0xff]  }
 0x1f5   : > { %4275 = vmatprep.mubr.bf16.mxu1 %v12434_v49  ;;  %2072 = vst [vmem:[#allocation3 + $0x428] sm:$0xf] %v10771_v55  ;;  %2262 = vst [vmem:[#allocation3 + $0x3c0] sm:$0xf] %v10800_v6  ;;  %v12475_v49 = vld [vmem:[%s15548_s3 + $0x230] sm:$0xff]   ;;  %v1721_v61 = vld [vmem:[#allocation2 + $0x208] sm:$0xff] }
 0x1f6   : > { %4429 = vmatmul.mubr.bf16.gmra.mxu0 %v12441_v30  ;;  %2263 = vst [vmem:[#allocation3 + $0x3e4] sm:$0xf] %v10801_v7  ;;  %2647 = vst [vmem:[#allocation3 + $0x3ec] sm:$0xf] %v10771_v55  ;;  %v12460_v47 = vld [vmem:[#allocation3 + $0x10] ss:$36 sps:$4 sm:$0xff]   ;;  %v10740_v21 = vpack.c.bf16 %v1721_v61, %v1721_v61 }
 0x1f7   : > { %4436 = vmatprep.mubr.bf16.mxu0 %v12446_v3  ;;  %v12465_v52 = vld [vmem:[#allocation3 + $0x1c] ss:$36 sps:$4 sm:$0xff]   ;;  %v1722_v2 = vld [vmem:[#allocation2 + $0x210] sm:$0xff]  ;;  %v2106_v25 = vld [vmem:[#allocation2 + $0x227] sm:$0xff]  ;;  %2264 = vst [vmem:[#allocation3 + $0x408] sm:$0xf] %v10802_v9 }
 0x1f8   : > { %v1914_v0 = vld [vmem:[#allocation2 + $0x211] sm:$0xff]  ;;  %v10741_v28 = vpack.c.bf16 %v1722_v2, %v1722_v2  ;;  %v2460_v15 = vld [vmem:[#allocation2 + $0x49] sm:$0xff]  ;;  %1881 = vst [vmem:[#allocation3 + $0x448] sm:$0xf] %v10740_v21  ;;  %2456 = vst [vmem:[#allocation3 + $0x40c] sm:$0xf] %v10740_v21 }
 0x1f9   : > { %v10773_v14 = vpack.c.bf16 %v1914_v0, %v1914_v0  ;;  %v2461_v8 = vld [vmem:[#allocation2 + $0x51] sm:$0xff]  ;;  %v10838_v33 = vpack.c.bf16 %v2460_v15, %v2460_v15  ;;  %v12866_v31 = vld [vmem:[#allocation2] sm:$0xff]  ;;  %v12488_v38 = vld [vmem:[%s15548_s3 + $0x228] sm:$0xff]  }
 0x1fa   : > { %v10839_v26 = vpack.c.bf16 %v2461_v8, %v2461_v8  ;;  %v2107_v16 = vld [vmem:[#allocation2 + $0x22f] sm:$0xff]  ;;  %v13708_v22 = vpack.c.bf16 %v12866_v31, %v12866_v31  ;;  %1882 = vst [vmem:[#allocation3 + $0x46c] sm:$0xf] %v10741_v28  ;;  %2457 = vst [vmem:[#allocation3 + $0x430] sm:$0xf] %v10741_v28  ;;  %v12501_v24 = vld [vmem:[%s15548_s3 + $0x220] sm:$0xff]  }
 0x1fb   : > { %2074 = vst [vmem:[#allocation3 + $0x470] sm:$0xf] %v10773_v14  ;;  %v13715_v53 = vpack.c.bf16 %v2107_v16, %v2107_v16  ;;  %v2464_v54 = vld [vmem:[#allocation2 + $0x89] sm:$0xff]  ;;  %v2465_v56 = vld [vmem:[#allocation2 + $0x91] sm:$0xff]  ;;  %2649 = vst [vmem:[#allocation3 + $0x434] sm:$0xf] %v10773_v14 }
 0x1fc   : > { %4276 = vmatmul.mubr.bf16.gmra.mxu1 %v12440_v19  ;;  %2620 = vst [vmem:[#allocation3 + $0x20] sm:$0xf] %v10838_v33  ;;  %2621 = vst [vmem:[#allocation3 + $0x44] sm:$0xf] %v10839_v26  ;;  %v10842_v46 = vpack.c.bf16 %v2464_v54, %v2464_v54  ;;  %v10843_v37 = vpack.c.bf16 %v2465_v56, %v2465_v56  ;;  %v2467_v20 = vld [vmem:[#allocation2 + $0xb1] sm:$0xff]  ;;  %v2468_v11 = vld [vmem:[#allocation2 + $0xc9] sm:$0xff] }
 0x1fd   : > { %4283 = vmatprep.mubr.bf16.mxu1 %v12444_v4  ;;  %2458 = vst [vmem:[#allocation3 + $0x454] sm:$0xf] %v13708_v22  ;;  %2459 = vst [vmem:[#allocation3 + $0x478] sm:$0xf] %v13708_v22  ;;  %v12469_v5 = vld [vmem:[#allocation3 + $0x58] ss:$36 sps:$4 sm:$0xff]   ;;  %v10845_v23 = vpack.c.bf16 %v2467_v20, %v2467_v20  ;;  %v10846_v12 = vpack.c.bf16 %v2468_v11, %v2468_v11 }
 0x1fe   : > { %4437 = vmatmul.mubr.bf16.gmra.mxu0 %v12449_v40  ;;  %v12470_v18 = vld [vmem:[#allocation3 + $0x18] ss:$36 sps:$4 sm:$0xff]   ;;  %2267 = vst [vmem:[#allocation3 + $0x474] sm:$0xf] %v13715_v53  ;;  %v12471_v19 = vld [vmem:[#allocation3 + $0xa4] ss:$36 sps:$4 sm:$0xff]  }
 0x1ff   : > { %4444 = vmatprep.mubr.bf16.mxu0 %v12451_v51  ;;  %v2469_v35 = vld [vmem:[#allocation2 + $0xd1] sm:$0xff]  ;;  %v12473_v30 = vld [vmem:[#allocation3 + $0x64] ss:$36 sps:$4 sm:$0xff]   ;;  %2624 = vst [vmem:[#allocation3 + $0xb0] sm:$0xf] %v10842_v46 }
 0x200   : > { %v2471_v27 = vld [vmem:[#allocation2 + $0xf1] sm:$0xff]  ;;  %2625 = vst [vmem:[#allocation3 + $0xd4] sm:$0xf] %v10843_v37  ;;  %v10847_v57 = vpack.c.bf16 %v2469_v35, %v2469_v35  ;;  %v2472_v58 = vld [vmem:[#allocation2 + $0x109] sm:$0xff]  ;;  %2627 = vst [vmem:[#allocation3 + $0x11c] sm:$0xf] %v10845_v23 }
 0x201   : > { %v10849_v32 = vpack.c.bf16 %v2471_v27, %v2471_v27  ;;  %v2473_v63 = vld [vmem:[#allocation2 + $0x111] sm:$0xff]  ;;  %2628 = vst [vmem:[#allocation3 + $0x140] sm:$0xf] %v10846_v12  ;;  %v10850_v4 = vpack.c.bf16 %v2472_v58, %v2472_v58  ;;  %v2476_v29 = vld [vmem:[#allocation2 + $0x149] sm:$0xff]  ;;  %v12476_v1 = vld [vmem:[#allocation3 + $0xa0] ss:$36 sps:$4 sm:$0xff]  }
 0x202   : > { %v2475_v13 = vld [vmem:[#allocation2 + $0x131] sm:$0xff]  ;;  %v10851_v45 = vpack.c.bf16 %v2473_v63, %v2473_v63  ;;  %2629 = vst [vmem:[#allocation3 + $0x164] sm:$0xf] %v10847_v57  ;;  %v10854_v39 = vpack.c.bf16 %v2476_v29, %v2476_v29  ;;  %v2480_v44 = vld [vmem:[#allocation2 + $0x189] sm:$0xff]  ;;  %v12477_v3 = vld [vmem:[#allocation3 + $0x60] ss:$36 sps:$4 sm:$0xff]  }
 0x203   : > { %v10853_v34 = vpack.c.bf16 %v2475_v13, %v2475_v13  ;;  %v2477_v36 = vld [vmem:[#allocation2 + $0x151] sm:$0xff]  ;;  %2631 = vst [vmem:[#allocation3 + $0x1ac] sm:$0xf] %v10849_v32  ;;  %2632 = vst [vmem:[#allocation3 + $0x1d0] sm:$0xf] %v10850_v4  ;;  %v10858_v50 = vpack.c.bf16 %v2480_v44, %v2480_v44  ;;  %v12540_v40 = vld [vmem:[%s15548_s3 + $0x208] sm:$0xff]  }
 0x204   : > { %4284 = vmatmul.mubr.bf16.gmra.mxu1 %v12448_v10  ;;  %v10855_v42 = vpack.c.bf16 %v2477_v36, %v2477_v36  ;;  %2633 = vst [vmem:[#allocation3 + $0x1f4] sm:$0xf] %v10851_v45  ;;  %2636 = vst [vmem:[#allocation3 + $0x260] sm:$0xf] %v10854_v39  ;;  %v12514_v59 = vld [vmem:[%s15548_s3 + $0x218] sm:$0xff]   ;;  %v12527_v10 = vld [vmem:[%s15548_s3 + $0x210] sm:$0xff]  }
 0x205   : > { %4485 = vmatprep.mubr.bf16.mxu1 %v12453_v41  ;;  %2635 = vst [vmem:[#allocation3 + $0x23c] sm:$0xf] %v10853_v34  ;;  %2640 = vst [vmem:[#allocation3 + $0x2f0] sm:$0xf] %v10858_v50  ;;  %v13727_v55 = vld [vmem:[#allocation3 + $0x454] ss:$36 sps:$4 sm:$0xff]  }
 0x206   : > { %4445 = vmatmul.mubr.bf16.gmra.mxu0 %v12459_v43  ;;  %2637 = vst [vmem:[#allocation3 + $0x284] sm:$0xf] %v10855_v42  ;;  %v12478_v6 = vld [vmem:[#allocation3 + $0xec] ss:$36 sps:$4 sm:$0xff]   ;;  %6519 = vst [vmem:[#allocation3 + $0x474] sm:$0xf] %v13715_v53 }
 0x207   : > { %4646 = vmatprep.mubr.bf16.mxu0 %v12465_v52  ;;  %v12480_v7 = vld [vmem:[#allocation3 + $0xac] ss:$36 sps:$4 sm:$0xff]   ;;  %6710 = vst [vmem:[#allocation3 + $0x454] sm:$0xf] %v13708_v22  ;;  %6711 = vst [vmem:[#allocation3 + $0x478] sm:$0xf] %v13708_v22 }
 0x208   : > { %v12482_v51 = vld [vmem:[#allocation3 + $0xe8] ss:$36 sps:$4 sm:$0xff]   ;;  %v12486_v43 = vld [vmem:[#allocation3 + $0xf4] ss:$36 sps:$4 sm:$0xff]   ;;  %v12491_v62 = vld [vmem:[#allocation3 + $0x17c] ss:$36 sps:$4 sm:$0xff]  }
 0x209   : > { %v12483_v41 = vld [vmem:[#allocation3 + $0xa8] ss:$36 sps:$4 sm:$0xff]   ;;  %v12489_v21 = vld [vmem:[#allocation3 + $0x130] ss:$36 sps:$4 sm:$0xff]   ;;  %v12493_v28 = vld [vmem:[#allocation3 + $0x13c] ss:$36 sps:$4 sm:$0xff]  }
 0x20a   : > { %v2488_v61 = vld [vmem:[#allocation2 + $0x209] sm:$0xff]  ;;  %v12495_v14 = vld [vmem:[#allocation3 + $0x178] ss:$36 sps:$4 sm:$0xff]   ;;  %v12502_v33 = vld [vmem:[#allocation3 + $0x1c0] ss:$36 sps:$4 sm:$0xff]  }
 0x20b   : > { %v10866_v2 = vpack.c.bf16 %v2488_v61, %v2488_v61  ;;  %v12490_v0 = vld [vmem:[#allocation3 + $0xf0] ss:$36 sps:$4 sm:$0xff]   ;;  %v12496_v9 = vld [vmem:[#allocation3 + $0x138] ss:$36 sps:$4 sm:$0xff]   ;;  %v12497_v15 = vld [vmem:[#allocation3 + $0x1c4] ss:$36 sps:$4 sm:$0xff]  }
 0x20c   : > { %4486 = vmatmul.mubr.bf16.vlgmr.msra.gmra.mxu1 %v12460_v47  ;;  %v2484_v47 = vld [vmem:[#allocation2 + $0x1c9] sm:$0xff]  ;;  %v12503_v26 = vld [vmem:[#allocation3 + $0x180] ss:$36 sps:$4 sm:$0xff]   ;;  %v2491_v54 = vld [vmem:[#allocation2 + $0x231] sm:$0xff] }
 0x20d   : > { %12175 = vmatpush3.bf16.msra.mxu1 %v13687_v60  ;;  %4493 = vmatprep.mubr.bf16.mxu1 %v12462_v48  ;;  %v13713_v60 = vpack.c.bf16 %v2106_v25, %v2106_v25  ;;  %v12553_v48 = vld [vmem:[%s15548_s3 + $0x200] sm:$0xff]   ;;  %v10862_v52 = vpack.c.bf16 %v2484_v47, %v2484_v47  ;;  %2648 = vst [vmem:[#allocation3 + $0x410] sm:$0xf] %v10866_v2  ;;  %v12504_v25 = vld [vmem:[#allocation3 + $0x20c] ss:$36 sps:$4 sm:$0xff]  }
 0x20e   : > { %12176 = vmatprep.subr.bf16.mxu1 %v12475_v49  ;;  %4647 = vmatmul.mubr.bf16.vlgmr.msra.gmra.mxu0 %v12470_v18  ;;  %v12499_v8 = vld [vmem:[#allocation3 + $0x184] ss:$36 sps:$4 sm:$0xff]   ;;  %v12506_v16 = vld [vmem:[#allocation3 + $0x1cc] ss:$36 sps:$4 sm:$0xff]   ;;  %v10869_v46 = vpack.c.bf16 %v2491_v54, %v2491_v54  ;;  %v12517_v11 = vld [vmem:[#allocation3 + $0x29c] ss:$36 sps:$4 sm:$0xff]   ;;  %v11201_v18 = vpop.f32.mrf.mxu1 }
 0x20f   : > { %2266 = vst [vmem:[#allocation3 + $0x450] sm:$0xf] %v13713_v60  ;;  %4654 = vmatprep.mubr.bf16.mxu0 %v12473_v30  ;;  %2644 = vst [vmem:[#allocation3 + $0x380] sm:$0xf] %v10862_v52  ;;  %v12508_v31 = vld [vmem:[#allocation3 + $0x208] ss:$36 sps:$4 sm:$0xff]  }
 0x210   : > { %6518 = vst [vmem:[#allocation3 + $0x450] sm:$0xf] %v13713_v60  ;;  %v12509_v22 = vld [vmem:[#allocation3 + $0x1c8] ss:$36 sps:$4 sm:$0xff]   ;;  %v12512_v60 = vld [vmem:[#allocation3 + $0x214] ss:$36 sps:$4 sm:$0xff]   ;;  %v11202_v35 = vpop.f32.mrf.mxu1 }
 0x211   : > { %12177 = vmatpush3.bf16.msra.mxu1 %v12475_v49  ;;  %v12484_v49 = vld [vmem:[#allocation3 + $0x134] ss:$36 sps:$4 sm:$0xff]   ;;  %v2490_v53 = vld [vmem:[#allocation2 + $0x229] sm:$0xff]  ;;  %2651 = vst [vmem:[#allocation3 + $0x47c] sm:$0xf] %v10869_v46  ;;  %v11203_v45 = vadd.f32 %v11202_v35, %v11201_v18 }
 0x212   : > { %12178 = vmatprep.subr.bf16.mxu1 %v12488_v38  ;;  %v10868_v56 = vpack.c.bf16 %v2490_v53, %v2490_v53  ;;  %v12515_v37 = vld [vmem:[#allocation3 + $0x250] ss:$36 sps:$4 sm:$0xff]   ;;  %v12521_v12 = vld [vmem:[#allocation3 + $0x298] ss:$36 sps:$4 sm:$0xff]   ;;  %v12525_v30 = vld [vmem:[#allocation3 + $0x2a4] ss:$36 sps:$4 sm:$0xff]  }
 0x213   : > { %v12516_v20 = vld [vmem:[#allocation3 + $0x210] ss:$36 sps:$4 sm:$0xff]   ;;  %v12522_v27 = vld [vmem:[#allocation3 + $0x258] ss:$36 sps:$4 sm:$0xff]   ;;  %v13747_v57 = vld [vmem:[%s15549_s4] ss:$0 sm:$0xff] }
 0x214   : > { %4494 = vmatmul.mubr.bf16.gmra.mxu1 %v12469_v5  ;;  %2650 = vst [vmem:[#allocation3 + $0x458] sm:$0xf] %v10868_v56  ;;  %v12519_v5 = vld [vmem:[#allocation3 + $0x25c] ss:$36 sps:$4 sm:$0xff]   ;;  %v4166_v4 = vadd.f32 %v13702_v17, %v13747_v57 }
 0x215   : > { %4501 = vmatprep.mubr.bf16.mxu1 %v12471_v19  ;;  %12179 = vmatpush3.bf16.msra.mxu1 %v12488_v38  ;;  %v12510_v38 = vld [vmem:[#allocation3 + $0x254] ss:$36 sps:$4 sm:$0xff]   ;;  %v12523_v19 = vld [vmem:[#allocation3 + $0x2e4] ss:$36 sps:$4 sm:$0xff]  }
 0x216   : > { %12180 = vmatprep.subr.bf16.mxu1 %v12501_v24  ;;  %4655 = vmatmul.mubr.bf16.gmra.mxu0 %v12477_v3  ;;  %v12528_v50 = vld [vmem:[#allocation3 + $0x2e0] ss:$36 sps:$4 sm:$0xff]  }
 0x217   : > { %4662 = vmatprep.mubr.bf16.mxu0 %v12480_v7  ;;  %v12530_v7 = vld [vmem:[#allocation3 + $0x32c] ss:$36 sps:$4 sm:$0xff]  }
 0x219   : > { %12181 = vmatpush3.bf16.msra.mxu1 %v12501_v24 }
 0x21a   : > { %12182 = vmatprep.subr.bf16.mxu1 %v12514_v59 }
 0x21b   : > { %v13742_v23 = vld [vmem:[#allocation3 + $0x458] ss:$36 sps:$4 sm:$0xff]  }
 0x21c   : > { %4502 = vmatmul.mubr.bf16.gmra.mxu1 %v12476_v1  ;;  %6902 = vst [vmem:[#allocation3 + $0x458] sm:$0xf] %v10868_v56  ;;  %6903 = vst [vmem:[#allocation3 + $0x47c] sm:$0xf] %v10869_v46  ;;  %v4169_v1 = vadd.f32 %v11203_v45, %v13747_v57 }
 0x21d   : > { %4509 = vmatprep.mubr.bf16.mxu1 %v12478_v6  ;;  %12183 = vmatpush3.bf16.msra.mxu1 %v12514_v59  ;;  %v12529_v59 = vld [vmem:[#allocation3 + $0x2a0] ss:$36 sps:$4 sm:$0xff]  }
 0x21e   : > { %12184 = vmatprep.subr.bf16.mxu1 %v12527_v10  ;;  %4663 = vmatmul.mubr.bf16.gmra.mxu0 %v12483_v41 }
 0x21f   : > { %4670 = vmatprep.mubr.bf16.mxu0 %v12486_v43 }
 0x221   : > { %12185 = vmatpush3.bf16.msra.mxu1 %v12527_v10  ;;  %v12532_v10 = vld [vmem:[#allocation3 + $0x2ec] ss:$36 sps:$4 sm:$0xff]  }
 0x222   : > { %12186 = vmatprep.subr.bf16.mxu1 %v12540_v40 }
 0x224   : > { %4510 = vmatmul.mubr.bf16.gmra.mxu1 %v12482_v51 }
 0x225   : > { %4517 = vmatprep.mubr.bf16.mxu1 %v12484_v49  ;;  %12187 = vmatpush3.bf16.msra.mxu1 %v12540_v40 }
 0x226   : > { %12188 = vmatprep.subr.bf16.mxu1 %v12553_v48  ;;  %4671 = vmatmul.mubr.bf16.gmra.mxu0 %v12490_v0 }
 0x227   : > { %4678 = vmatprep.mubr.bf16.mxu0 %v12493_v28  ;;  %v12535_v28 = vld [vmem:[#allocation3 + $0x2e8] ss:$36 sps:$4 sm:$0xff]  }
 0x229   : > { %12189 = vmatpush3.bf16.msra.mxu1 %v12553_v48 }
 0x22c   : > { %4518 = vmatmul.mubr.bf16.gmra.mxu1 %v12489_v21 }
 0x22d   : > { %4525 = vmatprep.mubr.bf16.mxu1 %v12491_v62  ;;  %v12534_v62 = vld [vmem:[#allocation3 + $0x328] ss:$36 sps:$4 sm:$0xff]  }
 0x22e   : > { %4679 = vmatmul.mubr.bf16.gmra.mxu0 %v12496_v9 }
 0x22f   : > { %4686 = vmatprep.mubr.bf16.mxu0 %v12499_v8  ;;  %v12536_v8 = vld [vmem:[#allocation3 + $0x374] ss:$36 sps:$4 sm:$0xff]  }
 0x234   : > { %4526 = vmatmul.mubr.bf16.gmra.mxu1 %v12495_v14 }
 0x235   : > { %4533 = vmatprep.mubr.bf16.mxu1 %v12497_v15 }
 0x236   : > { %4687 = vmatmul.mubr.bf16.gmra.mxu0 %v12503_v26 }
 0x237   : > { %4694 = vmatprep.mubr.bf16.mxu0 %v12506_v16 }
 0x23c   : > { %4534 = vmatmul.mubr.bf16.gmra.mxu1 %v12502_v33  ;;  %v12538_v33 = vld [vmem:[#allocation3 + $0x334] ss:$36 sps:$4 sm:$0xff]  }
 0x23d   : > { %4541 = vmatprep.mubr.bf16.mxu1 %v12504_v25 }
 0x23e   : > { %4695 = vmatmul.mubr.bf16.gmra.mxu0 %v12509_v22 }
 0x23f   : > { %4702 = vmatprep.mubr.bf16.mxu0 %v12512_v60 }
 0x242   : > { %v11310_v58 = vpop.f32.mrf.mxu0 }
 0x243   : > { %v11204_v32 = vpop.f32.mrf.mxu1 }
 0x244   : > { %4542 = vmatmul.mubr.bf16.gmra.mxu1 %v12508_v31  ;;  %v11311_v13 = vpop.f32.mrf.mxu0 }
 0x245   : > { %4549 = vmatprep.mubr.bf16.mxu1 %v12510_v38  ;;  %v11205_v63 = vpop.f32.mrf.mxu1  ;;  %v11312_v29 = vadd.f32 %v11311_v13, %v11310_v58 }
 0x246   : > { %4703 = vmatmul.mubr.bf16.gmra.mxu0 %v12516_v20  ;;  %v11206_v34 = vadd.f32 %v11205_v63, %v11204_v32  ;;  %v11313_v24 = vpop.f32.mrf.mxu0 }
 0x247   : > { %4710 = vmatprep.mubr.bf16.mxu0 %v12519_v5  ;;  %v11207_v36 = vpop.f32.mrf.mxu1  ;;  %v13751_v39 = vadd.f32 %v11312_v29, %v4166_v4  ;;  %v12542_v5 = vld [vmem:[#allocation3 + $0x330] ss:$36 sps:$4 sm:$0xff]  }
 0x248   : > { %v11314_v44 = vpop.f32.mrf.mxu0  ;;  %v4174_v43 = vadd.f32 %v11206_v34, %v13747_v57 }
 0x249   : > { %v11208_v42 = vpop.f32.mrf.mxu1  ;;  %v11315_v6 = vadd.f32 %v11314_v44, %v11313_v24 }
 0x24a   : > { %v11209_v3 = vadd.f32 %v11208_v42, %v11207_v36 }
 0x24b   : > { %v13754_v17 = vadd.f32 %v11315_v6, %v4169_v1 }
 0x24c   : > { %4550 = vmatmul.mubr.bf16.gmra.mxu1 %v12515_v37  ;;  %v4177_v14 = vadd.f32 %v11209_v3, %v13747_v57 }
 0x24d   : > { %4557 = vmatprep.mubr.bf16.mxu1 %v12517_v11  ;;  %v12541_v11 = vld [vmem:[#allocation3 + $0x370] ss:$36 sps:$4 sm:$0xff]  }
 0x24e   : > { %4711 = vmatmul.mubr.bf16.gmra.mxu0 %v12522_v27  ;;  %v12543_v27 = vld [vmem:[#allocation3 + $0x3bc] ss:$36 sps:$4 sm:$0xff]  }
 0x24f   : > { %4718 = vmatprep.mubr.bf16.mxu0 %v12525_v30 }
 0x253   : > { %v11210_v40 = vpop.f32.mrf.mxu1 }
 0x254   : > { %4558 = vmatmul.mubr.bf16.gmra.mxu1 %v12521_v12  ;;  %v11316_v51 = vpop.f32.mrf.mxu0 }
 0x255   : > { %4565 = vmatprep.mubr.bf16.mxu1 %v12523_v19  ;;  %v11211_v41 = vpop.f32.mrf.mxu1  ;;  %v12545_v19 = vld [vmem:[#allocation3 + $0x37c] ss:$36 sps:$4 sm:$0xff]  }
 0x256   : > { %4719 = vmatmul.mubr.bf16.gmra.mxu0 %v12529_v59  ;;  %v11317_v49 = vpop.f32.mrf.mxu0  ;;  %v11212_v47 = vadd.f32 %v11211_v41, %v11210_v40  ;;  %v12548_v59 = vld [vmem:[#allocation3 + $0x378] ss:$36 sps:$4 sm:$0xff]  }
 0x257   : > { %4726 = vmatprep.mubr.bf16.mxu0 %v12532_v10  ;;  %v11318_v48 = vadd.f32 %v11317_v49, %v11316_v51  ;;  %v11213_v52 = vpop.f32.mrf.mxu1  ;;  %v12551_v10 = vld [vmem:[#allocation3 + $0x3c4] ss:$36 sps:$4 sm:$0xff]  }
 0x258   : > { %v11319_v61 = vpop.f32.mrf.mxu0  ;;  %v4182_v38 = vadd.f32 %v11212_v47, %v13747_v57 }
 0x259   : > { %v13757_v2 = vadd.f32 %v11318_v48, %v4174_v43  ;;  %v11214_v21 = vpop.f32.mrf.mxu1 }
 0x25a   : > { %v11320_v0 = vpop.f32.mrf.mxu0  ;;  %v11215_v9 = vadd.f32 %v11214_v21, %v11213_v52 }
 0x25b   : > { %v11321_v15 = vadd.f32 %v11320_v0, %v11319_v61 }
 0x25c   : > { %4566 = vmatmul.mubr.bf16.gmra.mxu1 %v12528_v50  ;;  %v11322_v25 = vpop.f32.mrf.mxu0  ;;  %v4185_v18 = vadd.f32 %v11215_v9, %v13747_v57  ;;  %v12547_v50 = vld [vmem:[#allocation3 + $0x3b8] ss:$36 sps:$4 sm:$0xff]   ;;  %v12555_v9 = vld [vmem:[#allocation3 + $0x3c0] ss:$36 sps:$4 sm:$0xff]  }
 0x25d   : > { %4573 = vmatprep.mubr.bf16.mxu1 %v12530_v7  ;;  %v13760_v16 = vadd.f32 %v11321_v15, %v4177_v14  ;;  %v12549_v7 = vld [vmem:[#allocation3 + $0x404] ss:$36 sps:$4 sm:$0xff]  }
 0x25e   : > { %4727 = vmatmul.mubr.bf16.gmra.mxu0 %v12535_v28  ;;  %v11323_v22 = vpop.f32.mrf.mxu0  ;;  %v12554_v14 = vld [vmem:[#allocation3 + $0x400] ss:$36 sps:$4 sm:$0xff]  }
 0x25f   : > { %4734 = vmatprep.mubr.bf16.mxu0 %v12538_v33  ;;  %v11324_v53 = vadd.f32 %v11323_v22, %v11322_v25  ;;  %v12558_v25 = vld [vmem:[#allocation3 + $0x40c] ss:$36 sps:$4 sm:$0xff]  }
 0x260   : > { %v11325_v56 = vpop.f32.mrf.mxu0 }
 0x261   : > { %v13763_v46 = vadd.f32 %v11324_v53, %v4182_v38 }
 0x262   : > { %v11326_v20 = vpop.f32.mrf.mxu0 }
 0x263   : > { %v11327_v12 = vadd.f32 %v11326_v20, %v11325_v56 }
 0x264   : > { %v11216_v26 = vpop.f32.mrf.mxu1  ;;  %4574 = vmatmul.mubr.bf16.gmra.mxu1 %v12534_v62 }
 0x265   : > { %4581 = vmatprep.mubr.bf16.mxu1 %v12536_v8  ;;  %v13766_v58 = vadd.f32 %v11327_v12, %v4185_v18  ;;  %v12560_v12 = vld [vmem:[#allocation3 + $0x448] ss:$36 sps:$4 sm:$0xff]  }
 0x266   : > { %v11217_v31 = vpop.f32.mrf.mxu1  ;;  %v11328_v32 = vpop.f32.mrf.mxu0  ;;  %4735 = vmatmul.mubr.bf16.gmra.mxu0 %v12542_v5 }
 0x267   : > { %v11218_v60 = vadd.f32 %v11217_v31, %v11216_v26  ;;  %4742 = vmatprep.mubr.bf16.mxu0 %v12545_v19  ;;  %v12556_v26 = vld [vmem:[#allocation3 + $0x44c] ss:$36 sps:$4 sm:$0xff]  }
 0x268   : > { %v11219_v54 = vpop.f32.mrf.mxu1  ;;  %v11329_v13 = vpop.f32.mrf.mxu0 }
 0x269   : > { %v4190_v4 = vadd.f32 %v11218_v60, %v13747_v57  ;;  %v11330_v34 = vadd.f32 %v11329_v13, %v11328_v32 }
 0x26a   : > { %v11220_v37 = vpop.f32.mrf.mxu1  ;;  %v11331_v36 = vpop.f32.mrf.mxu0 }
 0x26b   : > { %v11221_v35 = vadd.f32 %v11220_v37, %v11219_v54  ;;  %v13769_v24 = vadd.f32 %v11330_v34, %v4190_v4  ;;  %v2805_v34 = vld [vmem:[#allocation3 + $0x450] sm:$0xff] }
 0x26c   : > { %v11222_v30 = vpop.f32.mrf.mxu1  ;;  %4582 = vmatmul.mubr.bf16.gmra.mxu1 %v12541_v11  ;;  %v11332_v44 = vpop.f32.mrf.mxu0 }
 0x26d   : > { %4589 = vmatprep.mubr.bf16.mxu1 %v12543_v27  ;;  %v4193_v1 = vadd.f32 %v11221_v35, %v13747_v57  ;;  %v11333_v6 = vadd.f32 %v11332_v44, %v11331_v36  ;;  %v12561_v27 = vld [vmem:[#allocation3 + $0x408] ss:$36 sps:$4 sm:$0xff]  }
 0x26e   : > { %v11223_v63 = vpop.f32.mrf.mxu1  ;;  %v11334_v51 = vpop.f32.mrf.mxu0  ;;  %4743 = vmatmul.mubr.bf16.gmra.mxu0 %v12548_v59 }
 0x26f   : > { %v11224_v45 = vadd.f32 %v11223_v63, %v11222_v30  ;;  %v13772_v41 = vadd.f32 %v11333_v6, %v4193_v1  ;;  %4750 = vmatprep.mubr.bf16.mxu0 %v12551_v10  ;;  %v12562_v63 = vld [vmem:[#allocation3 + $0x20] ss:$36 sps:$4 sm:$0xff]  }
 0x270   : > { %v11225_v29 = vpop.f32.mrf.mxu1  ;;  %v11335_v43 = vpop.f32.mrf.mxu0 }
 0x271   : > { %v4198_v47 = vadd.f32 %v11224_v45, %v13747_v57  ;;  %v11336_v52 = vadd.f32 %v11335_v43, %v11334_v51  ;;  %v12565_v51 = vld [vmem:[#allocation3 + $0x68] ss:$36 sps:$4 sm:$0xff]  }
 0x272   : > { %v11226_v42 = vpop.f32.mrf.mxu1  ;;  %v11337_v21 = vpop.f32.mrf.mxu0 }
 0x273   : > { %v11227_v3 = vadd.f32 %v11226_v42, %v11225_v29  ;;  %v13775_v0 = vadd.f32 %v11336_v52, %v4198_v47  ;;  %v2810_v29 = vld [vmem:[#allocation3 + $0x474] sm:$0xff] }
 0x274   : > { %v11228_v40 = vpop.f32.mrf.mxu1  ;;  %4590 = vmatmul.mubr.bf16.gmra.mxu1 %v12547_v50  ;;  %v11338_v28 = vpop.f32.mrf.mxu0  ;;  %v9999_v6 = vcombine.low %v2805_v34, %v2810_v29 }
 0x275   : > { %4597 = vmatprep.mubr.bf16.mxu1 %v12549_v7  ;;  %v4201_v15 = vadd.f32 %v11227_v3, %v13747_v57  ;;  %v11339_v33 = vadd.f32 %v11338_v28, %v11337_v21 }
 0x276   : > { %v11229_v49 = vpop.f32.mrf.mxu1  ;;  %v11340_v22 = vpop.f32.mrf.mxu0  ;;  %4751 = vmatmul.mubr.bf16.gmra.mxu0 %v12555_v9 }
 0x277   : > { %v11230_v48 = vadd.f32 %v11229_v49, %v11228_v40  ;;  %v13778_v38 = vadd.f32 %v11339_v33, %v4201_v15  ;;  %4758 = vmatprep.mubr.bf16.mxu0 %v12558_v25 }
 0x278   : > { %v11231_v61 = vpop.f32.mrf.mxu1  ;;  %v11341_v53 = vpop.f32.mrf.mxu0 }
 0x279   : > { %v4206_v54 = vadd.f32 %v11230_v48, %v13747_v57  ;;  %v11342_v37 = vadd.f32 %v11341_v53, %v11340_v22  ;;  %v12566_v48 = vld [vmem:[#allocation3 + $0xb0] ss:$36 sps:$4 sm:$0xff]  }
 0x27a   : > { %v11232_v62 = vpop.f32.mrf.mxu1  ;;  %v11343_v11 = vpop.f32.mrf.mxu0 }
 0x27b   : > { %v11233_v8 = vadd.f32 %v11232_v62, %v11231_v61  ;;  %v13781_v5 = vadd.f32 %v11342_v37, %v4206_v54  ;;  %v12568_v54 = vld [vmem:[#allocation3 + $0x140] ss:$36 sps:$4 sm:$0xff]  }
 0x27c   : > { %v11234_v31 = vpop.f32.mrf.mxu1  ;;  %4598 = vmatmul.mubr.bf16.gmra.mxu1 %v12554_v14  ;;  %v11344_v35 = vpop.f32.mrf.mxu0 }
 0x27d   : > { %4605 = vmatprep.mubr.bf16.mxu1 %v12556_v26  ;;  %v4209_v19 = vadd.f32 %v11233_v8, %v13747_v57  ;;  %v11345_v32 = vadd.f32 %v11344_v35, %v11343_v11 }
 0x27e   : > { %v11235_v60 = vpop.f32.mrf.mxu1  ;;  %v11346_v4 = vpop.f32.mrf.mxu0  ;;  %4759 = vmatmul.mubr.bf16.gmra.mxu0 %v12561_v27 }
 0x27f   : > { %v11236_v56 = vadd.f32 %v11235_v60, %v11234_v31  ;;  %v13784_v45 = vadd.f32 %v11345_v32, %v4209_v19  ;;  %4766 = vmatprep.mubr.bf16.mxu0 %v13727_v55  ;;  %v12567_v31 = vld [vmem:[#allocation3 + $0xf8] ss:$36 sps:$4 sm:$0xff]  }
 0x280   : > { %v11237_v20 = vpop.f32.mrf.mxu1  ;;  %v11347_v42 = vpop.f32.mrf.mxu0 }
 0x281   : > { %v4214_v44 = vadd.f32 %v11236_v56, %v13747_v57  ;;  %v11348_v59 = vadd.f32 %v11347_v42, %v11346_v4  ;;  %v12569_v4 = vld [vmem:[#allocation3 + $0x188] ss:$36 sps:$4 sm:$0xff]   ;;  %v12570_v42 = vld [vmem:[#allocation3 + $0x1d0] ss:$36 sps:$4 sm:$0xff]  }
 0x282   : > { %v11238_v18 = vpop.f32.mrf.mxu1  ;;  %v11349_v3 = vpop.f32.mrf.mxu0 }
 0x283   : > { %v11239_v30 = vadd.f32 %v11238_v18, %v11237_v20  ;;  %v13788_v7 = vadd.f32 %v11348_v59, %v4214_v44 }
 0x284   : > { %v11240_v13 = vpop.f32.mrf.mxu1  ;;  %4606 = vmatmul.mubr.bf16.gmra.mxu1 %v12560_v12  ;;  %v11350_v40 = vpop.f32.mrf.mxu0 }
 0x285   : > { %12190 = vmatprep.mubr.bf16.mxu1 %v12562_v63  ;;  %v4217_v49 = vadd.f32 %v11239_v30, %v13747_v57  ;;  %v11351_v47 = vadd.f32 %v11350_v40, %v11349_v3 }
 0x286   : > { %v11241_v36 = vpop.f32.mrf.mxu1  ;;  %v11352_v52 = vpop.f32.mrf.mxu0  ;;  %4767 = vmatmul.mubr.bf16.gmra.mxu0 %v9999_v6 }
 0x287   : > { %v11242_v50 = vadd.f32 %v11241_v36, %v11240_v13  ;;  %v13791_v61 = vadd.f32 %v11351_v47, %v4217_v49 }
 0x288   : > { %v11243_v1 = vpop.f32.mrf.mxu1  ;;  %v11353_v62 = vpop.f32.mrf.mxu0 }
 0x289   : > { %v4222_v28 = vadd.f32 %v11242_v50, %v13747_v57  ;;  %v11354_v9 = vadd.f32 %v11353_v62, %v11352_v52 }
 0x28a   : > { %v11244_v10 = vpop.f32.mrf.mxu1  ;;  %v11355_v8 = vpop.f32.mrf.mxu0 }
 0x28b   : > { %v11245_v43 = vadd.f32 %v11244_v10, %v11243_v1  ;;  %v13794_v33 = vadd.f32 %v11354_v9, %v4222_v28  ;;  %v12572_v28 = vld [vmem:[#allocation3 + $0x260] ss:$36 sps:$4 sm:$0xff]  }
 0x28c   : > { %v11246_v55 = vpop.f32.mrf.mxu1  ;;  %12191 = vmatmul.mubr.bf16.vlgmr.msra.gmra.mxu1 %v12565_v51  ;;  %v11356_v25 = vpop.f32.mrf.mxu0 }
 0x28d   : > { %12194 = vmatprep.mubr.bf16.mxu1 %v12566_v48  ;;  %v4225_v22 = vadd.f32 %v11245_v43, %v13747_v57  ;;  %v11357_v53 = vadd.f32 %v11356_v25, %v11355_v8 }
 0x28e   : > { %v11247_v21 = vpop.f32.mrf.mxu1  ;;  %v11358_v37 = vpop.f32.mrf.mxu0 }
 0x28f   : > { %v11248_v14 = vadd.f32 %v11247_v21, %v11246_v55  ;;  %v13797_v20 = vadd.f32 %v11357_v53, %v4225_v22  ;;  %v12571_v55 = vld [vmem:[#allocation3 + $0x218] ss:$36 sps:$4 sm:$0xff]  }
 0x290   : > { %v11249_v15 = vpop.f32.mrf.mxu1  ;;  %v11359_v18 = vpop.f32.mrf.mxu0 }
 0x291   : > { %v4230_v35 = vadd.f32 %v11248_v14, %v13747_v57  ;;  %v11360_v27 = vadd.f32 %v11359_v18, %v11358_v37 }
 0x292   : > { %v11250_v26 = vpop.f32.mrf.mxu1  ;;  %v11361_v30 = vpop.f32.mrf.mxu0 }
 0x293   : > { %v11251_v60 = vadd.f32 %v11250_v26, %v11249_v15  ;;  %v13800_v32 = vadd.f32 %v11360_v27, %v4230_v35  ;;  %v12574_v27 = vld [vmem:[#allocation3 + $0x2f0] ss:$36 sps:$4 sm:$0xff]  }
 0x294   : > { %v11252_v56 = vpop.f32.mrf.mxu1  ;;  %12195 = vmatmul.mubr.bf16.gmra.mxu1 %v12567_v31  ;;  %v11362_v13 = vpop.f32.mrf.mxu0 }
 0x295   : > { %12198 = vmatprep.mubr.bf16.mxu1 %v12568_v54  ;;  %v4233_v34 = vadd.f32 %v11251_v60, %v13747_v57  ;;  %v11363_v36 = vadd.f32 %v11362_v13, %v11361_v30 }
 0x296   : > { %v11253_v11 = vpop.f32.mrf.mxu1  ;;  %v11364_v50 = vpop.f32.mrf.mxu0 }
 0x297   : > { %v11254_v12 = vadd.f32 %v11253_v11, %v11252_v56  ;;  %v13803_v59 = vadd.f32 %v11363_v36, %v4233_v34  ;;  %v12573_v11 = vld [vmem:[#allocation3 + $0x2a8] ss:$36 sps:$4 sm:$0xff]  }
 0x298   : > { %v11255_v19 = vpop.f32.mrf.mxu1  ;;  %v11365_v3 = vpop.f32.mrf.mxu0 }
 0x299   : > { %v4238_v6 = vadd.f32 %v11254_v12, %v13747_v57  ;;  %v11366_v40 = vadd.f32 %v11365_v3, %v11364_v50 }
 0x29a   : > { %v11256_v63 = vpop.f32.mrf.mxu1  ;;  %v11367_v49 = vpop.f32.mrf.mxu0 }
 0x29b   : > { %v11257_v29 = vadd.f32 %v11256_v63, %v11255_v19  ;;  %v13806_v43 = vadd.f32 %v11366_v40, %v4238_v6  ;;  %v12575_v6 = vld [vmem:[#allocation3 + $0x338] ss:$36 sps:$4 sm:$0xff]  }
 0x29c   : > { %v11258_v44 = vpop.f32.mrf.mxu1  ;;  %12199 = vmatmul.mubr.bf16.gmra.mxu1 %v12569_v4  ;;  %v11368_v48 = vpop.f32.mrf.mxu0 }
 0x29d   : > { %12202 = vmatprep.mubr.bf16.mxu1 %v12570_v42  ;;  %v4241_v52 = vadd.f32 %v11257_v29, %v13747_v57  ;;  %v11369_v62 = vadd.f32 %v11368_v48, %v11367_v49 }
 0x29e   : > { %v11259_v1 = vpop.f32.mrf.mxu1  ;;  %v11370_v9 = vpop.f32.mrf.mxu0 }
 0x29f   : > { %v11260_v10 = vadd.f32 %v11259_v1, %v11258_v44  ;;  %v13809_v15 = vadd.f32 %v11369_v62, %v4241_v52 }
 0x2a0   : > { %v11261_v51 = vpop.f32.mrf.mxu1  ;;  %v11371_v26 = vpop.f32.mrf.mxu0 }
 0x2a1   : > { %v4246_v25 = vadd.f32 %v11260_v10, %v13747_v57  ;;  %v11372_v22 = vadd.f32 %v11371_v26, %v11370_v9 }
 0x2a2   : > { %v11262_v47 = vpop.f32.mrf.mxu1  ;;  %v11373_v53 = vpop.f32.mrf.mxu0 }
 0x2a3   : > { %v11263_v21 = vadd.f32 %v11262_v47, %v11261_v51  ;;  %v13812_v54 = vadd.f32 %v11372_v22, %v4246_v25  ;;  %v12576_v51 = vld [vmem:[#allocation3 + $0x380] ss:$36 sps:$4 sm:$0xff]   ;;  %v12577_v22 = vld [vmem:[#allocation3 + $0x3c8] ss:$36 sps:$4 sm:$0xff]  }
 0x2a4   : > { %v11264_v14 = vpop.f32.mrf.mxu1  ;;  %12203 = vmatmul.mubr.bf16.gmra.mxu1 %v12571_v55  ;;  %v11374_v37 = vpop.f32.mrf.mxu0 }
 0x2a5   : > { %12206 = vmatprep.mubr.bf16.mxu1 %v12572_v28  ;;  %v4249_v18 = vadd.f32 %v11263_v21, %v13747_v57  ;;  %v11375_v12 = vadd.f32 %v11374_v37, %v11373_v53 }
 0x2a6   : > { %v11265_v8 = vpop.f32.mrf.mxu1  ;;  %v11376_v30 = vpop.f32.mrf.mxu0 }
 0x2a7   : > { %v11266_v31 = vadd.f32 %v11265_v8, %v11264_v14  ;;  %v13815_v63 = vadd.f32 %v11375_v12, %v4249_v18 }
 0x2a8   : > { %v11267_v60 = vpop.f32.mrf.mxu1  ;;  %v11377_v4 = vpop.f32.mrf.mxu0 }
 0x2a9   : > { %v4254_v34 = vadd.f32 %v11266_v31, %v13747_v57  ;;  %v11378_v36 = vadd.f32 %v11377_v4, %v11376_v30 }
 0x2aa   : > { %v11268_v56 = vpop.f32.mrf.mxu1  ;;  %v11379_v44 = vpop.f32.mrf.mxu0 }
 0x2ab   : > { %v11269_v35 = vadd.f32 %v11268_v56, %v11267_v60  ;;  %v13818_v50 = vadd.f32 %v11378_v36, %v4254_v34  ;;  %v12578_v56 = vld [vmem:[#allocation3 + $0x410] ss:$36 sps:$4 sm:$0xff]  }
 0x2ac   : > { %v11270_v19 = vpop.f32.mrf.mxu1  ;;  %12207 = vmatmul.mubr.bf16.gmra.mxu1 %v12573_v11  ;;  %v11380_v3 = vpop.f32.mrf.mxu0 }
 0x2ad   : > { %12210 = vmatprep.mubr.bf16.mxu1 %v12574_v27  ;;  %v4257_v10 = vadd.f32 %v11269_v35, %v13747_v57  ;;  %v11381_v40 = vadd.f32 %v11380_v3, %v11379_v44 }
 0x2ae   : > { %v11271_v13 = vpop.f32.mrf.mxu1  ;;  %v11382_v47 = vpop.f32.mrf.mxu0 }
 0x2af   : > { %v11272_v29 = vadd.f32 %v11271_v13, %v11270_v19  ;;  %v13821_v48 = vadd.f32 %v11381_v40, %v4257_v10  ;;  %v12580_v40 = vld [vmem:[%s15550_s5 + $0x78] sm:$0xff]  }
 0x2b0   : > { %v11273_v42 = vpop.f32.mrf.mxu1  ;;  %v11383_v52 = vpop.f32.mrf.mxu0  ;;  %11654 = vmatprep.subr.bf16.mxu0 %v12580_v40 }
 0x2b1   : > { %v4262_v21 = vadd.f32 %v11272_v29, %v13747_v57  ;;  %v11384_v14 = vadd.f32 %v11383_v52, %v11382_v47 }
 0x2b2   : > { %v11274_v1 = vpop.f32.mrf.mxu1  ;;  %v11385_v8 = vpop.f32.mrf.mxu0 }
 0x2b3   : > { %v11275_v62 = vadd.f32 %v11274_v1, %v11273_v42  ;;  %v13824_v26 = vadd.f32 %v11384_v14, %v4262_v21 }
 0x2b4   : > { %v11276_v49 = vpop.f32.mrf.mxu1  ;;  %12211 = vmatmul.mubr.bf16.gmra.mxu1 %v12575_v6  ;;  %v11386_v31 = vpop.f32.mrf.mxu0 }
 0x2b5   : > { %12214 = vmatprep.mubr.bf16.mxu1 %v12576_v51  ;;  %v4265_v60 = vadd.f32 %v11275_v62, %v13747_v57  ;;  %v11387_v53 = vadd.f32 %v11386_v31, %v11385_v8 }
 0x2b6   : > { %v11277_v55 = vpop.f32.mrf.mxu1  ;;  %v11388_v11 = vpop.f32.mrf.mxu0 }
 0x2b7   : > { %v11278_v28 = vadd.f32 %v11277_v55, %v11276_v49  ;;  %v13827_v18 = vadd.f32 %v11387_v53, %v4265_v60 }
 0x2b8   : > { %v11279_v9 = vpop.f32.mrf.mxu1  ;;  %v11389_v12 = vpop.f32.mrf.mxu0 }
 0x2b9   : > { %v4270_v27 = vadd.f32 %v11278_v28, %v13747_v57  ;;  %v11390_v13 = vadd.f32 %v11389_v12, %v11388_v11 }
 0x2ba   : > { %v11280_v25 = vpop.f32.mrf.mxu1  ;;  %v11391_v34 = vpop.f32.mrf.mxu0 }
 0x2bb   : > { %v11281_v19 = vadd.f32 %v11280_v25, %v11279_v9  ;;  %v13830_v29 = vadd.f32 %v11390_v13, %v4270_v27 }
 0x2bc   : > { %v11282_v37 = vpop.f32.mrf.mxu1  ;;  %12215 = vmatmul.mubr.bf16.gmra.mxu1 %v12577_v22  ;;  %v11392_v42 = vpop.f32.mrf.mxu0 }
 0x2bd   : > { %12218 = vmatprep.mubr.bf16.mxu1 %v12578_v56  ;;  %v4273_v44 = vadd.f32 %v11281_v19, %v13747_v57  ;;  %v11393_v1 = vadd.f32 %v11392_v42, %v11391_v34 }
 0x2be   : > { %v11283_v35 = vpop.f32.mrf.mxu1  ;;  %v11394_v6 = vpop.f32.mrf.mxu0 }
 0x2bf   : > { %v11284_v30 = vadd.f32 %v11283_v35, %v11282_v37  ;;  %v13834_v10 = vadd.f32 %v11393_v1, %v4273_v44 }
 0x2c0   : > { %v11285_v4 = vpop.f32.mrf.mxu1  ;;  %v11395_v49 = vpop.f32.mrf.mxu0 }
 0x2c1   : > { %v4278_v47 = vadd.f32 %v11284_v30, %v13747_v57  ;;  %v11396_v21 = vadd.f32 %v11395_v49, %v11394_v6 }
 0x2c2   : > { %v11286_v36 = vpop.f32.mrf.mxu1  ;;  %v11397_v28 = vpop.f32.mrf.mxu0 }
 0x2c3   : > { %v11287_v55 = vadd.f32 %v11286_v36, %v11285_v4  ;;  %v13840_v14 = vadd.f32 %v11396_v21, %v4278_v47 }
 0x2c4   : > { %v11288_v3 = vpop.f32.mrf.mxu1  ;;  %12219 = vmatmul.mubr.bf16.gmra.mxu1 %v13742_v23  ;;  %v12581_v23 = vld [vmem:[%s15550_s5 + $0x38] sm:$0xff]   ;;  %v11398_v8 = vpop.f32.mrf.mxu0 }
 0x2c5   : > { %v4281_v25 = vadd.f32 %v11287_v55, %v13747_v57  ;;  %v11399_v31 = vadd.f32 %v11398_v8, %v11397_v28  ;;  %11655 = vmatpush3.bf16.msra.mxu0 %v12581_v23  ;;  %v12582_v28 = vld [vmem:[%s15550_s5 + $0x70] sm:$0xff]  }
 0x2c6   : > { %v11289_v51 = vpop.f32.mrf.mxu1  ;;  %v11400_v22 = vpop.f32.mrf.mxu0  ;;  %11656 = vmatprep.subr.bf16.mxu0 %v12582_v28 }
 0x2c7   : > { %v11290_v52 = vadd.f32 %v11289_v51, %v11288_v3  ;;  %v13846_v53 = vadd.f32 %v11399_v31, %v4281_v25 }
 0x2c8   : > { %v11291_v62 = vpop.f32.mrf.mxu1  ;;  %v11401_v56 = vpop.f32.mrf.mxu0 }
 0x2c9   : > { %v4286_v11 = vadd.f32 %v11290_v52, %v13747_v57  ;;  %v11402_v12 = vadd.f32 %v11401_v56, %v11400_v22 }
 0x2ca   : > { %v11292_v9 = vpop.f32.mrf.mxu1  ;;  %v11403_v19 = vpop.f32.mrf.mxu0 }
 0x2cb   : > { %v11293_v35 = vadd.f32 %v11292_v9, %v11291_v62  ;;  %v13849_v13 = vadd.f32 %v11402_v12, %v4286_v11 }
 0x2cc   : > { %v11422_v60 = vpop.f32.mrf.mxu1  ;;  %v11404_v34 = vpop.f32.mrf.mxu0 }
 0x2cd   : > { %v4289_v42 = vadd.f32 %v11293_v35, %v13747_v57  ;;  %v11405_v44 = vadd.f32 %v11404_v34, %v11403_v19 }
 0x2ce   : > { %v11423_v37 = vpop.f32.mrf.mxu1  ;;  %v11534_v6 = vpop.f32.mrf.mxu0 }
 0x2cf   : > { %v11424_v27 = vadd.f32 %v11423_v37, %v11422_v60  ;;  %v13853_v40 = vadd.f32 %v11405_v44, %v4289_v42 }
 0x2d0   : > { %v11425_v30 = vpop.f32.mrf.mxu1  ;;  %v11535_v47 = vpop.f32.mrf.mxu0 }
 0x2d1   : > { %v4488_v4 = vadd.f32 %v11424_v27, %v13751_v39  ;;  %v11536_v52 = vadd.f32 %v11535_v47, %v11534_v6 }
 0x2d2   : > { %v11426_v36 = vpop.f32.mrf.mxu1  ;;  %v13858_v62 = vpop.f32.mrf.mxu0 }
 0x2d3   : > { %v11427_v1 = vadd.f32 %v11426_v36, %v11425_v30  ;;  %v13863_v57 = vadd.f32 %v11536_v52, %v4488_v4 }
 0x2d4   : > { %v11428_v3 = vpop.f32.mrf.mxu1  ;;  %v13868_v9 = vpop.f32.mrf.mxu0 }
 0x2d5   : > { %v13856_v51 = vadd.f32 %v11427_v1, %v13754_v17 }
 0x2d6   : > { %v11429_v49 = vpop.f32.mrf.mxu1  ;;  %v13870_v25 = vpop.f32.mrf.mxu0 }
 0x2d7   : > { %v11430_v55 = vadd.f32 %v11429_v49, %v11428_v3  ;;  %v12584_v3 = vld [vmem:[%s15550_s5 + $0x68] sm:$0xff]  }
 0x2d8   : > { %v11431_v21 = vpop.f32.mrf.mxu1  ;;  %v13878_v60 = vpop.f32.mrf.mxu0 }
 0x2d9   : > { %v13861_v39 = vadd.f32 %v11430_v55, %v13757_v2  ;;  %v12583_v2 = vld [vmem:[%s15550_s5 + $0x30] sm:$0xff]  }
 0x2da   : > { %v11432_v23 = vpop.f32.mrf.mxu1  ;;  %11657 = vmatpush3.bf16.msra.mxu0 %v12583_v2  ;;  %v13880_v11 = vpop.f32.mrf.mxu0 }
 0x2db   : > { %v11433_v17 = vadd.f32 %v11432_v23, %v11431_v21  ;;  %11658 = vmatprep.subr.bf16.mxu0 %v12584_v3 }
 0x2dc   : > { %v11434_v8 = vpop.f32.mrf.mxu1  ;;  %v13885_v27 = vpop.f32.mrf.mxu0 }
 0x2dd   : > { %v13873_v31 = vadd.f32 %v11433_v17, %v13760_v16 }
 0x2de   : > { %v11435_v22 = vpop.f32.mrf.mxu1  ;;  %v13887_v30 = vpop.f32.mrf.mxu0 }
 0x2df   : > { %v11436_v56 = vadd.f32 %v11435_v22, %v11434_v8 }
 0x2e0   : > { %v11437_v37 = vpop.f32.mrf.mxu1  ;;  %v13892_v36 = vpop.f32.mrf.mxu0 }
 0x2e1   : > { %v13883_v35 = vadd.f32 %v11436_v56, %v13763_v46 }
 0x2e2   : > { %v11438_v12 = vpop.f32.mrf.mxu1  ;;  %v13894_v1 = vpop.f32.mrf.mxu0 }
 0x2e3   : > { %v11439_v16 = vadd.f32 %v11438_v12, %v11437_v37 }
 0x2e4   : > { %v11440_v19 = vpop.f32.mrf.mxu1  ;;  %v13902_v49 = vpop.f32.mrf.mxu0 }
 0x2e5   : > { %v13890_v4 = vadd.f32 %v11439_v16, %v13766_v58 }
 0x2e6   : > { %v11441_v34 = vpop.f32.mrf.mxu1  ;;  %v13904_v55 = vpop.f32.mrf.mxu0 }
 0x2e7   : > { %v11442_v42 = vadd.f32 %v11441_v34, %v11440_v19 }
 0x2e8   : > { %v11443_v44 = vpop.f32.mrf.mxu1  ;;  %v13912_v28 = vpop.f32.mrf.mxu0 }
 0x2e9   : > { %v13897_v46 = vadd.f32 %v11442_v42, %v13769_v24  ;;  %v12585_v24 = vld [vmem:[%s15550_s5 + $0x28] sm:$0xff]  }
 0x2ea   : > { %v11444_v6 = vpop.f32.mrf.mxu1  ;;  %11659 = vmatpush3.bf16.msra.mxu0 %v12585_v24  ;;  %v13914_v8 = vpop.f32.mrf.mxu0 }
 0x2eb   : > { %v11445_v47 = vadd.f32 %v11444_v6, %v11443_v44  ;;  %v12586_v6 = vld [vmem:[%s15550_s5 + $0x60] sm:$0xff]  }
 0x2ec   : > { %v11446_v58 = vpop.f32.mrf.mxu1  ;;  %v13919_v56 = vpop.f32.mrf.mxu0  ;;  %11660 = vmatprep.subr.bf16.mxu0 %v12586_v6 }
 0x2ed   : > { %v13907_v52 = vadd.f32 %v11445_v47, %v13772_v41 }
 0x2ee   : > { %v11447_v21 = vpop.f32.mrf.mxu1  ;;  %v13921_v12 = vpop.f32.mrf.mxu0 }
 0x2ef   : > { %v11448_v23 = vadd.f32 %v11447_v21, %v11446_v58 }
 0x2f0   : > { %v11449_v17 = vpop.f32.mrf.mxu1  ;;  %v13926_v34 = vpop.f32.mrf.mxu0 }
 0x2f1   : > { %v13917_v2 = vadd.f32 %v11448_v23, %v13775_v0 }
 0x2f2   : > { %v11450_v22 = vpop.f32.mrf.mxu1  ;;  %v13928_v3 = vpop.f32.mrf.mxu0 }
 0x2f3   : > { %v11451_v41 = vadd.f32 %v11450_v22, %v11449_v17 }
 0x2f4   : > { %v11452_v37 = vpop.f32.mrf.mxu1  ;;  %v13936_v58 = vpop.f32.mrf.mxu0 }
 0x2f5   : > { %v13924_v16 = vadd.f32 %v11451_v41, %v13778_v38 }
 0x2f6   : > { %v11453_v19 = vpop.f32.mrf.mxu1  ;;  %v13938_v21 = vpop.f32.mrf.mxu0 }
 0x2f7   : > { %15555 = vst [vmem:[#allocation4_spill] sm:$0xff] %v13924_v16  ;;  %v11454_v42 = vadd.f32 %v11453_v19, %v11452_v37 }
 0x2f8   : > { %v11455_v44 = vpop.f32.mrf.mxu1  ;;  %v13946_v22 = vpop.f32.mrf.mxu0 }
 0x2f9   : > { %v13931_v0 = vadd.f32 %v11454_v42, %v13781_v5  ;;  %v12587_v5 = vld [vmem:[%s15550_s5 + $0x20] sm:$0xff]  }
 0x2fa   : > { %v11456_v47 = vpop.f32.mrf.mxu1  ;;  %11661 = vmatpush3.bf16.msra.mxu0 %v12587_v5  ;;  %v13948_v19 = vpop.f32.mrf.mxu0 }
 0x2fb   : > { %15556 = vst [vmem:[#allocation5_spill] sm:$0xff] %v13931_v0  ;;  %v11457_v24 = vadd.f32 %v11456_v47, %v11455_v44 }
 0x2fc   : > { %v11458_v38 = vpop.f32.mrf.mxu1  ;;  %v13953_v6 = vpop.f32.mrf.mxu0 }
 0x2fd   : > { %v13941_v23 = vadd.f32 %v11457_v24, %v13784_v45 }
 0x2fe   : > { %v11459_v17 = vpop.f32.mrf.mxu1  ;;  %v13955_v24 = vpop.f32.mrf.mxu0 }
 0x2ff   : > { %15557 = vst [vmem:[#allocation6_spill] sm:$0xff] %v13941_v23  ;;  %v11460_v41 = vadd.f32 %v11459_v17, %v11458_v38 }
 0x300   : > { %v11461_v37 = vpop.f32.mrf.mxu1  ;;  %v13960_v0 = vpop.f32.mrf.mxu0 }
 0x301   : > { %v13951_v42 = vadd.f32 %v11460_v41, %v13788_v7  ;;  %v12588_v41 = vld [vmem:[%s15550_s5 + $0x58] sm:$0xff]  }
 0x302   : > { %v11462_v44 = vpop.f32.mrf.mxu1  ;;  %v13962_v17 = vpop.f32.mrf.mxu0  ;;  %11662 = vmatprep.subr.bf16.mxu0 %v12588_v41 }
 0x303   : > { %15558 = vst [vmem:[#allocation7_spill] sm:$0xff] %v13951_v42  ;;  %v11463_v45 = vadd.f32 %v11462_v44, %v11461_v37  ;;  %15560 = vst [vmem:[#allocation9_spill] sm:$0xff] %v13962_v17 }
 0x304   : > { %v11464_v47 = vpop.f32.mrf.mxu1  ;;  %v13970_v44 = vpop.f32.mrf.mxu0 }
 0x305   : > { %v13958_v23 = vadd.f32 %v11463_v45, %v13791_v61  ;;  %15562 = vst [vmem:[#allocation11_spill] sm:$0xff] %v13970_v44 }
 0x306   : > { %v11465_v16 = vpop.f32.mrf.mxu1  ;;  %v13972_v45 = vpop.f32.mrf.mxu0 }
 0x307   : > { %15559 = vst [vmem:[#allocation8_spill] sm:$0xff] %v13958_v23  ;;  %v11466_v38 = vadd.f32 %v11465_v16, %v11464_v47  ;;  %15563 = vst [vmem:[#allocation12_spill] sm:$0xff] %v13972_v45 }
 0x308   : > { %v11467_v5 = vpop.f32.mrf.mxu1 }
 0x309   : > { %v13965_v7 = vadd.f32 %v11466_v38, %v13794_v33  ;;  %v12589_v33 = vld [vmem:[%s15550_s5 + $0x18] sm:$0xff]   ;;  %v13980_v38 = vpop.f32.mrf.mxu0 }
 0x30a   : > { %v11468_v37 = vpop.f32.mrf.mxu1  ;;  %15565 = vst [vmem:[#allocation14_spill] sm:$0xff] %v13980_v38  ;;  %11663 = vmatpush3.bf16.msra.mxu0 %v12589_v33 }
 0x30b   : > { %15561 = vst [vmem:[#allocation10_spill] sm:$0xff] %v13965_v7  ;;  %v11469_v42 = vadd.f32 %v11468_v37, %v11467_v5  ;;  %v13982_v17 = vpop.f32.mrf.mxu0 }
 0x30c   : > { %v11470_v61 = vpop.f32.mrf.mxu1 }
 0x30d   : > { %v13975_v16 = vadd.f32 %v11469_v42, %v13797_v20  ;;  %v13987_v37 = vpop.f32.mrf.mxu0 }
 0x30e   : > { %v11471_v47 = vpop.f32.mrf.mxu1  ;;  %15567 = vst [vmem:[#allocation16_spill] sm:$0xff] %v13987_v37 }
 0x30f   : > { %15564 = vst [vmem:[#allocation13_spill] sm:$0xff] %v13975_v16  ;;  %v11472_v23 = vadd.f32 %v11471_v47, %v11470_v61  ;;  %v13989_v16 = vpop.f32.mrf.mxu0 }
 0x310   : > { %v11473_v7 = vpop.f32.mrf.mxu1 }
 0x311   : > { %v13985_v5 = vadd.f32 %v11472_v23, %v13800_v32  ;;  %v13994_v38 = vpop.f32.mrf.mxu0 }
 0x312   : > { %v11474_v41 = vpop.f32.mrf.mxu1  ;;  %15569 = vst [vmem:[#allocation18_spill] sm:$0xff] %v13994_v38 }
 0x313   : > { %15566 = vst [vmem:[#allocation15_spill] sm:$0xff] %v13985_v5  ;;  %v11475_v20 = vadd.f32 %v11474_v41, %v11473_v7  ;;  %v13996_v47 = vpop.f32.mrf.mxu0 }
 0x314   : > { %v11476_v42 = vpop.f32.mrf.mxu1 }
 0x315   : > { %v13992_v45 = vadd.f32 %v11475_v20, %v13803_v59  ;;  %v14001_v5 = vpop.f32.mrf.mxu0 }
 0x316   : > { %v11477_v44 = vpop.f32.mrf.mxu1  ;;  %15571 = vst [vmem:[#allocation20_spill] sm:$0xff] %v14001_v5 }
 0x317   : > { %15568 = vst [vmem:[#allocation17_spill] sm:$0xff] %v13992_v45  ;;  %v11478_v61 = vadd.f32 %v11477_v44, %v11476_v42  ;;  %v14003_v37 = vpop.f32.mrf.mxu0 }
 0x318   : > { %v11479_v33 = vpop.f32.mrf.mxu1 }
 0x319   : > { %v13999_v32 = vadd.f32 %v11478_v61, %v13806_v43  ;;  %v14008_v45 = vpop.f32.mrf.mxu0 }
 0x31a   : > { %v11480_v23 = vpop.f32.mrf.mxu1  ;;  %15573 = vst [vmem:[#allocation22_spill] sm:$0xff] %v14008_v45 }
 0x31b   : > { %15570 = vst [vmem:[#allocation19_spill] sm:$0xff] %v13999_v32  ;;  %v11481_v7 = vadd.f32 %v11480_v23, %v11479_v33  ;;  %v14010_v38 = vpop.f32.mrf.mxu0 }
 0x31c   : > { %v11482_v41 = vpop.f32.mrf.mxu1  ;;  %15574 = vst [vmem:[#allocation23_spill] sm:$0xff] %v14010_v38 }
 0x31d   : > { %v14006_v59 = vadd.f32 %v11481_v7, %v13809_v15  ;;  %v14015_v5 = vpop.f32.mrf.mxu0 }
 0x31e   : > { %v11483_v20 = vpop.f32.mrf.mxu1 }
 0x31f   : > { %15572 = vst [vmem:[#allocation21_spill] sm:$0xff] %v14006_v59  ;;  %v11484_v44 = vadd.f32 %v11483_v20, %v11482_v41  ;;  %v14020_v7 = vpop.f32.mrf.mxu0 }
 0x320   : > { %v11485_v42 = vpop.f32.mrf.mxu1 }
 0x321   : > { %v14013_v43 = vadd.f32 %v11484_v44, %v13812_v54  ;;  %v14025_v38 = vpop.f32.mrf.mxu0 }
 0x322   : > { %v11486_v61 = vpop.f32.mrf.mxu1 }
 0x323   : > { %15575 = vst [vmem:[#allocation24_spill] sm:$0xff] %v14013_v43  ;;  %v11487_v32 = vadd.f32 %v11486_v61, %v11485_v42  ;;  %v14030_v43 = vpop.f32.mrf.mxu0 }
 0x324   : > { %v11488_v33 = vpop.f32.mrf.mxu1 }
 0x325   : > { %v14018_v23 = vadd.f32 %v11487_v32, %v13815_v63 }
 0x326   : > { %v11489_v15 = vpop.f32.mrf.mxu1 }
 0x327   : > { %15576 = vst [vmem:[#allocation25_spill] sm:$0xff] %v14018_v23  ;;  %v11490_v59 = vadd.f32 %v11489_v15, %v11488_v33  ;;  %v14035_v15 = vpop.f32.mrf.mxu0 }
 0x328   : > { %v11491_v45 = vpop.f32.mrf.mxu1 }
 0x329   : > { %v14023_v41 = vadd.f32 %v11490_v59, %v13818_v50 }
 0x32a   : > { %v11492_v20 = vpop.f32.mrf.mxu1 }
 0x32b   : > { %15577 = vst [vmem:[#allocation26_spill] sm:$0xff] %v14023_v41  ;;  %v11493_v54 = vadd.f32 %v11492_v20, %v11491_v45  ;;  %v14040_v20 = vpop.f32.mrf.mxu0 }
 0x32c   : > { %v11494_v44 = vpop.f32.mrf.mxu1 }
 0x32d   : > { %v14028_v42 = vadd.f32 %v11493_v54, %v13821_v48 }
 0x32e   : > { %v11495_v61 = vpop.f32.mrf.mxu1 }
 0x32f   : > { %15578 = vst [vmem:[#allocation27_spill] sm:$0xff] %v14028_v42  ;;  %v11496_v63 = vadd.f32 %v11495_v61, %v11494_v44  ;;  %v14045_v61 = vpop.f32.mrf.mxu0 }
 0x330   : > { %v11497_v32 = vpop.f32.mrf.mxu1 }
 0x331   : > { %v14033_v23 = vadd.f32 %v11496_v63, %v13824_v26 }
 0x332   : > { %v11498_v33 = vpop.f32.mrf.mxu1 }
 0x333   : > { %15579 = vst [vmem:[#allocation28_spill] sm:$0xff] %v14033_v23  ;;  %v11499_v50 = vadd.f32 %v11498_v33, %v11497_v32  ;;  %v14050_v33 = vpop.f32.mrf.mxu0 }
 0x334   : > { %v11500_v59 = vpop.f32.mrf.mxu1 }
 0x335   : > { %v14038_v41 = vadd.f32 %v11499_v50, %v13827_v18 }
 0x336   : > { %v11501_v45 = vpop.f32.mrf.mxu1 }
 0x337   : > { %15580 = vst [vmem:[#allocation29_spill] sm:$0xff] %v14038_v41  ;;  %v11502_v48 = vadd.f32 %v11501_v45, %v11500_v59  ;;  %v14055_v45 = vpop.f32.mrf.mxu0 }
 0x338   : > { %v11503_v54 = vpop.f32.mrf.mxu1 }
 0x339   : > { %v14043_v42 = vadd.f32 %v11502_v48, %v13830_v29 }
 0x33a   : > { %v11504_v44 = vpop.f32.mrf.mxu1 }
 0x33b   : > { %15581 = vst [vmem:[#allocation30_spill] sm:$0xff] %v14043_v42  ;;  %v11505_v26 = vadd.f32 %v11504_v44, %v11503_v54  ;;  %v12591_v44 = vld [vmem:[%s15550_s5 + $0x10] sm:$0xff]  }
 0x33c   : > { %v11506_v63 = vpop.f32.mrf.mxu1 }
 0x33d   : > { %v14048_v23 = vadd.f32 %v11505_v26, %v13834_v10  ;;  %v12590_v10 = vld [vmem:[%s15550_s5 + $0x50] sm:$0xff]   ;;  %v14069_v26 = vpop.f32.mrf.mxu0 }
 0x33e   : > { %v11507_v32 = vpop.f32.mrf.mxu1  ;;  %11664 = vmatprep.subr.bf16.mxu0 %v12590_v10  ;;  %v12598_v10 = vld [vmem:[%s15550_s5 + $0x40] sm:$0xff]  }
 0x33f   : > { %v11508_v18 = vadd.f32 %v11507_v32, %v11506_v63  ;;  %v12595_v32 = vld [vmem:[%s15550_s5 + $0xb8] sm:$0xff]   ;;  %11665 = vmatpush3.bf16.msra.mxu0 %v12591_v44  ;;  %v12600_v44 = vld [vmem:[%s15550_s5 + $0xe8] sm:$0xff]  }
 0x340   : > { %v11509_v50 = vpop.f32.mrf.mxu1 }
 0x341   : > { %v14053_v41 = vadd.f32 %v11508_v18, %v13840_v14  ;;  %v12592_v14 = vld [vmem:[%s15550_s5 + $0x48] sm:$0xff]  }
 0x342   : > { %v11510_v59 = vpop.f32.mrf.mxu1  ;;  %11666 = vmatprep.subr.bf16.mxu0 %v12592_v14  ;;  %v11539_v14 = vadd.f32 %v13868_v9, %v13858_v62  ;;  %v12611_v62 = vld [vmem:[%s15550_s5 + $0x178] sm:$0xff]  }
 0x343   : > { %v11511_v29 = vadd.f32 %v11510_v59, %v11509_v50  ;;  %v12596_v50 = vld [vmem:[%s15550_s5 + $0xf0] sm:$0xff]  }
 0x344   : > { %v11512_v48 = vpop.f32.mrf.mxu1 }
 0x345   : > { %v14058_v42 = vadd.f32 %v11511_v29, %v13846_v53  ;;  %v12594_v53 = vld [vmem:[%s15550_s5 + $0xf8] sm:$0xff]   ;;  %v12593_v29 = vld [vmem:[%s15550_s5 + $0x8] sm:$0xff]  }
 0x346   : > { %v11513_v54 = vpop.f32.mrf.mxu1  ;;  %11766 = vmatprep.subr.bf16.mxu1 %v12594_v53  ;;  %11667 = vmatpush3.bf16.msra.mxu0 %v12593_v29 }
 0x347   : > { %15582 = vst [vmem:[#allocation31_spill] sm:$0xff] %v14058_v42  ;;  %v11514_v63 = vadd.f32 %v11513_v54, %v11512_v48  ;;  %11767 = vmatpush3.bf16.msra.mxu1 %v12595_v32  ;;  %v12597_v54 = vld [vmem:[%s15550_s5 + $0xb0] sm:$0xff]   ;;  %v14092_v42 = vpop.f32.mrf.mxu0  ;;  %v11542_v32 = vadd.f32 %v13878_v60, %v13870_v25  ;;  %11668 = vmatprep.subr.bf16.mxu0 %v12598_v10  ;;  %v12602_v25 = vld [vmem:[%s15550_s5 + $0xe0] sm:$0xff]  }
 0x348   : > { %v11515_v18 = vpop.f32.mrf.mxu1  ;;  %11768 = vmatprep.subr.bf16.mxu1 %v12596_v50  ;;  %v11548_v60 = vadd.f32 %v13892_v36, %v13887_v30  ;;  %v12603_v30 = vld [vmem:[%s15550_s5 + $0xa0] sm:$0xff]  }
 0x349   : > { %v14081_v59 = vadd.f32 %v11514_v63, %v13849_v13  ;;  %v12607_v63 = vld [vmem:[#allocation3 + $0x4] ss:$36 sps:$4 sm:$0xff]   ;;  %v14115_v9 = vpop.f32.mrf.mxu0  ;;  %v4657_v10 = vadd.f32 %v11542_v32, %v13861_v39  ;;  %v11554_v32 = vadd.f32 %v13912_v28, %v13904_v55 }
 0x34a   : > { %v11516_v48 = vpop.f32.mrf.mxu1  ;;  %8415 = vmatprep.mubr.bf16.mxu0 %v12607_v63  ;;  %v4652_v63 = vadd.f32 %v11539_v14, %v13856_v51  ;;  %v12604_v51 = vld [vmem:[%s15550_s5 + $0xd8] sm:$0xff]   ;;  %v11551_v14 = vadd.f32 %v13902_v49, %v13894_v1  ;;  %v11557_v1 = vadd.f32 %v13919_v56, %v13914_v8  ;;  %v12609_v8 = vld [vmem:[%s15550_s5 + $0xd0] sm:$0xff]  }
 0x34b   : > { %15583 = vst [vmem:[#allocation32_spill] sm:$0xff] %v14081_v59  ;;  %v11517_v13 = vadd.f32 %v11516_v48, %v11515_v18  ;;  %v12599_v18 = vld [vmem:[%s15550_s5] sm:$0xff]   ;;  %11769 = vmatpush3.bf16.msra.mxu1 %v12597_v54  ;;  %v12601_v48 = vld [vmem:[%s15550_s5 + $0xa8] sm:$0xff]   ;;  %v14133_v36 = vpop.f32.mrf.mxu0  ;;  %v12629_v56 = vld [vmem:[%s15550_s5 + $0x170] sm:$0xff]  }
 0x34c   : > { %v12192_v53 = vpop.f32.mrf.mxu1  ;;  %11770 = vmatprep.subr.bf16.mxu1 %v12600_v44  ;;  %v12605_v54 = vld [vmem:[#allocation3] ss:$36 sps:$4 sm:$0xff]   ;;  %11669 = vmatpush3.bf16.msra.mxu0 %v12599_v18 }
 0x34d   : > { %v14102_v59 = vadd.f32 %v11517_v13, %v13853_v40  ;;  %v11545_v40 = vadd.f32 %v13885_v27, %v13880_v11  ;;  %v12613_v11 = vld [vmem:[%s15550_s5 + $0x138] sm:$0xff]   ;;  %11878 = vmatprep.subr.bf16.mxu0 %v12611_v62  ;;  %v14135_v39 = vadd.f32 %v12192_v53, %v4657_v10  ;;  %v14161_v55 = vpop.f32.mrf.mxu0 }
 0x34e   : > { %v4809_v50 = vpop.f32.mrf.mxu1 }
 0x34f   : > { %v14124_v13 = vadd.f32 %v4809_v50, %v13863_v57  ;;  %11771 = vmatpush3.bf16.msra.mxu1 %v12601_v48  ;;  %v4660_v57 = vadd.f32 %v11545_v40, %v13873_v31  ;;  %v4665_v50 = vadd.f32 %v11548_v60, %v13883_v35  ;;  %8416 = vmatmul.mubr.bf16.vlgmr.msra.gmra.mxu0 %v12605_v54  ;;  %v12608_v35 = vld [vmem:[%s15550_s5 + $0x98] sm:$0xff]  }
 0x350   : > { %v12193_v29 = vpop.f32.mrf.mxu1  ;;  %11772 = vmatprep.subr.bf16.mxu1 %v12602_v25  ;;  %11879 = vmatpush3.bf16.msra.mxu0 %v12613_v11  ;;  %v4975_v28 = vmul.f32 %v14135_v39, %v14135_v39  ;;  %v4673_v54 = vadd.f32 %v11554_v32, %v13897_v46  ;;  %v12610_v46 = vld [vmem:[%s15550_s5 + $0x90] sm:$0xff]  }
 0x351   : > { %v4973_v31 = vmul.f32 %v14124_v13, %v14124_v13  ;;  %v14150_v53 = vadd.f32 %v12193_v29, %v4660_v57  ;;  %v11560_v29 = vadd.f32 %v13926_v34, %v13921_v12  ;;  %11880 = vmatprep.subr.bf16.mxu0 %v12629_v56  ;;  %v14187_v12 = vpop.f32.mrf.mxu0 }
 0x352   : > { %v4812_v27 = vpop.f32.mrf.mxu1 }
 0x353   : > { %v14138_v44 = vadd.f32 %v4812_v27, %v4652_v63  ;;  %11773 = vmatpush3.bf16.msra.mxu1 %v12603_v30  ;;  %v4976_v63 = vmul.f32 %v14150_v53, %v14150_v53  ;;  %v4668_v30 = vadd.f32 %v11551_v14, %v13890_v4  ;;  %v11563_v14 = vadd.f32 %v13936_v58, %v13928_v3 }
 0x354   : > { %v12196_v18 = vpop.f32.mrf.mxu1  ;;  %11774 = vmatprep.subr.bf16.mxu1 %v12604_v51  ;;  %v4676_v51 = vadd.f32 %v11557_v1, %v13907_v52  ;;  %v12612_v52 = vld [vmem:[%s15550_s5 + $0xc8] sm:$0xff]   ;;  %v11569_v3 = vadd.f32 %v13953_v6, %v13948_v19  ;;  %v12615_v19 = vld [vmem:[%s15550_s5 + $0xc0] sm:$0xff]   ;;  %v11572_v6 = vadd.f32 %v13960_v0, %v13955_v24 }
 0x355   : > { %v4936_v48 = vadd.f32 %v14138_v44, %v14124_v13  ;;  %v4974_v62 = vmul.f32 %v14138_v44, %v14138_v44  ;;  %v14181_v57 = vadd.f32 %v12196_v18, %v4673_v54  ;;  %v11566_v18 = vadd.f32 %v13946_v22, %v13938_v21  ;;  %v14215_v21 = vpop.f32.mrf.mxu0  ;;  %v12616_v0 = vld [vmem:[%s15550_s5 + $0x80] sm:$0xff]  }
 0x356   : > { %v4825_v49 = vpop.f32.mrf.mxu1 }
 0x357   : > { %v4937_v40 = vadd.f32 %v4936_v48, %v14135_v39  ;;  %v5005_v25 = vadd.f32 %v4974_v62, %v4973_v31  ;;  %v14166_v60 = vadd.f32 %v4825_v49, %v4665_v50  ;;  %11775 = vmatpush3.bf16.msra.mxu1 %v12608_v35  ;;  %v4681_v62 = vadd.f32 %v11560_v29, %v13917_v2  ;;  %v12614_v2 = vld [vmem:[%s15550_s5 + $0x88] sm:$0xff]   ;;  %v14238_v24 = vpop.f32.mrf.mxu0 }
 0x358   : > { %v12197_v10 = vpop.f32.mrf.mxu1  ;;  %11776 = vmatprep.subr.bf16.mxu1 %v12609_v8  ;;  %v4979_v22 = vmul.f32 %v14181_v57, %v14181_v57  ;;  %v15584_v29 = vld [vmem:[#allocation5_spill] sm:$0xff] }
 0x359   : > { %v5006_v11 = vadd.f32 %v5005_v25, %v4975_v28  ;;  %v4938_v27 = vadd.f32 %v4937_v40, %v14150_v53  ;;  %v4977_v32 = vmul.f32 %v14166_v60, %v14166_v60  ;;  %v14202_v49 = vadd.f32 %v12197_v10, %v4676_v51  ;;  %v12630_v40 = vld [vmem:[%s15550_s5 + $0x130] sm:$0xff]  }
 0x35a   : > { %v4828_v50 = vpop.f32.mrf.mxu1  ;;  %v4689_v54 = vadd.f32 %v11566_v18, %v15584_v29  ;;  %11881 = vmatpush3.bf16.msra.mxu0 %v12630_v40 }
 0x35b   : > { %v4939_v34 = vadd.f32 %v4938_v27, %v14166_v60  ;;  %v5007_v31 = vadd.f32 %v5006_v11, %v4976_v63  ;;  %v14192_v4 = vadd.f32 %v4828_v50, %v4668_v30  ;;  %11777 = vmatpush3.bf16.msra.mxu1 %v12610_v46  ;;  %v4980_v63 = vmul.f32 %v14202_v49, %v14202_v49  ;;  %v15585_v30 = vld [vmem:[#allocation4_spill] sm:$0xff]  ;;  %v15586_v46 = vld [vmem:[#allocation6_spill] sm:$0xff] }
 0x35c   : > { %v12200_v48 = vpop.f32.mrf.mxu1  ;;  %11778 = vmatprep.subr.bf16.mxu1 %v12612_v52  ;;  %v4684_v51 = vadd.f32 %v11563_v14, %v15585_v30  ;;  %v15587_v14 = vld [vmem:[#allocation9_spill] sm:$0xff] }
 0x35d   : > { %v5008_v1 = vadd.f32 %v5007_v31, %v4977_v32  ;;  %v4940_v35 = vadd.f32 %v4939_v34, %v14192_v4  ;;  %v4978_v28 = vmul.f32 %v14192_v4, %v14192_v4  ;;  %v14232_v50 = vadd.f32 %v12200_v48, %v4689_v54  ;;  %v15588_v48 = vld [vmem:[#allocation11_spill] sm:$0xff]  ;;  %v15592_v54 = vld [vmem:[#allocation16_spill] sm:$0xff] }
 0x35e   : > { %v4841_v58 = vpop.f32.mrf.mxu1  ;;  %v4692_v34 = vadd.f32 %v11569_v3, %v15586_v46  ;;  %v15593_v46 = vld [vmem:[#allocation18_spill] sm:$0xff] }
 0x35f   : > { %v4941_v25 = vadd.f32 %v4940_v35, %v14181_v57  ;;  %v5009_v8 = vadd.f32 %v5008_v1, %v4978_v28  ;;  %v14220_v56 = vadd.f32 %v4841_v58, %v4681_v62  ;;  %11779 = vmatpush3.bf16.msra.mxu1 %v12614_v2  ;;  %v11575_v1 = vadd.f32 %v15588_v48, %v15587_v14  ;;  %v15589_v35 = vld [vmem:[#allocation12_spill] sm:$0xff]  ;;  %v15590_v28 = vld [vmem:[#allocation14_spill] sm:$0xff]  ;;  %v15591_v58 = vld [vmem:[#allocation7_spill] sm:$0xff] }
 0x360   : > { %v12201_v10 = vpop.f32.mrf.mxu1  ;;  %11780 = vmatprep.subr.bf16.mxu1 %v12615_v19  ;;  %v11578_v40 = vadd.f32 %v15590_v28, %v15589_v35  ;;  %v4697_v2 = vadd.f32 %v11572_v6, %v15591_v58  ;;  %v11581_v19 = vadd.f32 %v15592_v54, %v13982_v17  ;;  %v4983_v6 = vmul.f32 %v14232_v50, %v14232_v50  ;;  %v15594_v17 = vld [vmem:[#allocation10_spill] sm:$0xff]  ;;  %v15595_v14 = vld [vmem:[#allocation8_spill] sm:$0xff]  ;;  %v15596_v28 = vld [vmem:[#allocation13_spill] sm:$0xff] }
 0x361   : > { %v5010_v11 = vadd.f32 %v5009_v8, %v4979_v22  ;;  %v4942_v27 = vadd.f32 %v4941_v25, %v14202_v49  ;;  %v4981_v52 = vmul.f32 %v14220_v56, %v14220_v56  ;;  %v14250_v25 = vadd.f32 %v12201_v10, %v4692_v34  ;;  %v15597_v54 = vld [vmem:[#allocation20_spill] sm:$0xff] }
 0x362   : > { %v4844_v32 = vpop.f32.mrf.mxu1  ;;  %v11584_v34 = vadd.f32 %v15593_v46, %v13989_v16  ;;  %v4700_v48 = vadd.f32 %v11575_v1, %v15595_v14  ;;  %v4708_v58 = vadd.f32 %v11581_v19, %v15596_v28  ;;  %v15598_v1 = vld [vmem:[#allocation22_spill] sm:$0xff]  ;;  %v15601_v28 = vld [vmem:[#allocation19_spill] sm:$0xff] }
 0x363   : > { %v4943_v31 = vadd.f32 %v4942_v27, %v14220_v56  ;;  %v5011_v18 = vadd.f32 %v5010_v11, %v4980_v63  ;;  %v14243_v62 = vadd.f32 %v4844_v32, %v4684_v51  ;;  %11781 = vmatpush3.bf16.msra.mxu1 %v12616_v0  ;;  %v12643_v11 = vld [vmem:[%s15550_s5 + $0x168] sm:$0xff]   ;;  %v14260_v27 = vpop.f32.mrf.mxu0  ;;  %v4705_v32 = vadd.f32 %v11578_v40, %v15594_v17 }
 0x364   : > { %v12204_v3 = vpop.f32.mrf.mxu1  ;;  %11882 = vmatprep.subr.bf16.mxu0 %v12643_v11 }
 0x365   : > { %v5012_v22 = vadd.f32 %v5011_v18, %v4981_v52  ;;  %v4944_v8 = vadd.f32 %v4943_v31, %v14243_v62  ;;  %v4982_v29 = vmul.f32 %v14243_v62, %v14243_v62  ;;  %v4984_v31 = vmul.f32 %v14250_v25, %v14250_v25 }
 0x366   : > { %v4857_v63 = vpop.f32.mrf.mxu1  ;;  %v14274_v35 = vadd.f32 %v12204_v3, %v4705_v32  ;;  %v11590_v3 = vadd.f32 %v15598_v1, %v14003_v37  ;;  %v12644_v32 = vld [vmem:[%s15550_s5 + $0x128] sm:$0xff]  }
 0x367   : > { %v4945_v10 = vadd.f32 %v4944_v8, %v14232_v50  ;;  %v5013_v30 = vadd.f32 %v5012_v22, %v4982_v29  ;;  %v14265_v51 = vadd.f32 %v4857_v63, %v4697_v2  ;;  %v14277_v22 = vpop.f32.mrf.mxu0  ;;  %v11587_v63 = vadd.f32 %v15597_v54, %v13996_v47  ;;  %11883 = vmatpush3.bf16.msra.mxu0 %v12644_v32 }
 0x368   : > { %v12205_v0 = vpop.f32.mrf.mxu1  ;;  %v11599_v32 = vadd.f32 %v14035_v15, %v14030_v43  ;;  %v12657_v43 = vld [vmem:[%s15550_s5 + $0x160] sm:$0xff]  }
 0x369   : > { %v5014_v52 = vadd.f32 %v5013_v30, %v4983_v6  ;;  %v4946_v18 = vadd.f32 %v4945_v10, %v14250_v25  ;;  %v4985_v40 = vmul.f32 %v14265_v51, %v14265_v51  ;;  %v15599_v6 = vld [vmem:[#allocation15_spill] sm:$0xff]  ;;  %v14289_v30 = vadd.f32 %v12205_v0, %v4708_v58  ;;  %v14299_v37 = vpop.f32.mrf.mxu0  ;;  %11884 = vmatprep.subr.bf16.mxu0 %v12657_v43 }
 0x36a   : > { %v4860_v2 = vpop.f32.mrf.mxu1  ;;  %v4713_v19 = vadd.f32 %v11584_v34, %v15599_v6  ;;  %v4987_v34 = vmul.f32 %v14274_v35, %v14274_v35  ;;  %v4721_v58 = vadd.f32 %v11590_v3, %v15601_v28  ;;  %v15603_v6 = vld [vmem:[#allocation21_spill] sm:$0xff]  ;;  %v11605_v28 = vadd.f32 %v14055_v45, %v14050_v33 }
 0x36b   : > { %v4947_v16 = vadd.f32 %v4946_v18, %v14265_v51  ;;  %v5015_v8 = vadd.f32 %v5014_v52, %v4984_v31  ;;  %v14282_v29 = vadd.f32 %v4860_v2, %v4700_v48  ;;  %v15600_v31 = vld [vmem:[#allocation23_spill] sm:$0xff]  ;;  %v11596_v48 = vadd.f32 %v14025_v38, %v14020_v7 }
 0x36c   : > { %v12208_v11 = vpop.f32.mrf.mxu1  ;;  %v11593_v47 = vadd.f32 %v14015_v5, %v15600_v31  ;;  %v4988_v5 = vmul.f32 %v14289_v30, %v14289_v30  ;;  %v15604_v31 = vld [vmem:[#allocation24_spill] sm:$0xff] }
 0x36d   : > { %v5016_v10 = vadd.f32 %v5015_v8, %v4985_v40  ;;  %v4948_v46 = vadd.f32 %v4947_v16, %v14282_v29  ;;  %v4986_v17 = vmul.f32 %v14282_v29, %v14282_v29  ;;  %v15602_v8 = vld [vmem:[#allocation17_spill] sm:$0xff]  ;;  %v14313_v1 = vadd.f32 %v12208_v11, %v4721_v58 }
 0x36e   : > { %v4873_v52 = vpop.f32.mrf.mxu1  ;;  %v4716_v54 = vadd.f32 %v11587_v63, %v15602_v8  ;;  %v11602_v63 = vadd.f32 %v14045_v61, %v14040_v20 }
 0x36f   : > { %v4949_v0 = vadd.f32 %v4948_v46, %v14274_v35  ;;  %v5017_v18 = vadd.f32 %v5016_v10, %v4986_v17  ;;  %v14304_v14 = vadd.f32 %v4873_v52, %v4713_v19  ;;  %v4724_v19 = vadd.f32 %v11593_v47, %v15603_v6  ;;  %v14316_v46 = vpop.f32.mrf.mxu0  ;;  %v15606_v6 = vld [vmem:[#allocation25_spill] sm:$0xff] }
 0x370   : > { %v12209_v2 = vpop.f32.mrf.mxu1  ;;  %v4729_v47 = vadd.f32 %v11596_v48, %v15604_v31  ;;  %v4991_v20 = vmul.f32 %v14313_v1, %v14313_v1 }
 0x371   : > { %v5018_v16 = vadd.f32 %v5017_v18, %v4987_v34  ;;  %v4950_v40 = vadd.f32 %v4949_v0, %v14289_v30  ;;  %v4989_v7 = vmul.f32 %v14304_v14, %v14304_v14  ;;  %v14328_v34 = vadd.f32 %v12209_v2, %v4724_v19  ;;  %v11624_v15 = vpop.f32.mrf.mxu0 }
 0x372   : > { %v4876_v10 = vpop.f32.mrf.mxu1  ;;  %v4732_v19 = vadd.f32 %v11599_v32, %v15606_v6  ;;  %v11614_v32 = vadd.f32 %v14187_v12, %v14161_v55  ;;  %v15610_v6 = vld [vmem:[#allocation29_spill] sm:$0xff] }
 0x373   : > { %v4951_v38 = vadd.f32 %v4950_v40, %v14304_v14  ;;  %v5019_v3 = vadd.f32 %v5018_v16, %v4988_v5  ;;  %v14321_v17 = vadd.f32 %v4876_v10, %v4716_v54  ;;  %v11608_v5 = vadd.f32 %v14092_v42, %v14069_v26  ;;  %v15605_v16 = vld [vmem:[#allocation26_spill] sm:$0xff]  ;;  %v11625_v31 = vpop.f32.mrf.mxu0 }
 0x374   : > { %v12212_v11 = vpop.f32.mrf.mxu1  ;;  %v4737_v40 = vadd.f32 %v11602_v63, %v15605_v16  ;;  %v4992_v45 = vmul.f32 %v14328_v34, %v14328_v34 }
 0x375   : > { %v5020_v52 = vadd.f32 %v5019_v3, %v4989_v7  ;;  %v4952_v0 = vadd.f32 %v4951_v38, %v14321_v17  ;;  %v4990_v18 = vmul.f32 %v14321_v17, %v14321_v17  ;;  %v15607_v38 = vld [vmem:[#allocation27_spill] sm:$0xff]  ;;  %v11627_v55 = vpop.f32.mrf.mxu0 }
 0x376   : > { %v4889_v58 = vpop.f32.mrf.mxu1  ;;  %v14350_v10 = vadd.f32 %v12212_v11, %v4737_v40  ;;  %v4740_v7 = vadd.f32 %v11605_v28, %v15607_v38  ;;  %v11620_v40 = vadd.f32 %v14277_v22, %v14260_v27 }
 0x377   : > { %v4953_v61 = vadd.f32 %v4952_v0, %v14313_v1  ;;  %v5021_v48 = vadd.f32 %v5020_v52, %v4990_v18  ;;  %v14341_v2 = vadd.f32 %v4889_v58, %v4729_v47  ;;  %v11611_v52 = vadd.f32 %v14133_v36, %v14115_v9  ;;  %v15608_v0 = vld [vmem:[#allocation28_spill] sm:$0xff] }
 0x378   : > { %v12213_v33 = vpop.f32.mrf.mxu1  ;;  %v4745_v18 = vadd.f32 %v11608_v5, %v15608_v0  ;;  %v11617_v9 = vadd.f32 %v14238_v24, %v14215_v21  ;;  %v4995_v12 = vmul.f32 %v14350_v10, %v14350_v10  ;;  %v11626_v0 = vadd.f32 %v11625_v31, %v11624_v15 }
 0x379   : > { %v5022_v8 = vadd.f32 %v5021_v48, %v4991_v20  ;;  %v4954_v54 = vadd.f32 %v4953_v61, %v14328_v34  ;;  %v4993_v26 = vmul.f32 %v14341_v2, %v14341_v2  ;;  %v14363_v58 = vadd.f32 %v12213_v33, %v4740_v7  ;;  %v12658_v61 = vld [vmem:[%s15550_s5 + $0x120] sm:$0xff]   ;;  %v15609_v33 = vld [vmem:[#allocation30_spill] sm:$0xff] }
 0x37a   : > { %v4892_v3 = vpop.f32.mrf.mxu1  ;;  %11885 = vmatpush3.bf16.msra.mxu0 %v12658_v61  ;;  %v4756_v7 = vadd.f32 %v11617_v9, %v14048_v23  ;;  %v12671_v9 = vld [vmem:[%s15550_s5 + $0x158] sm:$0xff]  }
 0x37b   : > { %v4955_v42 = vadd.f32 %v4954_v54, %v14341_v2  ;;  %v5023_v63 = vadd.f32 %v5022_v8, %v4992_v45  ;;  %v14356_v47 = vadd.f32 %v4892_v3, %v4732_v19  ;;  %v4753_v45 = vadd.f32 %v11614_v32, %v15609_v33  ;;  %11886 = vmatprep.subr.bf16.mxu0 %v12671_v9  ;;  %v15612_v33 = vld [vmem:[#allocation31_spill] sm:$0xff]  ;;  %v12687_v9 = vld [vmem:[%s15550_s5 + $0x150] sm:$0xff]  }
 0x37c   : > { %v12216_v11 = vpop.f32.mrf.mxu1  ;;  %v4996_v21 = vmul.f32 %v14363_v58, %v14363_v58  ;;  %v4748_v19 = vadd.f32 %v11611_v52, %v15610_v6  ;;  %v11623_v32 = vadd.f32 %v14316_v46, %v14299_v37  ;;  %v4761_v52 = vadd.f32 %v11620_v40, %v14053_v41  ;;  %v12672_v37 = vld [vmem:[%s15550_s5 + $0x1f8] sm:$0xff]  }
 0x37d   : > { %v5024_v28 = vadd.f32 %v5023_v63, %v4993_v26  ;;  %v4956_v43 = vadd.f32 %v4955_v42, %v14356_v47  ;;  %v4994_v20 = vmul.f32 %v14356_v47, %v14356_v47  ;;  %v14385_v38 = vadd.f32 %v12216_v11, %v4753_v45  ;;  %v11628_v42 = vpop.f32.mrf.mxu0  ;;  %11990 = vmatprep.subr.bf16.mxu1 %v12672_v37 }
 0x37e   : > { %v4905_v36 = vpop.f32.mrf.mxu1  ;;  %v4764_v45 = vadd.f32 %v11623_v32, %v15612_v33 }
 0x37f   : > { %v4957_v48 = vadd.f32 %v4956_v43, %v14350_v10  ;;  %v5025_v5 = vadd.f32 %v5024_v28, %v4994_v20  ;;  %v14376_v16 = vadd.f32 %v4905_v36, %v4745_v18  ;;  %v11629_v20 = vadd.f32 %v11628_v42, %v11627_v55  ;;  %v15611_v36 = vld [vmem:[#allocation32_spill] sm:$0xff] }
 0x380   : > { %v12217_v8 = vpop.f32.mrf.mxu1  ;;  %v4999_v41 = vmul.f32 %v14385_v38, %v14385_v38 }
 0x381   : > { %v5026_v24 = vadd.f32 %v5025_v5, %v4995_v12  ;;  %v4958_v54 = vadd.f32 %v4957_v48, %v14363_v58  ;;  %v4997_v27 = vmul.f32 %v14376_v16, %v14376_v16  ;;  %v14396_v28 = vadd.f32 %v12217_v8, %v4756_v7 }
 0x382   : > { %v4908_v3 = vpop.f32.mrf.mxu1  ;;  %v4769_v12 = vadd.f32 %v11626_v0, %v15611_v36 }
 0x383   : > { %v4959_v26 = vadd.f32 %v4958_v54, %v14376_v16  ;;  %v5027_v22 = vadd.f32 %v5026_v24, %v4996_v21  ;;  %v14391_v63 = vadd.f32 %v4908_v3, %v4748_v19  ;;  %v5000_v48 = vmul.f32 %v14396_v28, %v14396_v28 }
 0x384   : > { %v12220_v18 = vpop.f32.mrf.mxu1  ;;  %v4772_v21 = vadd.f32 %v11629_v20, %v14102_v59  ;;  %v12673_v59 = vld [vmem:[%s15550_s5 + $0x118] sm:$0xff]  }
 0x385   : > { %v5028_v11 = vadd.f32 %v5027_v22, %v4997_v27  ;;  %v4960_v23 = vadd.f32 %v4959_v26, %v14391_v63  ;;  %v4998_v43 = vmul.f32 %v14391_v63, %v14391_v63  ;;  %v14417_v8 = vadd.f32 %v12220_v18, %v4769_v12  ;;  %11887 = vmatpush3.bf16.msra.mxu0 %v12673_v59 }
 0x386   : > { %v4921_v61 = vpop.f32.mrf.mxu1  ;;  %11888 = vmatprep.subr.bf16.mxu0 %v12687_v9 }
 0x387   : > { %v4961_v46 = vadd.f32 %v4960_v23, %v14385_v38  ;;  %v5029_v15 = vadd.f32 %v5028_v11, %v4998_v43  ;;  %v14410_v31 = vadd.f32 %v4921_v61, %v4761_v52  ;;  %v5003_v22 = vmul.f32 %v14417_v8, %v14417_v8 }
 0x388   : > { %v12221_v55 = vpop.f32.mrf.mxu1 }
 0x389   : > { %v5030_v5 = vadd.f32 %v5029_v15, %v4999_v41  ;;  %v4962_v40 = vadd.f32 %v4961_v46, %v14396_v28  ;;  %v5001_v6 = vmul.f32 %v14410_v31, %v14410_v31  ;;  %v14425_v42 = vadd.f32 %v12221_v55, %v4772_v21 }
 0x38a   : > { %v4924_v24 = vpop.f32.mrf.mxu1 }
 0x38b   : > { %v4963_v54 = vadd.f32 %v4962_v40, %v14410_v31  ;;  %v5031_v19 = vadd.f32 %v5030_v5, %v5000_v48  ;;  %v14423_v7 = vadd.f32 %v4924_v24, %v4764_v45  ;;  %v5004_v18 = vmul.f32 %v14425_v42, %v14425_v42  ;;  %v12689_v5 = vld [vmem:[%s15550_s5 + $0x110] sm:$0xff]  }
 0x38c   : > { %11889 = vmatpush3.bf16.msra.mxu0 %v12689_v5 }
 0x38d   : > { %v5032_v3 = vadd.f32 %v5031_v19, %v5001_v6  ;;  %v4964_v26 = vadd.f32 %v4963_v54, %v14423_v7  ;;  %v5002_v27 = vmul.f32 %v14423_v7, %v14423_v7 }
 0x38f   : > { %v4965_v32 = vadd.f32 %v4964_v26, %v14417_v8  ;;  %v5033_v0 = vadd.f32 %v5032_v3, %v5002_v27 }
 0x391   : > { %v4966_v52 = vadd.f32 %v4965_v32, %v14425_v42  ;;  %v5034_v11 = vadd.f32 %v5033_v0, %v5003_v22 }
 0x393   : > { %v4967_v23 = vrot.slane %v4966_v52, 4  ;;  %v5035_v43 = vadd.f32 %v5034_v11, %v5004_v18 }
 0x395   : > { %v4968_v20 = vadd.f32 %v4967_v23, %v4966_v52  ;;  %v5036_v61 = vrot.slane %v5035_v43, 4 }
 0x397   : > { %v4969_v37 = vrot.slane %v4968_v20, 2  ;;  %v5037_v41 = vadd.f32 %v5036_v61, %v5035_v43 }
 0x399   : > { %v4970_v46 = vadd.f32 %v4969_v37, %v4968_v20  ;;  %v5038_v15 = vrot.slane %v5037_v41, 2 }
 0x39b   : > { %v4971_v36 = vrot.slane %v4970_v46, 1  ;;  %v5039_v12 = vadd.f32 %v5038_v15, %v5037_v41 }
 0x39d   : > { %v4972_v55 = vadd.f32 %v4971_v36, %v4970_v46  ;;  %v5040_v48 = vrot.slane %v5039_v12, 1 }
 0x39f   : > { %v5041_v40 = vadd.f32 %v5040_v48, %v5039_v12  ;;  %v14445_v33 = vmul.f32 0.00390625, %v4972_v55 }
 0x3a1   : > { %v5043_v45 = vmul.f32 0.00390625, %v5041_v40  ;;  %v5044_v21 = vmul.f32 %v14445_v33, %v14445_v33  ;;  %v5075_v24 = vsub.f32 %v14423_v7, %v14445_v33  ;;  %v5055_v6 = vsub.f32 %v14243_v62, %v14445_v33 }
 0x3a2   : > { %v5058_v3 = vsub.f32 %v14265_v51, %v14445_v33  ;;  %v5059_v26 = vsub.f32 %v14282_v29, %v14445_v33  ;;  %v5060_v27 = vsub.f32 %v14274_v35, %v14445_v33  ;;  %v5061_v59 = vsub.f32 %v14289_v30, %v14445_v33  ;;  %v12703_v51 = vld [vmem:[%s15550_s5 + $0x148] sm:$0xff]  }
 0x3a3   : > { %v5045_v54 = vsub.f32 %v5043_v45, %v5044_v21  ;;  %v5062_v7 = vsub.f32 %v14304_v14, %v14445_v33  ;;  %v5063_v22 = vsub.f32 %v14321_v17, %v14445_v33  ;;  %v5064_v62 = vsub.f32 %v14313_v1, %v14445_v33  ;;  %11890 = vmatprep.subr.bf16.mxu0 %v12703_v51 }
 0x3a4   : > { %v5065_v35 = vsub.f32 %v14328_v34, %v14445_v33  ;;  %v5066_v29 = vsub.f32 %v14341_v2, %v14445_v33  ;;  %v5067_v30 = vsub.f32 %v14356_v47, %v14445_v33  ;;  %v5068_v14 = vsub.f32 %v14350_v10, %v14445_v33 }
 0x3a5   : > { %v5078_v19 = vadd.f32 1e-05, %v5045_v54  ;;  %v5069_v1 = vsub.f32 %v14363_v58, %v14445_v33  ;;  %v5070_v17 = vsub.f32 %v14376_v16, %v14445_v33  ;;  %v5071_v32 = vsub.f32 %v14391_v63, %v14445_v33  ;;  %v12705_v16 = vld [vmem:[%s15550_s5 + $0x108] sm:$0xff]  }
 0x3a6   : > { %v5072_v34 = vsub.f32 %v14385_v38, %v14445_v33  ;;  %v5073_v2 = vsub.f32 %v14396_v28, %v14445_v33  ;;  %v5074_v47 = vsub.f32 %v14410_v31, %v14445_v33  ;;  %v5076_v10 = vsub.f32 %v14417_v8, %v14445_v33  ;;  %11891 = vmatpush3.bf16.msra.mxu0 %v12705_v16 }
 0x3a7   : > { %12862 = vrsqrt.f32 %v5078_v19  ;;  %v5077_v58 = vsub.f32 %v14425_v42, %v14445_v33  ;;  %v5046_v38 = vsub.f32 %v14124_v13, %v14445_v33  ;;  %v5047_v63 = vsub.f32 %v14138_v44, %v14445_v33 }
 0x3a8   : > { %v5048_v28 = vsub.f32 %v14135_v39, %v14445_v33  ;;  %v5049_v31 = vsub.f32 %v14150_v53, %v14445_v33  ;;  %v5050_v8 = vsub.f32 %v14166_v60, %v14445_v33  ;;  %v5051_v42 = vsub.f32 %v14192_v4, %v14445_v33 }
 0x3a9   : > { %v5052_v0 = vsub.f32 %v14181_v57, %v14445_v33  ;;  %v5053_v13 = vsub.f32 %v14202_v49, %v14445_v33  ;;  %v5054_v44 = vsub.f32 %v14220_v56, %v14445_v33  ;;  %v5056_v39 = vsub.f32 %v14232_v50, %v14445_v33  ;;  %v12719_v49 = vld [vmem:[%s15550_s5 + $0x140] sm:$0xff]  }
 0x3aa   : > { %v5057_v53 = vsub.f32 %v14250_v25, %v14445_v33  ;;  %11892 = vmatprep.subr.bf16.mxu0 %v12719_v49 }
 0x3b4   : > { %v12863_v18 = vpop.eup %12862 }
 0x3b5   : > { %v5109_v60 = vmul.f32 %v12863_v18, %v5075_v24  ;;  %v5080_v52 = vmul.f32 %v12863_v18, %v5046_v38  ;;  %v5081_v11 = vmul.f32 %v12863_v18, %v5047_v63  ;;  %v5082_v4 = vmul.f32 %v12863_v18, %v5048_v28 }
 0x3b6   : > { %v5083_v23 = vmul.f32 %v12863_v18, %v5049_v31  ;;  %v5084_v43 = vmul.f32 %v12863_v18, %v5050_v8  ;;  %v5085_v57 = vmul.f32 %v12863_v18, %v5051_v42  ;;  %v5086_v20 = vmul.f32 %v12863_v18, %v5052_v0 }
 0x3b7   : > { %v5141_v61 = vmax.f32 %v5109_v60, 0.0  ;;  %v5087_v56 = vmul.f32 %v12863_v18, %v5053_v13  ;;  %v5088_v9 = vmul.f32 %v12863_v18, %v5054_v44  ;;  %v5089_v37 = vmul.f32 %v12863_v18, %v5055_v6 }
 0x3b8   : > { %v5090_v50 = vmul.f32 %v12863_v18, %v5056_v39  ;;  %v5091_v41 = vmul.f32 %v12863_v18, %v5057_v53  ;;  %v5092_v46 = vmul.f32 %v12863_v18, %v5058_v3  ;;  %v5093_v25 = vmul.f32 %v12863_v18, %v5059_v26 }
 0x3b9   : > { %5173 = vst [vmem:[#allocation2 + $0x1f0] sm:$0xff] %v5141_v61  ;;  %v5094_v15 = vmul.f32 %v12863_v18, %v5060_v27  ;;  %v5095_v36 = vmul.f32 %v12863_v18, %v5061_v59  ;;  %v5096_v12 = vmul.f32 %v12863_v18, %v5062_v7  ;;  %v5097_v55 = vmul.f32 %v12863_v18, %v5063_v22 }
 0x3ba   : > { %v5098_v48 = vmul.f32 %v12863_v18, %v5064_v62  ;;  %v5099_v5 = vmul.f32 %v12863_v18, %v5065_v35  ;;  %v14522_v40 = vmul.f32 %v12863_v18, %v5066_v29  ;;  %v14524_v33 = vmul.f32 %v12863_v18, %v5067_v30  ;;  %v12721_v62 = vld [vmem:[%s15550_s5 + $0x100] sm:$0xff]  }
 0x3bb   : > { %v14526_v45 = vmul.f32 %v12863_v18, %v5068_v14  ;;  %v14528_v21 = vmul.f32 %v12863_v18, %v5069_v1  ;;  %v14530_v24 = vmul.f32 %v12863_v18, %v5070_v17  ;;  %v14532_v54 = vmul.f32 %v12863_v18, %v5071_v32  ;;  %11893 = vmatpush3.bf16.msra.mxu0 %v12721_v62 }
 0x3bc   : > { %v14534_v6 = vmul.f32 %v12863_v18, %v5072_v34  ;;  %v14536_v19 = vmul.f32 %v12863_v18, %v5073_v2  ;;  %v14538_v3 = vmul.f32 %v12863_v18, %v5074_v47  ;;  %v14540_v26 = vmul.f32 %v12863_v18, %v5076_v10 }
 0x3bd   : > { %v14542_v27 = vmul.f32 %v12863_v18, %v5077_v58  ;;  %v14544_v59 = vmax.f32 %v5080_v52, 0.0  ;;  %v14546_v7 = vmax.f32 %v5081_v11, 0.0  ;;  %v14548_v22 = vmax.f32 %v5082_v4, 0.0 }
 0x3be   : > { %v14553_v51 = vmax.f32 %v5083_v23, 0.0  ;;  %v14555_v35 = vmax.f32 %v5084_v43, 0.0  ;;  %v14557_v29 = vmax.f32 %v5085_v57, 0.0  ;;  %v14559_v30 = vmax.f32 %v5086_v20, 0.0 }
 0x3bf   : > { %v14561_v14 = vmax.f32 %v5087_v56, 0.0  ;;  %v14563_v1 = vmax.f32 %v5088_v9, 0.0  ;;  %v14565_v17 = vmax.f32 %v5089_v37, 0.0  ;;  %v14567_v32 = vmax.f32 %v5090_v50, 0.0  ;;  %5144 = vst [vmem:[#allocation2 + $0x28] sm:$0xff] %v14544_v59  ;;  %5145 = vst [vmem:[#allocation2 + $0x30] sm:$0xff] %v14546_v7 }
 0x3c0   : > { %5146 = vst [vmem:[#allocation2 + $0x48] sm:$0xff] %v14548_v22  ;;  %v14572_v34 = vmax.f32 %v5091_v41, 0.0  ;;  %v14574_v2 = vmax.f32 %v5092_v46, 0.0  ;;  %v14576_v47 = vmax.f32 %v5093_v25, 0.0  ;;  %v14578_v10 = vmax.f32 %v5094_v15, 0.0  ;;  %5147 = vst [vmem:[#allocation2 + $0x50] sm:$0xff] %v14553_v51 }
 0x3c1   : > { %5148 = vst [vmem:[#allocation2 + $0x68] sm:$0xff] %v14555_v35  ;;  %5149 = vst [vmem:[#allocation2 + $0x70] sm:$0xff] %v14557_v29  ;;  %v14584_v58 = vmax.f32 %v5095_v36, 0.0  ;;  %v14586_v16 = vmax.f32 %v5096_v12, 0.0  ;;  %v14588_v38 = vmax.f32 %v5097_v55, 0.0  ;;  %v14590_v63 = vmax.f32 %v5098_v48, 0.0 }
 0x3c2   : > { %5150 = vst [vmem:[#allocation2 + $0x88] sm:$0xff] %v14559_v30  ;;  %5151 = vst [vmem:[#allocation2 + $0x90] sm:$0xff] %v14561_v14  ;;  %v14596_v28 = vmax.f32 %v5099_v5, 0.0  ;;  %v5132_v31 = vmax.f32 %v14522_v40, 0.0  ;;  %v5133_v8 = vmax.f32 %v14524_v33, 0.0  ;;  %v5134_v42 = vmax.f32 %v14526_v45, 0.0 }
 0x3c3   : > { %5152 = vst [vmem:[#allocation2 + $0xa8] sm:$0xff] %v14563_v1  ;;  %5153 = vst [vmem:[#allocation2 + $0xb0] sm:$0xff] %v14565_v17  ;;  %v5135_v0 = vmax.f32 %v14528_v21, 0.0  ;;  %v5136_v18 = vmax.f32 %v14530_v24, 0.0  ;;  %v5137_v13 = vmax.f32 %v14532_v54, 0.0  ;;  %v5138_v44 = vmax.f32 %v14534_v6, 0.0 }
 0x3c4   : > { %5154 = vst [vmem:[#allocation2 + $0xc8] sm:$0xff] %v14567_v32  ;;  %5155 = vst [vmem:[#allocation2 + $0xd0] sm:$0xff] %v14572_v34  ;;  %v5139_v39 = vmax.f32 %v14536_v19, 0.0  ;;  %v5140_v53 = vmax.f32 %v14538_v3, 0.0  ;;  %v5142_v60 = vmax.f32 %v14540_v26, 0.0  ;;  %v5143_v52 = vmax.f32 %v14542_v27, 0.0 }
 0x3c5   : > { %5156 = vst [vmem:[#allocation2 + $0xe8] sm:$0xff] %v14574_v2  ;;  %5157 = vst [vmem:[#allocation2 + $0xf0] sm:$0xff] %v14576_v47  ;;  %v10904_v11 = vpack.c.bf16 %v14544_v59, %v14544_v59  ;;  %v10905_v4 = vpack.c.bf16 %v14546_v7, %v14546_v7  ;;  %v10906_v23 = vpack.c.bf16 %v14548_v22, %v14548_v22 }
 0x3c6   : > { %5158 = vst [vmem:[#allocation2 + $0x108] sm:$0xff] %v14578_v10  ;;  %5159 = vst [vmem:[#allocation2 + $0x110] sm:$0xff] %v14584_v58  ;;  %v10907_v43 = vpack.c.bf16 %v14553_v51, %v14553_v51  ;;  %v5178_v57 = vld [vmem:[#allocation2 + $0x27] sm:$0xff]  ;;  %v5179_v20 = vld [vmem:[#allocation2 + $0x2f] sm:$0xff]  ;;  %v10908_v61 = vpack.c.bf16 %v14555_v35, %v14555_v35  ;;  %v10909_v56 = vpack.c.bf16 %v14557_v29, %v14557_v29 }
 0x3c7   : > { %5160 = vst [vmem:[#allocation2 + $0x128] sm:$0xff] %v14586_v16  ;;  %5161 = vst [vmem:[#allocation2 + $0x130] sm:$0xff] %v14588_v38  ;;  %v5180_v49 = vld [vmem:[#allocation2 + $0x47] sm:$0xff]  ;;  %v10910_v9 = vpack.c.bf16 %v14559_v30, %v14559_v30  ;;  %v10911_v37 = vpack.c.bf16 %v14561_v14, %v14561_v14  ;;  %v10872_v50 = vpack.c.bf16 %v5178_v57, %v5178_v57  ;;  %v5181_v46 = vld [vmem:[#allocation2 + $0x4f] sm:$0xff] }
 0x3c8   : > { %5162 = vst [vmem:[#allocation2 + $0x148] sm:$0xff] %v14590_v63  ;;  %5163 = vst [vmem:[#allocation2 + $0x150] sm:$0xff] %v14596_v28  ;;  %v10873_v41 = vpack.c.bf16 %v5179_v20, %v5179_v20  ;;  %v10874_v25 = vpack.c.bf16 %v5180_v49, %v5180_v49  ;;  %v5562_v15 = vld [vmem:[#allocation2 + $0x29] sm:$0xff]  ;;  %v5563_v36 = vld [vmem:[#allocation2 + $0x31] sm:$0xff]  ;;  %v10912_v12 = vpack.c.bf16 %v14563_v1, %v14563_v1 }
 0x3c9   : > { %5164 = vst [vmem:[#allocation2 + $0x168] sm:$0xff] %v5132_v31  ;;  %5165 = vst [vmem:[#allocation2 + $0x170] sm:$0xff] %v5133_v8  ;;  %v10875_v55 = vpack.c.bf16 %v5181_v46, %v5181_v46  ;;  %v10936_v48 = vpack.c.bf16 %v5562_v15, %v5562_v15  ;;  %v10937_v5 = vpack.c.bf16 %v5563_v36, %v5563_v36  ;;  %v5182_v40 = vld [vmem:[#allocation2 + $0x67] sm:$0xff]  ;;  %v5183_v33 = vld [vmem:[#allocation2 + $0x6f] sm:$0xff] }
 0x3ca   : > { %5166 = vst [vmem:[#allocation2 + $0x188] sm:$0xff] %v5134_v42  ;;  %5167 = vst [vmem:[#allocation2 + $0x190] sm:$0xff] %v5135_v0  ;;  %v5564_v45 = vld [vmem:[#allocation2 + $0x49] sm:$0xff]  ;;  %v10913_v21 = vpack.c.bf16 %v14565_v17, %v14565_v17  ;;  %v10876_v24 = vpack.c.bf16 %v5182_v40, %v5182_v40  ;;  %v10877_v54 = vpack.c.bf16 %v5183_v33, %v5183_v33  ;;  %v5565_v6 = vld [vmem:[#allocation2 + $0x51] sm:$0xff] }
 0x3cb   : > { %5168 = vst [vmem:[#allocation2 + $0x1a8] sm:$0xff] %v5136_v18  ;;  %5169 = vst [vmem:[#allocation2 + $0x1b0] sm:$0xff] %v5137_v13  ;;  %v10938_v19 = vpack.c.bf16 %v5564_v45, %v5564_v45  ;;  %v5184_v3 = vld [vmem:[#allocation2 + $0x87] sm:$0xff]  ;;  %v5185_v26 = vld [vmem:[#allocation2 + $0x8f] sm:$0xff]  ;;  %v10914_v27 = vpack.c.bf16 %v14567_v32, %v14567_v32  ;;  %v10939_v59 = vpack.c.bf16 %v5565_v6, %v5565_v6 }
 0x3cc   : > { %5170 = vst [vmem:[#allocation2 + $0x1c8] sm:$0xff] %v5138_v44  ;;  %5174 = vst [vmem:[#allocation2 + $0x208] sm:$0xff] %v5142_v60  ;;  %v10878_v7 = vpack.c.bf16 %v5184_v3, %v5184_v3  ;;  %v10879_v22 = vpack.c.bf16 %v5185_v26, %v5185_v26  ;;  %v5566_v62 = vld [vmem:[#allocation2 + $0x69] sm:$0xff]  ;;  %v5567_v51 = vld [vmem:[#allocation2 + $0x71] sm:$0xff]  ;;  %v10915_v29 = vpack.c.bf16 %v14572_v34, %v14572_v34 }
 0x3cd   : > { %5175 = vst [vmem:[#allocation2 + $0x210] sm:$0xff] %v5143_v52  ;;  %5171 = vst [vmem:[#allocation2 + $0x1d0] sm:$0xff] %v5139_v39  ;;  %v5186_v35 = vld [vmem:[#allocation2 + $0xa7] sm:$0xff]  ;;  %v10940_v30 = vpack.c.bf16 %v5566_v62, %v5566_v62  ;;  %v10941_v14 = vpack.c.bf16 %v5567_v51, %v5567_v51  ;;  %v5187_v1 = vld [vmem:[#allocation2 + $0xaf] sm:$0xff]  ;;  %v10916_v8 = vpack.c.bf16 %v14574_v2, %v14574_v2 }
 0x3ce   : > { %5172 = vst [vmem:[#allocation2 + $0x1e8] sm:$0xff] %v5140_v53  ;;  %5530 = vst [vmem:[#allocation3 + $0x4c] sm:$0xf] %v10904_v11  ;;  %v10880_v17 = vpack.c.bf16 %v5186_v35, %v5186_v35  ;;  %v5568_v32 = vld [vmem:[#allocation2 + $0x89] sm:$0xff]  ;;  %v5569_v31 = vld [vmem:[#allocation2 + $0x91] sm:$0xff]  ;;  %v10881_v34 = vpack.c.bf16 %v5187_v1, %v5187_v1  ;;  %v10917_v39 = vpack.c.bf16 %v14576_v47, %v14576_v47 }
 0x3cf   : > { %5531 = vst [vmem:[#allocation3 + $0x70] sm:$0xf] %v10905_v4  ;;  %5532 = vst [vmem:[#allocation3 + $0x94] sm:$0xf] %v10906_v23  ;;  %v10942_v42 = vpack.c.bf16 %v5568_v32, %v5568_v32  ;;  %v10943_v0 = vpack.c.bf16 %v5569_v31, %v5569_v31  ;;  %v5188_v18 = vld [vmem:[#allocation2 + $0xc7] sm:$0xff]  ;;  %v5189_v13 = vld [vmem:[#allocation2 + $0xcf] sm:$0xff]  ;;  %v10918_v57 = vpack.c.bf16 %v14578_v10, %v14578_v10 }
 0x3d0   : > { %5533 = vst [vmem:[#allocation3 + $0xb8] sm:$0xf] %v10907_v43  ;;  %5534 = vst [vmem:[#allocation3 + $0xdc] sm:$0xf] %v10908_v61  ;;  %v5570_v44 = vld [vmem:[#allocation2 + $0xa9] sm:$0xff]  ;;  %v14648_v60 = vld [vmem:[#allocation2 + $0x1f1] sm:$0xff]  ;;  %v10882_v2 = vpack.c.bf16 %v5188_v18, %v5188_v18  ;;  %v10883_v52 = vpack.c.bf16 %v5189_v13, %v5189_v13  ;;  %v10920_v36 = vpack.c.bf16 %v14586_v16, %v14586_v16 }
 0x3d1   : > { %5535 = vst [vmem:[#allocation3 + $0x100] sm:$0xf] %v10909_v56  ;;  %5536 = vst [vmem:[#allocation3 + $0x124] sm:$0xf] %v10910_v9  ;;  %v14646_v53 = vld [vmem:[#allocation2 + $0x1f0] sm:$0xff]  ;;  %v10944_v4 = vpack.c.bf16 %v5570_v44, %v5570_v44  ;;  %v5190_v23 = vld [vmem:[#allocation2 + $0xe7] sm:$0xff]  ;;  %v10921_v40 = vpack.c.bf16 %v14588_v38, %v14588_v38  ;;  %v10922_v16 = vpack.c.bf16 %v14590_v63, %v14590_v63 }
 0x3d2   : > { %5537 = vst [vmem:[#allocation3 + $0x148] sm:$0xf] %v10911_v37  ;;  %5338 = vst [vmem:[#allocation3 + $0x48] sm:$0xf] %v10872_v50  ;;  %v5571_v11 = vld [vmem:[#allocation2 + $0xb1] sm:$0xff]  ;;  %v10884_v20 = vpack.c.bf16 %v5190_v23, %v5190_v23  ;;  %v5572_v61 = vld [vmem:[#allocation2 + $0xc9] sm:$0xff]  ;;  %v10919_v37 = vpack.c.bf16 %v14584_v58, %v14584_v58  ;;  %v10923_v45 = vpack.c.bf16 %v14596_v28, %v14596_v28 }
 0x3d3   : > { %5339 = vst [vmem:[#allocation3 + $0x6c] sm:$0xf] %v10873_v41  ;;  %5912 = vst [vmem:[#allocation3 + $0xc] sm:$0xf] %v10872_v50  ;;  %v5191_v43 = vld [vmem:[#allocation2 + $0xef] sm:$0xff]  ;;  %v10945_v47 = vpack.c.bf16 %v5571_v11, %v5571_v11  ;;  %v5192_v9 = vld [vmem:[#allocation2 + $0x107] sm:$0xff]  ;;  %v10946_v10 = vpack.c.bf16 %v5572_v61, %v5572_v61 }
 0x3d4   : > { %5913 = vst [vmem:[#allocation3 + $0x30] sm:$0xf] %v10873_v41  ;;  %5340 = vst [vmem:[#allocation3 + $0x90] sm:$0xf] %v10874_v25  ;;  %v10885_v49 = vpack.c.bf16 %v5191_v43, %v5191_v43  ;;  %v5573_v56 = vld [vmem:[#allocation2 + $0xd1] sm:$0xff]  ;;  %v10886_v46 = vpack.c.bf16 %v5192_v9, %v5192_v9  ;;  %v12704_v3 = vld [vmem:[%s15550_s5 + $0x1e8] sm:$0xff]  }
 0x3d5   : > { %5914 = vst [vmem:[#allocation3 + $0x54] sm:$0xf] %v10874_v25  ;;  %5538 = vst [vmem:[#allocation3 + $0x16c] sm:$0xf] %v10912_v12  ;;  %v10947_v50 = vpack.c.bf16 %v5573_v56, %v5573_v56  ;;  %v5193_v41 = vld [vmem:[#allocation2 + $0x10f] sm:$0xff]  ;;  %v12722_v51 = vld [vmem:[%s15550_s5 + $0x1a0] sm:$0xff]  }
 0x3d6   : > { %5341 = vst [vmem:[#allocation3 + $0xb4] sm:$0xf] %v10875_v55  ;;  %5722 = vst [vmem:[#allocation3 + $0x50] sm:$0xf] %v10936_v48  ;;  %v5574_v25 = vld [vmem:[#allocation2 + $0xe9] sm:$0xff]  ;;  %v5575_v15 = vld [vmem:[#allocation2 + $0xf1] sm:$0xff]  ;;  %v10887_v58 = vpack.c.bf16 %v5193_v41, %v5193_v41 }
 0x3d7   : > { %5723 = vst [vmem:[#allocation3 + $0x74] sm:$0xf] %v10937_v5  ;;  %5915 = vst [vmem:[#allocation3 + $0x78] sm:$0xf] %v10875_v55  ;;  %v10948_v55 = vpack.c.bf16 %v5574_v25, %v5574_v25  ;;  %v10949_v48 = vpack.c.bf16 %v5575_v15, %v5575_v15  ;;  %v12674_v5 = vld [vmem:[%s15550_s5 + $0x1b8] sm:$0xff]   ;;  %v12688_v63 = vld [vmem:[%s15550_s5 + $0x1f0] sm:$0xff]  }
 0x3d8   : > { %5539 = vst [vmem:[#allocation3 + $0x190] sm:$0xf] %v10913_v21  ;;  %5342 = vst [vmem:[#allocation3 + $0xd8] sm:$0xf] %v10876_v24  ;;  %v12619_v33 = vld [vmem:[#allocation3 + $0x4c] ss:$36 sps:$4 sm:$0xff]   ;;  %v10933_v21 = vpack.c.bf16 %v14646_v53, %v14646_v53 }
 0x3d9   : > { %5343 = vst [vmem:[#allocation3 + $0xfc] sm:$0xf] %v10877_v54  ;;  %5724 = vst [vmem:[#allocation3 + $0x98] sm:$0xf] %v10938_v19  ;;  %8423 = vmatprep.mubr.bf16.mxu0 %v12619_v33  ;;  %v12625_v6 = vld [vmem:[#allocation3 + $0x94] ss:$36 sps:$4 sm:$0xff]  }
 0x3da   : > { %5916 = vst [vmem:[#allocation3 + $0x9c] sm:$0xf] %v10876_v24  ;;  %5917 = vst [vmem:[#allocation3 + $0xc0] sm:$0xf] %v10877_v54  ;;  %v12617_v12 = vld [vmem:[#allocation3 + $0x48] ss:$36 sps:$4 sm:$0xff]   ;;  %v10965_v24 = vpack.c.bf16 %v14648_v60, %v14648_v60 }
 0x3db   : > { %5540 = vst [vmem:[#allocation3 + $0x1b4] sm:$0xf] %v10914_v27  ;;  %5725 = vst [vmem:[#allocation3 + $0xbc] sm:$0xf] %v10939_v59  ;;  %v12620_v54 = vld [vmem:[#allocation3 + $0x8] ss:$36 sps:$4 sm:$0xff]   ;;  %8424 = vmatmul.mubr.bf16.gmra.mxu0 %v12617_v12 }
 0x3dc   : > { %5344 = vst [vmem:[#allocation3 + $0x120] sm:$0xf] %v10878_v7  ;;  %5345 = vst [vmem:[#allocation3 + $0x144] sm:$0xf] %v10879_v22  ;;  %v12622_v38 = vld [vmem:[#allocation3 + $0xc] ss:$36 sps:$4 sm:$0xff]   ;;  %8431 = vmatprep.mubr.bf16.mxu0 %v12625_v6 }
 0x3dd   : > { %5918 = vst [vmem:[#allocation3 + $0xe4] sm:$0xf] %v10878_v7  ;;  %5919 = vst [vmem:[#allocation3 + $0x108] sm:$0xf] %v10879_v22  ;;  %8576 = vmatprep.mubr.bf16.mxu1 %v12622_v38  ;;  %v12690_v19 = vld [vmem:[%s15550_s5 + $0x1b0] sm:$0xff]   ;;  %v12706_v26 = vld [vmem:[%s15550_s5 + $0x1a8] sm:$0xff]  }
 0x3de   : > { %5541 = vst [vmem:[#allocation3 + $0x1d8] sm:$0xf] %v10915_v29  ;;  %5726 = vst [vmem:[#allocation3 + $0xe0] sm:$0xf] %v10940_v30  ;;  %8577 = vmatmul.mubr.bf16.vlgmr.msra.gmra.mxu1 %v12620_v54  ;;  %v12628_v28 = vld [vmem:[#allocation3 + $0x54] ss:$36 sps:$4 sm:$0xff]  }
 0x3df   : > { %5727 = vst [vmem:[#allocation3 + $0x104] sm:$0xf] %v10941_v14  ;;  %5346 = vst [vmem:[#allocation3 + $0x168] sm:$0xf] %v10880_v17  ;;  %11991 = vmatpush3.bf16.msra.mxu1 %v12674_v5  ;;  %8584 = vmatprep.mubr.bf16.mxu1 %v12628_v28  ;;  %v12623_v27 = vld [vmem:[#allocation3 + $0x90] ss:$36 sps:$4 sm:$0xff]  }
 0x3e0   : > { %5920 = vst [vmem:[#allocation3 + $0x12c] sm:$0xf] %v10880_v17  ;;  %5542 = vst [vmem:[#allocation3 + $0x1fc] sm:$0xf] %v10916_v8  ;;  %11992 = vmatprep.subr.bf16.mxu1 %v12688_v63  ;;  %v12720_v59 = vld [vmem:[%s15550_s5 + $0x1e0] sm:$0xff]   ;;  %v12729_v35 = vld [vmem:[%s15550_s5 + $0x1d8] sm:$0xff]  }
 0x3e1   : > { %5347 = vst [vmem:[#allocation3 + $0x18c] sm:$0xf] %v10881_v34  ;;  %5728 = vst [vmem:[#allocation3 + $0x128] sm:$0xf] %v10942_v42  ;;  %v12626_v7 = vld [vmem:[#allocation3 + $0x50] ss:$36 sps:$4 sm:$0xff]  }
 0x3e2   : > { %5729 = vst [vmem:[#allocation3 + $0x14c] sm:$0xf] %v10943_v0  ;;  %5921 = vst [vmem:[#allocation3 + $0x150] sm:$0xf] %v10881_v34  ;;  %v12633_v22 = vld [vmem:[#allocation3 + $0xdc] ss:$36 sps:$4 sm:$0xff]  }
 0x3e3   : > { %5543 = vst [vmem:[#allocation3 + $0x220] sm:$0xf] %v10917_v39  ;;  %5348 = vst [vmem:[#allocation3 + $0x1b0] sm:$0xf] %v10882_v2  ;;  %11993 = vmatpush3.bf16.msra.mxu1 %v12690_v19  ;;  %8432 = vmatmul.mubr.bf16.gmra.mxu0 %v12623_v27  ;;  %v12636_v62 = vld [vmem:[#allocation3 + $0x9c] ss:$36 sps:$4 sm:$0xff]  }
 0x3e4   : > { %5349 = vst [vmem:[#allocation3 + $0x1d4] sm:$0xf] %v10883_v52  ;;  %5730 = vst [vmem:[#allocation3 + $0x170] sm:$0xf] %v10944_v4  ;;  %11994 = vmatprep.subr.bf16.mxu1 %v12704_v3  ;;  %8439 = vmatprep.mubr.bf16.mxu0 %v12633_v22  ;;  %v12631_v29 = vld [vmem:[#allocation3 + $0xd8] ss:$36 sps:$4 sm:$0xff]  }
 0x3e5   : > { %5922 = vst [vmem:[#allocation3 + $0x174] sm:$0xf] %v10882_v2  ;;  %5923 = vst [vmem:[#allocation3 + $0x198] sm:$0xf] %v10883_v52  ;;  %v12634_v30 = vld [vmem:[#allocation3 + $0x98] ss:$36 sps:$4 sm:$0xff]  }
 0x3e6   : > { %5544 = vst [vmem:[#allocation3 + $0x244] sm:$0xf] %v10918_v57  ;;  %5731 = vst [vmem:[#allocation3 + $0x194] sm:$0xf] %v10945_v47  ;;  %8585 = vmatmul.mubr.bf16.gmra.mxu1 %v12626_v7  ;;  %v12639_v14 = vld [vmem:[#allocation3 + $0x124] ss:$36 sps:$4 sm:$0xff]  }
 0x3e7   : > { %5350 = vst [vmem:[#allocation3 + $0x1f8] sm:$0xf] %v10884_v20  ;;  %5351 = vst [vmem:[#allocation3 + $0x21c] sm:$0xf] %v10885_v49  ;;  %8592 = vmatprep.mubr.bf16.mxu1 %v12636_v62  ;;  %11995 = vmatpush3.bf16.msra.mxu1 %v12706_v26  ;;  %v12642_v1 = vld [vmem:[#allocation3 + $0xe4] ss:$36 sps:$4 sm:$0xff]  }
 0x3e8   : > { %5924 = vst [vmem:[#allocation3 + $0x1bc] sm:$0xf] %v10884_v20  ;;  %5925 = vst [vmem:[#allocation3 + $0x1e0] sm:$0xf] %v10885_v49  ;;  %11996 = vmatprep.subr.bf16.mxu1 %v12720_v59  ;;  %v5194_v17 = vld [vmem:[#allocation2 + $0x127] sm:$0xff]  ;;  %v5195_v32 = vld [vmem:[#allocation2 + $0x12f] sm:$0xff] }
 0x3e9   : > { %5545 = vst [vmem:[#allocation3 + $0x268] sm:$0xf] %v10919_v37  ;;  %5732 = vst [vmem:[#allocation3 + $0x1b8] sm:$0xf] %v10946_v10  ;;  %v10888_v31 = vpack.c.bf16 %v5194_v17, %v5194_v17  ;;  %v10889_v8 = vpack.c.bf16 %v5195_v32, %v5195_v32  ;;  %v5576_v34 = vld [vmem:[#allocation2 + $0x109] sm:$0xff]  ;;  %v5577_v42 = vld [vmem:[#allocation2 + $0x111] sm:$0xff] }
 0x3ea   : > { %5733 = vst [vmem:[#allocation3 + $0x1dc] sm:$0xf] %v10947_v50  ;;  %5352 = vst [vmem:[#allocation3 + $0x240] sm:$0xf] %v10886_v46  ;;  %v5196_v0 = vld [vmem:[#allocation2 + $0x147] sm:$0xff]  ;;  %v10950_v18 = vpack.c.bf16 %v5576_v34, %v5576_v34  ;;  %v10951_v13 = vpack.c.bf16 %v5577_v42, %v5577_v42  ;;  %v5197_v44 = vld [vmem:[#allocation2 + $0x14f] sm:$0xff] }
 0x3eb   : > { %5926 = vst [vmem:[#allocation3 + $0x204] sm:$0xf] %v10886_v46  ;;  %5546 = vst [vmem:[#allocation3 + $0x28c] sm:$0xf] %v10920_v36  ;;  %11997 = vmatpush3.bf16.msra.mxu1 %v12722_v51  ;;  %8440 = vmatmul.mubr.bf16.gmra.mxu0 %v12631_v29  ;;  %v10890_v39 = vpack.c.bf16 %v5196_v0, %v5196_v0  ;;  %v5578_v53 = vld [vmem:[#allocation2 + $0x129] sm:$0xff]  ;;  %v5579_v60 = vld [vmem:[#allocation2 + $0x131] sm:$0xff]  ;;  %v10891_v52 = vpack.c.bf16 %v5197_v44, %v5197_v44 }
 0x3ec   : > { %5353 = vst [vmem:[#allocation3 + $0x264] sm:$0xf] %v10887_v58  ;;  %5734 = vst [vmem:[#allocation3 + $0x200] sm:$0xf] %v10948_v55  ;;  %11998 = vmatprep.subr.bf16.mxu1 %v12729_v35  ;;  %8447 = vmatprep.mubr.bf16.mxu0 %v12639_v14  ;;  %v12637_v2 = vld [vmem:[#allocation3 + $0x120] ss:$36 sps:$4 sm:$0xff]   ;;  %v10952_v11 = vpack.c.bf16 %v5578_v53, %v5578_v53  ;;  %v10953_v4 = vpack.c.bf16 %v5579_v60, %v5579_v60 }
 0x3ed   : > { %5735 = vst [vmem:[#allocation3 + $0x224] sm:$0xf] %v10949_v48  ;;  %5927 = vst [vmem:[#allocation3 + $0x228] sm:$0xf] %v10887_v58  ;;  %v5198_v23 = vld [vmem:[#allocation2 + $0x167] sm:$0xff]  ;;  %v5199_v43 = vld [vmem:[#allocation2 + $0x16f] sm:$0xff] }
 0x3ee   : > { %5547 = vst [vmem:[#allocation3 + $0x2b0] sm:$0xf] %v10921_v40  ;;  %5548 = vst [vmem:[#allocation3 + $0x2d4] sm:$0xf] %v10922_v16  ;;  %8593 = vmatmul.mubr.bf16.gmra.mxu1 %v12634_v30  ;;  %v5390_v57 = vld [vmem:[#allocation2 + $0x168] sm:$0xff]  ;;  %v10892_v49 = vpack.c.bf16 %v5198_v23, %v5198_v23  ;;  %v10893_v61 = vpack.c.bf16 %v5199_v43, %v5199_v43  ;;  %v5391_v56 = vld [vmem:[#allocation2 + $0x170] sm:$0xff] }
 0x3ef   : > { %5549 = vst [vmem:[#allocation3 + $0x2f8] sm:$0xf] %v10923_v45  ;;  %5559 = vst [vmem:[#allocation3 + $0x460] sm:$0xf] %v10933_v21  ;;  %8600 = vmatprep.mubr.bf16.mxu1 %v12642_v1  ;;  %v12640_v47 = vld [vmem:[#allocation3 + $0xe0] ss:$36 sps:$4 sm:$0xff]   ;;  %v10924_v9 = vpack.c.bf16 %v5390_v57, %v5390_v57  ;;  %v10925_v41 = vpack.c.bf16 %v5391_v56, %v5391_v56 }
 0x3f0   : > { %5751 = vst [vmem:[#allocation3 + $0x464] sm:$0xf] %v10965_v24  ;;  %5354 = vst [vmem:[#allocation3 + $0x288] sm:$0xf] %v10888_v31  ;;  %v12647_v20 = vld [vmem:[#allocation3 + $0x16c] ss:$36 sps:$4 sm:$0xff]  }
 0x3f1   : > { %5355 = vst [vmem:[#allocation3 + $0x2ac] sm:$0xf] %v10889_v8  ;;  %5928 = vst [vmem:[#allocation3 + $0x24c] sm:$0xf] %v10888_v31  ;;  %v5580_v37 = vld [vmem:[#allocation2 + $0x149] sm:$0xff]  ;;  %v5581_v10 = vld [vmem:[#allocation2 + $0x151] sm:$0xff] }
 0x3f2   : > { %5929 = vst [vmem:[#allocation3 + $0x270] sm:$0xf] %v10889_v8  ;;  %5736 = vst [vmem:[#allocation3 + $0x248] sm:$0xf] %v10950_v18  ;;  %v12650_v50 = vld [vmem:[#allocation3 + $0x12c] ss:$36 sps:$4 sm:$0xff]   ;;  %v10954_v46 = vpack.c.bf16 %v5580_v37, %v5580_v37  ;;  %v10955_v25 = vpack.c.bf16 %v5581_v10, %v5581_v10 }
 0x3f3   : > { %5737 = vst [vmem:[#allocation3 + $0x26c] sm:$0xf] %v10951_v13  ;;  %5356 = vst [vmem:[#allocation3 + $0x2d0] sm:$0xf] %v10890_v39  ;;  %v5200_v15 = vld [vmem:[#allocation2 + $0x187] sm:$0xff]  ;;  %v5201_v36 = vld [vmem:[#allocation2 + $0x18f] sm:$0xff]  ;;  %8448 = vmatmul.mubr.bf16.gmra.mxu0 %v12637_v2 }
 0x3f4   : > { %5930 = vst [vmem:[#allocation3 + $0x294] sm:$0xf] %v10890_v39  ;;  %5357 = vst [vmem:[#allocation3 + $0x2f4] sm:$0xf] %v10891_v52  ;;  %v5392_v12 = vld [vmem:[#allocation2 + $0x188] sm:$0xff]  ;;  %v10894_v58 = vpack.c.bf16 %v5200_v15, %v5200_v15  ;;  %v10895_v55 = vpack.c.bf16 %v5201_v36, %v5201_v36  ;;  %v5393_v48 = vld [vmem:[#allocation2 + $0x190] sm:$0xff]  ;;  %8455 = vmatprep.mubr.bf16.mxu0 %v12647_v20 }
 0x3f5   : > { %5738 = vst [vmem:[#allocation3 + $0x290] sm:$0xf] %v10952_v11  ;;  %5739 = vst [vmem:[#allocation3 + $0x2b4] sm:$0xf] %v10953_v4  ;;  %v10926_v5 = vpack.c.bf16 %v5392_v12, %v5392_v12  ;;  %v5582_v40 = vld [vmem:[#allocation2 + $0x169] sm:$0xff]  ;;  %v5583_v33 = vld [vmem:[#allocation2 + $0x171] sm:$0xff]  ;;  %v10927_v16 = vpack.c.bf16 %v5393_v48, %v5393_v48 }
 0x3f6   : > { %5931 = vst [vmem:[#allocation3 + $0x2b8] sm:$0xf] %v10891_v52  ;;  %5358 = vst [vmem:[#allocation3 + $0x318] sm:$0xf] %v10892_v49  ;;  %v10956_v45 = vpack.c.bf16 %v5582_v40, %v5582_v40  ;;  %v10957_v21 = vpack.c.bf16 %v5583_v33, %v5583_v33  ;;  %v5202_v24 = vld [vmem:[#allocation2 + $0x1a7] sm:$0xff]  ;;  %v5203_v54 = vld [vmem:[#allocation2 + $0x1af] sm:$0xff]  ;;  %8601 = vmatmul.mubr.bf16.gmra.mxu1 %v12640_v47 }
 0x3f7   : > { %5359 = vst [vmem:[#allocation3 + $0x33c] sm:$0xf] %v10893_v61  ;;  %5550 = vst [vmem:[#allocation3 + $0x31c] sm:$0xf] %v10924_v9  ;;  %v5394_v38 = vld [vmem:[#allocation2 + $0x1a8] sm:$0xff]  ;;  %v10896_v6 = vpack.c.bf16 %v5202_v24, %v5202_v24  ;;  %v10897_v63 = vpack.c.bf16 %v5203_v54, %v5203_v54  ;;  %v5395_v28 = vld [vmem:[#allocation2 + $0x1b0] sm:$0xff]  ;;  %8608 = vmatprep.mubr.bf16.mxu1 %v12650_v50 }
 0x3f8   : > { %5932 = vst [vmem:[#allocation3 + $0x2dc] sm:$0xf] %v10892_v49  ;;  %5933 = vst [vmem:[#allocation3 + $0x300] sm:$0xf] %v10893_v61  ;;  %v10928_v19 = vpack.c.bf16 %v5394_v38, %v5394_v38  ;;  %v5584_v3 = vld [vmem:[#allocation2 + $0x189] sm:$0xff]  ;;  %v5585_v26 = vld [vmem:[#allocation2 + $0x191] sm:$0xff]  ;;  %v10929_v27 = vpack.c.bf16 %v5395_v28, %v5395_v28 }
 0x3f9   : > { %5551 = vst [vmem:[#allocation3 + $0x340] sm:$0xf] %v10925_v41  ;;  %5740 = vst [vmem:[#allocation3 + $0x2d8] sm:$0xf] %v10954_v46  ;;  %v10958_v59 = vpack.c.bf16 %v5584_v3, %v5584_v3  ;;  %v10959_v7 = vpack.c.bf16 %v5585_v26, %v5585_v26  ;;  %v5204_v22 = vld [vmem:[#allocation2 + $0x1c7] sm:$0xff]  ;;  %v5205_v62 = vld [vmem:[#allocation2 + $0x1cf] sm:$0xff] }
 0x3fa   : > { %5741 = vst [vmem:[#allocation3 + $0x2fc] sm:$0xf] %v10955_v25  ;;  %5360 = vst [vmem:[#allocation3 + $0x360] sm:$0xf] %v10894_v58  ;;  %v5396_v51 = vld [vmem:[#allocation2 + $0x1c8] sm:$0xff]  ;;  %v10898_v35 = vpack.c.bf16 %v5204_v22, %v5204_v22  ;;  %v10899_v29 = vpack.c.bf16 %v5205_v62, %v5205_v62  ;;  %v5397_v0 = vld [vmem:[#allocation2 + $0x1d0] sm:$0xff] }
 0x3fb   : > { %5361 = vst [vmem:[#allocation3 + $0x384] sm:$0xf] %v10895_v55  ;;  %5552 = vst [vmem:[#allocation3 + $0x364] sm:$0xf] %v10926_v5  ;;  %v10930_v30 = vpack.c.bf16 %v5396_v51, %v5396_v51  ;;  %v12645_v14 = vld [vmem:[#allocation3 + $0x168] ss:$36 sps:$4 sm:$0xff]   ;;  %v10931_v18 = vpack.c.bf16 %v5397_v0, %v5397_v0 }
 0x3fc   : > { %5934 = vst [vmem:[#allocation3 + $0x324] sm:$0xf] %v10894_v58  ;;  %5935 = vst [vmem:[#allocation3 + $0x348] sm:$0xf] %v10895_v55  ;;  %v12648_v1 = vld [vmem:[#allocation3 + $0x128] ss:$36 sps:$4 sm:$0xff]   ;;  %8456 = vmatmul.mubr.bf16.gmra.mxu0 %v12645_v14 }
 0x3fd   : > { %5553 = vst [vmem:[#allocation3 + $0x388] sm:$0xf] %v10927_v16  ;;  %5742 = vst [vmem:[#allocation3 + $0x320] sm:$0xf] %v10956_v45  ;;  %v12653_v17 = vld [vmem:[#allocation3 + $0x1b4] ss:$36 sps:$4 sm:$0xff]  }
 0x3fe   : > { %5743 = vst [vmem:[#allocation3 + $0x344] sm:$0xf] %v10957_v21  ;;  %5362 = vst [vmem:[#allocation3 + $0x3a8] sm:$0xf] %v10896_v6  ;;  %v12656_v32 = vld [vmem:[#allocation3 + $0x174] ss:$36 sps:$4 sm:$0xff]   ;;  %8609 = vmatmul.mubr.bf16.gmra.mxu1 %v12648_v1  ;;  %8463 = vmatprep.mubr.bf16.mxu0 %v12653_v17 }
 0x3ff   : > { %5363 = vst [vmem:[#allocation3 + $0x3cc] sm:$0xf] %v10897_v63  ;;  %5554 = vst [vmem:[#allocation3 + $0x3ac] sm:$0xf] %v10928_v19  ;;  %8616 = vmatprep.mubr.bf16.mxu1 %v12656_v32  ;;  %v12651_v31 = vld [vmem:[#allocation3 + $0x1b0] ss:$36 sps:$4 sm:$0xff]  }
 0x400   : > { %5936 = vst [vmem:[#allocation3 + $0x36c] sm:$0xf] %v10896_v6  ;;  %5937 = vst [vmem:[#allocation3 + $0x390] sm:$0xf] %v10897_v63  ;;  %v12654_v8 = vld [vmem:[#allocation3 + $0x170] ss:$36 sps:$4 sm:$0xff]  }
 0x401   : > { %5555 = vst [vmem:[#allocation3 + $0x3d0] sm:$0xf] %v10929_v27  ;;  %5744 = vst [vmem:[#allocation3 + $0x368] sm:$0xf] %v10958_v59  ;;  %v12661_v34 = vld [vmem:[#allocation3 + $0x1fc] ss:$36 sps:$4 sm:$0xff]  }
 0x402   : > { %5745 = vst [vmem:[#allocation3 + $0x38c] sm:$0xf] %v10959_v7  ;;  %5364 = vst [vmem:[#allocation3 + $0x3f0] sm:$0xf] %v10898_v35  ;;  %v12664_v42 = vld [vmem:[#allocation3 + $0x1bc] ss:$36 sps:$4 sm:$0xff]  }
 0x403   : > { %5365 = vst [vmem:[#allocation3 + $0x414] sm:$0xf] %v10899_v29  ;;  %5556 = vst [vmem:[#allocation3 + $0x3f4] sm:$0xf] %v10930_v30  ;;  %v5586_v13 = vld [vmem:[#allocation2 + $0x1a9] sm:$0xff]  ;;  %v5587_v44 = vld [vmem:[#allocation2 + $0x1b1] sm:$0xff] }
 0x404   : > { %5938 = vst [vmem:[#allocation3 + $0x3b4] sm:$0xf] %v10898_v35  ;;  %5939 = vst [vmem:[#allocation3 + $0x3d8] sm:$0xf] %v10899_v29  ;;  %8464 = vmatmul.mubr.bf16.gmra.mxu0 %v12651_v31  ;;  %v5206_v39 = vld [vmem:[#allocation2 + $0x1e7] sm:$0xff]  ;;  %v10960_v53 = vpack.c.bf16 %v5586_v13, %v5586_v13  ;;  %v10961_v60 = vpack.c.bf16 %v5587_v44, %v5587_v44  ;;  %v5207_v2 = vld [vmem:[#allocation2 + $0x1ef] sm:$0xff] }
 0x405   : > { %8471 = vmatprep.mubr.bf16.mxu0 %v12661_v34  ;;  %v10900_v52 = vpack.c.bf16 %v5206_v39, %v5206_v39  ;;  %v5398_v11 = vld [vmem:[#allocation2 + $0x1e8] sm:$0xff]  ;;  %5557 = vst [vmem:[#allocation3 + $0x418] sm:$0xf] %v10931_v18  ;;  %v10901_v23 = vpack.c.bf16 %v5207_v2, %v5207_v2  ;;  %v5589_v57 = vld [vmem:[#allocation2 + $0x1d1] sm:$0xff]  ;;  %v12748_v51 = vld [vmem:[%s15550_s5 + $0x1c0] sm:$0xff]  }
 0x406   : > { %8617 = vmatmul.mubr.bf16.gmra.mxu1 %v12654_v8  ;;  %v5588_v4 = vld [vmem:[#allocation2 + $0x1c9] sm:$0xff]  ;;  %v10932_v43 = vpack.c.bf16 %v5398_v11, %v5398_v11  ;;  %v12659_v61 = vld [vmem:[#allocation3 + $0x1f8] ss:$36 sps:$4 sm:$0xff]   ;;  %5746 = vst [vmem:[#allocation3 + $0x3b0] sm:$0xf] %v10960_v53  ;;  %v10963_v56 = vpack.c.bf16 %v5589_v57, %v5589_v57  ;;  %v12749_v1 = vld [vmem:[%s15550_s5 + $0x180] sm:$0xff]  }
 0x407   : > { %8624 = vmatprep.mubr.bf16.mxu1 %v12664_v42  ;;  %v10962_v47 = vpack.c.bf16 %v5588_v4, %v5588_v4  ;;  %v5590_v20 = vld [vmem:[#allocation2 + $0x1e9] sm:$0xff]  ;;  %5747 = vst [vmem:[#allocation3 + $0x3d4] sm:$0xf] %v10961_v60  ;;  %5366 = vst [vmem:[#allocation3 + $0x438] sm:$0xf] %v10900_v52  ;;  %v6137_v55 = vld [vmem:[#allocation2 + $0x31] sm:$0xff] }
 0x408   : > { %v5782_v49 = vld [vmem:[#allocation2 + $0x207] sm:$0xff]  ;;  %5940 = vst [vmem:[#allocation3 + $0x3fc] sm:$0xf] %v10900_v52  ;;  %v10964_v9 = vpack.c.bf16 %v5590_v20, %v5590_v20  ;;  %v5783_v37 = vld [vmem:[#allocation2 + $0x20f] sm:$0xff]  ;;  %v12662_v46 = vld [vmem:[#allocation3 + $0x1b8] ss:$36 sps:$4 sm:$0xff]   ;;  %v11031_v33 = vpack.c.bf16 %v6137_v55, %v6137_v55 }
 0x409   : > { %v10996_v10 = vpack.c.bf16 %v5782_v49, %v5782_v49  ;;  %v5944_v50 = vld [vmem:[#allocation2 + $0x28] sm:$0xff]  ;;  %v5945_v41 = vld [vmem:[#allocation2 + $0x30] sm:$0xff]  ;;  %5367 = vst [vmem:[#allocation3 + $0x45c] sm:$0xf] %v10901_v23  ;;  %5558 = vst [vmem:[#allocation3 + $0x43c] sm:$0xf] %v10932_v43  ;;  %v10997_v15 = vpack.c.bf16 %v5783_v37, %v5783_v37 }
 0x40a   : > { %v12667_v25 = vld [vmem:[#allocation3 + $0x244] ss:$36 sps:$4 sm:$0xff]   ;;  %5748 = vst [vmem:[#allocation3 + $0x3f8] sm:$0xf] %v10962_v47  ;;  %5941 = vst [vmem:[#allocation3 + $0x420] sm:$0xf] %v10901_v23  ;;  %v10998_v36 = vpack.c.bf16 %v5944_v50, %v5944_v50  ;;  %v10999_v12 = vpack.c.bf16 %v5945_v41, %v5945_v41 }
 0x40b   : > { %v6136_v58 = vld [vmem:[#allocation2 + $0x29] sm:$0xff]  ;;  %v12736_v48 = vld [vmem:[%s15550_s5 + $0x198] sm:$0xff]   ;;  %5749 = vst [vmem:[#allocation3 + $0x41c] sm:$0xf] %v10963_v56  ;;  %5750 = vst [vmem:[#allocation3 + $0x440] sm:$0xf] %v10964_v9 }
 0x40c   : > { %v12670_v5 = vld [vmem:[#allocation3 + $0x204] ss:$36 sps:$4 sm:$0xff]   ;;  %5942 = vst [vmem:[#allocation3 + $0x444] sm:$0xf] %v10996_v10  ;;  %v11030_v40 = vpack.c.bf16 %v6136_v58, %v6136_v58  ;;  %v12737_v16 = vld [vmem:[%s15550_s5 + $0x1d0] sm:$0xff]   ;;  %v14699_v45 = vld [vmem:[%s15550_s5 + $0x238] sm:$0xff]   ;;  %11999 = vmatpush3.bf16.msra.mxu1 %v12736_v48  ;;  %8472 = vmatmul.mubr.bf16.gmra.mxu0 %v12659_v61 }
 0x40d   : > { %5943 = vst [vmem:[#allocation3 + $0x468] sm:$0xf] %v10997_v15  ;;  %6104 = vst [vmem:[#allocation3 + $0x10] sm:$0xf] %v10998_v36  ;;  %v12738_v21 = vld [vmem:[%s15550_s5 + $0x190] sm:$0xff]   ;;  %v5946_v24 = vld [vmem:[#allocation2 + $0x48] sm:$0xff]  ;;  %12000 = vmatprep.subr.bf16.mxu1 %v12737_v16  ;;  %8479 = vmatprep.mubr.bf16.mxu0 %v12667_v25 }
 0x40e   : > { %6105 = vst [vmem:[#allocation3 + $0x34] sm:$0xf] %v10999_v12  ;;  %v5947_v54 = vld [vmem:[#allocation2 + $0x50] sm:$0xff]  ;;  %6296 = vst [vmem:[#allocation3 + $0x14] sm:$0xf] %v11030_v40  ;;  %v12740_v38 = vld [vmem:[%s15550_s5 + $0x1c8] sm:$0xff]   ;;  %v11000_v6 = vpack.c.bf16 %v5946_v24, %v5946_v24  ;;  %8625 = vmatmul.mubr.bf16.gmra.mxu1 %v12662_v46  ;;  %12222 = vmatprep.subr.bf16.mxu0 %v14699_v45 }
 0x40f   : > { %6297 = vst [vmem:[#allocation3 + $0x38] sm:$0xf] %v11031_v33  ;;  %v11001_v63 = vpack.c.bf16 %v5947_v54, %v5947_v54  ;;  %v6138_v28 = vld [vmem:[#allocation2 + $0x49] sm:$0xff]  ;;  %v6139_v19 = vld [vmem:[#allocation2 + $0x51] sm:$0xff]  ;;  %8632 = vmatprep.mubr.bf16.mxu1 %v12670_v5  ;;  %v12665_v35 = vld [vmem:[#allocation3 + $0x240] ss:$36 sps:$4 sm:$0xff]   ;;  %v11670_v9 = vpop.f32.mrf.mxu0 }
 0x410   : > { %v11032_v3 = vpack.c.bf16 %v6138_v28, %v6138_v28  ;;  %v11033_v26 = vpack.c.bf16 %v6139_v19, %v6139_v19  ;;  %v6328_v27 = vld [vmem:[#allocation2 + $0x47] sm:$0xff]  ;;  %v6329_v59 = vld [vmem:[#allocation2 + $0x4f] sm:$0xff]  ;;  %6106 = vst [vmem:[#allocation3 + $0x58] sm:$0xf] %v11000_v6  ;;  %6680 = vst [vmem:[#allocation3 + $0x1c] sm:$0xf] %v11000_v6  ;;  %12001 = vmatpush3.bf16.msra.mxu1 %v12738_v21 }
 0x411   : > { %6107 = vst [vmem:[#allocation3 + $0x7c] sm:$0xf] %v11001_v63  ;;  %v11062_v7 = vpack.c.bf16 %v6328_v27, %v6328_v27  ;;  %v11063_v22 = vpack.c.bf16 %v6329_v59, %v6329_v59  ;;  %6681 = vst [vmem:[#allocation3 + $0x40] sm:$0xf] %v11001_v63  ;;  %v12744_v62 = vld [vmem:[%s15550_s5 + $0x188] sm:$0xff]   ;;  %12002 = vmatprep.subr.bf16.mxu1 %v12740_v38  ;;  %v5949_v34 = vld [vmem:[#allocation2 + $0x70] sm:$0xff]  ;;  %v11671_v5 = vpop.f32.mrf.mxu0 }
 0x412   : > { %6298 = vst [vmem:[#allocation3 + $0x5c] sm:$0xf] %v11032_v3  ;;  %6299 = vst [vmem:[#allocation3 + $0x80] sm:$0xf] %v11033_v26  ;;  %v12668_v29 = vld [vmem:[#allocation3 + $0x200] ss:$36 sps:$4 sm:$0xff]   ;;  %v11003_v44 = vpack.c.bf16 %v5949_v34, %v5949_v34  ;;  %v14717_v54 = vadd.f32 %v11671_v5, %v11670_v9 }
 0x413   : > { %6488 = vst [vmem:[#allocation3 + $0x18] sm:$0xf] %v11062_v7  ;;  %6489 = vst [vmem:[#allocation3 + $0x3c] sm:$0xf] %v11063_v22  ;;  %v12677_v30 = vld [vmem:[#allocation3 + $0x28c] ss:$36 sps:$4 sm:$0xff]  }
 0x414   : > { %12003 = vmatpush3.bf16.msra.mxu1 %v12744_v62  ;;  %8480 = vmatmul.mubr.bf16.gmra.mxu0 %v12665_v35  ;;  %v12680_v14 = vld [vmem:[#allocation3 + $0x24c] ss:$36 sps:$4 sm:$0xff]   ;;  %v12683_v8 = vld [vmem:[#allocation3 + $0x2d4] ss:$36 sps:$4 sm:$0xff]   ;;  %6109 = vst [vmem:[#allocation3 + $0xc4] sm:$0xf] %v11003_v44 }
 0x415   : > { %12004 = vmatprep.subr.bf16.mxu1 %v12748_v51  ;;  %8487 = vmatprep.mubr.bf16.mxu0 %v12677_v30  ;;  %v12675_v17 = vld [vmem:[#allocation3 + $0x288] ss:$36 sps:$4 sm:$0xff]   ;;  %v6141_v18 = vld [vmem:[#allocation2 + $0x71] sm:$0xff]  ;;  %6683 = vst [vmem:[#allocation3 + $0x88] sm:$0xf] %v11003_v44 }
 0x416   : > { %8633 = vmatmul.mubr.bf16.gmra.mxu1 %v12668_v29  ;;  %v5948_v32 = vld [vmem:[#allocation2 + $0x68] sm:$0xff]  ;;  %v12686_v13 = vld [vmem:[#allocation3 + $0x294] ss:$36 sps:$4 sm:$0xff]   ;;  %v11035_v53 = vpack.c.bf16 %v6141_v18, %v6141_v18 }
 0x417   : > { %8640 = vmatprep.mubr.bf16.mxu1 %v12680_v14  ;;  %v12678_v31 = vld [vmem:[#allocation3 + $0x248] ss:$36 sps:$4 sm:$0xff]   ;;  %v11002_v42 = vpack.c.bf16 %v5948_v32, %v5948_v32  ;;  %v5951_v23 = vld [vmem:[#allocation2 + $0x90] sm:$0xff]  ;;  %v12693_v32 = vld [vmem:[#allocation3 + $0x31c] ss:$36 sps:$4 sm:$0xff]  }
 0x418   : > { %12005 = vmatpush3.bf16.msra.mxu1 %v12749_v1  ;;  %v6140_v0 = vld [vmem:[#allocation2 + $0x69] sm:$0xff]  ;;  %6301 = vst [vmem:[#allocation3 + $0xc8] sm:$0xf] %v11035_v53  ;;  %v11005_v47 = vpack.c.bf16 %v5951_v23, %v5951_v23  ;;  %v6143_v20 = vld [vmem:[#allocation2 + $0x91] sm:$0xff]  ;;  %v12697_v53 = vld [vmem:[#allocation3 + $0x360] ss:$36 sps:$4 sm:$0xff]  }
 0x419   : > { %v11034_v39 = vpack.c.bf16 %v6140_v0, %v6140_v0  ;;  %v6330_v60 = vld [vmem:[#allocation2 + $0x67] sm:$0xff]  ;;  %v6331_v2 = vld [vmem:[#allocation2 + $0x6f] sm:$0xff]  ;;  %6108 = vst [vmem:[#allocation3 + $0xa0] sm:$0xf] %v11002_v42  ;;  %6682 = vst [vmem:[#allocation3 + $0x64] sm:$0xf] %v11002_v42  ;;  %v11037_v37 = vpack.c.bf16 %v6143_v20, %v6143_v20 }
 0x41a   : > { %v11064_v52 = vpack.c.bf16 %v6330_v60, %v6330_v60  ;;  %v11065_v11 = vpack.c.bf16 %v6331_v2, %v6331_v2  ;;  %v5950_v4 = vld [vmem:[#allocation2 + $0x88] sm:$0xff]  ;;  %v5953_v46 = vld [vmem:[#allocation2 + $0xb0] sm:$0xff]  ;;  %6111 = vst [vmem:[#allocation3 + $0x10c] sm:$0xf] %v11005_v47  ;;  %6685 = vst [vmem:[#allocation3 + $0xd0] sm:$0xf] %v11005_v47 }
 0x41b   : > { %v6142_v43 = vld [vmem:[#allocation2 + $0x89] sm:$0xff]  ;;  %6300 = vst [vmem:[#allocation3 + $0xa4] sm:$0xf] %v11034_v39  ;;  %v11004_v57 = vpack.c.bf16 %v5950_v4, %v5950_v4  ;;  %v11007_v36 = vpack.c.bf16 %v5953_v46, %v5953_v46  ;;  %v6145_v12 = vld [vmem:[#allocation2 + $0xb1] sm:$0xff]  ;;  %6303 = vst [vmem:[#allocation3 + $0x110] sm:$0xf] %v11037_v37 }
 0x41c   : > { %8488 = vmatmul.mubr.bf16.gmra.mxu0 %v12675_v17  ;;  %v11036_v49 = vpack.c.bf16 %v6142_v43, %v6142_v43  ;;  %v6332_v61 = vld [vmem:[#allocation2 + $0x87] sm:$0xff]  ;;  %v6333_v56 = vld [vmem:[#allocation2 + $0x8f] sm:$0xff]  ;;  %6490 = vst [vmem:[#allocation3 + $0x60] sm:$0xf] %v11064_v52  ;;  %6491 = vst [vmem:[#allocation3 + $0x84] sm:$0xf] %v11065_v11  ;;  %v11039_v40 = vpack.c.bf16 %v6145_v12, %v6145_v12 }
 0x41d   : > { %8495 = vmatprep.mubr.bf16.mxu0 %v12683_v8  ;;  %v11066_v10 = vpack.c.bf16 %v6332_v61, %v6332_v61  ;;  %v11067_v50 = vpack.c.bf16 %v6333_v56, %v6333_v56  ;;  %v5952_v41 = vld [vmem:[#allocation2 + $0xa8] sm:$0xff]  ;;  %6110 = vst [vmem:[#allocation3 + $0xe8] sm:$0xf] %v11004_v57  ;;  %6684 = vst [vmem:[#allocation3 + $0xac] sm:$0xf] %v11004_v57  ;;  %v5955_v24 = vld [vmem:[#allocation2 + $0xd0] sm:$0xff] }
 0x41e   : > { %8641 = vmatmul.mubr.bf16.gmra.mxu1 %v12678_v31  ;;  %v6144_v25 = vld [vmem:[#allocation2 + $0xa9] sm:$0xff]  ;;  %6302 = vst [vmem:[#allocation3 + $0xec] sm:$0xf] %v11036_v49  ;;  %v11006_v15 = vpack.c.bf16 %v5952_v41, %v5952_v41  ;;  %6113 = vst [vmem:[#allocation3 + $0x154] sm:$0xf] %v11007_v36  ;;  %v11009_v63 = vpack.c.bf16 %v5955_v24, %v5955_v24  ;;  %v6147_v19 = vld [vmem:[#allocation2 + $0xd1] sm:$0xff] }
 0x41f   : > { %8648 = vmatprep.mubr.bf16.mxu1 %v12686_v13  ;;  %v11038_v58 = vpack.c.bf16 %v6144_v25, %v6144_v25  ;;  %v6334_v55 = vld [vmem:[#allocation2 + $0xa7] sm:$0xff]  ;;  %v6335_v48 = vld [vmem:[#allocation2 + $0xaf] sm:$0xff]  ;;  %6492 = vst [vmem:[#allocation3 + $0xa8] sm:$0xf] %v11066_v10  ;;  %6493 = vst [vmem:[#allocation3 + $0xcc] sm:$0xf] %v11067_v50  ;;  %v11041_v59 = vpack.c.bf16 %v6147_v19, %v6147_v19 }
 0x420   : > { %v11068_v33 = vpack.c.bf16 %v6334_v55, %v6334_v55  ;;  %v11069_v16 = vpack.c.bf16 %v6335_v48, %v6335_v48  ;;  %v5954_v21 = vld [vmem:[#allocation2 + $0xc8] sm:$0xff]  ;;  %v12681_v38 = vld [vmem:[#allocation3 + $0x2d0] ss:$36 sps:$4 sm:$0xff]   ;;  %6112 = vst [vmem:[#allocation3 + $0x130] sm:$0xf] %v11006_v15 }
 0x421   : > { %6304 = vst [vmem:[#allocation3 + $0x134] sm:$0xf] %v11038_v58  ;;  %6686 = vst [vmem:[#allocation3 + $0xf4] sm:$0xf] %v11006_v15  ;;  %v11008_v6 = vpack.c.bf16 %v5954_v21, %v5954_v21  ;;  %v6146_v28 = vld [vmem:[#allocation2 + $0xc9] sm:$0xff]  ;;  %v6149_v1 = vld [vmem:[#allocation2 + $0xf1] sm:$0xff] }
 0x422   : > { %6687 = vst [vmem:[#allocation3 + $0x118] sm:$0xf] %v11007_v36  ;;  %v6336_v3 = vld [vmem:[#allocation2 + $0xc7] sm:$0xff]  ;;  %v12684_v26 = vld [vmem:[#allocation3 + $0x290] ss:$36 sps:$4 sm:$0xff]   ;;  %v11040_v27 = vpack.c.bf16 %v6146_v28, %v6146_v28  ;;  %v11043_v8 = vpack.c.bf16 %v6149_v1, %v6149_v1 }
 0x423   : > { %6305 = vst [vmem:[#allocation3 + $0x158] sm:$0xf] %v11039_v40  ;;  %6494 = vst [vmem:[#allocation3 + $0xf0] sm:$0xf] %v11068_v33  ;;  %v6337_v7 = vld [vmem:[#allocation2 + $0xcf] sm:$0xff]  ;;  %v11070_v22 = vpack.c.bf16 %v6336_v3, %v6336_v3  ;;  %v6338_v17 = vld [vmem:[#allocation2 + $0xe7] sm:$0xff] }
 0x424   : > { %6495 = vst [vmem:[#allocation3 + $0x114] sm:$0xf] %v11069_v16  ;;  %v5956_v62 = vld [vmem:[#allocation2 + $0xe8] sm:$0xff]  ;;  %v5957_v51 = vld [vmem:[#allocation2 + $0xf0] sm:$0xff]  ;;  %6114 = vst [vmem:[#allocation3 + $0x178] sm:$0xf] %v11008_v6  ;;  %v11071_v35 = vpack.c.bf16 %v6337_v7, %v6337_v7  ;;  %v11072_v34 = vpack.c.bf16 %v6338_v17, %v6338_v17  ;;  %8496 = vmatmul.mubr.bf16.gmra.mxu0 %v12681_v38 }
 0x425   : > { %6115 = vst [vmem:[#allocation3 + $0x19c] sm:$0xf] %v11009_v63  ;;  %6688 = vst [vmem:[#allocation3 + $0x13c] sm:$0xf] %v11008_v6  ;;  %v11010_v29 = vpack.c.bf16 %v5956_v62, %v5956_v62  ;;  %v11011_v30 = vpack.c.bf16 %v5957_v51, %v5957_v51  ;;  %v6148_v14 = vld [vmem:[#allocation2 + $0xe9] sm:$0xff]  ;;  %8503 = vmatprep.mubr.bf16.mxu0 %v12693_v32  ;;  %v6151_v47 = vld [vmem:[#allocation2 + $0x111] sm:$0xff] }
 0x426   : > { %6689 = vst [vmem:[#allocation3 + $0x160] sm:$0xf] %v11009_v63  ;;  %6306 = vst [vmem:[#allocation3 + $0x17c] sm:$0xf] %v11040_v27  ;;  %v11042_v31 = vpack.c.bf16 %v6148_v14, %v6148_v14  ;;  %v12696_v42 = vld [vmem:[#allocation3 + $0x2dc] ss:$36 sps:$4 sm:$0xff]   ;;  %8649 = vmatmul.mubr.bf16.gmra.mxu1 %v12684_v26  ;;  %v11045_v56 = vpack.c.bf16 %v6151_v47, %v6151_v47 }
 0x427   : > { %6307 = vst [vmem:[#allocation3 + $0x1a0] sm:$0xf] %v11041_v59  ;;  %6496 = vst [vmem:[#allocation3 + $0x138] sm:$0xf] %v11070_v22  ;;  %8656 = vmatprep.mubr.bf16.mxu1 %v12696_v42  ;;  %v12691_v0 = vld [vmem:[#allocation3 + $0x318] ss:$36 sps:$4 sm:$0xff]  }
 0x428   : > { %6497 = vst [vmem:[#allocation3 + $0x15c] sm:$0xf] %v11071_v35  ;;  %6116 = vst [vmem:[#allocation3 + $0x1c0] sm:$0xf] %v11010_v29  ;;  %v12694_v18 = vld [vmem:[#allocation3 + $0x2d8] ss:$36 sps:$4 sm:$0xff]  }
 0x429   : > { %6117 = vst [vmem:[#allocation3 + $0x1e4] sm:$0xf] %v11011_v30  ;;  %6690 = vst [vmem:[#allocation3 + $0x184] sm:$0xf] %v11010_v29  ;;  %v12699_v13 = vld [vmem:[#allocation3 + $0x364] ss:$36 sps:$4 sm:$0xff]  }
 0x42a   : > { %6691 = vst [vmem:[#allocation3 + $0x1a8] sm:$0xf] %v11011_v30  ;;  %6308 = vst [vmem:[#allocation3 + $0x1c4] sm:$0xf] %v11042_v31  ;;  %v12702_v44 = vld [vmem:[#allocation3 + $0x324] ss:$36 sps:$4 sm:$0xff]  }
 0x42b   : > { %6309 = vst [vmem:[#allocation3 + $0x1e8] sm:$0xf] %v11043_v8  ;;  %6498 = vst [vmem:[#allocation3 + $0x180] sm:$0xf] %v11072_v34  ;;  %v6339_v39 = vld [vmem:[#allocation2 + $0xef] sm:$0xff]  ;;  %v6340_v49 = vld [vmem:[#allocation2 + $0x107] sm:$0xff] }
 0x42c   : > { %8504 = vmatmul.mubr.bf16.gmra.mxu0 %v12691_v0  ;;  %v11073_v60 = vpack.c.bf16 %v6339_v39, %v6339_v39  ;;  %v5958_v2 = vld [vmem:[#allocation2 + $0x108] sm:$0xff]  ;;  %v5959_v52 = vld [vmem:[#allocation2 + $0x110] sm:$0xff]  ;;  %v12700_v4 = vld [vmem:[#allocation3 + $0x320] ss:$36 sps:$4 sm:$0xff]   ;;  %v11074_v9 = vpack.c.bf16 %v6340_v49, %v6340_v49  ;;  %6311 = vst [vmem:[#allocation3 + $0x230] sm:$0xf] %v11045_v56 }
 0x42d   : > { %8511 = vmatprep.mubr.bf16.mxu0 %v12699_v13  ;;  %v6150_v11 = vld [vmem:[#allocation2 + $0x109] sm:$0xff]  ;;  %v11012_v43 = vpack.c.bf16 %v5958_v2, %v5958_v2  ;;  %v11013_v57 = vpack.c.bf16 %v5959_v52, %v5959_v52  ;;  %v6153_v15 = vld [vmem:[#allocation2 + $0x131] sm:$0xff]  ;;  %v12728_v2 = vld [vmem:[#allocation3 + $0x3fc] ss:$36 sps:$4 sm:$0xff]  }
 0x42e   : > { %8657 = vmatmul.mubr.bf16.gmra.mxu1 %v12694_v18  ;;  %v12709_v23 = vld [vmem:[#allocation3 + $0x3ac] ss:$36 sps:$4 sm:$0xff]   ;;  %v11044_v20 = vpack.c.bf16 %v6150_v11, %v6150_v11  ;;  %6499 = vst [vmem:[#allocation3 + $0x1a4] sm:$0xf] %v11073_v60  ;;  %6500 = vst [vmem:[#allocation3 + $0x1c8] sm:$0xf] %v11074_v9  ;;  %v11047_v48 = vpack.c.bf16 %v6153_v15, %v6153_v15 }
 0x42f   : > { %8664 = vmatprep.mubr.bf16.mxu1 %v12702_v44  ;;  %v6341_v61 = vld [vmem:[#allocation2 + $0x10f] sm:$0xff]  ;;  %6118 = vst [vmem:[#allocation3 + $0x208] sm:$0xf] %v11012_v43  ;;  %6119 = vst [vmem:[#allocation3 + $0x22c] sm:$0xf] %v11013_v57  ;;  %v6342_v12 = vld [vmem:[#allocation2 + $0x127] sm:$0xff] }
 0x430   : > { %v11075_v37 = vpack.c.bf16 %v6341_v61, %v6341_v61  ;;  %v5960_v10 = vld [vmem:[#allocation2 + $0x128] sm:$0xff]  ;;  %v5961_v50 = vld [vmem:[#allocation2 + $0x130] sm:$0xff]  ;;  %6310 = vst [vmem:[#allocation3 + $0x20c] sm:$0xf] %v11044_v20  ;;  %6692 = vst [vmem:[#allocation3 + $0x1cc] sm:$0xf] %v11012_v43  ;;  %v11076_v5 = vpack.c.bf16 %v6342_v12, %v6342_v12 }
 0x431   : > { %v6152_v41 = vld [vmem:[#allocation2 + $0x129] sm:$0xff]  ;;  %6693 = vst [vmem:[#allocation3 + $0x1f0] sm:$0xf] %v11013_v57  ;;  %v11014_v46 = vpack.c.bf16 %v5960_v10, %v5960_v10  ;;  %v11015_v25 = vpack.c.bf16 %v5961_v50, %v5961_v50  ;;  %v6155_v38 = vld [vmem:[#allocation2 + $0x151] sm:$0xff]  ;;  %6313 = vst [vmem:[#allocation3 + $0x278] sm:$0xf] %v11047_v48 }
 0x432   : > { %v11046_v36 = vpack.c.bf16 %v6152_v41, %v6152_v41  ;;  %v6343_v58 = vld [vmem:[#allocation2 + $0x12f] sm:$0xff]  ;;  %6501 = vst [vmem:[#allocation3 + $0x1ec] sm:$0xf] %v11075_v37  ;;  %6502 = vst [vmem:[#allocation3 + $0x210] sm:$0xf] %v11076_v5  ;;  %v11049_v28 = vpack.c.bf16 %v6155_v38, %v6155_v38  ;;  %v6344_v19 = vld [vmem:[#allocation2 + $0x147] sm:$0xff] }
 0x433   : > { %v12712_v55 = vld [vmem:[#allocation3 + $0x36c] ss:$36 sps:$4 sm:$0xff]   ;;  %v11077_v40 = vpack.c.bf16 %v6343_v58, %v6343_v58  ;;  %6120 = vst [vmem:[#allocation3 + $0x250] sm:$0xf] %v11014_v46  ;;  %6121 = vst [vmem:[#allocation3 + $0x274] sm:$0xf] %v11015_v25  ;;  %v11078_v27 = vpack.c.bf16 %v6344_v19, %v6344_v19 }
 0x434   : > { %8512 = vmatmul.mubr.bf16.gmra.mxu0 %v12697_v53  ;;  %v5962_v33 = vld [vmem:[#allocation2 + $0x148] sm:$0xff]  ;;  %6312 = vst [vmem:[#allocation3 + $0x254] sm:$0xf] %v11046_v36  ;;  %6694 = vst [vmem:[#allocation3 + $0x214] sm:$0xf] %v11014_v46  ;;  %v5963_v16 = vld [vmem:[#allocation2 + $0x150] sm:$0xff] }
 0x435   : > { %8519 = vmatprep.mubr.bf16.mxu0 %v12709_v23  ;;  %6695 = vst [vmem:[#allocation3 + $0x238] sm:$0xf] %v11015_v25  ;;  %v11016_v21 = vpack.c.bf16 %v5962_v33, %v5962_v33  ;;  %v6154_v24 = vld [vmem:[#allocation2 + $0x149] sm:$0xff]  ;;  %6503 = vst [vmem:[#allocation3 + $0x234] sm:$0xf] %v11077_v40  ;;  %v11017_v6 = vpack.c.bf16 %v5963_v16, %v5963_v16  ;;  %v6157_v51 = vld [vmem:[#allocation2 + $0x171] sm:$0xff] }
 0x436   : > { %8665 = vmatmul.mubr.bf16.gmra.mxu1 %v12700_v4  ;;  %v11048_v63 = vpack.c.bf16 %v6154_v24, %v6154_v24  ;;  %v6345_v3 = vld [vmem:[#allocation2 + $0x14f] sm:$0xff]  ;;  %6315 = vst [vmem:[#allocation3 + $0x2c0] sm:$0xf] %v11049_v28  ;;  %v11051_v30 = vpack.c.bf16 %v6157_v51, %v6157_v51  ;;  %v6346_v14 = vld [vmem:[#allocation2 + $0x167] sm:$0xff]  ;;  %6889 = vst [vmem:[#allocation3 + $0x284] sm:$0xf] %v11049_v28 }
 0x437   : > { %8672 = vmatprep.mubr.bf16.mxu1 %v12712_v55  ;;  %v5964_v26 = vld [vmem:[#allocation2 + $0x168] sm:$0xff]  ;;  %6122 = vst [vmem:[#allocation3 + $0x298] sm:$0xf] %v11016_v21  ;;  %v11079_v59 = vpack.c.bf16 %v6345_v3, %v6345_v3  ;;  %6696 = vst [vmem:[#allocation3 + $0x25c] sm:$0xf] %v11016_v21  ;;  %v5965_v7 = vld [vmem:[#allocation2 + $0x170] sm:$0xff]  ;;  %v11080_v32 = vpack.c.bf16 %v6346_v14, %v6346_v14 }
 0x438   : > { %v11018_v22 = vpack.c.bf16 %v5964_v26, %v5964_v26  ;;  %v6156_v62 = vld [vmem:[#allocation2 + $0x169] sm:$0xff]  ;;  %6123 = vst [vmem:[#allocation3 + $0x2bc] sm:$0xf] %v11017_v6  ;;  %6314 = vst [vmem:[#allocation3 + $0x29c] sm:$0xf] %v11048_v63  ;;  %v11019_v35 = vpack.c.bf16 %v5965_v7, %v5965_v7  ;;  %v6159_v11 = vld [vmem:[#allocation2 + $0x191] sm:$0xff] }
 0x439   : > { %6697 = vst [vmem:[#allocation3 + $0x280] sm:$0xf] %v11017_v6  ;;  %v11050_v29 = vpack.c.bf16 %v6156_v62, %v6156_v62  ;;  %v6347_v1 = vld [vmem:[#allocation2 + $0x16f] sm:$0xff]  ;;  %6888 = vst [vmem:[#allocation3 + $0x260] sm:$0xf] %v11048_v63  ;;  %v11053_v23 = vpack.c.bf16 %v6159_v11, %v6159_v11  ;;  %v6348_v43 = vld [vmem:[#allocation2 + $0x187] sm:$0xff] }
 0x43a   : > { %v12707_v17 = vld [vmem:[#allocation3 + $0x3a8] ss:$36 sps:$4 sm:$0xff]   ;;  %6504 = vst [vmem:[#allocation3 + $0x258] sm:$0xf] %v11078_v27  ;;  %6505 = vst [vmem:[#allocation3 + $0x27c] sm:$0xf] %v11079_v59  ;;  %v11081_v31 = vpack.c.bf16 %v6347_v1, %v6347_v1  ;;  %v11082_v20 = vpack.c.bf16 %v6348_v43, %v6348_v43 }
 0x43b   : > { %6124 = vst [vmem:[#allocation3 + $0x2e0] sm:$0xf] %v11018_v22  ;;  %6698 = vst [vmem:[#allocation3 + $0x2a4] sm:$0xf] %v11018_v22  ;;  %v5966_v8 = vld [vmem:[#allocation2 + $0x188] sm:$0xff]  ;;  %v5967_v34 = vld [vmem:[#allocation2 + $0x190] sm:$0xff] }
 0x43c   : > { %6125 = vst [vmem:[#allocation3 + $0x304] sm:$0xf] %v11019_v35  ;;  %6316 = vst [vmem:[#allocation3 + $0x2e4] sm:$0xf] %v11050_v29  ;;  %v12710_v42 = vld [vmem:[#allocation3 + $0x368] ss:$36 sps:$4 sm:$0xff]   ;;  %v11020_v18 = vpack.c.bf16 %v5966_v8, %v5966_v8  ;;  %v11021_v13 = vpack.c.bf16 %v5967_v34, %v5967_v34  ;;  %8520 = vmatmul.mubr.bf16.gmra.mxu0 %v12707_v17 }
 0x43d   : > { %6317 = vst [vmem:[#allocation3 + $0x308] sm:$0xf] %v11051_v30  ;;  %6699 = vst [vmem:[#allocation3 + $0x2c8] sm:$0xf] %v11019_v35  ;;  %v12715_v0 = vld [vmem:[#allocation3 + $0x3f4] ss:$36 sps:$4 sm:$0xff]  }
 0x43e   : > { %6890 = vst [vmem:[#allocation3 + $0x2a8] sm:$0xf] %v11050_v29  ;;  %6891 = vst [vmem:[#allocation3 + $0x2cc] sm:$0xf] %v11051_v30  ;;  %v12718_v44 = vld [vmem:[#allocation3 + $0x3b4] ss:$36 sps:$4 sm:$0xff]   ;;  %8673 = vmatmul.mubr.bf16.gmra.mxu1 %v12710_v42  ;;  %8527 = vmatprep.mubr.bf16.mxu0 %v12715_v0 }
 0x43f   : > { %6506 = vst [vmem:[#allocation3 + $0x2a0] sm:$0xf] %v11080_v32  ;;  %6507 = vst [vmem:[#allocation3 + $0x2c4] sm:$0xf] %v11081_v31  ;;  %8680 = vmatprep.mubr.bf16.mxu1 %v12718_v44  ;;  %v12713_v39 = vld [vmem:[#allocation3 + $0x3f0] ss:$36 sps:$4 sm:$0xff]  }
 0x440   : > { %6126 = vst [vmem:[#allocation3 + $0x328] sm:$0xf] %v11020_v18  ;;  %6127 = vst [vmem:[#allocation3 + $0x34c] sm:$0xf] %v11021_v13  ;;  %v12716_v53 = vld [vmem:[#allocation3 + $0x3b0] ss:$36 sps:$4 sm:$0xff]  }
 0x441   : > { %6700 = vst [vmem:[#allocation3 + $0x2ec] sm:$0xf] %v11020_v18  ;;  %6701 = vst [vmem:[#allocation3 + $0x310] sm:$0xf] %v11021_v13  ;;  %v12725_v60 = vld [vmem:[#allocation3 + $0x43c] ss:$36 sps:$4 sm:$0xff]  }
 0x442   : > { %v6158_v52 = vld [vmem:[#allocation2 + $0x189] sm:$0xff]  ;;  %v6161_v37 = vld [vmem:[#allocation2 + $0x1b1] sm:$0xff]  ;;  %6319 = vst [vmem:[#allocation3 + $0x350] sm:$0xf] %v11053_v23  ;;  %6893 = vst [vmem:[#allocation3 + $0x314] sm:$0xf] %v11053_v23 }
 0x443   : > { %v11052_v4 = vpack.c.bf16 %v6158_v52, %v6158_v52  ;;  %v6349_v57 = vld [vmem:[#allocation2 + $0x18f] sm:$0xff]  ;;  %v12723_v10 = vld [vmem:[#allocation3 + $0x438] ss:$36 sps:$4 sm:$0xff]   ;;  %v11055_v46 = vpack.c.bf16 %v6161_v37, %v6161_v37  ;;  %v6350_v25 = vld [vmem:[#allocation2 + $0x1a7] sm:$0xff]  ;;  %6508 = vst [vmem:[#allocation3 + $0x2e8] sm:$0xf] %v11082_v20 }
 0x444   : > { %8528 = vmatmul.mubr.bf16.gmra.mxu0 %v12713_v39  ;;  %v5968_v47 = vld [vmem:[#allocation2 + $0x1a8] sm:$0xff]  ;;  %v11083_v49 = vpack.c.bf16 %v6349_v57, %v6349_v57  ;;  %v5969_v61 = vld [vmem:[#allocation2 + $0x1b0] sm:$0xff]  ;;  %v12726_v36 = vld [vmem:[#allocation3 + $0x3f8] ss:$36 sps:$4 sm:$0xff]   ;;  %v11084_v58 = vpack.c.bf16 %v6350_v25, %v6350_v25 }
 0x445   : > { %8535 = vmatprep.mubr.bf16.mxu0 %v12725_v60  ;;  %v11022_v56 = vpack.c.bf16 %v5968_v47, %v5968_v47  ;;  %v6160_v9 = vld [vmem:[#allocation2 + $0x1a9] sm:$0xff]  ;;  %6318 = vst [vmem:[#allocation3 + $0x32c] sm:$0xf] %v11052_v4  ;;  %v11023_v50 = vpack.c.bf16 %v5969_v61, %v5969_v61  ;;  %6892 = vst [vmem:[#allocation3 + $0x2f0] sm:$0xf] %v11052_v4  ;;  %v6163_v24 = vld [vmem:[#allocation2 + $0x1d1] sm:$0xff] }
 0x446   : > { %8681 = vmatmul.mubr.bf16.gmra.mxu1 %v12716_v53  ;;  %v11054_v41 = vpack.c.bf16 %v6160_v9, %v6160_v9  ;;  %v6351_v15 = vld [vmem:[#allocation2 + $0x1af] sm:$0xff]  ;;  %6509 = vst [vmem:[#allocation3 + $0x30c] sm:$0xf] %v11083_v49  ;;  %v12732_v33 = vld [vmem:[#allocation3 + $0x444] ss:$36 sps:$4 sm:$0xff]   ;;  %v11057_v28 = vpack.c.bf16 %v6163_v24, %v6163_v24  ;;  %v12795_v9 = vld [vmem:[%s15550_s5 + $0x218] sm:$0xff]  }
 0x447   : > { %8688 = vmatprep.mubr.bf16.mxu1 %v12728_v2  ;;  %v12735_v12 = vld [vmem:[#allocation3 + $0x14] ss:$36 sps:$4 sm:$0xff]   ;;  %6128 = vst [vmem:[#allocation3 + $0x370] sm:$0xf] %v11022_v56  ;;  %v11085_v55 = vpack.c.bf16 %v6351_v15, %v6351_v15  ;;  %6702 = vst [vmem:[#allocation3 + $0x334] sm:$0xf] %v11022_v56 }
 0x448   : > { %v5970_v48 = vld [vmem:[#allocation2 + $0x1c8] sm:$0xff]  ;;  %v5971_v5 = vld [vmem:[#allocation2 + $0x1d0] sm:$0xff]  ;;  %6129 = vst [vmem:[#allocation3 + $0x394] sm:$0xf] %v11023_v50  ;;  %6320 = vst [vmem:[#allocation3 + $0x374] sm:$0xf] %v11054_v41 }
 0x449   : > { %v6162_v40 = vld [vmem:[#allocation2 + $0x1c9] sm:$0xff]  ;;  %6321 = vst [vmem:[#allocation3 + $0x398] sm:$0xf] %v11055_v46  ;;  %6703 = vst [vmem:[#allocation3 + $0x358] sm:$0xf] %v11023_v50  ;;  %v11024_v16 = vpack.c.bf16 %v5970_v48, %v5970_v48  ;;  %v11025_v21 = vpack.c.bf16 %v5971_v5, %v5971_v5  ;;  %v6165_v62 = vld [vmem:[#allocation2 + $0x1f1] sm:$0xff] }
 0x44a   : > { %v11056_v38 = vpack.c.bf16 %v6162_v40, %v6162_v40  ;;  %v6352_v6 = vld [vmem:[#allocation2 + $0x1c7] sm:$0xff]  ;;  %v6353_v63 = vld [vmem:[#allocation2 + $0x1cf] sm:$0xff]  ;;  %6894 = vst [vmem:[#allocation3 + $0x338] sm:$0xf] %v11054_v41  ;;  %6895 = vst [vmem:[#allocation3 + $0x35c] sm:$0xf] %v11055_v46  ;;  %v11059_v30 = vpack.c.bf16 %v6165_v62, %v6165_v62 }
 0x44b   : > { %6510 = vst [vmem:[#allocation3 + $0x330] sm:$0xf] %v11084_v58  ;;  %6511 = vst [vmem:[#allocation3 + $0x354] sm:$0xf] %v11085_v55  ;;  %v11086_v19 = vpack.c.bf16 %v6352_v6, %v6352_v6  ;;  %v11087_v3 = vpack.c.bf16 %v6353_v63, %v6353_v63  ;;  %v5972_v26 = vld [vmem:[#allocation2 + $0x1e8] sm:$0xff]  ;;  %v5973_v27 = vld [vmem:[#allocation2 + $0x1f0] sm:$0xff] }
 0x44c   : > { %v6164_v59 = vld [vmem:[#allocation2 + $0x1e9] sm:$0xff]  ;;  %8536 = vmatmul.mubr.bf16.gmra.mxu0 %v12723_v10  ;;  %6130 = vst [vmem:[#allocation3 + $0x3b8] sm:$0xf] %v11024_v16  ;;  %6131 = vst [vmem:[#allocation3 + $0x3dc] sm:$0xf] %v11025_v21  ;;  %v11026_v7 = vpack.c.bf16 %v5972_v26, %v5972_v26  ;;  %v11027_v22 = vpack.c.bf16 %v5973_v27, %v5973_v27  ;;  %v6167_v42 = vld [vmem:[#allocation2 + $0x211] sm:$0xff] }
 0x44d   : > { %6322 = vst [vmem:[#allocation3 + $0x3bc] sm:$0xf] %v11056_v38  ;;  %6704 = vst [vmem:[#allocation3 + $0x37c] sm:$0xf] %v11024_v16  ;;  %v11058_v51 = vpack.c.bf16 %v6164_v59, %v6164_v59  ;;  %v6354_v35 = vld [vmem:[#allocation2 + $0x1e7] sm:$0xff]  ;;  %v6355_v29 = vld [vmem:[#allocation2 + $0x1ef] sm:$0xff]  ;;  %8737 = vmatprep.mubr.bf16.mxu0 %v12735_v12  ;;  %v11061_v13 = vpack.c.bf16 %v6167_v42, %v6167_v42 }
 0x44e   : > { %6705 = vst [vmem:[#allocation3 + $0x3a0] sm:$0xf] %v11025_v21  ;;  %6896 = vst [vmem:[#allocation3 + $0x380] sm:$0xf] %v11056_v38  ;;  %8689 = vmatmul.mubr.bf16.gmra.mxu1 %v12726_v36  ;;  %v11088_v14 = vpack.c.bf16 %v6354_v35, %v6354_v35  ;;  %v11089_v1 = vpack.c.bf16 %v6355_v29, %v6355_v29  ;;  %v5974_v17 = vld [vmem:[#allocation2 + $0x208] sm:$0xff]  ;;  %v5975_v32 = vld [vmem:[#allocation2 + $0x210] sm:$0xff] }
 0x44f   : > { %6323 = vst [vmem:[#allocation3 + $0x3e0] sm:$0xf] %v11057_v28  ;;  %6512 = vst [vmem:[#allocation3 + $0x378] sm:$0xf] %v11086_v19  ;;  %8696 = vmatprep.mubr.bf16.mxu1 %v12732_v33  ;;  %v11028_v31 = vpack.c.bf16 %v5974_v17, %v5974_v17  ;;  %v11029_v8 = vpack.c.bf16 %v5975_v32, %v5975_v32  ;;  %v6166_v34 = vld [vmem:[#allocation2 + $0x209] sm:$0xff]  ;;  %v12782_v57 = vld [vmem:[%s15550_s5 + $0x220] sm:$0xff]  }
 0x450   : > { %6513 = vst [vmem:[#allocation3 + $0x39c] sm:$0xf] %v11087_v3  ;;  %6897 = vst [vmem:[#allocation3 + $0x3a4] sm:$0xf] %v11057_v28  ;;  %v6356_v0 = vld [vmem:[#allocation2 + $0x207] sm:$0xff]  ;;  %v11060_v18 = vpack.c.bf16 %v6166_v34, %v6166_v34  ;;  %v12756_v2 = vld [vmem:[%s15550_s5 + $0x230] sm:$0xff]  }
 0x451   : > { %6132 = vst [vmem:[#allocation3 + $0x400] sm:$0xf] %v11026_v7  ;;  %6133 = vst [vmem:[#allocation3 + $0x424] sm:$0xf] %v11027_v22  ;;  %v11090_v44 = vpack.c.bf16 %v6356_v0, %v6356_v0  ;;  %v12730_v39 = vld [vmem:[#allocation3 + $0x440] ss:$36 sps:$4 sm:$0xff]  }
 0x452   : > { %6324 = vst [vmem:[#allocation3 + $0x404] sm:$0xf] %v11058_v51  ;;  %6706 = vst [vmem:[#allocation3 + $0x3c4] sm:$0xf] %v11026_v7  ;;  %v12733_v53 = vld [vmem:[#allocation3 + $0x10] ss:$36 sps:$4 sm:$0xff]  }
 0x453   : > { %6707 = vst [vmem:[#allocation3 + $0x3e8] sm:$0xf] %v11027_v22  ;;  %6898 = vst [vmem:[#allocation3 + $0x3c8] sm:$0xf] %v11058_v51  ;;  %v12743_v60 = vld [vmem:[#allocation3 + $0x5c] ss:$36 sps:$4 sm:$0xff]  }
 0x454   : > { %6325 = vst [vmem:[#allocation3 + $0x428] sm:$0xf] %v11059_v30  ;;  %6514 = vst [vmem:[#allocation3 + $0x3c0] sm:$0xf] %v11088_v14  ;;  %8738 = vmatmul.mubr.bf16.vlgmr.msra.gmra.mxu0 %v12733_v53  ;;  %v12747_v52 = vld [vmem:[#allocation3 + $0x1c] ss:$36 sps:$4 sm:$0xff]  }
 0x455   : > { %6515 = vst [vmem:[#allocation3 + $0x3e4] sm:$0xf] %v11089_v1  ;;  %6899 = vst [vmem:[#allocation3 + $0x3ec] sm:$0xf] %v11059_v30  ;;  %12223 = vmatpush3.bf16.msra.mxu0 %v14699_v45  ;;  %8745 = vmatprep.mubr.bf16.mxu0 %v12743_v60  ;;  %v12769_v11 = vld [vmem:[%s15550_s5 + $0x228] sm:$0xff]   ;;  %v6713_v61 = vld [vmem:[#allocation2 + $0x51] sm:$0xff] }
 0x456   : > { %6134 = vst [vmem:[#allocation3 + $0x448] sm:$0xf] %v11028_v31  ;;  %6135 = vst [vmem:[#allocation3 + $0x46c] sm:$0xf] %v11029_v8  ;;  %8697 = vmatmul.mubr.bf16.gmra.mxu1 %v12730_v39  ;;  %12224 = vmatprep.subr.bf16.mxu0 %v12756_v2  ;;  %v12741_v4 = vld [vmem:[#allocation3 + $0x58] ss:$36 sps:$4 sm:$0xff]   ;;  %v11127_v37 = vpack.c.bf16 %v6713_v61, %v6713_v61  ;;  %v11673_v61 = vpop.f32.mrf.mxu0 }
 0x457   : > { %6708 = vst [vmem:[#allocation3 + $0x40c] sm:$0xf] %v11028_v31  ;;  %6709 = vst [vmem:[#allocation3 + $0x430] sm:$0xf] %v11029_v8  ;;  %8898 = vmatprep.mubr.bf16.mxu1 %v12747_v52  ;;  %v12745_v23 = vld [vmem:[#allocation3 + $0x18] ss:$36 sps:$4 sm:$0xff]  }
 0x458   : > { %6326 = vst [vmem:[#allocation3 + $0x44c] sm:$0xf] %v11060_v18  ;;  %6327 = vst [vmem:[#allocation3 + $0x470] sm:$0xf] %v11061_v13  ;;  %v12752_v43 = vld [vmem:[#allocation3 + $0xa4] ss:$36 sps:$4 sm:$0xff]  }
 0x459   : > { %6516 = vst [vmem:[#allocation3 + $0x408] sm:$0xf] %v11090_v44  ;;  %6900 = vst [vmem:[#allocation3 + $0x410] sm:$0xf] %v11060_v18  ;;  %12225 = vmatpush3.bf16.msra.mxu0 %v12756_v2  ;;  %v6357_v47 = vld [vmem:[#allocation2 + $0x20f] sm:$0xff]  ;;  %v12834_v31 = vld [vmem:[%s15550_s5 + $0x200] sm:$0xff]  }
 0x45a   : > { %6901 = vst [vmem:[#allocation3 + $0x434] sm:$0xf] %v11061_v13  ;;  %12226 = vmatprep.subr.bf16.mxu0 %v12769_v11  ;;  %v6712_v20 = vld [vmem:[#allocation2 + $0x49] sm:$0xff]  ;;  %v11091_v49 = vpack.c.bf16 %v6357_v47, %v6357_v47  ;;  %v6715_v50 = vld [vmem:[#allocation2 + $0x71] sm:$0xff]  ;;  %6873 = vst [vmem:[#allocation3 + $0x44] sm:$0xf] %v11127_v37 }
 0x45b   : > { %v12755_v45 = vld [vmem:[#allocation3 + $0x64] ss:$36 sps:$4 sm:$0xff]   ;;  %v11126_v56 = vpack.c.bf16 %v6712_v20, %v6712_v20  ;;  %v11129_v25 = vpack.c.bf16 %v6715_v50, %v6715_v50  ;;  %v6717_v15 = vld [vmem:[#allocation2 + $0x91] sm:$0xff]  ;;  %v12772_v0 = vld [vmem:[#allocation3 + $0x17c] ss:$36 sps:$4 sm:$0xff]  }
 0x45c   : > { %8746 = vmatmul.mubr.bf16.gmra.mxu0 %v12741_v4  ;;  %v6714_v10 = vld [vmem:[#allocation2 + $0x69] sm:$0xff]  ;;  %6517 = vst [vmem:[#allocation3 + $0x42c] sm:$0xf] %v11091_v49  ;;  %v6719_v58 = vld [vmem:[#allocation2 + $0xb1] sm:$0xff]  ;;  %v11131_v55 = vpack.c.bf16 %v6717_v15, %v6717_v15  ;;  %v12750_v21 = vld [vmem:[#allocation3 + $0xa0] ss:$36 sps:$4 sm:$0xff]  }
 0x45d   : > { %8753 = vmatprep.mubr.bf16.mxu0 %v12752_v43  ;;  %v6716_v41 = vld [vmem:[#allocation2 + $0x89] sm:$0xff]  ;;  %12227 = vmatpush3.bf16.msra.mxu0 %v12769_v11  ;;  %6872 = vst [vmem:[#allocation3 + $0x20] sm:$0xf] %v11126_v56  ;;  %v11128_v46 = vpack.c.bf16 %v6714_v10, %v6714_v10  ;;  %v11133_v5 = vpack.c.bf16 %v6719_v58, %v6719_v58  ;;  %v6721_v33 = vld [vmem:[#allocation2 + $0xd1] sm:$0xff]  ;;  %6875 = vst [vmem:[#allocation3 + $0x8c] sm:$0xf] %v11129_v25  ;;  %v11674_v56 = vpop.f32.mrf.mxu0 }
 0x45e   : > { %8899 = vmatmul.mubr.bf16.vlgmr.msra.gmra.mxu1 %v12745_v23  ;;  %v11130_v36 = vpack.c.bf16 %v6716_v41, %v6716_v41  ;;  %v6718_v12 = vld [vmem:[#allocation2 + $0xa9] sm:$0xff]  ;;  %12228 = vmatprep.subr.bf16.mxu0 %v12782_v57  ;;  %v11135_v38 = vpack.c.bf16 %v6721_v33, %v6721_v33  ;;  %v6723_v6 = vld [vmem:[#allocation2 + $0xf1] sm:$0xff]  ;;  %v12753_v3 = vld [vmem:[#allocation3 + $0x60] ss:$36 sps:$4 sm:$0xff]   ;;  %6877 = vst [vmem:[#allocation3 + $0xd4] sm:$0xf] %v11131_v55 }
 0x45f   : > { %8906 = vmatprep.mubr.bf16.mxu1 %v12755_v45  ;;  %v11132_v48 = vpack.c.bf16 %v6718_v12, %v6718_v12  ;;  %v6720_v40 = vld [vmem:[#allocation2 + $0xc9] sm:$0xff]  ;;  %6874 = vst [vmem:[#allocation3 + $0x68] sm:$0xf] %v11128_v46  ;;  %v6725_v19 = vld [vmem:[#allocation2 + $0x111] sm:$0xff]  ;;  %6879 = vst [vmem:[#allocation3 + $0x11c] sm:$0xf] %v11133_v5  ;;  %v11137_v26 = vpack.c.bf16 %v6723_v6, %v6723_v6  ;;  %v11675_v55 = vadd.f32 %v11674_v56, %v11673_v61 }
 0x460   : > { %v6722_v16 = vld [vmem:[#allocation2 + $0xe9] sm:$0xff]  ;;  %6876 = vst [vmem:[#allocation3 + $0xb0] sm:$0xf] %v11130_v36  ;;  %v11134_v24 = vpack.c.bf16 %v6720_v40, %v6720_v40  ;;  %v11139_v59 = vpack.c.bf16 %v6725_v19, %v6725_v19  ;;  %v6727_v22 = vld [vmem:[#allocation2 + $0x131] sm:$0xff]  ;;  %6881 = vst [vmem:[#allocation3 + $0x164] sm:$0xf] %v11135_v38 }
 0x461   : > { %v11136_v63 = vpack.c.bf16 %v6722_v16, %v6722_v16  ;;  %v6724_v28 = vld [vmem:[#allocation2 + $0x109] sm:$0xff]  ;;  %6878 = vst [vmem:[#allocation3 + $0xf8] sm:$0xf] %v11132_v48  ;;  %12229 = vmatpush3.bf16.msra.mxu0 %v12782_v57  ;;  %v11141_v35 = vpack.c.bf16 %v6727_v22, %v6727_v22  ;;  %6883 = vst [vmem:[#allocation3 + $0x1ac] sm:$0xf] %v11137_v26 }
 0x462   : > { %v11138_v27 = vpack.c.bf16 %v6724_v28, %v6724_v28  ;;  %v6726_v7 = vld [vmem:[#allocation2 + $0x129] sm:$0xff]  ;;  %6880 = vst [vmem:[#allocation3 + $0x140] sm:$0xf] %v11134_v24  ;;  %12230 = vmatprep.subr.bf16.mxu0 %v12795_v9  ;;  %6885 = vst [vmem:[#allocation3 + $0x1f4] sm:$0xf] %v11139_v59 }
 0x463   : > { %v12759_v62 = vld [vmem:[#allocation3 + $0xec] ss:$36 sps:$4 sm:$0xff]   ;;  %6882 = vst [vmem:[#allocation3 + $0x188] sm:$0xf] %v11136_v63  ;;  %v11140_v51 = vpack.c.bf16 %v6726_v7, %v6726_v7  ;;  %6887 = vst [vmem:[#allocation3 + $0x23c] sm:$0xf] %v11141_v35 }
 0x464   : > { %v12808_v29 = vld [vmem:[%s15550_s5 + $0x210] sm:$0xff]   ;;  %6884 = vst [vmem:[#allocation3 + $0x1d0] sm:$0xf] %v11138_v27  ;;  %8754 = vmatmul.mubr.bf16.gmra.mxu0 %v12750_v21  ;;  %v12821_v14 = vld [vmem:[%s15550_s5 + $0x208] sm:$0xff]   ;;  %v12775_v18 = vld [vmem:[#allocation3 + $0x13c] ss:$36 sps:$4 sm:$0xff]  }
 0x465   : > { %v12762_v30 = vld [vmem:[#allocation3 + $0xac] ss:$36 sps:$4 sm:$0xff]   ;;  %6886 = vst [vmem:[#allocation3 + $0x218] sm:$0xf] %v11140_v51  ;;  %8761 = vmatprep.mubr.bf16.mxu0 %v12759_v62  ;;  %12231 = vmatpush3.bf16.msra.mxu0 %v12795_v9  ;;  %v12765_v32 = vld [vmem:[#allocation3 + $0x134] ss:$36 sps:$4 sm:$0xff]  }
 0x466   : > { %8907 = vmatmul.mubr.bf16.gmra.mxu1 %v12753_v3  ;;  %12232 = vmatprep.subr.bf16.mxu0 %v12808_v29  ;;  %v12757_v1 = vld [vmem:[#allocation3 + $0xe8] ss:$36 sps:$4 sm:$0xff]   ;;  %v12768_v8 = vld [vmem:[#allocation3 + $0xf4] ss:$36 sps:$4 sm:$0xff]   ;;  %v12776_v60 = vld [vmem:[#allocation3 + $0x1c0] ss:$36 sps:$4 sm:$0xff]  }
 0x467   : > { %8914 = vmatprep.mubr.bf16.mxu1 %v12762_v30  ;;  %v12760_v17 = vld [vmem:[#allocation3 + $0xa8] ss:$36 sps:$4 sm:$0xff]   ;;  %v12763_v34 = vld [vmem:[#allocation3 + $0x130] ss:$36 sps:$4 sm:$0xff]   ;;  %v12770_v13 = vld [vmem:[#allocation3 + $0x178] ss:$36 sps:$4 sm:$0xff]  }
 0x468   : > { %v12766_v42 = vld [vmem:[#allocation3 + $0xf0] ss:$36 sps:$4 sm:$0xff]   ;;  %v12773_v44 = vld [vmem:[#allocation3 + $0x138] ss:$36 sps:$4 sm:$0xff]   ;;  %v12778_v39 = vld [vmem:[#allocation3 + $0x1c4] ss:$36 sps:$4 sm:$0xff]  }
 0x469   : > { %12233 = vmatpush3.bf16.msra.mxu0 %v12808_v29  ;;  %v12781_v53 = vld [vmem:[#allocation3 + $0x184] ss:$36 sps:$4 sm:$0xff]   ;;  %v12785_v52 = vld [vmem:[#allocation3 + $0x20c] ss:$36 sps:$4 sm:$0xff]   ;;  %v12791_v43 = vld [vmem:[#allocation3 + $0x254] ss:$36 sps:$4 sm:$0xff]  }
 0x46a   : > { %12234 = vmatprep.subr.bf16.mxu0 %v12821_v14  ;;  %v12779_v2 = vld [vmem:[#allocation3 + $0x180] ss:$36 sps:$4 sm:$0xff]   ;;  %v12788_v11 = vld [vmem:[#allocation3 + $0x1cc] ss:$36 sps:$4 sm:$0xff]   ;;  %v12794_v57 = vld [vmem:[#allocation3 + $0x214] ss:$36 sps:$4 sm:$0xff]  }
 0x46b   : > { %v12783_v4 = vld [vmem:[#allocation3 + $0x208] ss:$36 sps:$4 sm:$0xff]   ;;  %v12789_v47 = vld [vmem:[#allocation3 + $0x250] ss:$36 sps:$4 sm:$0xff]   ;;  %v12798_v45 = vld [vmem:[#allocation3 + $0x29c] ss:$36 sps:$4 sm:$0xff]  }
 0x46c   : > { %8762 = vmatmul.mubr.bf16.gmra.mxu0 %v12757_v1  ;;  %v12786_v23 = vld [vmem:[#allocation3 + $0x1c8] ss:$36 sps:$4 sm:$0xff]   ;;  %v12792_v20 = vld [vmem:[#allocation3 + $0x210] ss:$36 sps:$4 sm:$0xff]   ;;  %v12801_v49 = vld [vmem:[#allocation3 + $0x25c] ss:$36 sps:$4 sm:$0xff]  }
 0x46d   : > { %8769 = vmatprep.mubr.bf16.mxu0 %v12765_v32  ;;  %12235 = vmatpush3.bf16.msra.mxu0 %v12821_v14  ;;  %v12796_v9 = vld [vmem:[#allocation3 + $0x298] ss:$36 sps:$4 sm:$0xff]   ;;  %v12804_v10 = vld [vmem:[#allocation3 + $0x2e4] ss:$36 sps:$4 sm:$0xff]   ;;  %v14744_v46 = vld [vmem:[%s15551_s6] ss:$0 sm:$0xff] }
 0x46e   : > { %8915 = vmatmul.mubr.bf16.gmra.mxu1 %v12760_v17  ;;  %12236 = vmatprep.subr.bf16.mxu0 %v12834_v31  ;;  %v12799_v37 = vld [vmem:[#allocation3 + $0x258] ss:$36 sps:$4 sm:$0xff]   ;;  %v12807_v41 = vld [vmem:[#allocation3 + $0x2a4] ss:$36 sps:$4 sm:$0xff]   ;;  %v8418_v58 = vadd.f32 %v14717_v54, %v14744_v46  ;;  %v12811_v63 = vld [vmem:[#allocation3 + $0x32c] ss:$36 sps:$4 sm:$0xff]   ;;  %v8421_v28 = vadd.f32 %v11675_v55, %v14744_v46 }
 0x46f   : > { %8922 = vmatprep.mubr.bf16.mxu1 %v12768_v8  ;;  %v12802_v33 = vld [vmem:[#allocation3 + $0x2e0] ss:$36 sps:$4 sm:$0xff]   ;;  %v12814_v26 = vld [vmem:[#allocation3 + $0x2ec] ss:$36 sps:$4 sm:$0xff]   ;;  %v12817_v8 = vld [vmem:[#allocation3 + $0x374] ss:$36 sps:$4 sm:$0xff]  }
 0x470   : > { %v12805_v24 = vld [vmem:[#allocation3 + $0x2a0] ss:$36 sps:$4 sm:$0xff]   ;;  %v12809_v30 = vld [vmem:[#allocation3 + $0x328] ss:$36 sps:$4 sm:$0xff]  }
 0x471   : > { %12237 = vmatpush3.bf16.msra.mxu0 %v12834_v31  ;;  %v12812_v17 = vld [vmem:[#allocation3 + $0x2e8] ss:$36 sps:$4 sm:$0xff]  }
 0x474   : > { %8770 = vmatmul.mubr.bf16.gmra.mxu0 %v12763_v34 }
 0x475   : > { %8777 = vmatprep.mubr.bf16.mxu0 %v12772_v0 }
 0x476   : > { %8923 = vmatmul.mubr.bf16.gmra.mxu1 %v12766_v42 }
 0x477   : > { %8930 = vmatprep.mubr.bf16.mxu1 %v12775_v18  ;;  %v12820_v18 = vld [vmem:[#allocation3 + $0x334] ss:$36 sps:$4 sm:$0xff]  }
 0x47c   : > { %8778 = vmatmul.mubr.bf16.gmra.mxu0 %v12770_v13 }
 0x47d   : > { %8785 = vmatprep.mubr.bf16.mxu0 %v12778_v39 }
 0x47e   : > { %8931 = vmatmul.mubr.bf16.gmra.mxu1 %v12773_v44 }
 0x47f   : > { %8938 = vmatprep.mubr.bf16.mxu1 %v12781_v53 }
 0x484   : > { %8786 = vmatmul.mubr.bf16.gmra.mxu0 %v12776_v60 }
 0x485   : > { %8793 = vmatprep.mubr.bf16.mxu0 %v12785_v52 }
 0x486   : > { %8939 = vmatmul.mubr.bf16.gmra.mxu1 %v12779_v2 }
 0x487   : > { %8946 = vmatprep.mubr.bf16.mxu1 %v12788_v11 }
 0x48c   : > { %8794 = vmatmul.mubr.bf16.gmra.mxu0 %v12783_v4 }
 0x48d   : > { %8801 = vmatprep.mubr.bf16.mxu0 %v12791_v43 }
 0x48e   : > { %8947 = vmatmul.mubr.bf16.gmra.mxu1 %v12786_v23  ;;  %v12815_v23 = vld [vmem:[#allocation3 + $0x370] ss:$36 sps:$4 sm:$0xff]  }
 0x48f   : > { %8954 = vmatprep.mubr.bf16.mxu1 %v12794_v57 }
 0x494   : > { %8802 = vmatmul.mubr.bf16.gmra.mxu0 %v12789_v47  ;;  %v12818_v47 = vld [vmem:[#allocation3 + $0x330] ss:$36 sps:$4 sm:$0xff]  }
 0x495   : > { %8809 = vmatprep.mubr.bf16.mxu0 %v12798_v45 }
 0x496   : > { %8955 = vmatmul.mubr.bf16.gmra.mxu1 %v12792_v20 }
 0x497   : > { %8962 = vmatprep.mubr.bf16.mxu1 %v12801_v49  ;;  %v12824_v49 = vld [vmem:[#allocation3 + $0x3bc] ss:$36 sps:$4 sm:$0xff]  }
 0x49b   : > { %v11676_v50 = vpop.f32.mrf.mxu0 }
 0x49c   : > { %8810 = vmatmul.mubr.bf16.gmra.mxu0 %v12796_v9 }
 0x49d   : > { %8817 = vmatprep.mubr.bf16.mxu0 %v12804_v10  ;;  %v11677_v15 = vpop.f32.mrf.mxu0 }
 0x49e   : > { %v11782_v25 = vpop.f32.mrf.mxu1  ;;  %8963 = vmatmul.mubr.bf16.gmra.mxu1 %v12799_v37  ;;  %v11678_v36 = vadd.f32 %v11677_v15, %v11676_v50  ;;  %v12827_v37 = vld [vmem:[#allocation3 + $0x37c] ss:$36 sps:$4 sm:$0xff]  }
 0x49f   : > { %8970 = vmatprep.mubr.bf16.mxu1 %v12807_v41  ;;  %v11679_v5 = vpop.f32.mrf.mxu0 }
 0x4a0   : > { %v11783_v12 = vpop.f32.mrf.mxu1  ;;  %v8426_v62 = vadd.f32 %v11678_v36, %v14744_v46 }
 0x4a1   : > { %v11784_v48 = vadd.f32 %v11783_v12, %v11782_v25  ;;  %v11680_v21 = vpop.f32.mrf.mxu0 }
 0x4a2   : > { %v11785_v40 = vpop.f32.mrf.mxu1  ;;  %v11681_v38 = vadd.f32 %v11680_v21, %v11679_v5 }
 0x4a3   : > { %v14748_v16 = vadd.f32 %v11784_v48, %v8418_v58  ;;  %v11682_v3 = vpop.f32.mrf.mxu0  ;;  %v12822_v48 = vld [vmem:[#allocation3 + $0x3b8] ss:$36 sps:$4 sm:$0xff]  }
 0x4a4   : > { %v11786_v6 = vpop.f32.mrf.mxu1  ;;  %8818 = vmatmul.mubr.bf16.gmra.mxu0 %v12802_v33  ;;  %v8429_v34 = vadd.f32 %v11681_v38, %v14744_v46  ;;  %v12825_v33 = vld [vmem:[#allocation3 + $0x378] ss:$36 sps:$4 sm:$0xff]   ;;  %v12830_v38 = vld [vmem:[#allocation3 + $0x404] ss:$36 sps:$4 sm:$0xff]  }
 0x4a5   : > { %v11787_v19 = vadd.f32 %v11786_v6, %v11785_v40  ;;  %8825 = vmatprep.mubr.bf16.mxu0 %v12811_v63  ;;  %v11683_v59 = vpop.f32.mrf.mxu0 }
 0x4a6   : > { %v11788_v27 = vpop.f32.mrf.mxu1  ;;  %8971 = vmatmul.mubr.bf16.gmra.mxu1 %v12805_v24  ;;  %v11684_v7 = vadd.f32 %v11683_v59, %v11682_v3 }
 0x4a7   : > { %v14751_v54 = vadd.f32 %v11787_v19, %v8421_v28  ;;  %8978 = vmatprep.mubr.bf16.mxu1 %v12814_v26  ;;  %v11685_v35 = vpop.f32.mrf.mxu0  ;;  %v12833_v19 = vld [vmem:[#allocation3 + $0x3c4] ss:$36 sps:$4 sm:$0xff]  }
 0x4a8   : > { %v11789_v22 = vpop.f32.mrf.mxu1  ;;  %v8434_v2 = vadd.f32 %v11684_v7, %v14744_v46 }
 0x4a9   : > { %v11790_v51 = vadd.f32 %v11789_v22, %v11788_v27  ;;  %v11686_v1 = vpop.f32.mrf.mxu0 }
 0x4aa   : > { %v11791_v29 = vpop.f32.mrf.mxu1  ;;  %v11687_v32 = vadd.f32 %v11686_v1, %v11685_v35 }
 0x4ab   : > { %v14754_v14 = vadd.f32 %v11790_v51, %v8426_v62  ;;  %v11688_v0 = vpop.f32.mrf.mxu0 }
 0x4ac   : > { %v11792_v31 = vpop.f32.mrf.mxu1  ;;  %8826 = vmatmul.mubr.bf16.gmra.mxu0 %v12809_v30  ;;  %v8437_v61 = vadd.f32 %v11687_v32, %v14744_v46 }
 0x4ad   : > { %v11793_v42 = vadd.f32 %v11792_v31, %v11791_v29  ;;  %8833 = vmatprep.mubr.bf16.mxu0 %v12817_v8  ;;  %v11689_v39 = vpop.f32.mrf.mxu0  ;;  %v12828_v29 = vld [vmem:[#allocation3 + $0x400] ss:$36 sps:$4 sm:$0xff]   ;;  %v12837_v8 = vld [vmem:[#allocation3 + $0x44c] ss:$36 sps:$4 sm:$0xff]  }
 0x4ae   : > { %v11794_v13 = vpop.f32.mrf.mxu1  ;;  %8979 = vmatmul.mubr.bf16.gmra.mxu1 %v12812_v17  ;;  %v11690_v53 = vadd.f32 %v11689_v39, %v11688_v0  ;;  %v12831_v17 = vld [vmem:[#allocation3 + $0x3c0] ss:$36 sps:$4 sm:$0xff]  }
 0x4af   : > { %v14757_v44 = vadd.f32 %v11793_v42, %v8429_v34  ;;  %8986 = vmatprep.mubr.bf16.mxu1 %v12820_v18  ;;  %v11691_v11 = vpop.f32.mrf.mxu0  ;;  %v12840_v18 = vld [vmem:[#allocation3 + $0x40c] ss:$36 sps:$4 sm:$0xff]  }
 0x4b0   : > { %v11795_v60 = vpop.f32.mrf.mxu1  ;;  %v8442_v36 = vadd.f32 %v11690_v53, %v14744_v46 }
 0x4b1   : > { %v11796_v52 = vadd.f32 %v11795_v60, %v11794_v13  ;;  %v11692_v57 = vpop.f32.mrf.mxu0 }
 0x4b2   : > { %v11797_v4 = vpop.f32.mrf.mxu1  ;;  %v11693_v20 = vadd.f32 %v11692_v57, %v11691_v11  ;;  %v12835_v57 = vld [vmem:[#allocation3 + $0x448] ss:$36 sps:$4 sm:$0xff]  }
 0x4b3   : > { %v14760_v43 = vadd.f32 %v11796_v52, %v8434_v2  ;;  %v11694_v9 = vpop.f32.mrf.mxu0 }
 0x4b4   : > { %v11798_v45 = vpop.f32.mrf.mxu1  ;;  %8834 = vmatmul.mubr.bf16.gmra.mxu0 %v12815_v23  ;;  %v8445_v6 = vadd.f32 %v11693_v20, %v14744_v46 }
 0x4b5   : > { %v11799_v56 = vadd.f32 %v11798_v45, %v11797_v4  ;;  %8841 = vmatprep.mubr.bf16.mxu0 %v12824_v49  ;;  %v11695_v41 = vpop.f32.mrf.mxu0  ;;  %v12844_v45 = vld [vmem:[#allocation3 + $0x454] ss:$36 sps:$4 sm:$0xff]   ;;  %v12838_v49 = vld [vmem:[#allocation3 + $0x408] ss:$36 sps:$4 sm:$0xff]  }
 0x4b6   : > { %v11800_v10 = vpop.f32.mrf.mxu1  ;;  %8987 = vmatmul.mubr.bf16.gmra.mxu1 %v12818_v47  ;;  %v11696_v25 = vadd.f32 %v11695_v41, %v11694_v9  ;;  %v12841_v9 = vld [vmem:[#allocation3 + $0x20] ss:$36 sps:$4 sm:$0xff]  }
 0x4b7   : > { %v14763_v50 = vadd.f32 %v11799_v56, %v8437_v61  ;;  %8994 = vmatprep.mubr.bf16.mxu1 %v12827_v37  ;;  %v11697_v58 = vpop.f32.mrf.mxu0 }
 0x4b8   : > { %v11801_v15 = vpop.f32.mrf.mxu1  ;;  %v8450_v22 = vadd.f32 %v11696_v25, %v14744_v46 }
 0x4b9   : > { %v11802_v12 = vadd.f32 %v11801_v15, %v11800_v10  ;;  %v11698_v40 = vpop.f32.mrf.mxu0 }
 0x4ba   : > { %v11803_v55 = vpop.f32.mrf.mxu1  ;;  %v11699_v21 = vadd.f32 %v11698_v40, %v11697_v58 }
 0x4bb   : > { %v14766_v5 = vadd.f32 %v11802_v12, %v8442_v36 }
 0x4bc   : > { %v11804_v24 = vpop.f32.mrf.mxu1  ;;  %v11700_v28 = vpop.f32.mrf.mxu0  ;;  %8842 = vmatmul.mubr.bf16.gmra.mxu0 %v12822_v48  ;;  %v8453_v34 = vadd.f32 %v11699_v21, %v14744_v46  ;;  %v12842_v21 = vld [vmem:[#allocation3 + $0x450] ss:$36 sps:$4 sm:$0xff]  }
 0x4bd   : > { %v11805_v63 = vadd.f32 %v11804_v24, %v11803_v55  ;;  %8849 = vmatprep.mubr.bf16.mxu0 %v12830_v38 }
 0x4be   : > { %v11806_v3 = vpop.f32.mrf.mxu1  ;;  %8995 = vmatmul.mubr.bf16.gmra.mxu1 %v12825_v33  ;;  %v11701_v27 = vpop.f32.mrf.mxu0 }
 0x4bf   : > { %v14769_v26 = vadd.f32 %v11805_v63, %v8445_v6  ;;  %9002 = vmatprep.mubr.bf16.mxu1 %v12833_v19  ;;  %v11702_v59 = vadd.f32 %v11701_v27, %v11700_v28  ;;  %v12845_v6 = vld [vmem:[#allocation3 + $0x68] ss:$36 sps:$4 sm:$0xff]   ;;  %v12846_v19 = vld [vmem:[#allocation3 + $0xb0] ss:$36 sps:$4 sm:$0xff]  }
 0x4c0   : > { %v11807_v7 = vpop.f32.mrf.mxu1  ;;  %v11703_v51 = vpop.f32.mrf.mxu0 }
 0x4c1   : > { %v11808_v62 = vadd.f32 %v11807_v7, %v11806_v3  ;;  %v8458_v52 = vadd.f32 %v11702_v59, %v14744_v46 }
 0x4c2   : > { %v11809_v35 = vpop.f32.mrf.mxu1  ;;  %v11704_v1 = vpop.f32.mrf.mxu0 }
 0x4c3   : > { %v14772_v30 = vadd.f32 %v11808_v62, %v8450_v22  ;;  %v11705_v32 = vadd.f32 %v11704_v1, %v11703_v51 }
 0x4c4   : > { %v11810_v31 = vpop.f32.mrf.mxu1  ;;  %v11706_v0 = vpop.f32.mrf.mxu0  ;;  %8850 = vmatmul.mubr.bf16.gmra.mxu0 %v12828_v29 }
 0x4c5   : > { %v11811_v42 = vadd.f32 %v11810_v31, %v11809_v35  ;;  %8857 = vmatprep.mubr.bf16.mxu0 %v12837_v8  ;;  %v8461_v37 = vadd.f32 %v11705_v32, %v14744_v46 }
 0x4c6   : > { %v11812_v13 = vpop.f32.mrf.mxu1  ;;  %9003 = vmatmul.mubr.bf16.gmra.mxu1 %v12831_v17  ;;  %v11707_v53 = vpop.f32.mrf.mxu0 }
 0x4c7   : > { %v14775_v39 = vadd.f32 %v11811_v42, %v8453_v34  ;;  %9010 = vmatprep.mubr.bf16.mxu1 %v12840_v18  ;;  %v11708_v60 = vadd.f32 %v11707_v53, %v11706_v0  ;;  %v12847_v34 = vld [vmem:[#allocation3 + $0xf8] ss:$36 sps:$4 sm:$0xff]   ;;  %v12848_v18 = vld [vmem:[#allocation3 + $0x140] ss:$36 sps:$4 sm:$0xff]  }
 0x4c8   : > { %v11813_v2 = vpop.f32.mrf.mxu1  ;;  %v11709_v4 = vpop.f32.mrf.mxu0 }
 0x4c9   : > { %v11814_v11 = vadd.f32 %v11813_v2, %v11812_v13  ;;  %v8466_v55 = vadd.f32 %v11708_v60, %v14744_v46 }
 0x4ca   : > { %v11815_v23 = vpop.f32.mrf.mxu1  ;;  %v11710_v20 = vpop.f32.mrf.mxu0 }
 0x4cb   : > { %v14778_v47 = vadd.f32 %v11814_v11, %v8458_v52  ;;  %v11711_v61 = vadd.f32 %v11710_v20, %v11709_v4 }
 0x4cc   : > { %v11816_v56 = vpop.f32.mrf.mxu1  ;;  %v11712_v41 = vpop.f32.mrf.mxu0  ;;  %8858 = vmatmul.mubr.bf16.gmra.mxu0 %v12835_v57 }
 0x4cd   : > { %v11817_v10 = vadd.f32 %v11816_v56, %v11815_v23  ;;  %12238 = vmatprep.mubr.bf16.mxu0 %v12841_v9  ;;  %v8469_v3 = vadd.f32 %v11711_v61, %v14744_v46  ;;  %v12849_v9 = vld [vmem:[#allocation3 + $0x188] ss:$36 sps:$4 sm:$0xff]  }
 0x4ce   : > { %v11818_v25 = vpop.f32.mrf.mxu1  ;;  %9011 = vmatmul.mubr.bf16.gmra.mxu1 %v12838_v49  ;;  %v11713_v36 = vpop.f32.mrf.mxu0 }
 0x4cf   : > { %v14781_v15 = vadd.f32 %v11817_v10, %v8461_v37  ;;  %9018 = vmatprep.mubr.bf16.mxu1 %v12844_v45  ;;  %v11714_v12 = vadd.f32 %v11713_v36, %v11712_v41  ;;  %v12850_v41 = vld [vmem:[#allocation3 + $0x1d0] ss:$36 sps:$4 sm:$0xff]  }
 0x4d0   : > { %v11819_v58 = vpop.f32.mrf.mxu1  ;;  %v11715_v40 = vpop.f32.mrf.mxu0 }
 0x4d1   : > { %v11820_v48 = vadd.f32 %v11819_v58, %v11818_v25  ;;  %v8474_v29 = vadd.f32 %v11714_v12, %v14744_v46 }
 0x4d2   : > { %v11821_v33 = vpop.f32.mrf.mxu1  ;;  %v11716_v38 = vpop.f32.mrf.mxu0 }
 0x4d3   : > { %v14784_v24 = vadd.f32 %v11820_v48, %v8466_v55  ;;  %v11717_v63 = vadd.f32 %v11716_v38, %v11715_v40 }
 0x4d4   : > { %v11822_v28 = vpop.f32.mrf.mxu1  ;;  %v11718_v59 = vpop.f32.mrf.mxu0  ;;  %12239 = vmatmul.mubr.bf16.vlgmr.msra.gmra.mxu0 %v12845_v6 }
 0x4d5   : > { %v11823_v27 = vadd.f32 %v11822_v28, %v11821_v33  ;;  %12242 = vmatprep.mubr.bf16.mxu0 %v12846_v19  ;;  %v8477_v13 = vadd.f32 %v11717_v63, %v14744_v46 }
 0x4d6   : > { %v11824_v7 = vpop.f32.mrf.mxu1  ;;  %9019 = vmatmul.mubr.bf16.gmra.mxu1 %v12842_v21  ;;  %v11719_v62 = vpop.f32.mrf.mxu0 }
 0x4d7   : > { %v14787_v22 = vadd.f32 %v11823_v27, %v8469_v3  ;;  %v11720_v51 = vadd.f32 %v11719_v62, %v11718_v59  ;;  %v12851_v3 = vld [vmem:[#allocation3 + $0x218] ss:$36 sps:$4 sm:$0xff]  }
 0x4d8   : > { %v11825_v35 = vpop.f32.mrf.mxu1  ;;  %v11721_v17 = vpop.f32.mrf.mxu0 }
 0x4d9   : > { %v11826_v1 = vadd.f32 %v11825_v35, %v11824_v7  ;;  %v8482_v57 = vadd.f32 %v11720_v51, %v14744_v46  ;;  %v12852_v7 = vld [vmem:[#allocation3 + $0x260] ss:$36 sps:$4 sm:$0xff]  }
 0x4da   : > { %v11827_v32 = vpop.f32.mrf.mxu1  ;;  %v11722_v8 = vpop.f32.mrf.mxu0 }
 0x4db   : > { %v14790_v31 = vadd.f32 %v11826_v1, %v8474_v29  ;;  %v11723_v42 = vadd.f32 %v11722_v8, %v11721_v17 }
 0x4dc   : > { %v11828_v0 = vpop.f32.mrf.mxu1  ;;  %v11724_v60 = vpop.f32.mrf.mxu0  ;;  %12243 = vmatmul.mubr.bf16.gmra.mxu0 %v12847_v34 }
 0x4dd   : > { %v11829_v53 = vadd.f32 %v11828_v0, %v11827_v32  ;;  %12246 = vmatprep.mubr.bf16.mxu0 %v12848_v18  ;;  %v8485_v25 = vadd.f32 %v11723_v42, %v14744_v46 }
 0x4de   : > { %v11830_v2 = vpop.f32.mrf.mxu1  ;;  %v11725_v11 = vpop.f32.mrf.mxu0 }
 0x4df   : > { %v14793_v52 = vadd.f32 %v11829_v53, %v8477_v13  ;;  %v11726_v4 = vadd.f32 %v11725_v11, %v11724_v60  ;;  %v12853_v60 = vld [vmem:[#allocation3 + $0x2a8] ss:$36 sps:$4 sm:$0xff]  }
 0x4e0   : > { %v11831_v23 = vpop.f32.mrf.mxu1  ;;  %v11727_v45 = vpop.f32.mrf.mxu0 }
 0x4e1   : > { %v11832_v20 = vadd.f32 %v11831_v23, %v11830_v2  ;;  %v8490_v21 = vadd.f32 %v11726_v4, %v14744_v46  ;;  %v12854_v4 = vld [vmem:[#allocation3 + $0x2f0] ss:$36 sps:$4 sm:$0xff]  }
 0x4e2   : > { %v11833_v49 = vpop.f32.mrf.mxu1  ;;  %v11728_v56 = vpop.f32.mrf.mxu0 }
 0x4e3   : > { %v14796_v61 = vadd.f32 %v11832_v20, %v8482_v57  ;;  %v11729_v37 = vadd.f32 %v11728_v56, %v11727_v45 }
 0x4e4   : > { %v11834_v10 = vpop.f32.mrf.mxu1  ;;  %v11730_v12 = vpop.f32.mrf.mxu0  ;;  %12247 = vmatmul.mubr.bf16.gmra.mxu0 %v12849_v9 }
 0x4e5   : > { %v11835_v36 = vadd.f32 %v11834_v10, %v11833_v49  ;;  %12250 = vmatprep.mubr.bf16.mxu0 %v12850_v41  ;;  %v8493_v62 = vadd.f32 %v11729_v37, %v14744_v46 }
 0x4e6   : > { %v11836_v58 = vpop.f32.mrf.mxu1  ;;  %v11731_v48 = vpop.f32.mrf.mxu0 }
 0x4e7   : > { %v14799_v55 = vadd.f32 %v11835_v36, %v8485_v25  ;;  %v11732_v40 = vadd.f32 %v11731_v48, %v11730_v12  ;;  %v12855_v48 = vld [vmem:[#allocation3 + $0x338] ss:$36 sps:$4 sm:$0xff]  }
 0x4e8   : > { %v11837_v33 = vpop.f32.mrf.mxu1  ;;  %v11733_v6 = vpop.f32.mrf.mxu0 }
 0x4e9   : > { %v11838_v38 = vadd.f32 %v11837_v33, %v11836_v58  ;;  %v8498_v34 = vadd.f32 %v11732_v40, %v14744_v46 }
 0x4ea   : > { %v11839_v63 = vpop.f32.mrf.mxu1  ;;  %v11734_v19 = vpop.f32.mrf.mxu0 }
 0x4eb   : > { %v14802_v28 = vadd.f32 %v11838_v38, %v8490_v21  ;;  %v11735_v27 = vadd.f32 %v11734_v19, %v11733_v6  ;;  %v12856_v21 = vld [vmem:[#allocation3 + $0x380] ss:$36 sps:$4 sm:$0xff]  }
 0x4ec   : > { %v11840_v59 = vpop.f32.mrf.mxu1  ;;  %v11736_v35 = vpop.f32.mrf.mxu0  ;;  %12251 = vmatmul.mubr.bf16.gmra.mxu0 %v12851_v3 }
 0x4ed   : > { %v11841_v51 = vadd.f32 %v11840_v59, %v11839_v63  ;;  %12254 = vmatprep.mubr.bf16.mxu0 %v12852_v7  ;;  %v8501_v23 = vadd.f32 %v11735_v27, %v14744_v46 }
 0x4ee   : > { %v11842_v29 = vpop.f32.mrf.mxu1  ;;  %v11737_v17 = vpop.f32.mrf.mxu0 }
 0x4ef   : > { %v14805_v1 = vadd.f32 %v11841_v51, %v8493_v62  ;;  %v11738_v32 = vadd.f32 %v11737_v17, %v11736_v35 }
 0x4f0   : > { %v11843_v8 = vpop.f32.mrf.mxu1  ;;  %v11739_v0 = vpop.f32.mrf.mxu0 }
 0x4f1   : > { %v11844_v42 = vadd.f32 %v11843_v8, %v11842_v29  ;;  %v8506_v10 = vadd.f32 %v11738_v32, %v14744_v46  ;;  %v12857_v8 = vld [vmem:[#allocation3 + $0x3c8] ss:$36 sps:$4 sm:$0xff]  }
 0x4f2   : > { %v11845_v18 = vpop.f32.mrf.mxu1  ;;  %v11740_v53 = vpop.f32.mrf.mxu0 }
 0x4f3   : > { %v14808_v13 = vadd.f32 %v11844_v42, %v8498_v34  ;;  %v11741_v2 = vadd.f32 %v11740_v53, %v11739_v0  ;;  %v12858_v0 = vld [vmem:[#allocation3 + $0x410] ss:$36 sps:$4 sm:$0xff]  }
 0x4f4   : > { %v11846_v11 = vpop.f32.mrf.mxu1  ;;  %v11742_v20 = vpop.f32.mrf.mxu0  ;;  %12255 = vmatmul.mubr.bf16.gmra.mxu0 %v12853_v60 }
 0x4f5   : > { %v11847_v57 = vadd.f32 %v11846_v11, %v11845_v18  ;;  %12258 = vmatprep.mubr.bf16.mxu0 %v12854_v4  ;;  %v8509_v38 = vadd.f32 %v11741_v2, %v14744_v46 }
 0x4f6   : > { %v11848_v45 = vpop.f32.mrf.mxu1  ;;  %v11743_v56 = vpop.f32.mrf.mxu0 }
 0x4f7   : > { %v14811_v49 = vadd.f32 %v11847_v57, %v8501_v23  ;;  %v11744_v9 = vadd.f32 %v11743_v56, %v11742_v20 }
 0x4f8   : > { %v11849_v37 = vpop.f32.mrf.mxu1  ;;  %v11745_v25 = vpop.f32.mrf.mxu0 }
 0x4f9   : > { %v11850_v41 = vadd.f32 %v11849_v37, %v11848_v45  ;;  %v8514_v62 = vadd.f32 %v11744_v9, %v14744_v46  ;;  %v12859_v9 = vld [vmem:[#allocation3 + $0x458] ss:$36 sps:$4 sm:$0xff]  }
 0x4fa   : > { %v11851_v36 = vpop.f32.mrf.mxu1  ;;  %v11746_v58 = vpop.f32.mrf.mxu0 }
 0x4fb   : > { %v14814_v12 = vadd.f32 %v11850_v41, %v8506_v10  ;;  %v11747_v40 = vadd.f32 %v11746_v58, %v11745_v25 }
 0x4fc   : > { %v11852_v33 = vpop.f32.mrf.mxu1  ;;  %v11748_v63 = vpop.f32.mrf.mxu0  ;;  %12259 = vmatmul.mubr.bf16.gmra.mxu0 %v12855_v48 }
 0x4fd   : > { %v11853_v6 = vadd.f32 %v11852_v33, %v11851_v36  ;;  %12262 = vmatprep.mubr.bf16.mxu0 %v12856_v21  ;;  %v8517_v18 = vadd.f32 %v11747_v40, %v14744_v46 }
 0x4fe   : > { %v11854_v19 = vpop.f32.mrf.mxu1  ;;  %v11749_v27 = vpop.f32.mrf.mxu0 }
 0x4ff   : > { %v14817_v3 = vadd.f32 %v11853_v6, %v8509_v38  ;;  %v11750_v59 = vadd.f32 %v11749_v27, %v11748_v63 }
 0x500   : > { %v11855_v7 = vpop.f32.mrf.mxu1  ;;  %v11751_v35 = vpop.f32.mrf.mxu0 }
 0x501   : > { %v11856_v51 = vadd.f32 %v11855_v7, %v11854_v19  ;;  %v8522_v20 = vadd.f32 %v11750_v59, %v14744_v46 }
 0x502   : > { %v11857_v29 = vpop.f32.mrf.mxu1  ;;  %v11752_v32 = vpop.f32.mrf.mxu0 }
 0x503   : > { %v14820_v17 = vadd.f32 %v11856_v51, %v8514_v62  ;;  %v11753_v34 = vadd.f32 %v11752_v32, %v11751_v35 }
 0x504   : > { %v11858_v42 = vpop.f32.mrf.mxu1  ;;  %v11754_v60 = vpop.f32.mrf.mxu0  ;;  %12263 = vmatmul.mubr.bf16.gmra.mxu0 %v12857_v8 }
 0x505   : > { %v11859_v53 = vadd.f32 %v11858_v42, %v11857_v29  ;;  %12266 = vmatprep.mubr.bf16.mxu0 %v12858_v0  ;;  %v8525_v58 = vadd.f32 %v11753_v34, %v14744_v46 }
 0x506   : > { %v11860_v2 = vpop.f32.mrf.mxu1  ;;  %v11755_v4 = vpop.f32.mrf.mxu0 }
 0x507   : > { %v14823_v11 = vadd.f32 %v11859_v53, %v8517_v18  ;;  %v11756_v23 = vadd.f32 %v11755_v4, %v11754_v60 }
 0x508   : > { %v11861_v57 = vpop.f32.mrf.mxu1  ;;  %v11757_v56 = vpop.f32.mrf.mxu0 }
 0x509   : > { %v11862_v45 = vadd.f32 %v11861_v57, %v11860_v2  ;;  %v8530_v19 = vadd.f32 %v11756_v23, %v14744_v46 }
 0x50a   : > { %v11863_v37 = vpop.f32.mrf.mxu1  ;;  %v11758_v41 = vpop.f32.mrf.mxu0 }
 0x50b   : > { %v14826_v10 = vadd.f32 %v11862_v45, %v8522_v20  ;;  %v11759_v25 = vadd.f32 %v11758_v41, %v11757_v56 }
 0x50c   : > { %v11864_v36 = vpop.f32.mrf.mxu1  ;;  %v11760_v40 = vpop.f32.mrf.mxu0  ;;  %12267 = vmatmul.mubr.bf16.gmra.mxu0 %v12859_v9 }
 0x50d   : > { %v11865_v48 = vadd.f32 %v11864_v36, %v11863_v37  ;;  %v8533_v32 = vadd.f32 %v11759_v25, %v14744_v46 }
 0x50e   : > { %v11866_v33 = vpop.f32.mrf.mxu1  ;;  %v11761_v38 = vpop.f32.mrf.mxu0 }
 0x50f   : > { %v14829_v21 = vadd.f32 %v11865_v48, %v8525_v58  ;;  %v11762_v6 = vadd.f32 %v11761_v38, %v11760_v40 }
 0x510   : > { %v11867_v63 = vpop.f32.mrf.mxu1  ;;  %v11763_v59 = vpop.f32.mrf.mxu0 }
 0x511   : > { %v11868_v27 = vadd.f32 %v11867_v63, %v11866_v33  ;;  %v8538_v2 = vadd.f32 %v11762_v6, %v14744_v46 }
 0x512   : > { %v11869_v7 = vpop.f32.mrf.mxu1  ;;  %v11764_v51 = vpop.f32.mrf.mxu0 }
 0x513   : > { %v14832_v62 = vadd.f32 %v11868_v27, %v8530_v19  ;;  %v11765_v35 = vadd.f32 %v11764_v51, %v11763_v59 }
 0x514   : > { %v11870_v29 = vpop.f32.mrf.mxu1  ;;  %v11894_v34 = vpop.f32.mrf.mxu0 }
 0x515   : > { %v11871_v8 = vadd.f32 %v11870_v29, %v11869_v7  ;;  %v8541_v41 = vadd.f32 %v11765_v35, %v14744_v46 }
 0x516   : > { %v11872_v42 = vpop.f32.mrf.mxu1  ;;  %v11895_v18 = vpop.f32.mrf.mxu0 }
 0x517   : > { %v14835_v0 = vadd.f32 %v11871_v8, %v8533_v32  ;;  %v11896_v60 = vadd.f32 %v11895_v18, %v11894_v34 }
 0x518   : > { %v11873_v53 = vpop.f32.mrf.mxu1  ;;  %v11897_v23 = vpop.f32.mrf.mxu0 }
 0x519   : > { %v11874_v4 = vadd.f32 %v11873_v53, %v11872_v42  ;;  %v8740_v57 = vadd.f32 %v11896_v60, %v14748_v16 }
 0x51a   : > { %v11875_v20 = vpop.f32.mrf.mxu1  ;;  %v11898_v56 = vpop.f32.mrf.mxu0 }
 0x51b   : > { %v14839_v45 = vadd.f32 %v11874_v4, %v8538_v2  ;;  %v11899_v37 = vadd.f32 %v11898_v56, %v11897_v23 }
 0x51c   : > { %v11876_v9 = vpop.f32.mrf.mxu1  ;;  %v11900_v36 = vpop.f32.mrf.mxu0 }
 0x51d   : > { %v11877_v25 = vadd.f32 %v11876_v9, %v11875_v20  ;;  %v14843_v58 = vadd.f32 %v11899_v37, %v14751_v54 }
 0x51e   : > { %v12006_v48 = vpop.f32.mrf.mxu1  ;;  %v11901_v33 = vpop.f32.mrf.mxu0 }
 0x51f   : > { %v14845_v40 = vadd.f32 %v11877_v25, %v8541_v41  ;;  %v11902_v38 = vadd.f32 %v11901_v33, %v11900_v36 }
 0x520   : > { %v12007_v6 = vpop.f32.mrf.mxu1  ;;  %v11903_v63 = vpop.f32.mrf.mxu0 }
 0x521   : > { %v12008_v16 = vadd.f32 %v12007_v6, %v12006_v48  ;;  %v14848_v19 = vadd.f32 %v11902_v38, %v14754_v14 }
 0x522   : > { %v14850_v27 = vpop.f32.mrf.mxu1  ;;  %v11904_v59 = vpop.f32.mrf.mxu0 }
 0x523   : > { %v14852_v46 = vadd.f32 %v12008_v16, %v8740_v57  ;;  %v11905_v7 = vadd.f32 %v11904_v59, %v11903_v63 }
 0x524   : > { %v14854_v51 = vpop.f32.mrf.mxu1  ;;  %v11906_v54 = vpop.f32.mrf.mxu0 }
 0x525   : > { %v14857_v35 = vadd.f32 %v11905_v7, %v14757_v44 }
 0x526   : > { %v14859_v29 = vpop.f32.mrf.mxu1  ;;  %v11907_v32 = vpop.f32.mrf.mxu0 }
 0x527   : > { %v11908_v8 = vadd.f32 %v11907_v32, %v11906_v54 }
 0x528   : > { %v14861_v34 = vpop.f32.mrf.mxu1  ;;  %v11909_v14 = vpop.f32.mrf.mxu0 }
 0x529   : > { %v14864_v42 = vadd.f32 %v11908_v8, %v14760_v43 }
 0x52a   : > { %v14866_v18 = vpop.f32.mrf.mxu1  ;;  %v11910_v53 = vpop.f32.mrf.mxu0 }
 0x52b   : > { %v11911_v60 = vadd.f32 %v11910_v53, %v11909_v14 }
 0x52c   : > { %v14868_v2 = vpop.f32.mrf.mxu1  ;;  %v11912_v4 = vpop.f32.mrf.mxu0 }
 0x52d   : > { %v14871_v44 = vadd.f32 %v11911_v60, %v14763_v50 }
 0x52e   : > { %v14873_v23 = vpop.f32.mrf.mxu1  ;;  %v11913_v57 = vpop.f32.mrf.mxu0 }
 0x52f   : > { %v11914_v20 = vadd.f32 %v11913_v57, %v11912_v4 }
 0x530   : > { %v14875_v56 = vpop.f32.mrf.mxu1  ;;  %v11915_v9 = vpop.f32.mrf.mxu0 }
 0x531   : > { %v14878_v43 = vadd.f32 %v11914_v20, %v14766_v5 }
 0x532   : > { %v14880_v37 = vpop.f32.mrf.mxu1  ;;  %v11916_v41 = vpop.f32.mrf.mxu0 }
 0x533   : > { %v11917_v25 = vadd.f32 %v11916_v41, %v11915_v9 }
 0x534   : > { %v14882_v36 = vpop.f32.mrf.mxu1  ;;  %v11918_v48 = vpop.f32.mrf.mxu0 }
 0x535   : > { %v14885_v50 = vadd.f32 %v11917_v25, %v14769_v26 }
 0x536   : > { %v14887_v33 = vpop.f32.mrf.mxu1  ;;  %v11919_v38 = vpop.f32.mrf.mxu0 }
 0x537   : > { %v11920_v6 = vadd.f32 %v11919_v38, %v11918_v48 }
 0x538   : > { %v14889_v16 = vpop.f32.mrf.mxu1  ;;  %v11921_v63 = vpop.f32.mrf.mxu0 }
 0x539   : > { %v14892_v5 = vadd.f32 %v11920_v6, %v14772_v30 }
 0x53a   : > { %v14894_v59 = vpop.f32.mrf.mxu1  ;;  %v11922_v7 = vpop.f32.mrf.mxu0 }
 0x53b   : > { %v11923_v54 = vadd.f32 %v11922_v7, %v11921_v63 }
 0x53c   : > { %v14896_v32 = vpop.f32.mrf.mxu1  ;;  %v11924_v8 = vpop.f32.mrf.mxu0 }
 0x53d   : > { %v14899_v26 = vadd.f32 %v11923_v54, %v14775_v39 }
 0x53e   : > { %v14901_v14 = vpop.f32.mrf.mxu1  ;;  %v11925_v53 = vpop.f32.mrf.mxu0 }
 0x53f   : > { %15613 = vst [vmem:[#allocation5_spill] sm:$0xff] %v14899_v26  ;;  %v11926_v60 = vadd.f32 %v11925_v53, %v11924_v8 }
 0x540   : > { %v14903_v4 = vpop.f32.mrf.mxu1  ;;  %v11927_v57 = vpop.f32.mrf.mxu0 }
 0x541   : > { %v14906_v30 = vadd.f32 %v11926_v60, %v14778_v47 }
 0x542   : > { %v14908_v20 = vpop.f32.mrf.mxu1  ;;  %v11928_v9 = vpop.f32.mrf.mxu0 }
 0x543   : > { %15614 = vst [vmem:[#allocation4_spill] sm:$0xff] %v14906_v30  ;;  %v11929_v41 = vadd.f32 %v11928_v9, %v11927_v57 }
 0x544   : > { %v14910_v25 = vpop.f32.mrf.mxu1  ;;  %v11930_v48 = vpop.f32.mrf.mxu0 }
 0x545   : > { %v14913_v39 = vadd.f32 %v11929_v41, %v14781_v15 }
 0x546   : > { %v14915_v38 = vpop.f32.mrf.mxu1  ;;  %v11931_v6 = vpop.f32.mrf.mxu0 }
 0x547   : > { %15615 = vst [vmem:[#allocation6_spill] sm:$0xff] %v14913_v39  ;;  %v11932_v63 = vadd.f32 %v11931_v6, %v11930_v48 }
 0x548   : > { %v14917_v7 = vpop.f32.mrf.mxu1  ;;  %v11933_v54 = vpop.f32.mrf.mxu0 }
 0x549   : > { %v14920_v47 = vadd.f32 %v11932_v63, %v14784_v24 }
 0x54a   : > { %v14922_v8 = vpop.f32.mrf.mxu1  ;;  %v11934_v53 = vpop.f32.mrf.mxu0 }
 0x54b   : > { %15616 = vst [vmem:[#allocation9_spill] sm:$0xff] %v14920_v47  ;;  %v11935_v60 = vadd.f32 %v11934_v53, %v11933_v54 }
 0x54c   : > { %v14924_v57 = vpop.f32.mrf.mxu1  ;;  %v11936_v9 = vpop.f32.mrf.mxu0 }
 0x54d   : > { %v14927_v15 = vadd.f32 %v11935_v60, %v14787_v22 }
 0x54e   : > { %v14929_v41 = vpop.f32.mrf.mxu1  ;;  %v11937_v39 = vpop.f32.mrf.mxu0 }
 0x54f   : > { %15617 = vst [vmem:[#allocation11_spill] sm:$0xff] %v14927_v15  ;;  %v11938_v48 = vadd.f32 %v11937_v39, %v11936_v9 }
 0x550   : > { %v14931_v6 = vpop.f32.mrf.mxu1  ;;  %v11939_v26 = vpop.f32.mrf.mxu0 }
 0x551   : > { %15618 = vst [vmem:[#allocation12_spill] sm:$0xff] %v14931_v6  ;;  %v14934_v24 = vadd.f32 %v11938_v48, %v14790_v31 }
 0x552   : > { %v14936_v63 = vpop.f32.mrf.mxu1  ;;  %v11940_v47 = vpop.f32.mrf.mxu0 }
 0x553   : > { %15619 = vst [vmem:[#allocation14_spill] sm:$0xff] %v14934_v24  ;;  %v11941_v54 = vadd.f32 %v11940_v47, %v11939_v26 }
 0x554   : > { %v14938_v53 = vpop.f32.mrf.mxu1  ;;  %v11942_v30 = vpop.f32.mrf.mxu0 }
 0x555   : > { %15620 = vst [vmem:[#allocation7_spill] sm:$0xff] %v14938_v53  ;;  %v14941_v22 = vadd.f32 %v11941_v54, %v14793_v52 }
 0x556   : > { %v14943_v60 = vpop.f32.mrf.mxu1  ;;  %v11943_v15 = vpop.f32.mrf.mxu0 }
 0x557   : > { %15621 = vst [vmem:[#allocation16_spill] sm:$0xff] %v14941_v22  ;;  %v11944_v39 = vadd.f32 %v11943_v15, %v11942_v30 }
 0x558   : > { %v14945_v9 = vpop.f32.mrf.mxu1  ;;  %v11945_v6 = vpop.f32.mrf.mxu0 }
 0x559   : > { %15622 = vst [vmem:[#allocation18_spill] sm:$0xff] %v14945_v9  ;;  %v14948_v31 = vadd.f32 %v11944_v39, %v14796_v61 }
 0x55a   : > { %v14950_v48 = vpop.f32.mrf.mxu1  ;;  %v11946_v24 = vpop.f32.mrf.mxu0 }
 0x55b   : > { %15623 = vst [vmem:[#allocation10_spill] sm:$0xff] %v14948_v31  ;;  %v11947_v26 = vadd.f32 %v11946_v24, %v11945_v6 }
 0x55c   : > { %v14952_v47 = vpop.f32.mrf.mxu1  ;;  %v11948_v53 = vpop.f32.mrf.mxu0 }
 0x55d   : > { %15624 = vst [vmem:[#allocation8_spill] sm:$0xff] %v14952_v47  ;;  %v14955_v52 = vadd.f32 %v11947_v26, %v14799_v55 }
 0x55e   : > { %v14957_v54 = vpop.f32.mrf.mxu1  ;;  %v11949_v22 = vpop.f32.mrf.mxu0 }
 0x55f   : > { %15625 = vst [vmem:[#allocation13_spill] sm:$0xff] %v14955_v52  ;;  %v11950_v30 = vadd.f32 %v11949_v22, %v11948_v53 }
 0x560   : > { %v14959_v15 = vpop.f32.mrf.mxu1  ;;  %v11951_v9 = vpop.f32.mrf.mxu0 }
 0x561   : > { %15626 = vst [vmem:[#allocation20_spill] sm:$0xff] %v14959_v15  ;;  %v14962_v61 = vadd.f32 %v11950_v30, %v14802_v28 }
 0x562   : > { %v14964_v39 = vpop.f32.mrf.mxu1  ;;  %v11952_v31 = vpop.f32.mrf.mxu0 }
 0x563   : > { %15627 = vst [vmem:[#allocation22_spill] sm:$0xff] %v14962_v61  ;;  %v11953_v6 = vadd.f32 %v11952_v31, %v11951_v9 }
 0x564   : > { %v14966_v24 = vpop.f32.mrf.mxu1  ;;  %v11954_v47 = vpop.f32.mrf.mxu0 }
 0x565   : > { %15628 = vst [vmem:[#allocation15_spill] sm:$0xff] %v14966_v24  ;;  %v14969_v55 = vadd.f32 %v11953_v6, %v14805_v1 }
 0x566   : > { %v14971_v26 = vpop.f32.mrf.mxu1  ;;  %v11955_v52 = vpop.f32.mrf.mxu0 }
 0x567   : > { %15629 = vst [vmem:[#allocation23_spill] sm:$0xff] %v14969_v55  ;;  %v11956_v53 = vadd.f32 %v11955_v52, %v11954_v47 }
 0x568   : > { %v14973_v22 = vpop.f32.mrf.mxu1  ;;  %v11957_v15 = vpop.f32.mrf.mxu0 }
 0x569   : > { %15630 = vst [vmem:[#allocation19_spill] sm:$0xff] %v14973_v22  ;;  %v14976_v28 = vadd.f32 %v11956_v53, %v14808_v13 }
 0x56a   : > { %v14978_v30 = vpop.f32.mrf.mxu1  ;;  %v11958_v61 = vpop.f32.mrf.mxu0 }
 0x56b   : > { %15631 = vst [vmem:[#allocation17_spill] sm:$0xff] %v14976_v28  ;;  %15632 = vst [vmem:[#allocation21_spill] sm:$0xff] %v14978_v30  ;;  %v11959_v9 = vadd.f32 %v11958_v61, %v11957_v15 }
 0x56c   : > { %v14980_v31 = vpop.f32.mrf.mxu1  ;;  %v11960_v24 = vpop.f32.mrf.mxu0 }
 0x56d   : > { %15633 = vst [vmem:[#allocation24_spill] sm:$0xff] %v14980_v31  ;;  %v14983_v1 = vadd.f32 %v11959_v9, %v14811_v49 }
 0x56e   : > { %v11961_v6 = vpop.f32.mrf.mxu0  ;;  %v14985_v55 = vpop.f32.mrf.mxu1 }
 0x56f   : > { %15634 = vst [vmem:[#allocation26_spill] sm:$0xff] %v14983_v1  ;;  %v11962_v47 = vadd.f32 %v11961_v6, %v11960_v24 }
 0x570   : > { %v11963_v52 = vpop.f32.mrf.mxu0  ;;  %v14990_v53 = vpop.f32.mrf.mxu1 }
 0x571   : > { %v14988_v22 = vadd.f32 %v11962_v47, %v14814_v12 }
 0x572   : > { %v11964_v13 = vpop.f32.mrf.mxu0  ;;  %v14995_v31 = vpop.f32.mrf.mxu1 }
 0x573   : > { %15635 = vst [vmem:[#allocation25_spill] sm:$0xff] %v14988_v22  ;;  %v11965_v28 = vadd.f32 %v11964_v13, %v11963_v52 }
 0x574   : > { %v11966_v30 = vpop.f32.mrf.mxu0  ;;  %v15000_v6 = vpop.f32.mrf.mxu1 }
 0x575   : > { %v14993_v15 = vadd.f32 %v11965_v28, %v14817_v3 }
 0x576   : > { %v11967_v61 = vpop.f32.mrf.mxu0  ;;  %v15005_v13 = vpop.f32.mrf.mxu1 }
 0x577   : > { %15636 = vst [vmem:[#allocation27_spill] sm:$0xff] %v14993_v15  ;;  %v11968_v49 = vadd.f32 %v11967_v61, %v11966_v30 }
 0x578   : > { %v11969_v9 = vpop.f32.mrf.mxu0  ;;  %v15010_v61 = vpop.f32.mrf.mxu1 }
 0x579   : > { %v14998_v1 = vadd.f32 %v11968_v49, %v14820_v17 }
 0x57a   : > { %v11970_v24 = vpop.f32.mrf.mxu0 }
 0x57b   : > { %15637 = vst [vmem:[#allocation28_spill] sm:$0xff] %v14998_v1  ;;  %v11971_v12 = vadd.f32 %v11970_v24, %v11969_v9  ;;  %v15015_v24 = vpop.f32.mrf.mxu1 }
 0x57c   : > { %v11972_v47 = vpop.f32.mrf.mxu0 }
 0x57d   : > { %v15003_v22 = vadd.f32 %v11971_v12, %v14823_v11 }
 0x57e   : > { %v11973_v52 = vpop.f32.mrf.mxu0 }
 0x57f   : > { %15638 = vst [vmem:[#allocation30_spill] sm:$0xff] %v15003_v22  ;;  %v11974_v3 = vadd.f32 %v11973_v52, %v11972_v47  ;;  %v15020_v52 = vpop.f32.mrf.mxu1 }
 0x580   : > { %v11975_v28 = vpop.f32.mrf.mxu0 }
 0x581   : > { %v15008_v15 = vadd.f32 %v11974_v3, %v14826_v10 }
 0x582   : > { %v11976_v30 = vpop.f32.mrf.mxu0 }
 0x583   : > { %15639 = vst [vmem:[#allocation29_spill] sm:$0xff] %v15008_v15  ;;  %v11977_v17 = vadd.f32 %v11976_v30, %v11975_v28  ;;  %v15025_v30 = vpop.f32.mrf.mxu1 }
 0x584   : > { %v11978_v49 = vpop.f32.mrf.mxu0 }
 0x585   : > { %v15013_v1 = vadd.f32 %v11977_v17, %v14829_v21 }
 0x586   : > { %v11979_v9 = vpop.f32.mrf.mxu0 }
 0x587   : > { %15640 = vst [vmem:[#allocation32_spill] sm:$0xff] %v15013_v1  ;;  %v11980_v11 = vadd.f32 %v11979_v9, %v11978_v49  ;;  %v15030_v9 = vpop.f32.mrf.mxu1 }
 0x588   : > { %v11981_v12 = vpop.f32.mrf.mxu0 }
 0x589   : > { %v15018_v22 = vadd.f32 %v11980_v11, %v14832_v62 }
 0x58a   : > { %v11982_v47 = vpop.f32.mrf.mxu0 }
 0x58b   : > { %v11983_v10 = vadd.f32 %v11982_v47, %v11981_v12  ;;  %v12011_v12 = vadd.f32 %v14854_v51, %v14850_v27 }
 0x58c   : > { %v11984_v3 = vpop.f32.mrf.mxu0 }
 0x58d   : > { %v15023_v15 = vadd.f32 %v11983_v10, %v14835_v0  ;;  %v12014_v0 = vadd.f32 %v14861_v34, %v14859_v29  ;;  %v8904_v51 = vadd.f32 %v12011_v12, %v14843_v58 }
 0x58e   : > { %v11985_v28 = vpop.f32.mrf.mxu0 }
 0x58f   : > { %v11986_v21 = vadd.f32 %v11985_v28, %v11984_v3  ;;  %v12017_v3 = vadd.f32 %v14868_v2, %v14866_v18  ;;  %v12020_v28 = vadd.f32 %v14875_v56, %v14873_v23  ;;  %v12023_v23 = vadd.f32 %v14882_v36, %v14880_v37 }
 0x590   : > { %v11987_v17 = vpop.f32.mrf.mxu0  ;;  %v12029_v37 = vadd.f32 %v14896_v32, %v14894_v59 }
 0x591   : > { %v15028_v1 = vadd.f32 %v11986_v21, %v14839_v45  ;;  %v15041_v45 = vpop.f32.mrf.mxu1  ;;  %v8912_v18 = vadd.f32 %v12017_v3, %v14857_v35 }
 0x592   : > { %v11988_v49 = vpop.f32.mrf.mxu0 }
 0x593   : > { %v11989_v62 = vadd.f32 %v11988_v49, %v11987_v17  ;;  %v8909_v17 = vadd.f32 %v12014_v0, %v14848_v19  ;;  %v12026_v19 = vadd.f32 %v14889_v16, %v14887_v33  ;;  %v12032_v0 = vadd.f32 %v14903_v4, %v14901_v14 }
 0x594   : > { %v12240_v11 = vpop.f32.mrf.mxu0 }
 0x595   : > { %v15037_v47 = vadd.f32 %v11989_v62, %v14845_v40  ;;  %v15050_v40 = vpop.f32.mrf.mxu1  ;;  %v15052_v34 = vadd.f32 %v12240_v11, %v8909_v17 }
 0x596   : > { %v9061_v10 = vpop.f32.mrf.mxu0 }
 0x597   : > { %v15047_v27 = vadd.f32 %v9061_v10, %v14852_v46  ;;  %v8917_v46 = vadd.f32 %v12020_v28, %v14864_v42  ;;  %v15072_v11 = vpop.f32.mrf.mxu1  ;;  %v9227_v42 = vmul.f32 %v15052_v34, %v15052_v34  ;;  %v8925_v10 = vadd.f32 %v12026_v19, %v14878_v43 }
 0x598   : > { %v12241_v21 = vpop.f32.mrf.mxu0 }
 0x599   : > { %v9225_v58 = vmul.f32 %v15047_v27, %v15047_v27  ;;  %v15064_v49 = vadd.f32 %v12241_v21, %v8912_v18  ;;  %v8920_v21 = vadd.f32 %v12023_v23, %v14871_v44  ;;  %v15089_v18 = vpop.f32.mrf.mxu1  ;;  %v12038_v44 = vadd.f32 %v14917_v7, %v14915_v38  ;;  %v15641_v7 = vld [vmem:[#allocation12_spill] sm:$0xff] }
 0x59a   : > { %v9064_v29 = vpop.f32.mrf.mxu0 }
 0x59b   : > { %v15055_v2 = vadd.f32 %v9064_v29, %v8904_v51  ;;  %v9228_v59 = vmul.f32 %v15064_v49, %v15064_v49  ;;  %v8928_v51 = vadd.f32 %v12029_v37, %v14885_v50  ;;  %v8933_v50 = vadd.f32 %v12032_v0, %v14892_v5 }
 0x59c   : > { %v12244_v56 = vpop.f32.mrf.mxu0  ;;  %v12041_v37 = vadd.f32 %v14924_v57, %v14922_v8 }
 0x59d   : > { %v9188_v62 = vadd.f32 %v15055_v2, %v15047_v27  ;;  %v9226_v35 = vmul.f32 %v15055_v2, %v15055_v2  ;;  %v15086_v17 = vadd.f32 %v12244_v56, %v8925_v10 }
 0x59e   : > { %v9077_v36 = vpop.f32.mrf.mxu0 }
 0x59f   : > { %v9189_v33 = vadd.f32 %v9188_v62, %v15052_v34  ;;  %v9257_v16 = vadd.f32 %v9226_v35, %v9225_v58  ;;  %v15077_v12 = vadd.f32 %v9077_v36, %v8917_v46  ;;  %v12035_v46 = vadd.f32 %v14910_v25, %v14908_v20 }
 0x5a0   : > { %v12245_v3 = vpop.f32.mrf.mxu0  ;;  %v9231_v20 = vmul.f32 %v15086_v17, %v15086_v17 }
 0x5a1   : > { %v9258_v32 = vadd.f32 %v9257_v16, %v9227_v42  ;;  %v9190_v28 = vadd.f32 %v9189_v33, %v15064_v49  ;;  %v9229_v43 = vmul.f32 %v15077_v12, %v15077_v12  ;;  %v15101_v58 = vadd.f32 %v12245_v3, %v8928_v51  ;;  %v15108_v42 = vpop.f32.mrf.mxu1  ;;  %v15642_v16 = vld [vmem:[#allocation4_spill] sm:$0xff] }
 0x5a2   : > { %v9080_v29 = vpop.f32.mrf.mxu0  ;;  %v12044_v33 = vadd.f32 %v15641_v7, %v14929_v41  ;;  %v8941_v0 = vadd.f32 %v12038_v44, %v15642_v16  ;;  %v15648_v7 = vld [vmem:[#allocation8_spill] sm:$0xff] }
 0x5a3   : > { %v9191_v14 = vadd.f32 %v9190_v28, %v15077_v12  ;;  %v9259_v4 = vadd.f32 %v9258_v32, %v9228_v59  ;;  %v15094_v19 = vadd.f32 %v9080_v29, %v8920_v21  ;;  %v9232_v8 = vmul.f32 %v15101_v58, %v15101_v58  ;;  %v15643_v59 = vld [vmem:[#allocation5_spill] sm:$0xff]  ;;  %v15644_v21 = vld [vmem:[#allocation6_spill] sm:$0xff] }
 0x5a4   : > { %v12248_v23 = vpop.f32.mrf.mxu0  ;;  %v8936_v32 = vadd.f32 %v12035_v46, %v15643_v59  ;;  %v8944_v51 = vadd.f32 %v12041_v37, %v15644_v21  ;;  %v15646_v46 = vld [vmem:[#allocation18_spill] sm:$0xff]  ;;  %v12053_v16 = vadd.f32 %v15648_v7, %v14950_v48 }
 0x5a5   : > { %v9260_v56 = vadd.f32 %v9259_v4, %v9229_v43  ;;  %v9192_v62 = vadd.f32 %v9191_v14, %v15094_v19  ;;  %v9230_v35 = vmul.f32 %v15094_v19, %v15094_v19  ;;  %v15122_v28 = vadd.f32 %v12248_v23, %v8941_v0  ;;  %v15125_v14 = vpop.f32.mrf.mxu1  ;;  %v15650_v59 = vld [vmem:[#allocation14_spill] sm:$0xff] }
 0x5a6   : > { %v9093_v36 = vpop.f32.mrf.mxu0  ;;  %v12050_v23 = vadd.f32 %v15646_v46, %v14943_v60 }
 0x5a7   : > { %v9193_v25 = vadd.f32 %v9192_v62, %v15086_v17  ;;  %v9261_v5 = vadd.f32 %v9260_v56, %v9230_v35  ;;  %v15113_v38 = vadd.f32 %v9093_v36, %v8933_v50  ;;  %v15645_v50 = vld [vmem:[#allocation7_spill] sm:$0xff]  ;;  %v15647_v35 = vld [vmem:[#allocation9_spill] sm:$0xff] }
 0x5a8   : > { %v12249_v10 = vpop.f32.mrf.mxu0  ;;  %v12047_v56 = vadd.f32 %v15645_v50, %v14936_v63  ;;  %v8949_v37 = vadd.f32 %v12044_v33, %v15647_v35  ;;  %v9235_v63 = vmul.f32 %v15122_v28, %v15122_v28  ;;  %v15652_v50 = vld [vmem:[#allocation16_spill] sm:$0xff] }
 0x5a9   : > { %v9262_v57 = vadd.f32 %v9261_v5, %v9231_v20  ;;  %v9194_v3 = vadd.f32 %v9193_v25, %v15101_v58  ;;  %v9233_v43 = vmul.f32 %v15113_v38, %v15113_v38  ;;  %v15137_v20 = vadd.f32 %v12249_v10, %v8944_v51  ;;  %v15649_v10 = vld [vmem:[#allocation20_spill] sm:$0xff] }
 0x5aa   : > { %v9096_v29 = vpop.f32.mrf.mxu0  ;;  %v8960_v46 = vadd.f32 %v12053_v16, %v15652_v50  ;;  %v15658_v50 = vld [vmem:[#allocation22_spill] sm:$0xff] }
 0x5ab   : > { %v9195_v41 = vadd.f32 %v9194_v3, %v15113_v38  ;;  %v9263_v4 = vadd.f32 %v9262_v57, %v9232_v8  ;;  %v15130_v44 = vadd.f32 %v9096_v29, %v8936_v32  ;;  %v15144_v8 = vpop.f32.mrf.mxu1  ;;  %v12056_v3 = vadd.f32 %v15649_v10, %v14957_v54 }
 0x5ac   : > { %v12252_v62 = vpop.f32.mrf.mxu0  ;;  %v8957_v32 = vadd.f32 %v12050_v23, %v15650_v59  ;;  %v9236_v48 = vmul.f32 %v15137_v20, %v15137_v20 }
 0x5ad   : > { %v9264_v36 = vadd.f32 %v9263_v4, %v9233_v43  ;;  %v9196_v25 = vadd.f32 %v9195_v41, %v15130_v44  ;;  %v9234_v5 = vmul.f32 %v15130_v44, %v15130_v44  ;;  %v15651_v41 = vld [vmem:[#allocation11_spill] sm:$0xff] }
 0x5ae   : > { %v9109_v0 = vpop.f32.mrf.mxu0  ;;  %v8952_v43 = vadd.f32 %v12047_v56, %v15651_v41  ;;  %v15158_v4 = vadd.f32 %v12252_v62, %v8957_v32  ;;  %v15654_v56 = vld [vmem:[#allocation19_spill] sm:$0xff]  ;;  %v15656_v32 = vld [vmem:[#allocation21_spill] sm:$0xff] }
 0x5af   : > { %v9197_v60 = vadd.f32 %v9196_v25, %v15122_v28  ;;  %v9265_v33 = vadd.f32 %v9264_v36, %v9234_v5  ;;  %v15149_v57 = vadd.f32 %v9109_v0, %v8949_v37  ;;  %v15161_v37 = vpop.f32.mrf.mxu1  ;;  %v15653_v5 = vld [vmem:[#allocation15_spill] sm:$0xff]  ;;  %v12062_v62 = vadd.f32 %v15654_v56, %v14971_v26 }
 0x5b0   : > { %v12253_v21 = vpop.f32.mrf.mxu0  ;;  %v12059_v7 = vadd.f32 %v15653_v5, %v14964_v39  ;;  %v9239_v39 = vmul.f32 %v15158_v4, %v15158_v4  ;;  %v15659_v5 = vld [vmem:[#allocation13_spill] sm:$0xff] }
 0x5b1   : > { %v9266_v51 = vadd.f32 %v9265_v33, %v9235_v63  ;;  %v9198_v29 = vadd.f32 %v9197_v60, %v15137_v20  ;;  %v9237_v23 = vmul.f32 %v15149_v57, %v15149_v57  ;;  %v15655_v63 = vld [vmem:[#allocation10_spill] sm:$0xff]  ;;  %v15173_v33 = vadd.f32 %v12253_v21, %v8960_v46  ;;  %v15180_v41 = vpop.f32.mrf.mxu1 }
 0x5b2   : > { %v9112_v35 = vpop.f32.mrf.mxu0  ;;  %v8965_v16 = vadd.f32 %v12056_v3, %v15655_v63  ;;  %v12068_v21 = vadd.f32 %v14990_v53, %v14985_v55  ;;  %v8973_v46 = vadd.f32 %v12062_v62, %v15658_v50  ;;  %v8968_v56 = vadd.f32 %v12059_v7, %v15659_v5 }
 0x5b3   : > { %v9199_v54 = vadd.f32 %v9198_v29, %v15149_v57  ;;  %v9267_v36 = vadd.f32 %v9266_v51, %v9236_v48  ;;  %v15166_v25 = vadd.f32 %v9112_v35, %v8952_v43  ;;  %v15657_v48 = vld [vmem:[#allocation24_spill] sm:$0xff]  ;;  %v12074_v7 = vadd.f32 %v15010_v61, %v15005_v13 }
 0x5b4   : > { %v12256_v0 = vpop.f32.mrf.mxu0  ;;  %v12065_v51 = vadd.f32 %v15657_v48, %v15656_v32  ;;  %v12071_v48 = vadd.f32 %v15000_v6, %v14995_v31 }
 0x5b5   : > { %v9268_v60 = vadd.f32 %v9267_v36, %v9237_v23  ;;  %v9200_v10 = vadd.f32 %v9199_v54, %v15166_v25  ;;  %v9238_v59 = vmul.f32 %v15166_v25, %v15166_v25  ;;  %v9240_v54 = vmul.f32 %v15173_v33, %v15173_v33 }
 0x5b6   : > { %v9125_v29 = vpop.f32.mrf.mxu0  ;;  %v15194_v63 = vadd.f32 %v12256_v0, %v8973_v46  ;;  %v12077_v46 = vadd.f32 %v15020_v52, %v15015_v24 }
 0x5b7   : > { %v9201_v26 = vadd.f32 %v9200_v10, %v15158_v4  ;;  %v9269_v3 = vadd.f32 %v9268_v60, %v9238_v59  ;;  %v15185_v43 = vadd.f32 %v9125_v29, %v8965_v16  ;;  %v15660_v10 = vld [vmem:[#allocation23_spill] sm:$0xff]  ;;  %v15197_v59 = vpop.f32.mrf.mxu1  ;;  %v15661_v29 = vld [vmem:[#allocation17_spill] sm:$0xff] }
 0x5b8   : > { %v12257_v35 = vpop.f32.mrf.mxu0  ;;  %v8976_v60 = vadd.f32 %v12065_v51, %v15660_v10  ;;  %v8981_v51 = vadd.f32 %v12068_v21, %v15661_v29  ;;  %v9243_v31 = vmul.f32 %v15194_v63, %v15194_v63  ;;  %v12080_v21 = vadd.f32 %v15030_v9, %v15025_v30  ;;  %v15663_v10 = vld [vmem:[#allocation26_spill] sm:$0xff] }
 0x5b9   : > { %v9270_v23 = vadd.f32 %v9269_v3, %v9239_v39  ;;  %v9202_v36 = vadd.f32 %v9201_v26, %v15173_v33  ;;  %v9241_v53 = vmul.f32 %v15185_v43, %v15185_v43 }
 0x5ba   : > { %v9128_v16 = vpop.f32.mrf.mxu0  ;;  %v15209_v26 = vadd.f32 %v12257_v35, %v8976_v60  ;;  %v15662_v35 = vld [vmem:[#allocation25_spill] sm:$0xff]  ;;  %v8984_v60 = vadd.f32 %v12071_v48, %v15663_v10  ;;  %v12086_v48 = vadd.f32 %v15089_v18, %v15072_v11  ;;  %v15667_v10 = vld [vmem:[#allocation30_spill] sm:$0xff] }
 0x5bb   : > { %v9203_v55 = vadd.f32 %v9202_v36, %v15185_v43  ;;  %v9271_v62 = vadd.f32 %v9270_v23, %v9240_v54  ;;  %v15202_v32 = vadd.f32 %v9128_v16, %v8968_v56  ;;  %v12096_v23 = vpop.f32.mrf.mxu1  ;;  %v8989_v36 = vadd.f32 %v12074_v7, %v15662_v35 }
 0x5bc   : > { %v12260_v0 = vpop.f32.mrf.mxu0  ;;  %v9244_v56 = vmul.f32 %v15209_v26, %v15209_v26 }
 0x5bd   : > { %v9272_v39 = vadd.f32 %v9271_v62, %v9241_v53  ;;  %v9204_v3 = vadd.f32 %v9203_v55, %v15202_v32  ;;  %v9242_v50 = vmul.f32 %v15202_v32, %v15202_v32  ;;  %v15228_v16 = vadd.f32 %v12260_v0, %v8989_v36  ;;  %v15664_v55 = vld [vmem:[#allocation27_spill] sm:$0xff]  ;;  %v12097_v29 = vpop.f32.mrf.mxu1 }
 0x5be   : > { %v9141_v54 = vpop.f32.mrf.mxu0  ;;  %v8992_v53 = vadd.f32 %v12077_v46, %v15664_v55 }
 0x5bf   : > { %v9205_v6 = vadd.f32 %v9204_v3, %v15194_v63  ;;  %v9273_v13 = vadd.f32 %v9272_v39, %v9242_v50  ;;  %v15219_v61 = vadd.f32 %v9141_v54, %v8981_v51  ;;  %v12083_v39 = vadd.f32 %v15050_v40, %v15041_v45  ;;  %v15665_v3 = vld [vmem:[#allocation28_spill] sm:$0xff]  ;;  %v12099_v36 = vpop.f32.mrf.mxu1 }
 0x5c0   : > { %v12261_v5 = vpop.f32.mrf.mxu0  ;;  %v8997_v50 = vadd.f32 %v12080_v21, %v15665_v3  ;;  %v9247_v45 = vmul.f32 %v15228_v16, %v15228_v16  ;;  %v12092_v21 = vadd.f32 %v15161_v37, %v15144_v8  ;;  %v12095_v3 = vadd.f32 %v15197_v59, %v15180_v41 }
 0x5c1   : > { %v9274_v24 = vadd.f32 %v9273_v13, %v9243_v31  ;;  %v9206_v52 = vadd.f32 %v9205_v6, %v15209_v26  ;;  %v9245_v30 = vmul.f32 %v15219_v61, %v15219_v61  ;;  %v15241_v54 = vadd.f32 %v12261_v5, %v8992_v53  ;;  %v15666_v5 = vld [vmem:[#allocation29_spill] sm:$0xff]  ;;  %v15668_v53 = vld [vmem:[#allocation32_spill] sm:$0xff] }
 0x5c2   : > { %v9144_v62 = vpop.f32.mrf.mxu0  ;;  %v12089_v13 = vadd.f32 %v15125_v14, %v15108_v42 }
 0x5c3   : > { %v9207_v51 = vadd.f32 %v9206_v52, %v15219_v61  ;;  %v9275_v9 = vadd.f32 %v9274_v24, %v9244_v56  ;;  %v15234_v7 = vadd.f32 %v9144_v62, %v8984_v60  ;;  %v9005_v56 = vadd.f32 %v12086_v48, %v15666_v5 }
 0x5c4   : > { %v12264_v0 = vpop.f32.mrf.mxu0  ;;  %v9248_v52 = vmul.f32 %v15241_v54, %v15241_v54  ;;  %v9000_v60 = vadd.f32 %v12083_v39, %v15667_v10  ;;  %v9008_v62 = vadd.f32 %v12089_v13, %v15668_v53  ;;  %v9013_v39 = vadd.f32 %v12092_v21, %v15018_v22 }
 0x5c5   : > { %v9276_v46 = vadd.f32 %v9275_v9, %v9245_v30  ;;  %v9208_v31 = vadd.f32 %v9207_v51, %v15234_v7  ;;  %v9246_v6 = vmul.f32 %v15234_v7, %v15234_v7  ;;  %v15260_v55 = vadd.f32 %v12264_v0, %v9005_v56  ;;  %v12100_v30 = vpop.f32.mrf.mxu1 }
 0x5c6   : > { %v9157_v35 = vpop.f32.mrf.mxu0 }
 0x5c7   : > { %v9209_v40 = vadd.f32 %v9208_v31, %v15228_v16  ;;  %v9277_v11 = vadd.f32 %v9276_v46, %v9246_v6  ;;  %v15251_v18 = vadd.f32 %v9157_v35, %v8997_v50  ;;  %v12098_v50 = vadd.f32 %v12097_v29, %v12096_v23 }
 0x5c8   : > { %v12265_v24 = vpop.f32.mrf.mxu0  ;;  %v12101_v35 = vadd.f32 %v12100_v30, %v12099_v36  ;;  %v9016_v36 = vadd.f32 %v12095_v3, %v15023_v15 }
 0x5c9   : > { %v9278_v42 = vadd.f32 %v9277_v11, %v9247_v45  ;;  %v9210_v14 = vadd.f32 %v9209_v40, %v15241_v54  ;;  %v9249_v8 = vmul.f32 %v15251_v18, %v15251_v18  ;;  %v15271_v31 = vadd.f32 %v12265_v24, %v9008_v62 }
 0x5ca   : > { %v9160_v51 = vpop.f32.mrf.mxu0  ;;  %v9251_v40 = vmul.f32 %v15260_v55, %v15260_v55  ;;  %v9021_v22 = vadd.f32 %v12098_v50, %v15028_v1  ;;  %v9024_v24 = vadd.f32 %v12101_v35, %v15037_v47 }
 0x5cb   : > { %v9211_v9 = vadd.f32 %v9210_v14, %v15251_v18  ;;  %v9279_v37 = vadd.f32 %v9278_v42, %v9248_v52  ;;  %v15266_v48 = vadd.f32 %v9160_v51, %v9000_v60  ;;  %v9252_v29 = vmul.f32 %v15271_v31, %v15271_v31 }
 0x5cc   : > { %v12268_v46 = vpop.f32.mrf.mxu0 }
 0x5cd   : > { %v9280_v0 = vadd.f32 %v9279_v37, %v9249_v8  ;;  %v9212_v6 = vadd.f32 %v9211_v9, %v15266_v48  ;;  %v9250_v13 = vmul.f32 %v15266_v48, %v15266_v48  ;;  %v15286_v56 = vadd.f32 %v12268_v46, %v9021_v22 }
 0x5ce   : > { %v9173_v45 = vpop.f32.mrf.mxu0 }
 0x5cf   : > { %v9213_v11 = vadd.f32 %v9212_v6, %v15260_v55  ;;  %v9281_v41 = vadd.f32 %v9280_v0, %v9250_v13  ;;  %v15279_v59 = vadd.f32 %v9173_v45, %v9013_v39  ;;  %v9255_v47 = vmul.f32 %v15286_v56, %v15286_v56 }
 0x5d0   : > { %v12269_v23 = vpop.f32.mrf.mxu0 }
 0x5d1   : > { %v9282_v21 = vadd.f32 %v9281_v41, %v9251_v40  ;;  %v9214_v5 = vadd.f32 %v9213_v11, %v15271_v31  ;;  %v9253_v14 = vmul.f32 %v15279_v59, %v15279_v59  ;;  %v15294_v53 = vadd.f32 %v12269_v23, %v9024_v24 }
 0x5d2   : > { %v9176_v52 = vpop.f32.mrf.mxu0 }
 0x5d3   : > { %v9215_v42 = vadd.f32 %v9214_v5, %v15279_v59  ;;  %v9283_v1 = vadd.f32 %v9282_v21, %v9252_v29  ;;  %v15292_v10 = vadd.f32 %v9176_v52, %v9016_v36  ;;  %v9256_v9 = vmul.f32 %v15294_v53, %v15294_v53 }
 0x5d5   : > { %v9284_v60 = vadd.f32 %v9283_v1, %v9253_v14  ;;  %v9216_v62 = vadd.f32 %v9215_v42, %v15292_v10  ;;  %v9254_v15 = vmul.f32 %v15292_v10, %v15292_v10 }
 0x5d7   : > { %v9217_v51 = vadd.f32 %v9216_v62, %v15286_v56  ;;  %v9285_v30 = vadd.f32 %v9284_v60, %v9254_v15 }
 0x5d9   : > { %v9218_v8 = vadd.f32 %v9217_v51, %v15294_v53  ;;  %v9286_v37 = vadd.f32 %v9285_v30, %v9255_v47 }
 0x5db   : > { %v9219_v3 = vrot.slane %v9218_v8, 4  ;;  %v9287_v50 = vadd.f32 %v9286_v37, %v9256_v9 }
 0x5dd   : > { %v9220_v46 = vadd.f32 %v9219_v3, %v9218_v8  ;;  %v9288_v39 = vrot.slane %v9287_v50, 4 }
 0x5df   : > { %v9221_v0 = vrot.slane %v9220_v46, 2  ;;  %v9289_v6 = vadd.f32 %v9288_v39, %v9287_v50 }
 0x5e1   : > { %v9222_v13 = vadd.f32 %v9221_v0, %v9220_v46  ;;  %v9290_v35 = vrot.slane %v9289_v6, 2 }
 0x5e3   : > { %v9223_v45 = vrot.slane %v9222_v13, 1  ;;  %v9291_v40 = vadd.f32 %v9290_v35, %v9289_v6 }
 0x5e5   : > { %v9224_v11 = vadd.f32 %v9223_v45, %v9222_v13  ;;  %v9292_v41 = vrot.slane %v9291_v40, 1 }
 0x5e7   : > { %v9293_v22 = vadd.f32 %v9292_v41, %v9291_v40  ;;  %v15305_v23 = vmul.f32 0.00390625, %v9224_v11 }
 0x5e9   : > { %v9295_v29 = vmul.f32 0.00390625, %v9293_v22  ;;  %v9296_v21 = vmul.f32 %v15305_v23, %v15305_v23  ;;  %v9327_v5 = vsub.f32 %v15292_v10, %v15305_v23  ;;  %v9307_v24 = vsub.f32 %v15130_v44, %v15305_v23 }
 0x5ea   : > { %v9310_v42 = vsub.f32 %v15149_v57, %v15305_v23  ;;  %v9311_v14 = vsub.f32 %v15166_v25, %v15305_v23  ;;  %v9312_v1 = vsub.f32 %v15158_v4, %v15305_v23  ;;  %v9313_v60 = vsub.f32 %v15173_v33, %v15305_v23 }
 0x5eb   : > { %v9297_v36 = vsub.f32 %v9295_v29, %v9296_v21  ;;  %v9314_v10 = vsub.f32 %v15185_v43, %v15305_v23  ;;  %v9315_v62 = vsub.f32 %v15202_v32, %v15305_v23  ;;  %v9316_v44 = vsub.f32 %v15194_v63, %v15305_v23 }
 0x5ec   : > { %v9317_v57 = vsub.f32 %v15209_v26, %v15305_v23  ;;  %v9318_v25 = vsub.f32 %v15219_v61, %v15305_v23  ;;  %v9319_v4 = vsub.f32 %v15234_v7, %v15305_v23  ;;  %v9320_v33 = vsub.f32 %v15228_v16, %v15305_v23 }
 0x5ed   : > { %v9330_v52 = vadd.f32 1e-05, %v9297_v36  ;;  %v9321_v43 = vsub.f32 %v15241_v54, %v15305_v23  ;;  %v9322_v32 = vsub.f32 %v15251_v18, %v15305_v23  ;;  %v9323_v63 = vsub.f32 %v15266_v48, %v15305_v23 }
 0x5ee   : > { %v9324_v26 = vsub.f32 %v15260_v55, %v15305_v23  ;;  %v9325_v61 = vsub.f32 %v15271_v31, %v15305_v23  ;;  %v9326_v7 = vsub.f32 %v15279_v59, %v15305_v23  ;;  %v9328_v16 = vsub.f32 %v15286_v56, %v15305_v23 }
 0x5ef   : > { %12864 = vrsqrt.f32 %v9330_v52  ;;  %v9329_v54 = vsub.f32 %v15294_v53, %v15305_v23  ;;  %v9298_v18 = vsub.f32 %v15047_v27, %v15305_v23  ;;  %v9299_v48 = vsub.f32 %v15055_v2, %v15305_v23 }
 0x5f0   : > { %v9300_v55 = vsub.f32 %v15052_v34, %v15305_v23  ;;  %v9301_v31 = vsub.f32 %v15064_v49, %v15305_v23  ;;  %v9302_v59 = vsub.f32 %v15077_v12, %v15305_v23  ;;  %v9303_v56 = vsub.f32 %v15094_v19, %v15305_v23 }
 0x5f1   : > { %v9304_v53 = vsub.f32 %v15086_v17, %v15305_v23  ;;  %v9305_v27 = vsub.f32 %v15101_v58, %v15305_v23  ;;  %v9306_v2 = vsub.f32 %v15113_v38, %v15305_v23  ;;  %v9308_v34 = vsub.f32 %v15122_v28, %v15305_v23 }
 0x5f2   : > { %v9309_v49 = vsub.f32 %v15137_v20, %v15305_v23 }
 0x5fc   : > { %v12865_v15 = vpop.eup %12864 }
 0x5fd   : > { %v15373_v12 = vmul.f32 %v12865_v15, %v9327_v5  ;;  %v9332_v47 = vmul.f32 %v12865_v15, %v9298_v18  ;;  %v9333_v19 = vmul.f32 %v12865_v15, %v9299_v48  ;;  %v9334_v51 = vmul.f32 %v12865_v15, %v9300_v55  ;;  %v9404_v48 = vld [vmem:[%s15552_s7 + $0x30] sm:$0xff] }
 0x5fe   : > { %v9335_v30 = vmul.f32 %v12865_v15, %v9301_v31  ;;  %v9336_v17 = vmul.f32 %v12865_v15, %v9302_v59  ;;  %v9337_v9 = vmul.f32 %v12865_v15, %v9303_v56  ;;  %v9338_v8 = vmul.f32 %v12865_v15, %v9304_v53  ;;  %v9405_v56 = vld [vmem:[%s15552_s7 + $0x38] sm:$0xff] }
 0x5ff   : > { %v9339_v37 = vmul.f32 %v12865_v15, %v9305_v27  ;;  %v9340_v58 = vmul.f32 %v12865_v15, %v9306_v2  ;;  %v9341_v3 = vmul.f32 %v12865_v15, %v9307_v24  ;;  %v15375_v50 = vmul.f32 %v12865_v15, %v9308_v34  ;;  %v9406_v2 = vld [vmem:[%s15552_s7 + $0x40] sm:$0xff] }
 0x600   : > { %v15377_v38 = vmul.f32 %v12865_v15, %v9309_v49  ;;  %v15379_v28 = vmul.f32 %v12865_v15, %v9310_v42  ;;  %v15381_v46 = vmul.f32 %v12865_v15, %v9311_v14  ;;  %v15383_v20 = vmul.f32 %v12865_v15, %v9312_v1  ;;  %v9398_v14 = vld [vmem:[%s15552_s7] sm:$0xff]  ;;  %v9399_v1 = vld [vmem:[%s15552_s7 + $0x8] sm:$0xff] }
 0x601   : > { %v15385_v39 = vmul.f32 %v12865_v15, %v9313_v60  ;;  %v15387_v0 = vmul.f32 %v12865_v15, %v9314_v10  ;;  %v15389_v6 = vmul.f32 %v12865_v15, %v9315_v62  ;;  %v15391_v13 = vmul.f32 %v12865_v15, %v9316_v44  ;;  %v9400_v44 = vld [vmem:[%s15552_s7 + $0x10] sm:$0xff] }
 0x602   : > { %v15393_v35 = vmul.f32 %v12865_v15, %v9317_v57  ;;  %v15395_v45 = vmul.f32 %v12865_v15, %v9318_v25  ;;  %v15397_v40 = vmul.f32 %v12865_v15, %v9319_v4  ;;  %v15399_v11 = vmul.f32 %v12865_v15, %v9320_v33  ;;  %v9401_v25 = vld [vmem:[%s15552_s7 + $0x18] sm:$0xff] }
 0x603   : > { %v15401_v41 = vmul.f32 %v12865_v15, %v9321_v43  ;;  %v15403_v22 = vmul.f32 %v12865_v15, %v9322_v32  ;;  %v15405_v23 = vmul.f32 %v12865_v15, %v9323_v63  ;;  %v15407_v29 = vmul.f32 %v12865_v15, %v9324_v26  ;;  %v9402_v32 = vld [vmem:[%s15552_s7 + $0x20] sm:$0xff] }
 0x604   : > { %v15409_v21 = vmul.f32 %v12865_v15, %v9325_v61  ;;  %v15411_v5 = vmul.f32 %v12865_v15, %v9326_v7  ;;  %v15413_v36 = vmul.f32 %v12865_v15, %v9328_v16  ;;  %v15415_v24 = vmul.f32 %v12865_v15, %v9329_v54  ;;  %v9403_v7 = vld [vmem:[%s15552_s7 + $0x28] sm:$0xff] }
 0x605   : > { %v9364_v52 = vmax.f32 %v9332_v47, 0.0  ;;  %v9365_v42 = vmax.f32 %v9333_v19, 0.0  ;;  %v9366_v60 = vmax.f32 %v9334_v51, 0.0  ;;  %v9367_v57 = vmax.f32 %v9335_v30, 0.0  ;;  %v9407_v19 = vld [vmem:[%s15552_s7 + $0x48] sm:$0xff] }
 0x606   : > { %v9368_v4 = vmax.f32 %v9336_v17, 0.0  ;;  %v9369_v63 = vmax.f32 %v9337_v9, 0.0  ;;  %v9370_v16 = vmax.f32 %v9338_v8, 0.0  ;;  %v9371_v55 = vmax.f32 %v9339_v37, 0.0  ;;  %v9408_v9 = vld [vmem:[%s15552_s7 + $0x50] sm:$0xff] }
 0x607   : > { %v9430_v10 = vmul.f32 %v9398_v14, %v9364_v52  ;;  %v9431_v62 = vmul.f32 %v9399_v1, %v9365_v42  ;;  %v9432_v33 = vmul.f32 %v9400_v44, %v9366_v60  ;;  %v9433_v26 = vmul.f32 %v9401_v25, %v9367_v57 }
 0x608   : > { %v9434_v54 = vmul.f32 %v9402_v32, %v9368_v4  ;;  %v9435_v31 = vmul.f32 %v9403_v7, %v9369_v63  ;;  %v9372_v53 = vmax.f32 %v9340_v58, 0.0  ;;  %v9436_v15 = vmul.f32 %v9404_v48, %v9370_v16 }
 0x609   : > { %v9462_v43 = vadd.f32 %v9431_v62, %v9430_v10  ;;  %v9373_v34 = vmax.f32 %v9341_v3, 0.0  ;;  %v9437_v49 = vmul.f32 %v9405_v56, %v9371_v55  ;;  %v9374_v51 = vmax.f32 %v15375_v50, 0.0  ;;  %v9409_v3 = vld [vmem:[%s15552_s7 + $0x58] sm:$0xff]  ;;  %v9410_v50 = vld [vmem:[%s15552_s7 + $0x60] sm:$0xff] }
 0x60a   : > { %v9438_v30 = vmul.f32 %v9406_v2, %v9372_v53  ;;  %v9375_v8 = vmax.f32 %v15377_v38, 0.0  ;;  %v9376_v52 = vmax.f32 %v15379_v28, 0.0  ;;  %v9377_v1 = vmax.f32 %v15381_v46, 0.0  ;;  %v9411_v38 = vld [vmem:[%s15552_s7 + $0x68] sm:$0xff]  ;;  %v9412_v28 = vld [vmem:[%s15552_s7 + $0x70] sm:$0xff]  ;;  %v9413_v46 = vld [vmem:[%s15552_s7 + $0x78] sm:$0xff] }
 0x60b   : > { %v9463_v61 = vadd.f32 %v9462_v43, %v9432_v33  ;;  %v9439_v37 = vmul.f32 %v9407_v19, %v9373_v34  ;;  %v9440_v42 = vmul.f32 %v9408_v9, %v9374_v51  ;;  %v9378_v62 = vmax.f32 %v15383_v20, 0.0  ;;  %v9414_v20 = vld [vmem:[%s15552_s7 + $0x80] sm:$0xff] }
 0x60c   : > { %v9441_v60 = vmul.f32 %v9409_v3, %v9375_v8  ;;  %v9442_v44 = vmul.f32 %v9410_v50, %v9376_v52  ;;  %v9379_v25 = vmax.f32 %v15385_v39, 0.0  ;;  %v9443_v4 = vmul.f32 %v9411_v38, %v9377_v1  ;;  %v9415_v39 = vld [vmem:[%s15552_s7 + $0x88] sm:$0xff] }
 0x60d   : > { %v9464_v18 = vadd.f32 %v9463_v61, %v9433_v26  ;;  %v9380_v43 = vmax.f32 %v15387_v0, 0.0  ;;  %v9444_v32 = vmul.f32 %v9412_v28, %v9378_v62  ;;  %v9381_v26 = vmax.f32 %v15389_v6, 0.0  ;;  %v9416_v0 = vld [vmem:[%s15552_s7 + $0x90] sm:$0xff]  ;;  %v9417_v6 = vld [vmem:[%s15552_s7 + $0x98] sm:$0xff] }
 0x60e   : > { %v9445_v61 = vmul.f32 %v9413_v46, %v9379_v25  ;;  %v9382_v16 = vmax.f32 %v15391_v13, 0.0  ;;  %v9383_v48 = vmax.f32 %v15393_v35, 0.0  ;;  %v9418_v13 = vld [vmem:[%s15552_s7 + $0xa0] sm:$0xff]  ;;  %v9419_v35 = vld [vmem:[%s15552_s7 + $0xa8] sm:$0xff]  ;;  %v9386_v34 = vmax.f32 %v15399_v11, 0.0 }
 0x60f   : > { %v9465_v59 = vadd.f32 %v9464_v18, %v9434_v54  ;;  %v9446_v54 = vmul.f32 %v9414_v20, %v9380_v43  ;;  %v9447_v55 = vmul.f32 %v9415_v39, %v9381_v26  ;;  %v9387_v19 = vmax.f32 %v15401_v41, 0.0  ;;  %v9422_v11 = vld [vmem:[%s15552_s7 + $0xc0] sm:$0xff]  ;;  %v9423_v41 = vld [vmem:[%s15552_s7 + $0xc8] sm:$0xff] }
 0x610   : > { %v9448_v56 = vmul.f32 %v9416_v0, %v9382_v16  ;;  %v9390_v52 = vmax.f32 %v15407_v29, 0.0  ;;  %v9391_v50 = vmax.f32 %v15409_v21, 0.0  ;;  %v9426_v29 = vld [vmem:[%s15552_s7 + $0xe0] sm:$0xff]  ;;  %v9427_v21 = vld [vmem:[%s15552_s7 + $0xe8] sm:$0xff]  ;;  %v9394_v25 = vmax.f32 %v15413_v36, 0.0 }
 0x611   : > { %v9466_v27 = vadd.f32 %v9465_v59, %v9435_v31  ;;  %v9384_v59 = vmax.f32 %v15395_v45, 0.0  ;;  %v9420_v45 = vld [vmem:[%s15552_s7 + $0xb0] sm:$0xff]  ;;  %v9395_v43 = vmax.f32 %v15415_v24, 0.0 }
 0x612   : > { %v9452_v9 = vmul.f32 %v9420_v45, %v9386_v34 }
 0x613   : > { %v9467_v47 = vadd.f32 %v9466_v27, %v9436_v15  ;;  %v9385_v15 = vmax.f32 %v15397_v40, 0.0  ;;  %v9449_v27 = vmul.f32 %v9417_v6, %v9383_v48  ;;  %v9421_v40 = vld [vmem:[%s15552_s7 + $0xb8] sm:$0xff]  ;;  %v9396_v48 = vlaneseq }
 0x615   : > { %v9468_v17 = vadd.f32 %v9467_v47, %v9437_v49  ;;  %v9450_v49 = vmul.f32 %v9418_v13, %v9384_v59  ;;  %v9451_v51 = vmul.f32 %v9419_v35, %v9385_v15  ;;  %v9397_v24 = vand.u32 127, %v9396_v48 }
 0x617   : > { %v9469_v58 = vadd.f32 %v9468_v17, %v9438_v30  ;;  %v9388_v17 = vmax.f32 %v15403_v22, 0.0  ;;  %v9424_v22 = vld [vmem:[%s15552_s7 + $0xd0] sm:$0xff]  ;;  %vm9501_vm0 = vcmp.eq.s32.totalorder %v9397_v24, 0 }
 0x618   : > { %v9456_v38 = vmul.f32 %v9424_v22, %v9390_v52 }
 0x619   : > { %v9470_v14 = vadd.f32 %v9469_v58, %v9439_v37  ;;  %v9389_v37 = vmax.f32 %v15405_v23, 0.0  ;;  %v9453_v58 = vmul.f32 %v9421_v40, %v9387_v19  ;;  %v9425_v23 = vld [vmem:[%s15552_s7 + $0xd8] sm:$0xff] }
 0x61b   : > { %v9471_v10 = vadd.f32 %v9470_v14, %v9440_v42  ;;  %v9454_v42 = vmul.f32 %v9422_v11, %v9388_v17  ;;  %v9455_v1 = vmul.f32 %v9423_v41, %v9389_v37 }
 0x61d   : > { %v9472_v57 = vadd.f32 %v9471_v10, %v9441_v60  ;;  %v9392_v10 = vmax.f32 %v15411_v5, 0.0  ;;  %v9428_v5 = vld [vmem:[%s15552_s7 + $0xf0] sm:$0xff] }
 0x61f   : > { %v9473_v33 = vadd.f32 %v9472_v57, %v9442_v44  ;;  %v9393_v44 = vmax.f32 %v15373_v12, 0.0  ;;  %v9457_v57 = vmul.f32 %v9425_v23, %v9391_v50  ;;  %v9429_v12 = vld [vmem:[%s15552_s7 + $0xf8] sm:$0xff] }
 0x620   : > { %v9461_v26 = vmul.f32 %v9429_v12, %v9395_v43 }
 0x621   : > { %v9474_v63 = vadd.f32 %v9473_v33, %v9443_v4  ;;  %v9458_v4 = vmul.f32 %v9426_v29, %v9392_v10  ;;  %v9459_v46 = vmul.f32 %v9427_v21, %v9393_v44 }
 0x623   : > { %v9475_v7 = vadd.f32 %v9474_v63, %v9444_v32  ;;  %v9460_v63 = vmul.f32 %v9428_v5, %v9394_v25 }
 0x625   : > { %v9476_v18 = vadd.f32 %v9475_v7, %v9445_v61 }
 0x627   : > { %v9477_v31 = vadd.f32 %v9476_v18, %v9446_v54 }
 0x629   : > { %v9478_v53 = vadd.f32 %v9477_v31, %v9447_v55  ;;  %v9503_v55 = vld [vmem:[%s15553_s8] sm:$0x1] }
 0x62b   : > { %v9479_v2 = vadd.f32 %v9478_v53, %v9448_v56 }
 0x62d   : > { %v9480_v47 = vadd.f32 %v9479_v2, %v9449_v27 }
 0x62f   : > { %v9481_v30 = vadd.f32 %v9480_v47, %v9450_v49 }
 0x631   : > { %v9482_v8 = vadd.f32 %v9481_v30, %v9451_v51 }
 0x633   : > { %v9483_v3 = vadd.f32 %v9482_v8, %v9452_v9 }
 0x635   : > { %v9484_v14 = vadd.f32 %v9483_v3, %v9453_v58 }
 0x637   : > { %v9485_v60 = vadd.f32 %v9484_v14, %v9454_v42 }
 0x639   : > { %v9486_v62 = vadd.f32 %v9485_v60, %v9455_v1 }
 0x63b   : > { %v9487_v28 = vadd.f32 %v9486_v62, %v9456_v38 }
 0x63d   : > { %v9488_v33 = vadd.f32 %v9487_v28, %v9457_v57 }
 0x63f   : > { %v9489_v32 = vadd.f32 %v9488_v33, %v9458_v4 }
 0x641   : > { %v9490_v20 = vadd.f32 %v9489_v32, %v9459_v46 }
 0x643   : > { %v9491_v61 = vadd.f32 %v9490_v20, %v9460_v63 }
 0x645   : > { %v9492_v36 = vadd.f32 %v9491_v61, %v9461_v26 }
 0x647   : > { %v9493_v7 = vrot.slane %v9492_v36, 4 }
 0x649   : > { %v9494_v39 = vadd.f32 %v9493_v7, %v9492_v36 }
 0x64b   : > { %v9495_v16 = vrot.slane %v9494_v39, 2 }
 0x64d   : > { %v9496_v54 = vadd.f32 %v9495_v16, %v9494_v39 }
 0x64f   : > { %v9497_v18 = vrot.slane %v9496_v54, 1 }
 0x651   : > { %v9498_v0 = vadd.f32 %v9497_v18, %v9496_v54 }
 0x653   : > { %9499 = vadd.xlane.f32.xlu0 %v9498_v0 }
 0x6dc   : > { %v9500_v31 = vpop.xlane.xlu0 %9499 }
 0x6dd   : > { %v9502_v6 = vsel %vm9501_vm0, %v9500_v31, 0.0 }
 0x6de   : > { %v9504_v59 = vadd.f32 %v9503_v55, %v9502_v6 }
 0x6e0   : > { %9505 = vst [vmem:[%s328_s13] sm:$0x1] %v9504_v59 }
 0x6e1 PF: > { %s19_s30 = sadd.s32 1, %s12873_s30  }
 0x6e2   : > { %p16_p4 = scmp.ge.s32.totalorder %s19_s30, 4  }
 0x6e4   :  { %18 = sbr.rel (!%p16_p4) target bundleno = 1 (0x1), region = 88 }

</bundles_post_ra>
